<compile_context>
chip_gen: v6e
topology: v6e:2x2x1
jax: 0.10.0
libtpu: 0.0.40
codegen_flags: <defaults>
</compile_context>

<pallas_src>
import functools
import numpy as np
import jax
import jax.numpy as jnp
from jax.experimental import pallas as pl
from jax.experimental.pallas import tpu as pltpu

# ---------------- scaled-down SimdBlock configuration ----------------------
H = 32            # hidden_channels
OUT = 32          # out_channels (== H so update_v output feeds the GRU)
INT_EMB = 16      # int_emb_size
BAS = 8           # basis_emb_size
OUT_EMB = 64      # out_emb_channels
NS = 7            # num_spherical
NR = 6            # num_radial
NUM_LAYERS = 2
N_BEFORE = 1
N_AFTER = 2
N_OUT_LAYERS = 2
FEATURE_LIST = [5, 4]
CUTOFF = 5.0
ENV_EXP = 5
N_RES = 2 * N_BEFORE + 1 + 2 * N_AFTER     # residual-weight count per layer

_VMEM = pl.BlockSpec(memory_space=pltpu.MemorySpace.VMEM)
_BF16 = jnp.bfloat16
_F32 = jnp.float32

# =========================== in-kernel helpers ==============================

def _swish(x):
    return x * jax.nn.sigmoid(x)


def _mm(a, b):
    # both operands already in the intended dtype (bf16 weights / f32 scatter)
    return jnp.dot(a, b, preferred_element_type=jnp.float32)


def _mmb(a_f32, b_bf16):
    # activation (f32) x pre-cast bf16 weight, f32 accumulation
    return jnp.dot(a_f32.astype(_BF16), b_bf16, preferred_element_type=jnp.float32)

# =========================== the fused mega-kernel ==========================

def _simd_block_kernel(
    # graph data / structure constants (padded row counts)
    x_ref, rbf_ref, sbf_ref,
    ohi_ref, ohj_ref, ohne_ref, goh_ref, soh_ref,
    gsc_ref, ngo_ref, ohp_ref, cnt_ref, pseg_ref, bseg_ref,
    # init_e params
    ie_rbf0_w_ref, ie_rbf0_b_ref, ie_wi_ref, ie_wj_ref, ie_wr_ref,
    ie_lin_b_ref, ie_rbf1_w_ref,
    # update_v params (stacked: init_v + NUM_LAYERS)
    uv_up_w_ref, uv_up_b_ref, uv_lins_w_ref, uv_lins_b_ref, uv_lin_w_ref,
    # update_e params (stacked: NUM_LAYERS, basis chains pre-folded)
    ue_kj_w_ref, ue_kj_b_ref, ue_rbf_w_ref, ue_sbf_w_ref, ue_down_ref,
    ue_up_ref, ue_res_w_ref, ue_res_b_ref, ue_rbfo_ref,
    # GRU params (separate per-gate (H,H) weights: fwd r,z,n | bwd r,z,n)
    gw_ih_ref, gb_ih_ref, gw_hh_ref, gb_hh_ref, gbias_ref,
    # output
    out_ref,
    *, G, G_pad, maxN, S):
  f32 = jnp.float32
  bf16 = jnp.bfloat16

  x_b = x_ref[...].astype(bf16)              # (Np, H)   node embeddings
  rbf_b = rbf_ref[...].astype(bf16)          # (Ep, NR)
  sbf_b = sbf_ref[...].astype(bf16)          # (Tp, NS*NR)
  ohne = ohne_ref[...]                       # (Np, Ep)  f32 scatter-sum edges->nodes
  soh = soh_ref[...]                         # (Ep, Tp)  f32 scatter-sum triplets->edges
  goh = goh_ref[...]                         # (Tp, Ep)  bf16 gather edges->triplets

  # ---------------- init_e --------------------------------------------------
  rbf0 = _swish(_mm(rbf_b, ie_rbf0_w_ref[...]) + ie_rbf0_b_ref[...])
  xi = _mm(ohi_ref[...], x_b)                # exact one-hot gather x[i] (bf16 MXU)
  xj = _mm(ohj_ref[...], x_b)                # exact one-hot gather x[j]
  # concat([xi, xj, rbf0]) @ W  ==  xi@Wi + xj@Wj + rbf0@Wr  (no lane concat)
  e1 = _swish(_mmb(xi, ie_wi_ref[...]) + _mmb(xj, ie_wj_ref[...])
              + _mmb(rbf0, ie_wr_ref[...]) + ie_lin_b_ref[...])
  e2 = _mm(rbf_b, ie_rbf1_w_ref[...]) * e1

  # ---------------- stacked parameter loads ---------------------------------
  uv_up_w = uv_up_w_ref[...]; uv_up_b = uv_up_b_ref[...]
  uv_lins_w = uv_lins_w_ref[...]; uv_lins_b = uv_lins_b_ref[...]
  uv_lin_w = uv_lin_w_ref[...]
  ue_kj_w = ue_kj_w_ref[...]; ue_kj_b = ue_kj_b_ref[...]
  ue_rbf_w = ue_rbf_w_ref[...]; ue_sbf_w = ue_sbf_w_ref[...]
  ue_down = ue_down_ref[...]; ue_up = ue_up_ref[...]
  ue_res_w = ue_res_w_ref[...]; ue_res_b = ue_res_b_ref[...]
  ue_rbfo = ue_rbfo_ref[...]

  def update_v(e2_val, v_prev, k):
    v = _mm(ohne, e2_val)                                   # scatter-sum (f32)
    v = _mmb(v, uv_up_w[k]) + uv_up_b[k:k + 1, :]           # lin_up (no act)
    for li in range(N_OUT_LAYERS):
      q = k * N_OUT_LAYERS + li
      v = _swish(_mmb(v, uv_lins_w[q]) + uv_lins_b[q:q + 1, :])
    return _mmb(v, uv_lin_w[k]) + v_prev

  def update_e(e1_val, l):
    x_kj = _swish(_mmb(e1_val, ue_kj_w[l]) + ue_kj_b[l:l + 1, :])
    x_kj = x_kj * _mm(rbf_b, ue_rbf_w[l])                   # folded rbf1@rbf2
    x_kj = _swish(_mmb(x_kj, ue_down[l]))                   # (Ep, INT)
    s = _mm(sbf_b, ue_sbf_w[l])                             # folded sbf1@sbf2 (Tp, INT)
    x_g = _mm(goh, x_kj.astype(bf16))                       # triplet gather (bf16 MXU)
    agg = _mm(soh, x_g * s)                                 # scatter-sum (f32)
    h = _swish(_mmb(agg, ue_up[l]))
    base = l * N_RES

    def res_layer(v, k):
      h1 = _swish(_mmb(v, ue_res_w[base + k]) + ue_res_b[base + k:base + k + 1, :])
      h2 = _swish(_mmb(h1, ue_res_w[base + k + 1])
                  + ue_res_b[base + k + 1:base + k + 2, :])
      return v + h2

    k = 0
    for _ in range(N_BEFORE):
      h = res_layer(h, k); k += 2
    h = _swish(_mmb(h, ue_res_w[base + k]) + ue_res_b[base + k:base + k + 1, :])
    k += 1
    for _ in range(N_AFTER):
      h = res_layer(h, k); k += 2
    return h, _mm(rbf_b, ue_rbfo[l]) * h

  # ---------------- init_v + (update_e, update_v) layer loop ----------------
  # TODO(synk): reference forward zips with undefined self.update_us; loop over
  # (update_e, update_v) pairs as the __init__ implies.
  n_pad = x_b.shape[0]
  v = update_v(e2, jnp.zeros((n_pad, OUT), f32), 0)
  for l in range(NUM_LAYERS):
    e1, e2 = update_e(e1, l)
    v = update_v(e2, v, l + 1)

  # ---------------- bidirectional GRU (fully resident) ----------------------
  bseg = bseg_ref[...]                       # (Np,1) int32, -1 on padded nodes
  h0_rows = []
  for g in range(G):                         # segment-max h0 (raw v, pre-relu)
    h0_rows.append(jnp.max(jnp.where(bseg == g, v, -jnp.inf),
                           axis=0, keepdims=True))
  if G_pad > G:
    h0_rows.append(jnp.zeros((G_pad - G, OUT), f32))
  h0 = jnp.concatenate(h0_rows, axis=0)      # (G_pad, H)

  message = jax.nn.relu(v + gbias_ref[...])
  # scatter message into timestep-major padded layout: row t*G_pad + g
  padded = _mm(gsc_ref[...], message.astype(bf16)).astype(bf16)   # (maxN*G_pad, H)

  gw_ih = gw_ih_ref[...]; gb_ih = gb_ih_ref[...]
  gw_hh = gw_hh_ref[...]; gb_hh = gb_hh_ref[...]

  # hoisted input projections: all timesteps, both directions, 3 gates each
  gx = [_mm(padded, gw_ih[g]) + gb_ih[g:g + 1, :] for g in range(6)]

  def gru_step(h, t, goff):                  # goff: 0 = fwd gates, 3 = bwd gates
    h_b = h.astype(bf16)
    gh_r = _mm(h_b, gw_hh[goff + 0]) + gb_hh[goff + 0:goff + 1, :]
    gh_z = _mm(h_b, gw_hh[goff + 1]) + gb_hh[goff + 1:goff + 2, :]
    gh_n = _mm(h_b, gw_hh[goff + 2]) + gb_hh[goff + 2:goff + 3, :]
    lo = t * G_pad                           # sublane-aligned static slice
    r = jax.nn.sigmoid(gx[goff + 0][lo:lo + G_pad, :] + gh_r)
    z = jax.nn.sigmoid(gx[goff + 1][lo:lo + G_pad, :] + gh_z)
    n = jnp.tanh(gx[goff + 2][lo:lo + G_pad, :] + r * gh_n)
    return (1.0 - z) * n + z * h

  hf = h0
  fwd_states = []
  for t in range(maxN):
    hf = gru_step(hf, t, 0)
    fwd_states.append(hf)
  hb = h0
  bwd_states = [None] * maxN
  for t in range(maxN - 1, -1, -1):
    hb = gru_step(hb, t, 3)
    bwd_states[t] = hb

  fwd_all = jnp.concatenate(fwd_states, axis=0)     # (maxN*G_pad, H) t-major
  bwd_all = jnp.concatenate(bwd_states, axis=0)
  ngo = ngo_ref[...]                                # (Np, maxN*G_pad) f32
  node_fwd = _mm(ngo, fwd_all)                      # exact gather back to nodes
  node_bwd = _mm(ngo, bwd_all)
  v2h = jnp.concatenate([node_fwd, node_bwd], axis=1)   # (Np, 2H)

  # ---------------- readout: segment mean + segment max ---------------------
  mean = _mm(ohp_ref[...], v2h) / cnt_ref[...]
  pseg = pseg_ref[...]
  mx_rows = []
  for s_id in range(S):
    mx_rows.append(jnp.max(jnp.where(pseg == s_id, v2h, -jnp.inf),
                           axis=0, keepdims=True))
  mx = jnp.concatenate(mx_rows, axis=0)
  out_ref[...] = jnp.concatenate([mean, mx], axis=1)    # (S, 4H) = 128 lanes

# =========================== parameters ====================================

_KEYS = iter(jax.random.split(jax.random.PRNGKey(1), 512))


def _W(shape):
    fi, fo = shape
    s = float(np.sqrt(6.0 / (fi + fo)))
    return jax.random.uniform(next(_KEYS), shape, jnp.float32, -s, s)


def _bf(w):
    return w.astype(_BF16)


def make_init_e_params():
    lin_w = _W((3 * H, H))
    return dict(
        emb_tables=[_W((v, H - 1)) for v in FEATURE_LIST],
        lin_wi=_bf(lin_w[:H]), lin_wj=_bf(lin_w[H:2 * H]),
        lin_wr=_bf(lin_w[2 * H:]),
        lin_b=jnp.zeros((1, H), jnp.float32),
        rbf0_w=_bf(_W((NR, H))), rbf0_b=jnp.zeros((1, H), jnp.float32),
        rbf1_w=_bf(_W((NR, H))))


def make_update_v_params():
    return dict(
        up_w=_W((H, OUT_EMB)), up_b=jnp.zeros((OUT_EMB,), jnp.float32),
        lins_w=[_W((OUT_EMB, OUT_EMB)) for _ in range(N_OUT_LAYERS)],
        lins_b=[jnp.zeros((OUT_EMB,), jnp.float32) for _ in range(N_OUT_LAYERS)],
        lin_w=_W((OUT_EMB, OUT)))


def stack_update_v(parts):
    return dict(
        up_w=_bf(jnp.stack([p['up_w'] for p in parts])),
        up_b=jnp.stack([p['up_b'] for p in parts]),
        lins_w=_bf(jnp.stack([w for p in parts for w in p['lins_w']])),
        lins_b=jnp.stack([b for p in parts for b in p['lins_b']]),
        lin_w=_bf(jnp.stack([p['lin_w'] for p in parts])))


def make_update_e_params():
    return dict(
        rbf1=_W((NR, BAS)), rbf2=_W((BAS, H)),
        sbf1=_W((NS * NR, BAS)), sbf2=_W((BAS, INT_EMB)),
        rbf=_W((NR, H)),
        kj_w=_W((H, H)), kj_b=jnp.zeros((H,), jnp.float32),
        down=_W((H, INT_EMB)), up=_W((INT_EMB, H)),
        res_w=[_W((H, H)) for _ in range(N_RES)],
        res_b=[jnp.zeros((H,), jnp.float32) for _ in range(N_RES)])


def stack_update_e(parts):
    return dict(
        kj_w=_bf(jnp.stack([p['kj_w'] for p in parts])),
        kj_b=jnp.stack([p['kj_b'] for p in parts]),
        # fold the low-rank basis chains at parameter-build time
        rbf_w=_bf(jnp.stack([p['rbf1'] @ p['rbf2'] for p in parts])),
        sbf_w=_bf(jnp.stack([p['sbf1'] @ p['sbf2'] for p in parts])),
        down=_bf(jnp.stack([p['down'] for p in parts])),
        up=_bf(jnp.stack([p['up'] for p in parts])),
        res_w=_bf(jnp.stack([w for p in parts for w in p['res_w']])),
        res_b=jnp.stack([b for p in parts for b in p['res_b']]),
        rbfo=_bf(jnp.stack([p['rbf'] for p in parts])))


def make_gru_params():
    k = 1.0 / np.sqrt(H)
    u = lambda shape: jax.random.uniform(next(_KEYS), shape, jnp.float32, -k, k)
    # gate order: [fwd_r, fwd_z, fwd_n, bwd_r, bwd_z, bwd_n], separate (H,H)
    return dict(
        w_ih=_bf(jnp.stack([u((H, H)) for _ in range(6)])),
        b_ih=jnp.stack([u((H,)) for _ in range(6)]),
        w_hh=_bf(jnp.stack([u((H, H)) for _ in range(6)])),
        b_hh=jnp.stack([u((H,)) for _ in range(6)]),
        bias=u((1, H)))


PARAMS = dict(
    init_e=make_init_e_params(),
    uv=stack_update_v([make_update_v_params() for _ in range(NUM_LAYERS + 1)]),
    ue=stack_update_e([make_update_e_params() for _ in range(NUM_LAYERS)]),
    gru=make_gru_params(),
)

# =========================== host / XLA glue ================================

def basis_emb(dist, angle, idx_kj):
    # TODO(synk): the reference 'emb' basis module is undefined; approximate
    # with a DimeNet-style Bessel radial basis x cos(l*angle) angular basis.
    x = dist / CUTOFF
    p = ENV_EXP + 1
    a = -(p + 1) * (p + 2) / 2.0
    bcoef = p * (p + 2)
    c = -p * (p + 1) / 2.0

    def env(t):
        return 1.0 / t + a * t ** (p - 1) + bcoef * t ** p + c * t ** (p + 1)

    n = jnp.arange(1, NR + 1, dtype=jnp.float32)
    rbf = env(x)[:, None] * jnp.sin(n[None, :] * np.pi * x[:, None])    # (E,NR)
    xk = x[idx_kj]
    rad = env(xk)[:, None] * jnp.sin(n[None, :] * np.pi * xk[:, None])  # (T,NR)
    l = jnp.arange(NS, dtype=jnp.float32)
    ang = jnp.cos(l[None, :] * angle[:, None])                          # (T,NS)
    sbf = (ang[:, :, None] * rad[:, None, :]).reshape(-1, NS * NR)
    return rbf, sbf


def embedding_layer(v_f, tables):
    g = jnp.zeros((v_f.shape[0], H - 1), jnp.float32)
    for t, tab in enumerate(tables):
        g = g + tab[v_f[:, t].astype(jnp.int32)]
    res = v_f[:, len(tables):]
    return jnp.concatenate([g, res], axis=1)


def simd_forward(v_f, pos, P, C):
    # xyz_to_dat: dist / angle (triplet index construction is numpy glue)
    i_idx, j_idx = C['i'], C['j']
    dist = jnp.sqrt(jnp.sum((pos[i_idx] - pos[j_idx]) ** 2, axis=-1))
    pos_ji = pos[C['t_i']] - pos[C['t_j']]
    pos_jk = pos[C['t_k']] - pos[C['t_j']]
    a = jnp.sum(pos_ji * pos_jk, axis=-1)
    b = jnp.linalg.norm(jnp.cross(pos_ji, pos_jk), axis=-1)
    angle = jnp.arctan2(b, a)

    rbf, sbf = basis_emb(dist, angle, C['idx_kj'])
    x_nodes = embedding_layer(v_f, P['init_e']['emb_tables'])

    # pad irregular row counts to sublane multiples; padded rows are inert
    # because all one-hot gather/scatter entries touching them are zero.
    Np, Ep, Tp = C['N_pad'], C['E_pad'], C['T_pad']
    x_p = jnp.pad(x_nodes, ((0, Np - x_nodes.shape[0]), (0, 0)))
    rbf_p = jnp.pad(rbf, ((0, Ep - rbf.shape[0]), (0, 0)))
    sbf_p = jnp.pad(sbf, ((0, Tp - sbf.shape[0]), (0, 0)))

    S = C['S']
    args = (
        x_p, rbf_p, sbf_p,
        C['oh_edge_i'], C['oh_edge_j'], C['onehot_node_edge'],
        C['gather_oh'], C['scatter_oh'],
        C['gru_scatter_oh'], C['node_gather_oh'],
        C['onehot_pad'], C['pad_counts_col'], C['pad_seg_col'],
        C['batch_seg_col'],
        P['init_e']['rbf0_w'], P['init_e']['rbf0_b'],
        P['init_e']['lin_wi'], P['init_e']['lin_wj'], P['init_e']['lin_wr'],
        P['init_e']['lin_b'], P['init_e']['rbf1_w'],
        P['uv']['up_w'], P['uv']['up_b'], P['uv']['lins_w'],
        P['uv']['lins_b'], P['uv']['lin_w'],
        P['ue']['kj_w'], P['ue']['kj_b'], P['ue']['rbf_w'], P['ue']['sbf_w'],
        P['ue']['down'], P['ue']['up'], P['ue']['res_w'], P['ue']['res_b'],
        P['ue']['rbfo'],
        P['gru']['w_ih'], P['gru']['b_ih'], P['gru']['w_hh'], P['gru']['b_hh'],
        P['gru']['bias'],
    )
    out = pl.pallas_call(
        functools.partial(_simd_block_kernel, G=C['G'], G_pad=C['G_pad'],
                          maxN=C['maxN'], S=S),
        out_shape=jax.ShapeDtypeStruct((S, 4 * H), jnp.float32),
        in_specs=[_VMEM] * len(args),
        out_specs=_VMEM,
    )(*args)
    return out[:-1]                      # get_node_out drops the last segment

# =========================== graph glue (numpy) =============================

def get_batch_nodes_num(batch):
    batch = list(batch)
    nodes_num = 1
    out = []
    for i in range(len(batch) - 1):
        if batch[i] == batch[i + 1]:
            nodes_num += 1
        else:
            out.append(nodes_num)
            nodes_num = 1
    out.append(nodes_num)
    return out


def build_triplets(edge_index):
    j, i = edge_index                      # j = source, i = target
    E = j.shape[0]
    ti, tj, tk, kj, ji = [], [], [], [], []
    for e in range(E):
        jn, inode = j[e], i[e]
        for e2 in range(E):
            if i[e2] == jn:                # edge e2 : k -> jn
                k = j[e2]
                if k != inode:
                    ti.append(inode); tj.append(jn); tk.append(k)
                    kj.append(e2); ji.append(e)
    return (np.array(ti, np.int32), np.array(tj, np.int32),
            np.array(tk, np.int32), np.array(kj, np.int32),
            np.array(ji, np.int32))


def _onehot(rows_idx, n_rows, cols_idx, n_cols, dtype):
    m = np.zeros((n_rows, n_cols), np.float32)
    m[np.asarray(rows_idx), np.asarray(cols_idx)] = 1.0
    return jnp.asarray(m, dtype=dtype)

# =========================== main ===========================================

if __name__ == "__main__":
    sizes = [5, 4, 6]
    batch_np = np.concatenate([np.full(n, g) for g, n in enumerate(sizes)]
                              ).astype(np.int32)
    N = int(batch_np.shape[0])
    G = len(sizes)

    # fully-connected edges within each graph (no self loops)
    src, dst, off = [], [], 0
    for n in sizes:
        for a_ in range(n):
            for b_ in range(n):
                if a_ != b_:
                    src.append(off + a_); dst.append(off + b_)
        off += n
    edge_index = np.stack([np.array(src, np.int32), np.array(dst, np.int32)])
    j_np, i_np = edge_index
    E = int(j_np.shape[0])

    t_i, t_j, t_k, idx_kj, idx_ji = build_triplets(edge_index)
    T = int(t_i.shape[0])

    bn = get_batch_nodes_num(batch_np.tolist())
    node_pos = np.concatenate([np.arange(n) for n in bn]).astype(np.int32)
    maxN = int(max(bn))

    p_np = batch_np                       # atom_padding (squeezed)
    S = int(p_np.max()) + 1

    def _pad8(n):
        return int(-(-n // 8) * 8)

    N_pad, E_pad, T_pad, G_pad = _pad8(N), _pad8(E), _pad8(T), _pad8(G)

    pad_counts = np.zeros((S,), np.float32)
    for s in range(S):
        pad_counts[s] = max(float((p_np == s).sum()), 1.0)

    def _seg_col(ids, n_rows):
        c = -np.ones((n_rows, 1), np.int32)
        c[:ids.shape[0], 0] = ids
        return jnp.asarray(c)

    # timestep-major padded-message row index: row = pos*G_pad + graph
    gru_rows = node_pos * G_pad + batch_np

    CONSTS = dict(
        i=jnp.asarray(i_np), j=jnp.asarray(j_np),
        t_i=jnp.asarray(t_i), t_j=jnp.asarray(t_j), t_k=jnp.asarray(t_k),
        idx_kj=jnp.asarray(idx_kj),
        # gathers in bf16 (exact one-hots feeding bf16 matmuls),
        # scatter-sums / final gathers in f32 for summation/output precision
        oh_edge_i=_onehot(np.arange(E), E_pad, i_np, N_pad, _BF16),
        oh_edge_j=_onehot(np.arange(E), E_pad, j_np, N_pad, _BF16),
        onehot_node_edge=_onehot(i_np, N_pad, np.arange(E), E_pad, _F32),
        gather_oh=_onehot(np.arange(T), T_pad, idx_kj, E_pad, _BF16),
        scatter_oh=_onehot(idx_ji, E_pad, np.arange(T), T_pad, _F32),
        gru_scatter_oh=_onehot(gru_rows, maxN * G_pad, np.arange(N), N_pad, _BF16),
        node_gather_oh=_onehot(np.arange(N), N_pad, gru_rows, maxN * G_pad, _F32),
        onehot_pad=_onehot(p_np, S, np.arange(N), N_pad, _F32),
        pad_counts_col=jnp.asarray(pad_counts.reshape(S, 1)),
        pad_seg_col=_seg_col(p_np, N_pad),
        batch_seg_col=_seg_col(batch_np, N_pad),
        N_pad=N_pad, E_pad=E_pad, T_pad=T_pad,
        G=G, G_pad=G_pad, maxN=maxN, S=S,
    )

    # deterministic inputs
    key = jax.random.PRNGKey(0)
    k1, k2, k3, k4 = jax.random.split(key, 4)
    pos = jax.random.normal(k1, (N, 3), jnp.float32) * 1.5
    cat0 = jax.random.randint(k2, (N,), 0, FEATURE_LIST[0])
    cat1 = jax.random.randint(k3, (N,), 0, FEATURE_LIST[1])
    cont = jax.random.normal(k4, (N, 1), jnp.float32)
    v_f = jnp.concatenate([cat0[:, None].astype(jnp.float32),
                           cat1[:, None].astype(jnp.float32), cont], axis=1)

    fwd = jax.jit(lambda vf, p: simd_forward(vf, p, PARAMS, CONSTS))
    out = fwd(v_f, pos)
    out = jax.block_until_ready(out)
    assert out.shape == (S - 1, 4 * H), out.shape
    assert bool(jnp.all(jnp.isfinite(out)))
    print("KERNEL_OK")
</pallas_src>

<mosaic_0001>
module attributes {stable_mosaic.version = 11 : i64} {
  func.func @_simd_block_kernel(%arg0: memref<16x32xf32, #tpu.memory_space<vmem>>, %arg1: memref<64x6xf32, #tpu.memory_space<vmem>>, %arg2: memref<208x42xf32, #tpu.memory_space<vmem>>, %arg3: memref<64x16xbf16, #tpu.memory_space<vmem>>, %arg4: memref<64x16xbf16, #tpu.memory_space<vmem>>, %arg5: memref<16x64xf32, #tpu.memory_space<vmem>>, %arg6: memref<208x64xbf16, #tpu.memory_space<vmem>>, %arg7: memref<64x208xf32, #tpu.memory_space<vmem>>, %arg8: memref<48x16xbf16, #tpu.memory_space<vmem>>, %arg9: memref<16x48xf32, #tpu.memory_space<vmem>>, %arg10: memref<3x16xf32, #tpu.memory_space<vmem>>, %arg11: memref<3x1xf32, #tpu.memory_space<vmem>>, %arg12: memref<16x1xi32, #tpu.memory_space<vmem>>, %arg13: memref<16x1xi32, #tpu.memory_space<vmem>>, %arg14: memref<6x32xbf16, #tpu.memory_space<vmem>>, %arg15: memref<1x32xf32, #tpu.memory_space<vmem>>, %arg16: memref<32x32xbf16, #tpu.memory_space<vmem>>, %arg17: memref<32x32xbf16, #tpu.memory_space<vmem>>, %arg18: memref<32x32xbf16, #tpu.memory_space<vmem>>, %arg19: memref<1x32xf32, #tpu.memory_space<vmem>>, %arg20: memref<6x32xbf16, #tpu.memory_space<vmem>>, %arg21: memref<3x32x64xbf16, #tpu.memory_space<vmem>>, %arg22: memref<3x64xf32, #tpu.memory_space<vmem>>, %arg23: memref<6x64x64xbf16, #tpu.memory_space<vmem>>, %arg24: memref<6x64xf32, #tpu.memory_space<vmem>>, %arg25: memref<3x64x32xbf16, #tpu.memory_space<vmem>>, %arg26: memref<2x32x32xbf16, #tpu.memory_space<vmem>>, %arg27: memref<2x32xf32, #tpu.memory_space<vmem>>, %arg28: memref<2x6x32xbf16, #tpu.memory_space<vmem>>, %arg29: memref<2x42x16xbf16, #tpu.memory_space<vmem>>, %arg30: memref<2x32x16xbf16, #tpu.memory_space<vmem>>, %arg31: memref<2x16x32xbf16, #tpu.memory_space<vmem>>, %arg32: memref<14x32x32xbf16, #tpu.memory_space<vmem>>, %arg33: memref<14x32xf32, #tpu.memory_space<vmem>>, %arg34: memref<2x6x32xbf16, #tpu.memory_space<vmem>>, %arg35: memref<6x32x32xbf16, #tpu.memory_space<vmem>>, %arg36: memref<6x32xf32, #tpu.memory_space<vmem>>, %arg37: memref<6x32x32xbf16, #tpu.memory_space<vmem>>, %arg38: memref<6x32xf32, #tpu.memory_space<vmem>>, %arg39: memref<1x32xf32, #tpu.memory_space<vmem>>, %arg40: memref<3x128xf32, #tpu.memory_space<vmem>>) attributes {dimension_semantics = [], scalar_prefetch = 0 : i64, scratch_operands = 0 : i64, tpu.core_type = #tpu.core_type<tc>} {
    %c0 = arith.constant 0 : index
    %c0_0 = arith.constant 0 : index
    %0 = vector.load %arg0[%c0, %c0_0] : memref<16x32xf32, #tpu.memory_space<vmem>>, vector<16x32xf32>
    %1 = arith.truncf %0 : vector<16x32xf32> to vector<16x32xbf16>
    %c0_1 = arith.constant 0 : index
    %c0_2 = arith.constant 0 : index
    %2 = vector.load %arg1[%c0_1, %c0_2] : memref<64x6xf32, #tpu.memory_space<vmem>>, vector<64x6xf32>
    %3 = arith.truncf %2 : vector<64x6xf32> to vector<64x6xbf16>
    %c0_3 = arith.constant 0 : index
    %c0_4 = arith.constant 0 : index
    %4 = vector.load %arg2[%c0_3, %c0_4] : memref<208x42xf32, #tpu.memory_space<vmem>>, vector<208x42xf32>
    %5 = arith.truncf %4 : vector<208x42xf32> to vector<208x42xbf16>
    %c0_5 = arith.constant 0 : index
    %c0_6 = arith.constant 0 : index
    %6 = vector.load %arg5[%c0_5, %c0_6] : memref<16x64xf32, #tpu.memory_space<vmem>>, vector<16x64xf32>
    %c0_7 = arith.constant 0 : index
    %c0_8 = arith.constant 0 : index
    %7 = vector.load %arg7[%c0_7, %c0_8] : memref<64x208xf32, #tpu.memory_space<vmem>>, vector<64x208xf32>
    %c0_9 = arith.constant 0 : index
    %c0_10 = arith.constant 0 : index
    %8 = vector.load %arg6[%c0_9, %c0_10] : memref<208x64xbf16, #tpu.memory_space<vmem>>, vector<208x64xbf16>
    %c0_11 = arith.constant 0 : index
    %c0_12 = arith.constant 0 : index
    %9 = vector.load %arg14[%c0_11, %c0_12] : memref<6x32xbf16, #tpu.memory_space<vmem>>, vector<6x32xbf16>
    %cst = arith.constant dense<0.000000e+00> : vector<64x32xf32>
    %10 = tpu.matmul %3, %9, %cst {dimension_numbers = #tpu.dot_dimension_numbers<[1], [0], [0], [1], [0, 0, 1, 1], [], []>} : vector<64x6xbf16>, vector<6x32xbf16>, vector<64x32xf32> -> vector<64x32xf32>
    %c0_13 = arith.constant 0 : index
    %c0_14 = arith.constant 0 : index
    %11 = vector.load %arg15[%c0_13, %c0_14] : memref<1x32xf32, #tpu.memory_space<vmem>>, vector<1x32xf32>
    %12 = vector.broadcast %11 : vector<1x32xf32> to vector<64x32xf32>
    %13 = arith.addf %10, %12 : vector<64x32xf32>
    %14 = arith.negf %13 : vector<64x32xf32>
    %15 = math.exp %14 : vector<64x32xf32>
    %cst_15 = arith.constant 1.000000e+00 : f32
    %16 = vector.broadcast %cst_15 : f32 to vector<64x32xf32>
    %17 = arith.addf %16, %15 : vector<64x32xf32>
    %18 = arith.divf %16, %17 : vector<64x32xf32>
    %19 = arith.mulf %13, %18 : vector<64x32xf32>
    %c0_16 = arith.constant 0 : index
    %c0_17 = arith.constant 0 : index
    %20 = vector.load %arg3[%c0_16, %c0_17] : memref<64x16xbf16, #tpu.memory_space<vmem>>, vector<64x16xbf16>
    %cst_18 = arith.constant dense<0.000000e+00> : vector<64x32xf32>
    %21 = tpu.matmul %20, %1, %cst_18 {dimension_numbers = #tpu.dot_dimension_numbers<[1], [0], [0], [1], [0, 0, 1, 1], [], []>} : vector<64x16xbf16>, vector<16x32xbf16>, vector<64x32xf32> -> vector<64x32xf32>
    %c0_19 = arith.constant 0 : index
    %c0_20 = arith.constant 0 : index
    %22 = vector.load %arg4[%c0_19, %c0_20] : memref<64x16xbf16, #tpu.memory_space<vmem>>, vector<64x16xbf16>
    %cst_21 = arith.constant dense<0.000000e+00> : vector<64x32xf32>
    %23 = tpu.matmul %22, %1, %cst_21 {dimension_numbers = #tpu.dot_dimension_numbers<[1], [0], [0], [1], [0, 0, 1, 1], [], []>} : vector<64x16xbf16>, vector<16x32xbf16>, vector<64x32xf32> -> vector<64x32xf32>
    %c0_22 = arith.constant 0 : index
    %c0_23 = arith.constant 0 : index
    %24 = vector.load %arg16[%c0_22, %c0_23] : memref<32x32xbf16, #tpu.memory_space<vmem>>, vector<32x32xbf16>
    %25 = arith.truncf %21 : vector<64x32xf32> to vector<64x32xbf16>
    %cst_24 = arith.constant dense<0.000000e+00> : vector<64x32xf32>
    %26 = tpu.matmul %25, %24, %cst_24 {dimension_numbers = #tpu.dot_dimension_numbers<[1], [0], [0], [1], [0, 0, 1, 1], [], []>} : vector<64x32xbf16>, vector<32x32xbf16>, vector<64x32xf32> -> vector<64x32xf32>
    %c0_25 = arith.constant 0 : index
    %c0_26 = arith.constant 0 : index
    %27 = vector.load %arg17[%c0_25, %c0_26] : memref<32x32xbf16, #tpu.memory_space<vmem>>, vector<32x32xbf16>
    %28 = arith.truncf %23 : vector<64x32xf32> to vector<64x32xbf16>
    %cst_27 = arith.constant dense<0.000000e+00> : vector<64x32xf32>
    %29 = tpu.matmul %28, %27, %cst_27 {dimension_numbers = #tpu.dot_dimension_numbers<[1], [0], [0], [1], [0, 0, 1, 1], [], []>} : vector<64x32xbf16>, vector<32x32xbf16>, vector<64x32xf32> -> vector<64x32xf32>
    %30 = arith.addf %26, %29 : vector<64x32xf32>
    %c0_28 = arith.constant 0 : index
    %c0_29 = arith.constant 0 : index
    %31 = vector.load %arg18[%c0_28, %c0_29] : memref<32x32xbf16, #tpu.memory_space<vmem>>, vector<32x32xbf16>
    %32 = arith.truncf %19 : vector<64x32xf32> to vector<64x32xbf16>
    %cst_30 = arith.constant dense<0.000000e+00> : vector<64x32xf32>
    %33 = tpu.matmul %32, %31, %cst_30 {dimension_numbers = #tpu.dot_dimension_numbers<[1], [0], [0], [1], [0, 0, 1, 1], [], []>} : vector<64x32xbf16>, vector<32x32xbf16>, vector<64x32xf32> -> vector<64x32xf32>
    %34 = arith.addf %30, %33 : vector<64x32xf32>
    %c0_31 = arith.constant 0 : index
    %c0_32 = arith.constant 0 : index
    %35 = vector.load %arg19[%c0_31, %c0_32] : memref<1x32xf32, #tpu.memory_space<vmem>>, vector<1x32xf32>
    %36 = vector.broadcast %35 : vector<1x32xf32> to vector<64x32xf32>
    %37 = arith.addf %34, %36 : vector<64x32xf32>
    %38 = arith.negf %37 : vector<64x32xf32>
    %39 = math.exp %38 : vector<64x32xf32>
    %cst_33 = arith.constant 1.000000e+00 : f32
    %40 = vector.broadcast %cst_33 : f32 to vector<64x32xf32>
    %41 = arith.addf %40, %39 : vector<64x32xf32>
    %42 = arith.divf %40, %41 : vector<64x32xf32>
    %43 = arith.mulf %37, %42 : vector<64x32xf32>
    %c0_34 = arith.constant 0 : index
    %c0_35 = arith.constant 0 : index
    %44 = vector.load %arg20[%c0_34, %c0_35] : memref<6x32xbf16, #tpu.memory_space<vmem>>, vector<6x32xbf16>
    %cst_36 = arith.constant dense<0.000000e+00> : vector<64x32xf32>
    %45 = tpu.matmul %3, %44, %cst_36 {dimension_numbers = #tpu.dot_dimension_numbers<[1], [0], [0], [1], [0, 0, 1, 1], [], []>} : vector<64x6xbf16>, vector<6x32xbf16>, vector<64x32xf32> -> vector<64x32xf32>
    %46 = arith.mulf %45, %43 : vector<64x32xf32>
    %c0_37 = arith.constant 0 : index
    %c0_38 = arith.constant 0 : index
    %c0_39 = arith.constant 0 : index
    %47 = vector.load %arg21[%c0_37, %c0_38, %c0_39] : memref<3x32x64xbf16, #tpu.memory_space<vmem>>, vector<3x32x64xbf16>
    %c0_40 = arith.constant 0 : index
    %c0_41 = arith.constant 0 : index
    %48 = vector.load %arg22[%c0_40, %c0_41] : memref<3x64xf32, #tpu.memory_space<vmem>>, vector<3x64xf32>
    %c0_42 = arith.constant 0 : index
    %c0_43 = arith.constant 0 : index
    %c0_44 = arith.constant 0 : index
    %49 = vector.load %arg23[%c0_42, %c0_43, %c0_44] : memref<6x64x64xbf16, #tpu.memory_space<vmem>>, vector<6x64x64xbf16>
    %c0_45 = arith.constant 0 : index
    %c0_46 = arith.constant 0 : index
    %50 = vector.load %arg24[%c0_45, %c0_46] : memref<6x64xf32, #tpu.memory_space<vmem>>, vector<6x64xf32>
    %c0_47 = arith.constant 0 : index
    %c0_48 = arith.constant 0 : index
    %c0_49 = arith.constant 0 : index
    %51 = vector.load %arg25[%c0_47, %c0_48, %c0_49] : memref<3x64x32xbf16, #tpu.memory_space<vmem>>, vector<3x64x32xbf16>
    %c0_50 = arith.constant 0 : index
    %c0_51 = arith.constant 0 : index
    %c0_52 = arith.constant 0 : index
    %52 = vector.load %arg26[%c0_50, %c0_51, %c0_52] : memref<2x32x32xbf16, #tpu.memory_space<vmem>>, vector<2x32x32xbf16>
    %c0_53 = arith.constant 0 : index
    %c0_54 = arith.constant 0 : index
    %53 = vector.load %arg27[%c0_53, %c0_54] : memref<2x32xf32, #tpu.memory_space<vmem>>, vector<2x32xf32>
    %c0_55 = arith.constant 0 : index
    %c0_56 = arith.constant 0 : index
    %c0_57 = arith.constant 0 : index
    %54 = vector.load %arg28[%c0_55, %c0_56, %c0_57] : memref<2x6x32xbf16, #tpu.memory_space<vmem>>, vector<2x6x32xbf16>
    %c0_58 = arith.constant 0 : index
    %c0_59 = arith.constant 0 : index
    %c0_60 = arith.constant 0 : index
    %55 = vector.load %arg29[%c0_58, %c0_59, %c0_60] : memref<2x42x16xbf16, #tpu.memory_space<vmem>>, vector<2x42x16xbf16>
    %c0_61 = arith.constant 0 : index
    %c0_62 = arith.constant 0 : index
    %c0_63 = arith.constant 0 : index
    %56 = vector.load %arg30[%c0_61, %c0_62, %c0_63] : memref<2x32x16xbf16, #tpu.memory_space<vmem>>, vector<2x32x16xbf16>
    %c0_64 = arith.constant 0 : index
    %c0_65 = arith.constant 0 : index
    %c0_66 = arith.constant 0 : index
    %57 = vector.load %arg31[%c0_64, %c0_65, %c0_66] : memref<2x16x32xbf16, #tpu.memory_space<vmem>>, vector<2x16x32xbf16>
    %c0_67 = arith.constant 0 : index
    %c0_68 = arith.constant 0 : index
    %c0_69 = arith.constant 0 : index
    %58 = vector.load %arg32[%c0_67, %c0_68, %c0_69] : memref<14x32x32xbf16, #tpu.memory_space<vmem>>, vector<14x32x32xbf16>
    %c0_70 = arith.constant 0 : index
    %c0_71 = arith.constant 0 : index
    %59 = vector.load %arg33[%c0_70, %c0_71] : memref<14x32xf32, #tpu.memory_space<vmem>>, vector<14x32xf32>
    %c0_72 = arith.constant 0 : index
    %c0_73 = arith.constant 0 : index
    %c0_74 = arith.constant 0 : index
    %60 = vector.load %arg34[%c0_72, %c0_73, %c0_74] : memref<2x6x32xbf16, #tpu.memory_space<vmem>>, vector<2x6x32xbf16>
    %cst_75 = arith.constant 0.000000e+00 : f32
    %61 = vector.broadcast %cst_75 : f32 to vector<16x32xf32>
    %cst_76 = arith.constant dense<0.000000e+00> : vector<16x32xf32>
    %62 = tpu.matmul %6, %46, %cst_76 {dimension_numbers = #tpu.dot_dimension_numbers<[1], [0], [0], [1], [0, 0, 1, 1], [], []>} : vector<16x64xf32>, vector<64x32xf32>, vector<16x32xf32> -> vector<16x32xf32>
    %63 = vector.extract_strided_slice %47 {offsets = [0, 0, 0], sizes = [1, 32, 64], strides = [1, 1, 1]} : vector<3x32x64xbf16> to vector<1x32x64xbf16>
    %64 = vector.shape_cast %63 : vector<1x32x64xbf16> to vector<32x64xbf16>
    %65 = arith.truncf %62 : vector<16x32xf32> to vector<16x32xbf16>
    %cst_77 = arith.constant dense<0.000000e+00> : vector<16x64xf32>
    %66 = tpu.matmul %65, %64, %cst_77 {dimension_numbers = #tpu.dot_dimension_numbers<[1], [0], [0], [1], [0, 0, 1, 1], [], []>} : vector<16x32xbf16>, vector<32x64xbf16>, vector<16x64xf32> -> vector<16x64xf32>
    %67 = vector.extract_strided_slice %48 {offsets = [0, 0], sizes = [1, 64], strides = [1, 1]} : vector<3x64xf32> to vector<1x64xf32>
    %68 = vector.broadcast %67 : vector<1x64xf32> to vector<16x64xf32>
    %69 = arith.addf %66, %68 : vector<16x64xf32>
    %70 = vector.extract_strided_slice %49 {offsets = [0, 0, 0], sizes = [1, 64, 64], strides = [1, 1, 1]} : vector<6x64x64xbf16> to vector<1x64x64xbf16>
    %71 = vector.shape_cast %70 : vector<1x64x64xbf16> to vector<64x64xbf16>
    %72 = arith.truncf %69 : vector<16x64xf32> to vector<16x64xbf16>
    %cst_78 = arith.constant dense<0.000000e+00> : vector<16x64xf32>
    %73 = tpu.matmul %72, %71, %cst_78 {dimension_numbers = #tpu.dot_dimension_numbers<[1], [0], [0], [1], [0, 0, 1, 1], [], []>} : vector<16x64xbf16>, vector<64x64xbf16>, vector<16x64xf32> -> vector<16x64xf32>
    %74 = vector.extract_strided_slice %50 {offsets = [0, 0], sizes = [1, 64], strides = [1, 1]} : vector<6x64xf32> to vector<1x64xf32>
    %75 = vector.broadcast %74 : vector<1x64xf32> to vector<16x64xf32>
    %76 = arith.addf %73, %75 : vector<16x64xf32>
    %77 = arith.negf %76 : vector<16x64xf32>
    %78 = math.exp %77 : vector<16x64xf32>
    %cst_79 = arith.constant 1.000000e+00 : f32
    %79 = vector.broadcast %cst_79 : f32 to vector<16x64xf32>
    %80 = arith.addf %79, %78 : vector<16x64xf32>
    %81 = arith.divf %79, %80 : vector<16x64xf32>
    %82 = arith.mulf %76, %81 : vector<16x64xf32>
    %83 = vector.extract_strided_slice %49 {offsets = [1, 0, 0], sizes = [1, 64, 64], strides = [1, 1, 1]} : vector<6x64x64xbf16> to vector<1x64x64xbf16>
    %84 = vector.shape_cast %83 : vector<1x64x64xbf16> to vector<64x64xbf16>
    %85 = arith.truncf %82 : vector<16x64xf32> to vector<16x64xbf16>
    %cst_80 = arith.constant dense<0.000000e+00> : vector<16x64xf32>
    %86 = tpu.matmul %85, %84, %cst_80 {dimension_numbers = #tpu.dot_dimension_numbers<[1], [0], [0], [1], [0, 0, 1, 1], [], []>} : vector<16x64xbf16>, vector<64x64xbf16>, vector<16x64xf32> -> vector<16x64xf32>
    %87 = vector.extract_strided_slice %50 {offsets = [1, 0], sizes = [1, 64], strides = [1, 1]} : vector<6x64xf32> to vector<1x64xf32>
    %88 = vector.broadcast %87 : vector<1x64xf32> to vector<16x64xf32>
    %89 = arith.addf %86, %88 : vector<16x64xf32>
    %90 = arith.negf %89 : vector<16x64xf32>
    %91 = math.exp %90 : vector<16x64xf32>
    %cst_81 = arith.constant 1.000000e+00 : f32
    %92 = vector.broadcast %cst_81 : f32 to vector<16x64xf32>
    %93 = arith.addf %92, %91 : vector<16x64xf32>
    %94 = arith.divf %92, %93 : vector<16x64xf32>
    %95 = arith.mulf %89, %94 : vector<16x64xf32>
    %96 = vector.extract_strided_slice %51 {offsets = [0, 0, 0], sizes = [1, 64, 32], strides = [1, 1, 1]} : vector<3x64x32xbf16> to vector<1x64x32xbf16>
    %97 = vector.shape_cast %96 : vector<1x64x32xbf16> to vector<64x32xbf16>
    %98 = arith.truncf %95 : vector<16x64xf32> to vector<16x64xbf16>
    %cst_82 = arith.constant dense<0.000000e+00> : vector<16x32xf32>
    %99 = tpu.matmul %98, %97, %cst_82 {dimension_numbers = #tpu.dot_dimension_numbers<[1], [0], [0], [1], [0, 0, 1, 1], [], []>} : vector<16x64xbf16>, vector<64x32xbf16>, vector<16x32xf32> -> vector<16x32xf32>
    %100 = arith.addf %99, %61 : vector<16x32xf32>
    %101 = vector.extract_strided_slice %52 {offsets = [0, 0, 0], sizes = [1, 32, 32], strides = [1, 1, 1]} : vector<2x32x32xbf16> to vector<1x32x32xbf16>
    %102 = vector.shape_cast %101 : vector<1x32x32xbf16> to vector<32x32xbf16>
    %103 = arith.truncf %43 : vector<64x32xf32> to vector<64x32xbf16>
    %cst_83 = arith.constant dense<0.000000e+00> : vector<64x32xf32>
    %104 = tpu.matmul %103, %102, %cst_83 {dimension_numbers = #tpu.dot_dimension_numbers<[1], [0], [0], [1], [0, 0, 1, 1], [], []>} : vector<64x32xbf16>, vector<32x32xbf16>, vector<64x32xf32> -> vector<64x32xf32>
    %105 = vector.extract_strided_slice %53 {offsets = [0, 0], sizes = [1, 32], strides = [1, 1]} : vector<2x32xf32> to vector<1x32xf32>
    %106 = vector.broadcast %105 : vector<1x32xf32> to vector<64x32xf32>
    %107 = arith.addf %104, %106 : vector<64x32xf32>
    %108 = arith.negf %107 : vector<64x32xf32>
    %109 = math.exp %108 : vector<64x32xf32>
    %cst_84 = arith.constant 1.000000e+00 : f32
    %110 = vector.broadcast %cst_84 : f32 to vector<64x32xf32>
    %111 = arith.addf %110, %109 : vector<64x32xf32>
    %112 = arith.divf %110, %111 : vector<64x32xf32>
    %113 = arith.mulf %107, %112 : vector<64x32xf32>
    %114 = vector.extract_strided_slice %54 {offsets = [0, 0, 0], sizes = [1, 6, 32], strides = [1, 1, 1]} : vector<2x6x32xbf16> to vector<1x6x32xbf16>
    %115 = vector.shape_cast %114 : vector<1x6x32xbf16> to vector<6x32xbf16>
    %cst_85 = arith.constant dense<0.000000e+00> : vector<64x32xf32>
    %116 = tpu.matmul %3, %115, %cst_85 {dimension_numbers = #tpu.dot_dimension_numbers<[1], [0], [0], [1], [0, 0, 1, 1], [], []>} : vector<64x6xbf16>, vector<6x32xbf16>, vector<64x32xf32> -> vector<64x32xf32>
    %117 = arith.mulf %113, %116 : vector<64x32xf32>
    %118 = vector.extract_strided_slice %56 {offsets = [0, 0, 0], sizes = [1, 32, 16], strides = [1, 1, 1]} : vector<2x32x16xbf16> to vector<1x32x16xbf16>
    %119 = vector.shape_cast %118 : vector<1x32x16xbf16> to vector<32x16xbf16>
    %120 = arith.truncf %117 : vector<64x32xf32> to vector<64x32xbf16>
    %cst_86 = arith.constant dense<0.000000e+00> : vector<64x16xf32>
    %121 = tpu.matmul %120, %119, %cst_86 {dimension_numbers = #tpu.dot_dimension_numbers<[1], [0], [0], [1], [0, 0, 1, 1], [], []>} : vector<64x32xbf16>, vector<32x16xbf16>, vector<64x16xf32> -> vector<64x16xf32>
    %122 = arith.negf %121 : vector<64x16xf32>
    %123 = math.exp %122 : vector<64x16xf32>
    %cst_87 = arith.constant 1.000000e+00 : f32
    %124 = vector.broadcast %cst_87 : f32 to vector<64x16xf32>
    %125 = arith.addf %124, %123 : vector<64x16xf32>
    %126 = arith.divf %124, %125 : vector<64x16xf32>
    %127 = arith.mulf %121, %126 : vector<64x16xf32>
    %128 = vector.extract_strided_slice %55 {offsets = [0, 0, 0], sizes = [1, 42, 16], strides = [1, 1, 1]} : vector<2x42x16xbf16> to vector<1x42x16xbf16>
    %129 = vector.shape_cast %128 : vector<1x42x16xbf16> to vector<42x16xbf16>
    %cst_88 = arith.constant dense<0.000000e+00> : vector<208x16xf32>
    %130 = tpu.matmul %5, %129, %cst_88 {dimension_numbers = #tpu.dot_dimension_numbers<[1], [0], [0], [1], [0, 0, 1, 1], [], []>} : vector<208x42xbf16>, vector<42x16xbf16>, vector<208x16xf32> -> vector<208x16xf32>
    %131 = arith.truncf %127 : vector<64x16xf32> to vector<64x16xbf16>
    %cst_89 = arith.constant dense<0.000000e+00> : vector<208x16xf32>
    %132 = tpu.matmul %8, %131, %cst_89 {dimension_numbers = #tpu.dot_dimension_numbers<[1], [0], [0], [1], [0, 0, 1, 1], [], []>} : vector<208x64xbf16>, vector<64x16xbf16>, vector<208x16xf32> -> vector<208x16xf32>
    %133 = arith.mulf %132, %130 : vector<208x16xf32>
    %cst_90 = arith.constant dense<0.000000e+00> : vector<64x16xf32>
    %134 = tpu.matmul %7, %133, %cst_90 {dimension_numbers = #tpu.dot_dimension_numbers<[1], [0], [0], [1], [0, 0, 1, 1], [], []>} : vector<64x208xf32>, vector<208x16xf32>, vector<64x16xf32> -> vector<64x16xf32>
    %135 = vector.extract_strided_slice %57 {offsets = [0, 0, 0], sizes = [1, 16, 32], strides = [1, 1, 1]} : vector<2x16x32xbf16> to vector<1x16x32xbf16>
    %136 = vector.shape_cast %135 : vector<1x16x32xbf16> to vector<16x32xbf16>
    %137 = arith.truncf %134 : vector<64x16xf32> to vector<64x16xbf16>
    %cst_91 = arith.constant dense<0.000000e+00> : vector<64x32xf32>
    %138 = tpu.matmul %137, %136, %cst_91 {dimension_numbers = #tpu.dot_dimension_numbers<[1], [0], [0], [1], [0, 0, 1, 1], [], []>} : vector<64x16xbf16>, vector<16x32xbf16>, vector<64x32xf32> -> vector<64x32xf32>
    %139 = arith.negf %138 : vector<64x32xf32>
    %140 = math.exp %139 : vector<64x32xf32>
    %cst_92 = arith.constant 1.000000e+00 : f32
    %141 = vector.broadcast %cst_92 : f32 to vector<64x32xf32>
    %142 = arith.addf %141, %140 : vector<64x32xf32>
    %143 = arith.divf %141, %142 : vector<64x32xf32>
    %144 = arith.mulf %138, %143 : vector<64x32xf32>
    %145 = vector.extract_strided_slice %58 {offsets = [0, 0, 0], sizes = [1, 32, 32], strides = [1, 1, 1]} : vector<14x32x32xbf16> to vector<1x32x32xbf16>
    %146 = vector.shape_cast %145 : vector<1x32x32xbf16> to vector<32x32xbf16>
    %147 = arith.truncf %144 : vector<64x32xf32> to vector<64x32xbf16>
    %cst_93 = arith.constant dense<0.000000e+00> : vector<64x32xf32>
    %148 = tpu.matmul %147, %146, %cst_93 {dimension_numbers = #tpu.dot_dimension_numbers<[1], [0], [0], [1], [0, 0, 1, 1], [], []>} : vector<64x32xbf16>, vector<32x32xbf16>, vector<64x32xf32> -> vector<64x32xf32>
    %149 = vector.extract_strided_slice %59 {offsets = [0, 0], sizes = [1, 32], strides = [1, 1]} : vector<14x32xf32> to vector<1x32xf32>
    %150 = vector.broadcast %149 : vector<1x32xf32> to vector<64x32xf32>
    %151 = arith.addf %148, %150 : vector<64x32xf32>
    %152 = arith.negf %151 : vector<64x32xf32>
    %153 = math.exp %152 : vector<64x32xf32>
    %cst_94 = arith.constant 1.000000e+00 : f32
    %154 = vector.broadcast %cst_94 : f32 to vector<64x32xf32>
    %155 = arith.addf %154, %153 : vector<64x32xf32>
    %156 = arith.divf %154, %155 : vector<64x32xf32>
    %157 = arith.mulf %151, %156 : vector<64x32xf32>
    %158 = vector.extract_strided_slice %58 {offsets = [1, 0, 0], sizes = [1, 32, 32], strides = [1, 1, 1]} : vector<14x32x32xbf16> to vector<1x32x32xbf16>
    %159 = vector.shape_cast %158 : vector<1x32x32xbf16> to vector<32x32xbf16>
    %160 = arith.truncf %157 : vector<64x32xf32> to vector<64x32xbf16>
    %cst_95 = arith.constant dense<0.000000e+00> : vector<64x32xf32>
    %161 = tpu.matmul %160, %159, %cst_95 {dimension_numbers = #tpu.dot_dimension_numbers<[1], [0], [0], [1], [0, 0, 1, 1], [], []>} : vector<64x32xbf16>, vector<32x32xbf16>, vector<64x32xf32> -> vector<64x32xf32>
    %162 = vector.extract_strided_slice %59 {offsets = [1, 0], sizes = [1, 32], strides = [1, 1]} : vector<14x32xf32> to vector<1x32xf32>
    %163 = vector.broadcast %162 : vector<1x32xf32> to vector<64x32xf32>
    %164 = arith.addf %161, %163 : vector<64x32xf32>
    %165 = arith.negf %164 : vector<64x32xf32>
    %166 = math.exp %165 : vector<64x32xf32>
    %cst_96 = arith.constant 1.000000e+00 : f32
    %167 = vector.broadcast %cst_96 : f32 to vector<64x32xf32>
    %168 = arith.addf %167, %166 : vector<64x32xf32>
    %169 = arith.divf %167, %168 : vector<64x32xf32>
    %170 = arith.mulf %164, %169 : vector<64x32xf32>
    %171 = arith.addf %144, %170 : vector<64x32xf32>
    %172 = vector.extract_strided_slice %58 {offsets = [2, 0, 0], sizes = [1, 32, 32], strides = [1, 1, 1]} : vector<14x32x32xbf16> to vector<1x32x32xbf16>
    %173 = vector.shape_cast %172 : vector<1x32x32xbf16> to vector<32x32xbf16>
    %174 = arith.truncf %171 : vector<64x32xf32> to vector<64x32xbf16>
    %cst_97 = arith.constant dense<0.000000e+00> : vector<64x32xf32>
    %175 = tpu.matmul %174, %173, %cst_97 {dimension_numbers = #tpu.dot_dimension_numbers<[1], [0], [0], [1], [0, 0, 1, 1], [], []>} : vector<64x32xbf16>, vector<32x32xbf16>, vector<64x32xf32> -> vector<64x32xf32>
    %176 = vector.extract_strided_slice %59 {offsets = [2, 0], sizes = [1, 32], strides = [1, 1]} : vector<14x32xf32> to vector<1x32xf32>
    %177 = vector.broadcast %176 : vector<1x32xf32> to vector<64x32xf32>
    %178 = arith.addf %175, %177 : vector<64x32xf32>
    %179 = arith.negf %178 : vector<64x32xf32>
    %180 = math.exp %179 : vector<64x32xf32>
    %cst_98 = arith.constant 1.000000e+00 : f32
    %181 = vector.broadcast %cst_98 : f32 to vector<64x32xf32>
    %182 = arith.addf %181, %180 : vector<64x32xf32>
    %183 = arith.divf %181, %182 : vector<64x32xf32>
    %184 = arith.mulf %178, %183 : vector<64x32xf32>
    %185 = vector.extract_strided_slice %58 {offsets = [3, 0, 0], sizes = [1, 32, 32], strides = [1, 1, 1]} : vector<14x32x32xbf16> to vector<1x32x32xbf16>
    %186 = vector.shape_cast %185 : vector<1x32x32xbf16> to vector<32x32xbf16>
    %187 = arith.truncf %184 : vector<64x32xf32> to vector<64x32xbf16>
    %cst_99 = arith.constant dense<0.000000e+00> : vector<64x32xf32>
    %188 = tpu.matmul %187, %186, %cst_99 {dimension_numbers = #tpu.dot_dimension_numbers<[1], [0], [0], [1], [0, 0, 1, 1], [], []>} : vector<64x32xbf16>, vector<32x32xbf16>, vector<64x32xf32> -> vector<64x32xf32>
    %189 = vector.extract_strided_slice %59 {offsets = [3, 0], sizes = [1, 32], strides = [1, 1]} : vector<14x32xf32> to vector<1x32xf32>
    %190 = vector.broadcast %189 : vector<1x32xf32> to vector<64x32xf32>
    %191 = arith.addf %188, %190 : vector<64x32xf32>
    %192 = arith.negf %191 : vector<64x32xf32>
    %193 = math.exp %192 : vector<64x32xf32>
    %cst_100 = arith.constant 1.000000e+00 : f32
    %194 = vector.broadcast %cst_100 : f32 to vector<64x32xf32>
    %195 = arith.addf %194, %193 : vector<64x32xf32>
    %196 = arith.divf %194, %195 : vector<64x32xf32>
    %197 = arith.mulf %191, %196 : vector<64x32xf32>
    %198 = vector.extract_strided_slice %58 {offsets = [4, 0, 0], sizes = [1, 32, 32], strides = [1, 1, 1]} : vector<14x32x32xbf16> to vector<1x32x32xbf16>
    %199 = vector.shape_cast %198 : vector<1x32x32xbf16> to vector<32x32xbf16>
    %200 = arith.truncf %197 : vector<64x32xf32> to vector<64x32xbf16>
    %cst_101 = arith.constant dense<0.000000e+00> : vector<64x32xf32>
    %201 = tpu.matmul %200, %199, %cst_101 {dimension_numbers = #tpu.dot_dimension_numbers<[1], [0], [0], [1], [0, 0, 1, 1], [], []>} : vector<64x32xbf16>, vector<32x32xbf16>, vector<64x32xf32> -> vector<64x32xf32>
    %202 = vector.extract_strided_slice %59 {offsets = [4, 0], sizes = [1, 32], strides = [1, 1]} : vector<14x32xf32> to vector<1x32xf32>
    %203 = vector.broadcast %202 : vector<1x32xf32> to vector<64x32xf32>
    %204 = arith.addf %201, %203 : vector<64x32xf32>
    %205 = arith.negf %204 : vector<64x32xf32>
    %206 = math.exp %205 : vector<64x32xf32>
    %cst_102 = arith.constant 1.000000e+00 : f32
    %207 = vector.broadcast %cst_102 : f32 to vector<64x32xf32>
    %208 = arith.addf %207, %206 : vector<64x32xf32>
    %209 = arith.divf %207, %208 : vector<64x32xf32>
    %210 = arith.mulf %204, %209 : vector<64x32xf32>
    %211 = arith.addf %184, %210 : vector<64x32xf32>
    %212 = vector.extract_strided_slice %58 {offsets = [5, 0, 0], sizes = [1, 32, 32], strides = [1, 1, 1]} : vector<14x32x32xbf16> to vector<1x32x32xbf16>
    %213 = vector.shape_cast %212 : vector<1x32x32xbf16> to vector<32x32xbf16>
    %214 = arith.truncf %211 : vector<64x32xf32> to vector<64x32xbf16>
    %cst_103 = arith.constant dense<0.000000e+00> : vector<64x32xf32>
    %215 = tpu.matmul %214, %213, %cst_103 {dimension_numbers = #tpu.dot_dimension_numbers<[1], [0], [0], [1], [0, 0, 1, 1], [], []>} : vector<64x32xbf16>, vector<32x32xbf16>, vector<64x32xf32> -> vector<64x32xf32>
    %216 = vector.extract_strided_slice %59 {offsets = [5, 0], sizes = [1, 32], strides = [1, 1]} : vector<14x32xf32> to vector<1x32xf32>
    %217 = vector.broadcast %216 : vector<1x32xf32> to vector<64x32xf32>
    %218 = arith.addf %215, %217 : vector<64x32xf32>
    %219 = arith.negf %218 : vector<64x32xf32>
    %220 = math.exp %219 : vector<64x32xf32>
    %cst_104 = arith.constant 1.000000e+00 : f32
    %221 = vector.broadcast %cst_104 : f32 to vector<64x32xf32>
    %222 = arith.addf %221, %220 : vector<64x32xf32>
    %223 = arith.divf %221, %222 : vector<64x32xf32>
    %224 = arith.mulf %218, %223 : vector<64x32xf32>
    %225 = vector.extract_strided_slice %58 {offsets = [6, 0, 0], sizes = [1, 32, 32], strides = [1, 1, 1]} : vector<14x32x32xbf16> to vector<1x32x32xbf16>
    %226 = vector.shape_cast %225 : vector<1x32x32xbf16> to vector<32x32xbf16>
    %227 = arith.truncf %224 : vector<64x32xf32> to vector<64x32xbf16>
    %cst_105 = arith.constant dense<0.000000e+00> : vector<64x32xf32>
    %228 = tpu.matmul %227, %226, %cst_105 {dimension_numbers = #tpu.dot_dimension_numbers<[1], [0], [0], [1], [0, 0, 1, 1], [], []>} : vector<64x32xbf16>, vector<32x32xbf16>, vector<64x32xf32> -> vector<64x32xf32>
    %229 = vector.extract_strided_slice %59 {offsets = [6, 0], sizes = [1, 32], strides = [1, 1]} : vector<14x32xf32> to vector<1x32xf32>
    %230 = vector.broadcast %229 : vector<1x32xf32> to vector<64x32xf32>
    %231 = arith.addf %228, %230 : vector<64x32xf32>
    %232 = arith.negf %231 : vector<64x32xf32>
    %233 = math.exp %232 : vector<64x32xf32>
    %cst_106 = arith.constant 1.000000e+00 : f32
    %234 = vector.broadcast %cst_106 : f32 to vector<64x32xf32>
    %235 = arith.addf %234, %233 : vector<64x32xf32>
    %236 = arith.divf %234, %235 : vector<64x32xf32>
    %237 = arith.mulf %231, %236 : vector<64x32xf32>
    %238 = arith.addf %211, %237 : vector<64x32xf32>
    %239 = vector.extract_strided_slice %60 {offsets = [0, 0, 0], sizes = [1, 6, 32], strides = [1, 1, 1]} : vector<2x6x32xbf16> to vector<1x6x32xbf16>
    %240 = vector.shape_cast %239 : vector<1x6x32xbf16> to vector<6x32xbf16>
    %cst_107 = arith.constant dense<0.000000e+00> : vector<64x32xf32>
    %241 = tpu.matmul %3, %240, %cst_107 {dimension_numbers = #tpu.dot_dimension_numbers<[1], [0], [0], [1], [0, 0, 1, 1], [], []>} : vector<64x6xbf16>, vector<6x32xbf16>, vector<64x32xf32> -> vector<64x32xf32>
    %242 = arith.mulf %241, %238 : vector<64x32xf32>
    %cst_108 = arith.constant dense<0.000000e+00> : vector<16x32xf32>
    %243 = tpu.matmul %6, %242, %cst_108 {dimension_numbers = #tpu.dot_dimension_numbers<[1], [0], [0], [1], [0, 0, 1, 1], [], []>} : vector<16x64xf32>, vector<64x32xf32>, vector<16x32xf32> -> vector<16x32xf32>
    %244 = vector.extract_strided_slice %47 {offsets = [1, 0, 0], sizes = [1, 32, 64], strides = [1, 1, 1]} : vector<3x32x64xbf16> to vector<1x32x64xbf16>
    %245 = vector.shape_cast %244 : vector<1x32x64xbf16> to vector<32x64xbf16>
    %246 = arith.truncf %243 : vector<16x32xf32> to vector<16x32xbf16>
    %cst_109 = arith.constant dense<0.000000e+00> : vector<16x64xf32>
    %247 = tpu.matmul %246, %245, %cst_109 {dimension_numbers = #tpu.dot_dimension_numbers<[1], [0], [0], [1], [0, 0, 1, 1], [], []>} : vector<16x32xbf16>, vector<32x64xbf16>, vector<16x64xf32> -> vector<16x64xf32>
    %248 = vector.extract_strided_slice %48 {offsets = [1, 0], sizes = [1, 64], strides = [1, 1]} : vector<3x64xf32> to vector<1x64xf32>
    %249 = vector.broadcast %248 : vector<1x64xf32> to vector<16x64xf32>
    %250 = arith.addf %247, %249 : vector<16x64xf32>
    %251 = vector.extract_strided_slice %49 {offsets = [2, 0, 0], sizes = [1, 64, 64], strides = [1, 1, 1]} : vector<6x64x64xbf16> to vector<1x64x64xbf16>
    %252 = vector.shape_cast %251 : vector<1x64x64xbf16> to vector<64x64xbf16>
    %253 = arith.truncf %250 : vector<16x64xf32> to vector<16x64xbf16>
    %cst_110 = arith.constant dense<0.000000e+00> : vector<16x64xf32>
    %254 = tpu.matmul %253, %252, %cst_110 {dimension_numbers = #tpu.dot_dimension_numbers<[1], [0], [0], [1], [0, 0, 1, 1], [], []>} : vector<16x64xbf16>, vector<64x64xbf16>, vector<16x64xf32> -> vector<16x64xf32>
    %255 = vector.extract_strided_slice %50 {offsets = [2, 0], sizes = [1, 64], strides = [1, 1]} : vector<6x64xf32> to vector<1x64xf32>
    %256 = vector.broadcast %255 : vector<1x64xf32> to vector<16x64xf32>
    %257 = arith.addf %254, %256 : vector<16x64xf32>
    %258 = arith.negf %257 : vector<16x64xf32>
    %259 = math.exp %258 : vector<16x64xf32>
    %cst_111 = arith.constant 1.000000e+00 : f32
    %260 = vector.broadcast %cst_111 : f32 to vector<16x64xf32>
    %261 = arith.addf %260, %259 : vector<16x64xf32>
    %262 = arith.divf %260, %261 : vector<16x64xf32>
    %263 = arith.mulf %257, %262 : vector<16x64xf32>
    %264 = vector.extract_strided_slice %49 {offsets = [3, 0, 0], sizes = [1, 64, 64], strides = [1, 1, 1]} : vector<6x64x64xbf16> to vector<1x64x64xbf16>
    %265 = vector.shape_cast %264 : vector<1x64x64xbf16> to vector<64x64xbf16>
    %266 = arith.truncf %263 : vector<16x64xf32> to vector<16x64xbf16>
    %cst_112 = arith.constant dense<0.000000e+00> : vector<16x64xf32>
    %267 = tpu.matmul %266, %265, %cst_112 {dimension_numbers = #tpu.dot_dimension_numbers<[1], [0], [0], [1], [0, 0, 1, 1], [], []>} : vector<16x64xbf16>, vector<64x64xbf16>, vector<16x64xf32> -> vector<16x64xf32>
    %268 = vector.extract_strided_slice %50 {offsets = [3, 0], sizes = [1, 64], strides = [1, 1]} : vector<6x64xf32> to vector<1x64xf32>
    %269 = vector.broadcast %268 : vector<1x64xf32> to vector<16x64xf32>
    %270 = arith.addf %267, %269 : vector<16x64xf32>
    %271 = arith.negf %270 : vector<16x64xf32>
    %272 = math.exp %271 : vector<16x64xf32>
    %cst_113 = arith.constant 1.000000e+00 : f32
    %273 = vector.broadcast %cst_113 : f32 to vector<16x64xf32>
    %274 = arith.addf %273, %272 : vector<16x64xf32>
    %275 = arith.divf %273, %274 : vector<16x64xf32>
    %276 = arith.mulf %270, %275 : vector<16x64xf32>
    %277 = vector.extract_strided_slice %51 {offsets = [1, 0, 0], sizes = [1, 64, 32], strides = [1, 1, 1]} : vector<3x64x32xbf16> to vector<1x64x32xbf16>
    %278 = vector.shape_cast %277 : vector<1x64x32xbf16> to vector<64x32xbf16>
    %279 = arith.truncf %276 : vector<16x64xf32> to vector<16x64xbf16>
    %cst_114 = arith.constant dense<0.000000e+00> : vector<16x32xf32>
    %280 = tpu.matmul %279, %278, %cst_114 {dimension_numbers = #tpu.dot_dimension_numbers<[1], [0], [0], [1], [0, 0, 1, 1], [], []>} : vector<16x64xbf16>, vector<64x32xbf16>, vector<16x32xf32> -> vector<16x32xf32>
    %281 = arith.addf %280, %100 : vector<16x32xf32>
    %282 = vector.extract_strided_slice %52 {offsets = [1, 0, 0], sizes = [1, 32, 32], strides = [1, 1, 1]} : vector<2x32x32xbf16> to vector<1x32x32xbf16>
    %283 = vector.shape_cast %282 : vector<1x32x32xbf16> to vector<32x32xbf16>
    %284 = arith.truncf %238 : vector<64x32xf32> to vector<64x32xbf16>
    %cst_115 = arith.constant dense<0.000000e+00> : vector<64x32xf32>
    %285 = tpu.matmul %284, %283, %cst_115 {dimension_numbers = #tpu.dot_dimension_numbers<[1], [0], [0], [1], [0, 0, 1, 1], [], []>} : vector<64x32xbf16>, vector<32x32xbf16>, vector<64x32xf32> -> vector<64x32xf32>
    %286 = vector.extract_strided_slice %53 {offsets = [1, 0], sizes = [1, 32], strides = [1, 1]} : vector<2x32xf32> to vector<1x32xf32>
    %287 = vector.broadcast %286 : vector<1x32xf32> to vector<64x32xf32>
    %288 = arith.addf %285, %287 : vector<64x32xf32>
    %289 = arith.negf %288 : vector<64x32xf32>
    %290 = math.exp %289 : vector<64x32xf32>
    %cst_116 = arith.constant 1.000000e+00 : f32
    %291 = vector.broadcast %cst_116 : f32 to vector<64x32xf32>
    %292 = arith.addf %291, %290 : vector<64x32xf32>
    %293 = arith.divf %291, %292 : vector<64x32xf32>
    %294 = arith.mulf %288, %293 : vector<64x32xf32>
    %295 = vector.extract_strided_slice %54 {offsets = [1, 0, 0], sizes = [1, 6, 32], strides = [1, 1, 1]} : vector<2x6x32xbf16> to vector<1x6x32xbf16>
    %296 = vector.shape_cast %295 : vector<1x6x32xbf16> to vector<6x32xbf16>
    %cst_117 = arith.constant dense<0.000000e+00> : vector<64x32xf32>
    %297 = tpu.matmul %3, %296, %cst_117 {dimension_numbers = #tpu.dot_dimension_numbers<[1], [0], [0], [1], [0, 0, 1, 1], [], []>} : vector<64x6xbf16>, vector<6x32xbf16>, vector<64x32xf32> -> vector<64x32xf32>
    %298 = arith.mulf %294, %297 : vector<64x32xf32>
    %299 = vector.extract_strided_slice %56 {offsets = [1, 0, 0], sizes = [1, 32, 16], strides = [1, 1, 1]} : vector<2x32x16xbf16> to vector<1x32x16xbf16>
    %300 = vector.shape_cast %299 : vector<1x32x16xbf16> to vector<32x16xbf16>
    %301 = arith.truncf %298 : vector<64x32xf32> to vector<64x32xbf16>
    %cst_118 = arith.constant dense<0.000000e+00> : vector<64x16xf32>
    %302 = tpu.matmul %301, %300, %cst_118 {dimension_numbers = #tpu.dot_dimension_numbers<[1], [0], [0], [1], [0, 0, 1, 1], [], []>} : vector<64x32xbf16>, vector<32x16xbf16>, vector<64x16xf32> -> vector<64x16xf32>
    %303 = arith.negf %302 : vector<64x16xf32>
    %304 = math.exp %303 : vector<64x16xf32>
    %cst_119 = arith.constant 1.000000e+00 : f32
    %305 = vector.broadcast %cst_119 : f32 to vector<64x16xf32>
    %306 = arith.addf %305, %304 : vector<64x16xf32>
    %307 = arith.divf %305, %306 : vector<64x16xf32>
    %308 = arith.mulf %302, %307 : vector<64x16xf32>
    %309 = vector.extract_strided_slice %55 {offsets = [1, 0, 0], sizes = [1, 42, 16], strides = [1, 1, 1]} : vector<2x42x16xbf16> to vector<1x42x16xbf16>
    %310 = vector.shape_cast %309 : vector<1x42x16xbf16> to vector<42x16xbf16>
    %cst_120 = arith.constant dense<0.000000e+00> : vector<208x16xf32>
    %311 = tpu.matmul %5, %310, %cst_120 {dimension_numbers = #tpu.dot_dimension_numbers<[1], [0], [0], [1], [0, 0, 1, 1], [], []>} : vector<208x42xbf16>, vector<42x16xbf16>, vector<208x16xf32> -> vector<208x16xf32>
    %312 = arith.truncf %308 : vector<64x16xf32> to vector<64x16xbf16>
    %cst_121 = arith.constant dense<0.000000e+00> : vector<208x16xf32>
    %313 = tpu.matmul %8, %312, %cst_121 {dimension_numbers = #tpu.dot_dimension_numbers<[1], [0], [0], [1], [0, 0, 1, 1], [], []>} : vector<208x64xbf16>, vector<64x16xbf16>, vector<208x16xf32> -> vector<208x16xf32>
    %314 = arith.mulf %313, %311 : vector<208x16xf32>
    %cst_122 = arith.constant dense<0.000000e+00> : vector<64x16xf32>
    %315 = tpu.matmul %7, %314, %cst_122 {dimension_numbers = #tpu.dot_dimension_numbers<[1], [0], [0], [1], [0, 0, 1, 1], [], []>} : vector<64x208xf32>, vector<208x16xf32>, vector<64x16xf32> -> vector<64x16xf32>
    %316 = vector.extract_strided_slice %57 {offsets = [1, 0, 0], sizes = [1, 16, 32], strides = [1, 1, 1]} : vector<2x16x32xbf16> to vector<1x16x32xbf16>
    %317 = vector.shape_cast %316 : vector<1x16x32xbf16> to vector<16x32xbf16>
    %318 = arith.truncf %315 : vector<64x16xf32> to vector<64x16xbf16>
    %cst_123 = arith.constant dense<0.000000e+00> : vector<64x32xf32>
    %319 = tpu.matmul %318, %317, %cst_123 {dimension_numbers = #tpu.dot_dimension_numbers<[1], [0], [0], [1], [0, 0, 1, 1], [], []>} : vector<64x16xbf16>, vector<16x32xbf16>, vector<64x32xf32> -> vector<64x32xf32>
    %320 = arith.negf %319 : vector<64x32xf32>
    %321 = math.exp %320 : vector<64x32xf32>
    %cst_124 = arith.constant 1.000000e+00 : f32
    %322 = vector.broadcast %cst_124 : f32 to vector<64x32xf32>
    %323 = arith.addf %322, %321 : vector<64x32xf32>
    %324 = arith.divf %322, %323 : vector<64x32xf32>
    %325 = arith.mulf %319, %324 : vector<64x32xf32>
    %326 = vector.extract_strided_slice %58 {offsets = [7, 0, 0], sizes = [1, 32, 32], strides = [1, 1, 1]} : vector<14x32x32xbf16> to vector<1x32x32xbf16>
    %327 = vector.shape_cast %326 : vector<1x32x32xbf16> to vector<32x32xbf16>
    %328 = arith.truncf %325 : vector<64x32xf32> to vector<64x32xbf16>
    %cst_125 = arith.constant dense<0.000000e+00> : vector<64x32xf32>
    %329 = tpu.matmul %328, %327, %cst_125 {dimension_numbers = #tpu.dot_dimension_numbers<[1], [0], [0], [1], [0, 0, 1, 1], [], []>} : vector<64x32xbf16>, vector<32x32xbf16>, vector<64x32xf32> -> vector<64x32xf32>
    %330 = vector.extract_strided_slice %59 {offsets = [7, 0], sizes = [1, 32], strides = [1, 1]} : vector<14x32xf32> to vector<1x32xf32>
    %331 = vector.broadcast %330 : vector<1x32xf32> to vector<64x32xf32>
    %332 = arith.addf %329, %331 : vector<64x32xf32>
    %333 = arith.negf %332 : vector<64x32xf32>
    %334 = math.exp %333 : vector<64x32xf32>
    %cst_126 = arith.constant 1.000000e+00 : f32
    %335 = vector.broadcast %cst_126 : f32 to vector<64x32xf32>
    %336 = arith.addf %335, %334 : vector<64x32xf32>
    %337 = arith.divf %335, %336 : vector<64x32xf32>
    %338 = arith.mulf %332, %337 : vector<64x32xf32>
    %339 = vector.extract_strided_slice %58 {offsets = [8, 0, 0], sizes = [1, 32, 32], strides = [1, 1, 1]} : vector<14x32x32xbf16> to vector<1x32x32xbf16>
    %340 = vector.shape_cast %339 : vector<1x32x32xbf16> to vector<32x32xbf16>
    %341 = arith.truncf %338 : vector<64x32xf32> to vector<64x32xbf16>
    %cst_127 = arith.constant dense<0.000000e+00> : vector<64x32xf32>
    %342 = tpu.matmul %341, %340, %cst_127 {dimension_numbers = #tpu.dot_dimension_numbers<[1], [0], [0], [1], [0, 0, 1, 1], [], []>} : vector<64x32xbf16>, vector<32x32xbf16>, vector<64x32xf32> -> vector<64x32xf32>
    %343 = vector.extract_strided_slice %59 {offsets = [8, 0], sizes = [1, 32], strides = [1, 1]} : vector<14x32xf32> to vector<1x32xf32>
    %344 = vector.broadcast %343 : vector<1x32xf32> to vector<64x32xf32>
    %345 = arith.addf %342, %344 : vector<64x32xf32>
    %346 = arith.negf %345 : vector<64x32xf32>
    %347 = math.exp %346 : vector<64x32xf32>
    %cst_128 = arith.constant 1.000000e+00 : f32
    %348 = vector.broadcast %cst_128 : f32 to vector<64x32xf32>
    %349 = arith.addf %348, %347 : vector<64x32xf32>
    %350 = arith.divf %348, %349 : vector<64x32xf32>
    %351 = arith.mulf %345, %350 : vector<64x32xf32>
    %352 = arith.addf %325, %351 : vector<64x32xf32>
    %353 = vector.extract_strided_slice %58 {offsets = [9, 0, 0], sizes = [1, 32, 32], strides = [1, 1, 1]} : vector<14x32x32xbf16> to vector<1x32x32xbf16>
    %354 = vector.shape_cast %353 : vector<1x32x32xbf16> to vector<32x32xbf16>
    %355 = arith.truncf %352 : vector<64x32xf32> to vector<64x32xbf16>
    %cst_129 = arith.constant dense<0.000000e+00> : vector<64x32xf32>
    %356 = tpu.matmul %355, %354, %cst_129 {dimension_numbers = #tpu.dot_dimension_numbers<[1], [0], [0], [1], [0, 0, 1, 1], [], []>} : vector<64x32xbf16>, vector<32x32xbf16>, vector<64x32xf32> -> vector<64x32xf32>
    %357 = vector.extract_strided_slice %59 {offsets = [9, 0], sizes = [1, 32], strides = [1, 1]} : vector<14x32xf32> to vector<1x32xf32>
    %358 = vector.broadcast %357 : vector<1x32xf32> to vector<64x32xf32>
    %359 = arith.addf %356, %358 : vector<64x32xf32>
    %360 = arith.negf %359 : vector<64x32xf32>
    %361 = math.exp %360 : vector<64x32xf32>
    %cst_130 = arith.constant 1.000000e+00 : f32
    %362 = vector.broadcast %cst_130 : f32 to vector<64x32xf32>
    %363 = arith.addf %362, %361 : vector<64x32xf32>
    %364 = arith.divf %362, %363 : vector<64x32xf32>
    %365 = arith.mulf %359, %364 : vector<64x32xf32>
    %366 = vector.extract_strided_slice %58 {offsets = [10, 0, 0], sizes = [1, 32, 32], strides = [1, 1, 1]} : vector<14x32x32xbf16> to vector<1x32x32xbf16>
    %367 = vector.shape_cast %366 : vector<1x32x32xbf16> to vector<32x32xbf16>
    %368 = arith.truncf %365 : vector<64x32xf32> to vector<64x32xbf16>
    %cst_131 = arith.constant dense<0.000000e+00> : vector<64x32xf32>
    %369 = tpu.matmul %368, %367, %cst_131 {dimension_numbers = #tpu.dot_dimension_numbers<[1], [0], [0], [1], [0, 0, 1, 1], [], []>} : vector<64x32xbf16>, vector<32x32xbf16>, vector<64x32xf32> -> vector<64x32xf32>
    %370 = vector.extract_strided_slice %59 {offsets = [10, 0], sizes = [1, 32], strides = [1, 1]} : vector<14x32xf32> to vector<1x32xf32>
    %371 = vector.broadcast %370 : vector<1x32xf32> to vector<64x32xf32>
    %372 = arith.addf %369, %371 : vector<64x32xf32>
    %373 = arith.negf %372 : vector<64x32xf32>
    %374 = math.exp %373 : vector<64x32xf32>
    %cst_132 = arith.constant 1.000000e+00 : f32
    %375 = vector.broadcast %cst_132 : f32 to vector<64x32xf32>
    %376 = arith.addf %375, %374 : vector<64x32xf32>
    %377 = arith.divf %375, %376 : vector<64x32xf32>
    %378 = arith.mulf %372, %377 : vector<64x32xf32>
    %379 = vector.extract_strided_slice %58 {offsets = [11, 0, 0], sizes = [1, 32, 32], strides = [1, 1, 1]} : vector<14x32x32xbf16> to vector<1x32x32xbf16>
    %380 = vector.shape_cast %379 : vector<1x32x32xbf16> to vector<32x32xbf16>
    %381 = arith.truncf %378 : vector<64x32xf32> to vector<64x32xbf16>
    %cst_133 = arith.constant dense<0.000000e+00> : vector<64x32xf32>
    %382 = tpu.matmul %381, %380, %cst_133 {dimension_numbers = #tpu.dot_dimension_numbers<[1], [0], [0], [1], [0, 0, 1, 1], [], []>} : vector<64x32xbf16>, vector<32x32xbf16>, vector<64x32xf32> -> vector<64x32xf32>
    %383 = vector.extract_strided_slice %59 {offsets = [11, 0], sizes = [1, 32], strides = [1, 1]} : vector<14x32xf32> to vector<1x32xf32>
    %384 = vector.broadcast %383 : vector<1x32xf32> to vector<64x32xf32>
    %385 = arith.addf %382, %384 : vector<64x32xf32>
    %386 = arith.negf %385 : vector<64x32xf32>
    %387 = math.exp %386 : vector<64x32xf32>
    %cst_134 = arith.constant 1.000000e+00 : f32
    %388 = vector.broadcast %cst_134 : f32 to vector<64x32xf32>
    %389 = arith.addf %388, %387 : vector<64x32xf32>
    %390 = arith.divf %388, %389 : vector<64x32xf32>
    %391 = arith.mulf %385, %390 : vector<64x32xf32>
    %392 = arith.addf %365, %391 : vector<64x32xf32>
    %393 = vector.extract_strided_slice %58 {offsets = [12, 0, 0], sizes = [1, 32, 32], strides = [1, 1, 1]} : vector<14x32x32xbf16> to vector<1x32x32xbf16>
    %394 = vector.shape_cast %393 : vector<1x32x32xbf16> to vector<32x32xbf16>
    %395 = arith.truncf %392 : vector<64x32xf32> to vector<64x32xbf16>
    %cst_135 = arith.constant dense<0.000000e+00> : vector<64x32xf32>
    %396 = tpu.matmul %395, %394, %cst_135 {dimension_numbers = #tpu.dot_dimension_numbers<[1], [0], [0], [1], [0, 0, 1, 1], [], []>} : vector<64x32xbf16>, vector<32x32xbf16>, vector<64x32xf32> -> vector<64x32xf32>
    %397 = vector.extract_strided_slice %59 {offsets = [12, 0], sizes = [1, 32], strides = [1, 1]} : vector<14x32xf32> to vector<1x32xf32>
    %398 = vector.broadcast %397 : vector<1x32xf32> to vector<64x32xf32>
    %399 = arith.addf %396, %398 : vector<64x32xf32>
    %400 = arith.negf %399 : vector<64x32xf32>
    %401 = math.exp %400 : vector<64x32xf32>
    %cst_136 = arith.constant 1.000000e+00 : f32
    %402 = vector.broadcast %cst_136 : f32 to vector<64x32xf32>
    %403 = arith.addf %402, %401 : vector<64x32xf32>
    %404 = arith.divf %402, %403 : vector<64x32xf32>
    %405 = arith.mulf %399, %404 : vector<64x32xf32>
    %406 = vector.extract_strided_slice %58 {offsets = [13, 0, 0], sizes = [1, 32, 32], strides = [1, 1, 1]} : vector<14x32x32xbf16> to vector<1x32x32xbf16>
    %407 = vector.shape_cast %406 : vector<1x32x32xbf16> to vector<32x32xbf16>
    %408 = arith.truncf %405 : vector<64x32xf32> to vector<64x32xbf16>
    %cst_137 = arith.constant dense<0.000000e+00> : vector<64x32xf32>
    %409 = tpu.matmul %408, %407, %cst_137 {dimension_numbers = #tpu.dot_dimension_numbers<[1], [0], [0], [1], [0, 0, 1, 1], [], []>} : vector<64x32xbf16>, vector<32x32xbf16>, vector<64x32xf32> -> vector<64x32xf32>
    %410 = vector.extract_strided_slice %59 {offsets = [13, 0], sizes = [1, 32], strides = [1, 1]} : vector<14x32xf32> to vector<1x32xf32>
    %411 = vector.broadcast %410 : vector<1x32xf32> to vector<64x32xf32>
    %412 = arith.addf %409, %411 : vector<64x32xf32>
    %413 = arith.negf %412 : vector<64x32xf32>
    %414 = math.exp %413 : vector<64x32xf32>
    %cst_138 = arith.constant 1.000000e+00 : f32
    %415 = vector.broadcast %cst_138 : f32 to vector<64x32xf32>
    %416 = arith.addf %415, %414 : vector<64x32xf32>
    %417 = arith.divf %415, %416 : vector<64x32xf32>
    %418 = arith.mulf %412, %417 : vector<64x32xf32>
    %419 = arith.addf %392, %418 : vector<64x32xf32>
    %420 = vector.extract_strided_slice %60 {offsets = [1, 0, 0], sizes = [1, 6, 32], strides = [1, 1, 1]} : vector<2x6x32xbf16> to vector<1x6x32xbf16>
    %421 = vector.shape_cast %420 : vector<1x6x32xbf16> to vector<6x32xbf16>
    %cst_139 = arith.constant dense<0.000000e+00> : vector<64x32xf32>
    %422 = tpu.matmul %3, %421, %cst_139 {dimension_numbers = #tpu.dot_dimension_numbers<[1], [0], [0], [1], [0, 0, 1, 1], [], []>} : vector<64x6xbf16>, vector<6x32xbf16>, vector<64x32xf32> -> vector<64x32xf32>
    %423 = arith.mulf %422, %419 : vector<64x32xf32>
    %cst_140 = arith.constant dense<0.000000e+00> : vector<16x32xf32>
    %424 = tpu.matmul %6, %423, %cst_140 {dimension_numbers = #tpu.dot_dimension_numbers<[1], [0], [0], [1], [0, 0, 1, 1], [], []>} : vector<16x64xf32>, vector<64x32xf32>, vector<16x32xf32> -> vector<16x32xf32>
    %425 = vector.extract_strided_slice %47 {offsets = [2, 0, 0], sizes = [1, 32, 64], strides = [1, 1, 1]} : vector<3x32x64xbf16> to vector<1x32x64xbf16>
    %426 = vector.shape_cast %425 : vector<1x32x64xbf16> to vector<32x64xbf16>
    %427 = arith.truncf %424 : vector<16x32xf32> to vector<16x32xbf16>
    %cst_141 = arith.constant dense<0.000000e+00> : vector<16x64xf32>
    %428 = tpu.matmul %427, %426, %cst_141 {dimension_numbers = #tpu.dot_dimension_numbers<[1], [0], [0], [1], [0, 0, 1, 1], [], []>} : vector<16x32xbf16>, vector<32x64xbf16>, vector<16x64xf32> -> vector<16x64xf32>
    %429 = vector.extract_strided_slice %48 {offsets = [2, 0], sizes = [1, 64], strides = [1, 1]} : vector<3x64xf32> to vector<1x64xf32>
    %430 = vector.broadcast %429 : vector<1x64xf32> to vector<16x64xf32>
    %431 = arith.addf %428, %430 : vector<16x64xf32>
    %432 = vector.extract_strided_slice %49 {offsets = [4, 0, 0], sizes = [1, 64, 64], strides = [1, 1, 1]} : vector<6x64x64xbf16> to vector<1x64x64xbf16>
    %433 = vector.shape_cast %432 : vector<1x64x64xbf16> to vector<64x64xbf16>
    %434 = arith.truncf %431 : vector<16x64xf32> to vector<16x64xbf16>
    %cst_142 = arith.constant dense<0.000000e+00> : vector<16x64xf32>
    %435 = tpu.matmul %434, %433, %cst_142 {dimension_numbers = #tpu.dot_dimension_numbers<[1], [0], [0], [1], [0, 0, 1, 1], [], []>} : vector<16x64xbf16>, vector<64x64xbf16>, vector<16x64xf32> -> vector<16x64xf32>
    %436 = vector.extract_strided_slice %50 {offsets = [4, 0], sizes = [1, 64], strides = [1, 1]} : vector<6x64xf32> to vector<1x64xf32>
    %437 = vector.broadcast %436 : vector<1x64xf32> to vector<16x64xf32>
    %438 = arith.addf %435, %437 : vector<16x64xf32>
    %439 = arith.negf %438 : vector<16x64xf32>
    %440 = math.exp %439 : vector<16x64xf32>
    %cst_143 = arith.constant 1.000000e+00 : f32
    %441 = vector.broadcast %cst_143 : f32 to vector<16x64xf32>
    %442 = arith.addf %441, %440 : vector<16x64xf32>
    %443 = arith.divf %441, %442 : vector<16x64xf32>
    %444 = arith.mulf %438, %443 : vector<16x64xf32>
    %445 = vector.extract_strided_slice %49 {offsets = [5, 0, 0], sizes = [1, 64, 64], strides = [1, 1, 1]} : vector<6x64x64xbf16> to vector<1x64x64xbf16>
    %446 = vector.shape_cast %445 : vector<1x64x64xbf16> to vector<64x64xbf16>
    %447 = arith.truncf %444 : vector<16x64xf32> to vector<16x64xbf16>
    %cst_144 = arith.constant dense<0.000000e+00> : vector<16x64xf32>
    %448 = tpu.matmul %447, %446, %cst_144 {dimension_numbers = #tpu.dot_dimension_numbers<[1], [0], [0], [1], [0, 0, 1, 1], [], []>} : vector<16x64xbf16>, vector<64x64xbf16>, vector<16x64xf32> -> vector<16x64xf32>
    %449 = vector.extract_strided_slice %50 {offsets = [5, 0], sizes = [1, 64], strides = [1, 1]} : vector<6x64xf32> to vector<1x64xf32>
    %450 = vector.broadcast %449 : vector<1x64xf32> to vector<16x64xf32>
    %451 = arith.addf %448, %450 : vector<16x64xf32>
    %452 = arith.negf %451 : vector<16x64xf32>
    %453 = math.exp %452 : vector<16x64xf32>
    %cst_145 = arith.constant 1.000000e+00 : f32
    %454 = vector.broadcast %cst_145 : f32 to vector<16x64xf32>
    %455 = arith.addf %454, %453 : vector<16x64xf32>
    %456 = arith.divf %454, %455 : vector<16x64xf32>
    %457 = arith.mulf %451, %456 : vector<16x64xf32>
    %458 = vector.extract_strided_slice %51 {offsets = [2, 0, 0], sizes = [1, 64, 32], strides = [1, 1, 1]} : vector<3x64x32xbf16> to vector<1x64x32xbf16>
    %459 = vector.shape_cast %458 : vector<1x64x32xbf16> to vector<64x32xbf16>
    %460 = arith.truncf %457 : vector<16x64xf32> to vector<16x64xbf16>
    %cst_146 = arith.constant dense<0.000000e+00> : vector<16x32xf32>
    %461 = tpu.matmul %460, %459, %cst_146 {dimension_numbers = #tpu.dot_dimension_numbers<[1], [0], [0], [1], [0, 0, 1, 1], [], []>} : vector<16x64xbf16>, vector<64x32xbf16>, vector<16x32xf32> -> vector<16x32xf32>
    %462 = arith.addf %461, %281 : vector<16x32xf32>
    %c0_147 = arith.constant 0 : index
    %c0_148 = arith.constant 0 : index
    %463 = vector.load %arg13[%c0_147, %c0_148] : memref<16x1xi32, #tpu.memory_space<vmem>>, vector<16x1xi32>
    %c0_i32 = arith.constant 0 : i32
    %464 = vector.broadcast %c0_i32 : i32 to vector<16x1xi32>
    %465 = arith.cmpi eq, %463, %464 : vector<16x1xi32>
    %cst_149 = arith.constant 0xFF800000 : f32
    %466 = vector.shape_cast %465 : vector<16x1xi1> to vector<16x1xi1>
    %467 = vector.broadcast %466 : vector<16x1xi1> to vector<16x32xi1>
    %468 = vector.broadcast %cst_149 : f32 to vector<16x32xf32>
    %469 = arith.select %467, %462, %468 : vector<16x32xi1>, vector<16x32xf32>
    %cst_150 = arith.constant dense<0xFF800000> : vector<32xf32>
    %470 = vector.multi_reduction <maximumf>, %469, %cst_150 [0] : vector<16x32xf32> to vector<32xf32>
    %471 = vector.shape_cast %470 : vector<32xf32> to vector<1x32xf32>
    %c1_i32 = arith.constant 1 : i32
    %472 = vector.broadcast %c1_i32 : i32 to vector<16x1xi32>
    %473 = arith.cmpi eq, %463, %472 : vector<16x1xi32>
    %cst_151 = arith.constant 0xFF800000 : f32
    %474 = vector.shape_cast %473 : vector<16x1xi1> to vector<16x1xi1>
    %475 = vector.broadcast %474 : vector<16x1xi1> to vector<16x32xi1>
    %476 = vector.broadcast %cst_151 : f32 to vector<16x32xf32>
    %477 = arith.select %475, %462, %476 : vector<16x32xi1>, vector<16x32xf32>
    %cst_152 = arith.constant dense<0xFF800000> : vector<32xf32>
    %478 = vector.multi_reduction <maximumf>, %477, %cst_152 [0] : vector<16x32xf32> to vector<32xf32>
    %479 = vector.shape_cast %478 : vector<32xf32> to vector<1x32xf32>
    %c2_i32 = arith.constant 2 : i32
    %480 = vector.broadcast %c2_i32 : i32 to vector<16x1xi32>
    %481 = arith.cmpi eq, %463, %480 : vector<16x1xi32>
    %cst_153 = arith.constant 0xFF800000 : f32
    %482 = vector.shape_cast %481 : vector<16x1xi1> to vector<16x1xi1>
    %483 = vector.broadcast %482 : vector<16x1xi1> to vector<16x32xi1>
    %484 = vector.broadcast %cst_153 : f32 to vector<16x32xf32>
    %485 = arith.select %483, %462, %484 : vector<16x32xi1>, vector<16x32xf32>
    %cst_154 = arith.constant dense<0xFF800000> : vector<32xf32>
    %486 = vector.multi_reduction <maximumf>, %485, %cst_154 [0] : vector<16x32xf32> to vector<32xf32>
    %487 = vector.shape_cast %486 : vector<32xf32> to vector<1x32xf32>
    %cst_155 = arith.constant 0.000000e+00 : f32
    %488 = vector.broadcast %cst_155 : f32 to vector<5x32xf32>
    %489 = tpu.concatenate %471, %479, %487, %488 in 0 : vector<1x32xf32>, vector<1x32xf32>, vector<1x32xf32>, vector<5x32xf32> -> vector<8x32xf32>
    %c0_156 = arith.constant 0 : index
    %c0_157 = arith.constant 0 : index
    %490 = vector.load %arg39[%c0_156, %c0_157] : memref<1x32xf32, #tpu.memory_space<vmem>>, vector<1x32xf32>
    %491 = vector.broadcast %490 : vector<1x32xf32> to vector<16x32xf32>
    %492 = arith.addf %462, %491 : vector<16x32xf32>
    %cst_158 = arith.constant 0.000000e+00 : f32
    %493 = vector.broadcast %cst_158 : f32 to vector<16x32xf32>
    %494 = arith.maximumf %492, %493 : vector<16x32xf32>
    %c0_159 = arith.constant 0 : index
    %c0_160 = arith.constant 0 : index
    %495 = vector.load %arg8[%c0_159, %c0_160] : memref<48x16xbf16, #tpu.memory_space<vmem>>, vector<48x16xbf16>
    %496 = arith.truncf %494 : vector<16x32xf32> to vector<16x32xbf16>
    %cst_161 = arith.constant dense<0.000000e+00> : vector<48x32xf32>
    %497 = tpu.matmul %495, %496, %cst_161 {dimension_numbers = #tpu.dot_dimension_numbers<[1], [0], [0], [1], [0, 0, 1, 1], [], []>} : vector<48x16xbf16>, vector<16x32xbf16>, vector<48x32xf32> -> vector<48x32xf32>
    %498 = arith.truncf %497 : vector<48x32xf32> to vector<48x32xbf16>
    %c0_162 = arith.constant 0 : index
    %c0_163 = arith.constant 0 : index
    %c0_164 = arith.constant 0 : index
    %499 = vector.load %arg35[%c0_162, %c0_163, %c0_164] : memref<6x32x32xbf16, #tpu.memory_space<vmem>>, vector<6x32x32xbf16>
    %c0_165 = arith.constant 0 : index
    %c0_166 = arith.constant 0 : index
    %500 = vector.load %arg36[%c0_165, %c0_166] : memref<6x32xf32, #tpu.memory_space<vmem>>, vector<6x32xf32>
    %c0_167 = arith.constant 0 : index
    %c0_168 = arith.constant 0 : index
    %c0_169 = arith.constant 0 : index
    %501 = vector.load %arg37[%c0_167, %c0_168, %c0_169] : memref<6x32x32xbf16, #tpu.memory_space<vmem>>, vector<6x32x32xbf16>
    %c0_170 = arith.constant 0 : index
    %c0_171 = arith.constant 0 : index
    %502 = vector.load %arg38[%c0_170, %c0_171] : memref<6x32xf32, #tpu.memory_space<vmem>>, vector<6x32xf32>
    %503 = vector.extract_strided_slice %499 {offsets = [0, 0, 0], sizes = [1, 32, 32], strides = [1, 1, 1]} : vector<6x32x32xbf16> to vector<1x32x32xbf16>
    %504 = vector.shape_cast %503 : vector<1x32x32xbf16> to vector<32x32xbf16>
    %cst_172 = arith.constant dense<0.000000e+00> : vector<48x32xf32>
    %505 = tpu.matmul %498, %504, %cst_172 {dimension_numbers = #tpu.dot_dimension_numbers<[1], [0], [0], [1], [0, 0, 1, 1], [], []>} : vector<48x32xbf16>, vector<32x32xbf16>, vector<48x32xf32> -> vector<48x32xf32>
    %506 = vector.extract_strided_slice %500 {offsets = [0, 0], sizes = [1, 32], strides = [1, 1]} : vector<6x32xf32> to vector<1x32xf32>
    %507 = vector.broadcast %506 : vector<1x32xf32> to vector<48x32xf32>
    %508 = arith.addf %505, %507 : vector<48x32xf32>
    %509 = vector.extract_strided_slice %499 {offsets = [1, 0, 0], sizes = [1, 32, 32], strides = [1, 1, 1]} : vector<6x32x32xbf16> to vector<1x32x32xbf16>
    %510 = vector.shape_cast %509 : vector<1x32x32xbf16> to vector<32x32xbf16>
    %cst_173 = arith.constant dense<0.000000e+00> : vector<48x32xf32>
    %511 = tpu.matmul %498, %510, %cst_173 {dimension_numbers = #tpu.dot_dimension_numbers<[1], [0], [0], [1], [0, 0, 1, 1], [], []>} : vector<48x32xbf16>, vector<32x32xbf16>, vector<48x32xf32> -> vector<48x32xf32>
    %512 = vector.extract_strided_slice %500 {offsets = [1, 0], sizes = [1, 32], strides = [1, 1]} : vector<6x32xf32> to vector<1x32xf32>
    %513 = vector.broadcast %512 : vector<1x32xf32> to vector<48x32xf32>
    %514 = arith.addf %511, %513 : vector<48x32xf32>
    %515 = vector.extract_strided_slice %499 {offsets = [2, 0, 0], sizes = [1, 32, 32], strides = [1, 1, 1]} : vector<6x32x32xbf16> to vector<1x32x32xbf16>
    %516 = vector.shape_cast %515 : vector<1x32x32xbf16> to vector<32x32xbf16>
    %cst_174 = arith.constant dense<0.000000e+00> : vector<48x32xf32>
    %517 = tpu.matmul %498, %516, %cst_174 {dimension_numbers = #tpu.dot_dimension_numbers<[1], [0], [0], [1], [0, 0, 1, 1], [], []>} : vector<48x32xbf16>, vector<32x32xbf16>, vector<48x32xf32> -> vector<48x32xf32>
    %518 = vector.extract_strided_slice %500 {offsets = [2, 0], sizes = [1, 32], strides = [1, 1]} : vector<6x32xf32> to vector<1x32xf32>
    %519 = vector.broadcast %518 : vector<1x32xf32> to vector<48x32xf32>
    %520 = arith.addf %517, %519 : vector<48x32xf32>
    %521 = vector.extract_strided_slice %499 {offsets = [3, 0, 0], sizes = [1, 32, 32], strides = [1, 1, 1]} : vector<6x32x32xbf16> to vector<1x32x32xbf16>
    %522 = vector.shape_cast %521 : vector<1x32x32xbf16> to vector<32x32xbf16>
    %cst_175 = arith.constant dense<0.000000e+00> : vector<48x32xf32>
    %523 = tpu.matmul %498, %522, %cst_175 {dimension_numbers = #tpu.dot_dimension_numbers<[1], [0], [0], [1], [0, 0, 1, 1], [], []>} : vector<48x32xbf16>, vector<32x32xbf16>, vector<48x32xf32> -> vector<48x32xf32>
    %524 = vector.extract_strided_slice %500 {offsets = [3, 0], sizes = [1, 32], strides = [1, 1]} : vector<6x32xf32> to vector<1x32xf32>
    %525 = vector.broadcast %524 : vector<1x32xf32> to vector<48x32xf32>
    %526 = arith.addf %523, %525 : vector<48x32xf32>
    %527 = vector.extract_strided_slice %499 {offsets = [4, 0, 0], sizes = [1, 32, 32], strides = [1, 1, 1]} : vector<6x32x32xbf16> to vector<1x32x32xbf16>
    %528 = vector.shape_cast %527 : vector<1x32x32xbf16> to vector<32x32xbf16>
    %cst_176 = arith.constant dense<0.000000e+00> : vector<48x32xf32>
    %529 = tpu.matmul %498, %528, %cst_176 {dimension_numbers = #tpu.dot_dimension_numbers<[1], [0], [0], [1], [0, 0, 1, 1], [], []>} : vector<48x32xbf16>, vector<32x32xbf16>, vector<48x32xf32> -> vector<48x32xf32>
    %530 = vector.extract_strided_slice %500 {offsets = [4, 0], sizes = [1, 32], strides = [1, 1]} : vector<6x32xf32> to vector<1x32xf32>
    %531 = vector.broadcast %530 : vector<1x32xf32> to vector<48x32xf32>
    %532 = arith.addf %529, %531 : vector<48x32xf32>
    %533 = vector.extract_strided_slice %499 {offsets = [5, 0, 0], sizes = [1, 32, 32], strides = [1, 1, 1]} : vector<6x32x32xbf16> to vector<1x32x32xbf16>
    %534 = vector.shape_cast %533 : vector<1x32x32xbf16> to vector<32x32xbf16>
    %cst_177 = arith.constant dense<0.000000e+00> : vector<48x32xf32>
    %535 = tpu.matmul %498, %534, %cst_177 {dimension_numbers = #tpu.dot_dimension_numbers<[1], [0], [0], [1], [0, 0, 1, 1], [], []>} : vector<48x32xbf16>, vector<32x32xbf16>, vector<48x32xf32> -> vector<48x32xf32>
    %536 = vector.extract_strided_slice %500 {offsets = [5, 0], sizes = [1, 32], strides = [1, 1]} : vector<6x32xf32> to vector<1x32xf32>
    %537 = vector.broadcast %536 : vector<1x32xf32> to vector<48x32xf32>
    %538 = arith.addf %535, %537 : vector<48x32xf32>
    %539 = arith.truncf %489 : vector<8x32xf32> to vector<8x32xbf16>
    %540 = vector.extract_strided_slice %501 {offsets = [0, 0, 0], sizes = [1, 32, 32], strides = [1, 1, 1]} : vector<6x32x32xbf16> to vector<1x32x32xbf16>
    %541 = vector.shape_cast %540 : vector<1x32x32xbf16> to vector<32x32xbf16>
    %cst_178 = arith.constant dense<0.000000e+00> : vector<8x32xf32>
    %542 = tpu.matmul %539, %541, %cst_178 {dimension_numbers = #tpu.dot_dimension_numbers<[1], [0], [0], [1], [0, 0, 1, 1], [], []>} : vector<8x32xbf16>, vector<32x32xbf16>, vector<8x32xf32> -> vector<8x32xf32>
    %543 = vector.extract_strided_slice %502 {offsets = [0, 0], sizes = [1, 32], strides = [1, 1]} : vector<6x32xf32> to vector<1x32xf32>
    %544 = vector.broadcast %543 : vector<1x32xf32> to vector<8x32xf32>
    %545 = arith.addf %542, %544 : vector<8x32xf32>
    %546 = vector.extract_strided_slice %501 {offsets = [1, 0, 0], sizes = [1, 32, 32], strides = [1, 1, 1]} : vector<6x32x32xbf16> to vector<1x32x32xbf16>
    %547 = vector.shape_cast %546 : vector<1x32x32xbf16> to vector<32x32xbf16>
    %cst_179 = arith.constant dense<0.000000e+00> : vector<8x32xf32>
    %548 = tpu.matmul %539, %547, %cst_179 {dimension_numbers = #tpu.dot_dimension_numbers<[1], [0], [0], [1], [0, 0, 1, 1], [], []>} : vector<8x32xbf16>, vector<32x32xbf16>, vector<8x32xf32> -> vector<8x32xf32>
    %549 = vector.extract_strided_slice %502 {offsets = [1, 0], sizes = [1, 32], strides = [1, 1]} : vector<6x32xf32> to vector<1x32xf32>
    %550 = vector.broadcast %549 : vector<1x32xf32> to vector<8x32xf32>
    %551 = arith.addf %548, %550 : vector<8x32xf32>
    %552 = vector.extract_strided_slice %501 {offsets = [2, 0, 0], sizes = [1, 32, 32], strides = [1, 1, 1]} : vector<6x32x32xbf16> to vector<1x32x32xbf16>
    %553 = vector.shape_cast %552 : vector<1x32x32xbf16> to vector<32x32xbf16>
    %cst_180 = arith.constant dense<0.000000e+00> : vector<8x32xf32>
    %554 = tpu.matmul %539, %553, %cst_180 {dimension_numbers = #tpu.dot_dimension_numbers<[1], [0], [0], [1], [0, 0, 1, 1], [], []>} : vector<8x32xbf16>, vector<32x32xbf16>, vector<8x32xf32> -> vector<8x32xf32>
    %555 = vector.extract_strided_slice %502 {offsets = [2, 0], sizes = [1, 32], strides = [1, 1]} : vector<6x32xf32> to vector<1x32xf32>
    %556 = vector.broadcast %555 : vector<1x32xf32> to vector<8x32xf32>
    %557 = arith.addf %554, %556 : vector<8x32xf32>
    %558 = vector.extract_strided_slice %508 {offsets = [0, 0], sizes = [8, 32], strides = [1, 1]} : vector<48x32xf32> to vector<8x32xf32>
    %559 = arith.addf %558, %545 : vector<8x32xf32>
    %560 = arith.negf %559 : vector<8x32xf32>
    %561 = math.exp %560 : vector<8x32xf32>
    %cst_181 = arith.constant 1.000000e+00 : f32
    %562 = vector.broadcast %cst_181 : f32 to vector<8x32xf32>
    %563 = arith.addf %562, %561 : vector<8x32xf32>
    %564 = arith.divf %562, %563 : vector<8x32xf32>
    %565 = vector.extract_strided_slice %514 {offsets = [0, 0], sizes = [8, 32], strides = [1, 1]} : vector<48x32xf32> to vector<8x32xf32>
    %566 = arith.addf %565, %551 : vector<8x32xf32>
    %567 = arith.negf %566 : vector<8x32xf32>
    %568 = math.exp %567 : vector<8x32xf32>
    %cst_182 = arith.constant 1.000000e+00 : f32
    %569 = vector.broadcast %cst_182 : f32 to vector<8x32xf32>
    %570 = arith.addf %569, %568 : vector<8x32xf32>
    %571 = arith.divf %569, %570 : vector<8x32xf32>
    %572 = vector.extract_strided_slice %520 {offsets = [0, 0], sizes = [8, 32], strides = [1, 1]} : vector<48x32xf32> to vector<8x32xf32>
    %573 = arith.mulf %564, %557 : vector<8x32xf32>
    %574 = arith.addf %572, %573 : vector<8x32xf32>
    %575 = math.tanh %574 : vector<8x32xf32>
    %cst_183 = arith.constant 1.000000e+00 : f32
    %576 = vector.broadcast %cst_183 : f32 to vector<8x32xf32>
    %577 = arith.subf %576, %571 : vector<8x32xf32>
    %578 = arith.mulf %577, %575 : vector<8x32xf32>
    %579 = arith.mulf %571, %489 : vector<8x32xf32>
    %580 = arith.addf %578, %579 : vector<8x32xf32>
    %581 = arith.truncf %580 : vector<8x32xf32> to vector<8x32xbf16>
    %582 = vector.extract_strided_slice %501 {offsets = [0, 0, 0], sizes = [1, 32, 32], strides = [1, 1, 1]} : vector<6x32x32xbf16> to vector<1x32x32xbf16>
    %583 = vector.shape_cast %582 : vector<1x32x32xbf16> to vector<32x32xbf16>
    %cst_184 = arith.constant dense<0.000000e+00> : vector<8x32xf32>
    %584 = tpu.matmul %581, %583, %cst_184 {dimension_numbers = #tpu.dot_dimension_numbers<[1], [0], [0], [1], [0, 0, 1, 1], [], []>} : vector<8x32xbf16>, vector<32x32xbf16>, vector<8x32xf32> -> vector<8x32xf32>
    %585 = vector.extract_strided_slice %502 {offsets = [0, 0], sizes = [1, 32], strides = [1, 1]} : vector<6x32xf32> to vector<1x32xf32>
    %586 = vector.broadcast %585 : vector<1x32xf32> to vector<8x32xf32>
    %587 = arith.addf %584, %586 : vector<8x32xf32>
    %588 = vector.extract_strided_slice %501 {offsets = [1, 0, 0], sizes = [1, 32, 32], strides = [1, 1, 1]} : vector<6x32x32xbf16> to vector<1x32x32xbf16>
    %589 = vector.shape_cast %588 : vector<1x32x32xbf16> to vector<32x32xbf16>
    %cst_185 = arith.constant dense<0.000000e+00> : vector<8x32xf32>
    %590 = tpu.matmul %581, %589, %cst_185 {dimension_numbers = #tpu.dot_dimension_numbers<[1], [0], [0], [1], [0, 0, 1, 1], [], []>} : vector<8x32xbf16>, vector<32x32xbf16>, vector<8x32xf32> -> vector<8x32xf32>
    %591 = vector.extract_strided_slice %502 {offsets = [1, 0], sizes = [1, 32], strides = [1, 1]} : vector<6x32xf32> to vector<1x32xf32>
    %592 = vector.broadcast %591 : vector<1x32xf32> to vector<8x32xf32>
    %593 = arith.addf %590, %592 : vector<8x32xf32>
    %594 = vector.extract_strided_slice %501 {offsets = [2, 0, 0], sizes = [1, 32, 32], strides = [1, 1, 1]} : vector<6x32x32xbf16> to vector<1x32x32xbf16>
    %595 = vector.shape_cast %594 : vector<1x32x32xbf16> to vector<32x32xbf16>
    %cst_186 = arith.constant dense<0.000000e+00> : vector<8x32xf32>
    %596 = tpu.matmul %581, %595, %cst_186 {dimension_numbers = #tpu.dot_dimension_numbers<[1], [0], [0], [1], [0, 0, 1, 1], [], []>} : vector<8x32xbf16>, vector<32x32xbf16>, vector<8x32xf32> -> vector<8x32xf32>
    %597 = vector.extract_strided_slice %502 {offsets = [2, 0], sizes = [1, 32], strides = [1, 1]} : vector<6x32xf32> to vector<1x32xf32>
    %598 = vector.broadcast %597 : vector<1x32xf32> to vector<8x32xf32>
    %599 = arith.addf %596, %598 : vector<8x32xf32>
    %600 = vector.extract_strided_slice %508 {offsets = [8, 0], sizes = [8, 32], strides = [1, 1]} : vector<48x32xf32> to vector<8x32xf32>
    %601 = arith.addf %600, %587 : vector<8x32xf32>
    %602 = arith.negf %601 : vector<8x32xf32>
    %603 = math.exp %602 : vector<8x32xf32>
    %cst_187 = arith.constant 1.000000e+00 : f32
    %604 = vector.broadcast %cst_187 : f32 to vector<8x32xf32>
    %605 = arith.addf %604, %603 : vector<8x32xf32>
    %606 = arith.divf %604, %605 : vector<8x32xf32>
    %607 = vector.extract_strided_slice %514 {offsets = [8, 0], sizes = [8, 32], strides = [1, 1]} : vector<48x32xf32> to vector<8x32xf32>
    %608 = arith.addf %607, %593 : vector<8x32xf32>
    %609 = arith.negf %608 : vector<8x32xf32>
    %610 = math.exp %609 : vector<8x32xf32>
    %cst_188 = arith.constant 1.000000e+00 : f32
    %611 = vector.broadcast %cst_188 : f32 to vector<8x32xf32>
    %612 = arith.addf %611, %610 : vector<8x32xf32>
    %613 = arith.divf %611, %612 : vector<8x32xf32>
    %614 = vector.extract_strided_slice %520 {offsets = [8, 0], sizes = [8, 32], strides = [1, 1]} : vector<48x32xf32> to vector<8x32xf32>
    %615 = arith.mulf %606, %599 : vector<8x32xf32>
    %616 = arith.addf %614, %615 : vector<8x32xf32>
    %617 = math.tanh %616 : vector<8x32xf32>
    %cst_189 = arith.constant 1.000000e+00 : f32
    %618 = vector.broadcast %cst_189 : f32 to vector<8x32xf32>
    %619 = arith.subf %618, %613 : vector<8x32xf32>
    %620 = arith.mulf %619, %617 : vector<8x32xf32>
    %621 = arith.mulf %613, %580 : vector<8x32xf32>
    %622 = arith.addf %620, %621 : vector<8x32xf32>
    %623 = arith.truncf %622 : vector<8x32xf32> to vector<8x32xbf16>
    %624 = vector.extract_strided_slice %501 {offsets = [0, 0, 0], sizes = [1, 32, 32], strides = [1, 1, 1]} : vector<6x32x32xbf16> to vector<1x32x32xbf16>
    %625 = vector.shape_cast %624 : vector<1x32x32xbf16> to vector<32x32xbf16>
    %cst_190 = arith.constant dense<0.000000e+00> : vector<8x32xf32>
    %626 = tpu.matmul %623, %625, %cst_190 {dimension_numbers = #tpu.dot_dimension_numbers<[1], [0], [0], [1], [0, 0, 1, 1], [], []>} : vector<8x32xbf16>, vector<32x32xbf16>, vector<8x32xf32> -> vector<8x32xf32>
    %627 = vector.extract_strided_slice %502 {offsets = [0, 0], sizes = [1, 32], strides = [1, 1]} : vector<6x32xf32> to vector<1x32xf32>
    %628 = vector.broadcast %627 : vector<1x32xf32> to vector<8x32xf32>
    %629 = arith.addf %626, %628 : vector<8x32xf32>
    %630 = vector.extract_strided_slice %501 {offsets = [1, 0, 0], sizes = [1, 32, 32], strides = [1, 1, 1]} : vector<6x32x32xbf16> to vector<1x32x32xbf16>
    %631 = vector.shape_cast %630 : vector<1x32x32xbf16> to vector<32x32xbf16>
    %cst_191 = arith.constant dense<0.000000e+00> : vector<8x32xf32>
    %632 = tpu.matmul %623, %631, %cst_191 {dimension_numbers = #tpu.dot_dimension_numbers<[1], [0], [0], [1], [0, 0, 1, 1], [], []>} : vector<8x32xbf16>, vector<32x32xbf16>, vector<8x32xf32> -> vector<8x32xf32>
    %633 = vector.extract_strided_slice %502 {offsets = [1, 0], sizes = [1, 32], strides = [1, 1]} : vector<6x32xf32> to vector<1x32xf32>
    %634 = vector.broadcast %633 : vector<1x32xf32> to vector<8x32xf32>
    %635 = arith.addf %632, %634 : vector<8x32xf32>
    %636 = vector.extract_strided_slice %501 {offsets = [2, 0, 0], sizes = [1, 32, 32], strides = [1, 1, 1]} : vector<6x32x32xbf16> to vector<1x32x32xbf16>
    %637 = vector.shape_cast %636 : vector<1x32x32xbf16> to vector<32x32xbf16>
    %cst_192 = arith.constant dense<0.000000e+00> : vector<8x32xf32>
    %638 = tpu.matmul %623, %637, %cst_192 {dimension_numbers = #tpu.dot_dimension_numbers<[1], [0], [0], [1], [0, 0, 1, 1], [], []>} : vector<8x32xbf16>, vector<32x32xbf16>, vector<8x32xf32> -> vector<8x32xf32>
    %639 = vector.extract_strided_slice %502 {offsets = [2, 0], sizes = [1, 32], strides = [1, 1]} : vector<6x32xf32> to vector<1x32xf32>
    %640 = vector.broadcast %639 : vector<1x32xf32> to vector<8x32xf32>
    %641 = arith.addf %638, %640 : vector<8x32xf32>
    %642 = vector.extract_strided_slice %508 {offsets = [16, 0], sizes = [8, 32], strides = [1, 1]} : vector<48x32xf32> to vector<8x32xf32>
    %643 = arith.addf %642, %629 : vector<8x32xf32>
    %644 = arith.negf %643 : vector<8x32xf32>
    %645 = math.exp %644 : vector<8x32xf32>
    %cst_193 = arith.constant 1.000000e+00 : f32
    %646 = vector.broadcast %cst_193 : f32 to vector<8x32xf32>
    %647 = arith.addf %646, %645 : vector<8x32xf32>
    %648 = arith.divf %646, %647 : vector<8x32xf32>
    %649 = vector.extract_strided_slice %514 {offsets = [16, 0], sizes = [8, 32], strides = [1, 1]} : vector<48x32xf32> to vector<8x32xf32>
    %650 = arith.addf %649, %635 : vector<8x32xf32>
    %651 = arith.negf %650 : vector<8x32xf32>
    %652 = math.exp %651 : vector<8x32xf32>
    %cst_194 = arith.constant 1.000000e+00 : f32
    %653 = vector.broadcast %cst_194 : f32 to vector<8x32xf32>
    %654 = arith.addf %653, %652 : vector<8x32xf32>
    %655 = arith.divf %653, %654 : vector<8x32xf32>
    %656 = vector.extract_strided_slice %520 {offsets = [16, 0], sizes = [8, 32], strides = [1, 1]} : vector<48x32xf32> to vector<8x32xf32>
    %657 = arith.mulf %648, %641 : vector<8x32xf32>
    %658 = arith.addf %656, %657 : vector<8x32xf32>
    %659 = math.tanh %658 : vector<8x32xf32>
    %cst_195 = arith.constant 1.000000e+00 : f32
    %660 = vector.broadcast %cst_195 : f32 to vector<8x32xf32>
    %661 = arith.subf %660, %655 : vector<8x32xf32>
    %662 = arith.mulf %661, %659 : vector<8x32xf32>
    %663 = arith.mulf %655, %622 : vector<8x32xf32>
    %664 = arith.addf %662, %663 : vector<8x32xf32>
    %665 = arith.truncf %664 : vector<8x32xf32> to vector<8x32xbf16>
    %666 = vector.extract_strided_slice %501 {offsets = [0, 0, 0], sizes = [1, 32, 32], strides = [1, 1, 1]} : vector<6x32x32xbf16> to vector<1x32x32xbf16>
    %667 = vector.shape_cast %666 : vector<1x32x32xbf16> to vector<32x32xbf16>
    %cst_196 = arith.constant dense<0.000000e+00> : vector<8x32xf32>
    %668 = tpu.matmul %665, %667, %cst_196 {dimension_numbers = #tpu.dot_dimension_numbers<[1], [0], [0], [1], [0, 0, 1, 1], [], []>} : vector<8x32xbf16>, vector<32x32xbf16>, vector<8x32xf32> -> vector<8x32xf32>
    %669 = vector.extract_strided_slice %502 {offsets = [0, 0], sizes = [1, 32], strides = [1, 1]} : vector<6x32xf32> to vector<1x32xf32>
    %670 = vector.broadcast %669 : vector<1x32xf32> to vector<8x32xf32>
    %671 = arith.addf %668, %670 : vector<8x32xf32>
    %672 = vector.extract_strided_slice %501 {offsets = [1, 0, 0], sizes = [1, 32, 32], strides = [1, 1, 1]} : vector<6x32x32xbf16> to vector<1x32x32xbf16>
    %673 = vector.shape_cast %672 : vector<1x32x32xbf16> to vector<32x32xbf16>
    %cst_197 = arith.constant dense<0.000000e+00> : vector<8x32xf32>
    %674 = tpu.matmul %665, %673, %cst_197 {dimension_numbers = #tpu.dot_dimension_numbers<[1], [0], [0], [1], [0, 0, 1, 1], [], []>} : vector<8x32xbf16>, vector<32x32xbf16>, vector<8x32xf32> -> vector<8x32xf32>
    %675 = vector.extract_strided_slice %502 {offsets = [1, 0], sizes = [1, 32], strides = [1, 1]} : vector<6x32xf32> to vector<1x32xf32>
    %676 = vector.broadcast %675 : vector<1x32xf32> to vector<8x32xf32>
    %677 = arith.addf %674, %676 : vector<8x32xf32>
    %678 = vector.extract_strided_slice %501 {offsets = [2, 0, 0], sizes = [1, 32, 32], strides = [1, 1, 1]} : vector<6x32x32xbf16> to vector<1x32x32xbf16>
    %679 = vector.shape_cast %678 : vector<1x32x32xbf16> to vector<32x32xbf16>
    %cst_198 = arith.constant dense<0.000000e+00> : vector<8x32xf32>
    %680 = tpu.matmul %665, %679, %cst_198 {dimension_numbers = #tpu.dot_dimension_numbers<[1], [0], [0], [1], [0, 0, 1, 1], [], []>} : vector<8x32xbf16>, vector<32x32xbf16>, vector<8x32xf32> -> vector<8x32xf32>
    %681 = vector.extract_strided_slice %502 {offsets = [2, 0], sizes = [1, 32], strides = [1, 1]} : vector<6x32xf32> to vector<1x32xf32>
    %682 = vector.broadcast %681 : vector<1x32xf32> to vector<8x32xf32>
    %683 = arith.addf %680, %682 : vector<8x32xf32>
    %684 = vector.extract_strided_slice %508 {offsets = [24, 0], sizes = [8, 32], strides = [1, 1]} : vector<48x32xf32> to vector<8x32xf32>
    %685 = arith.addf %684, %671 : vector<8x32xf32>
    %686 = arith.negf %685 : vector<8x32xf32>
    %687 = math.exp %686 : vector<8x32xf32>
    %cst_199 = arith.constant 1.000000e+00 : f32
    %688 = vector.broadcast %cst_199 : f32 to vector<8x32xf32>
    %689 = arith.addf %688, %687 : vector<8x32xf32>
    %690 = arith.divf %688, %689 : vector<8x32xf32>
    %691 = vector.extract_strided_slice %514 {offsets = [24, 0], sizes = [8, 32], strides = [1, 1]} : vector<48x32xf32> to vector<8x32xf32>
    %692 = arith.addf %691, %677 : vector<8x32xf32>
    %693 = arith.negf %692 : vector<8x32xf32>
    %694 = math.exp %693 : vector<8x32xf32>
    %cst_200 = arith.constant 1.000000e+00 : f32
    %695 = vector.broadcast %cst_200 : f32 to vector<8x32xf32>
    %696 = arith.addf %695, %694 : vector<8x32xf32>
    %697 = arith.divf %695, %696 : vector<8x32xf32>
    %698 = vector.extract_strided_slice %520 {offsets = [24, 0], sizes = [8, 32], strides = [1, 1]} : vector<48x32xf32> to vector<8x32xf32>
    %699 = arith.mulf %690, %683 : vector<8x32xf32>
    %700 = arith.addf %698, %699 : vector<8x32xf32>
    %701 = math.tanh %700 : vector<8x32xf32>
    %cst_201 = arith.constant 1.000000e+00 : f32
    %702 = vector.broadcast %cst_201 : f32 to vector<8x32xf32>
    %703 = arith.subf %702, %697 : vector<8x32xf32>
    %704 = arith.mulf %703, %701 : vector<8x32xf32>
    %705 = arith.mulf %697, %664 : vector<8x32xf32>
    %706 = arith.addf %704, %705 : vector<8x32xf32>
    %707 = arith.truncf %706 : vector<8x32xf32> to vector<8x32xbf16>
    %708 = vector.extract_strided_slice %501 {offsets = [0, 0, 0], sizes = [1, 32, 32], strides = [1, 1, 1]} : vector<6x32x32xbf16> to vector<1x32x32xbf16>
    %709 = vector.shape_cast %708 : vector<1x32x32xbf16> to vector<32x32xbf16>
    %cst_202 = arith.constant dense<0.000000e+00> : vector<8x32xf32>
    %710 = tpu.matmul %707, %709, %cst_202 {dimension_numbers = #tpu.dot_dimension_numbers<[1], [0], [0], [1], [0, 0, 1, 1], [], []>} : vector<8x32xbf16>, vector<32x32xbf16>, vector<8x32xf32> -> vector<8x32xf32>
    %711 = vector.extract_strided_slice %502 {offsets = [0, 0], sizes = [1, 32], strides = [1, 1]} : vector<6x32xf32> to vector<1x32xf32>
    %712 = vector.broadcast %711 : vector<1x32xf32> to vector<8x32xf32>
    %713 = arith.addf %710, %712 : vector<8x32xf32>
    %714 = vector.extract_strided_slice %501 {offsets = [1, 0, 0], sizes = [1, 32, 32], strides = [1, 1, 1]} : vector<6x32x32xbf16> to vector<1x32x32xbf16>
    %715 = vector.shape_cast %714 : vector<1x32x32xbf16> to vector<32x32xbf16>
    %cst_203 = arith.constant dense<0.000000e+00> : vector<8x32xf32>
    %716 = tpu.matmul %707, %715, %cst_203 {dimension_numbers = #tpu.dot_dimension_numbers<[1], [0], [0], [1], [0, 0, 1, 1], [], []>} : vector<8x32xbf16>, vector<32x32xbf16>, vector<8x32xf32> -> vector<8x32xf32>
    %717 = vector.extract_strided_slice %502 {offsets = [1, 0], sizes = [1, 32], strides = [1, 1]} : vector<6x32xf32> to vector<1x32xf32>
    %718 = vector.broadcast %717 : vector<1x32xf32> to vector<8x32xf32>
    %719 = arith.addf %716, %718 : vector<8x32xf32>
    %720 = vector.extract_strided_slice %501 {offsets = [2, 0, 0], sizes = [1, 32, 32], strides = [1, 1, 1]} : vector<6x32x32xbf16> to vector<1x32x32xbf16>
    %721 = vector.shape_cast %720 : vector<1x32x32xbf16> to vector<32x32xbf16>
    %cst_204 = arith.constant dense<0.000000e+00> : vector<8x32xf32>
    %722 = tpu.matmul %707, %721, %cst_204 {dimension_numbers = #tpu.dot_dimension_numbers<[1], [0], [0], [1], [0, 0, 1, 1], [], []>} : vector<8x32xbf16>, vector<32x32xbf16>, vector<8x32xf32> -> vector<8x32xf32>
    %723 = vector.extract_strided_slice %502 {offsets = [2, 0], sizes = [1, 32], strides = [1, 1]} : vector<6x32xf32> to vector<1x32xf32>
    %724 = vector.broadcast %723 : vector<1x32xf32> to vector<8x32xf32>
    %725 = arith.addf %722, %724 : vector<8x32xf32>
    %726 = vector.extract_strided_slice %508 {offsets = [32, 0], sizes = [8, 32], strides = [1, 1]} : vector<48x32xf32> to vector<8x32xf32>
    %727 = arith.addf %726, %713 : vector<8x32xf32>
    %728 = arith.negf %727 : vector<8x32xf32>
    %729 = math.exp %728 : vector<8x32xf32>
    %cst_205 = arith.constant 1.000000e+00 : f32
    %730 = vector.broadcast %cst_205 : f32 to vector<8x32xf32>
    %731 = arith.addf %730, %729 : vector<8x32xf32>
    %732 = arith.divf %730, %731 : vector<8x32xf32>
    %733 = vector.extract_strided_slice %514 {offsets = [32, 0], sizes = [8, 32], strides = [1, 1]} : vector<48x32xf32> to vector<8x32xf32>
    %734 = arith.addf %733, %719 : vector<8x32xf32>
    %735 = arith.negf %734 : vector<8x32xf32>
    %736 = math.exp %735 : vector<8x32xf32>
    %cst_206 = arith.constant 1.000000e+00 : f32
    %737 = vector.broadcast %cst_206 : f32 to vector<8x32xf32>
    %738 = arith.addf %737, %736 : vector<8x32xf32>
    %739 = arith.divf %737, %738 : vector<8x32xf32>
    %740 = vector.extract_strided_slice %520 {offsets = [32, 0], sizes = [8, 32], strides = [1, 1]} : vector<48x32xf32> to vector<8x32xf32>
    %741 = arith.mulf %732, %725 : vector<8x32xf32>
    %742 = arith.addf %740, %741 : vector<8x32xf32>
    %743 = math.tanh %742 : vector<8x32xf32>
    %cst_207 = arith.constant 1.000000e+00 : f32
    %744 = vector.broadcast %cst_207 : f32 to vector<8x32xf32>
    %745 = arith.subf %744, %739 : vector<8x32xf32>
    %746 = arith.mulf %745, %743 : vector<8x32xf32>
    %747 = arith.mulf %739, %706 : vector<8x32xf32>
    %748 = arith.addf %746, %747 : vector<8x32xf32>
    %749 = arith.truncf %748 : vector<8x32xf32> to vector<8x32xbf16>
    %750 = vector.extract_strided_slice %501 {offsets = [0, 0, 0], sizes = [1, 32, 32], strides = [1, 1, 1]} : vector<6x32x32xbf16> to vector<1x32x32xbf16>
    %751 = vector.shape_cast %750 : vector<1x32x32xbf16> to vector<32x32xbf16>
    %cst_208 = arith.constant dense<0.000000e+00> : vector<8x32xf32>
    %752 = tpu.matmul %749, %751, %cst_208 {dimension_numbers = #tpu.dot_dimension_numbers<[1], [0], [0], [1], [0, 0, 1, 1], [], []>} : vector<8x32xbf16>, vector<32x32xbf16>, vector<8x32xf32> -> vector<8x32xf32>
    %753 = vector.extract_strided_slice %502 {offsets = [0, 0], sizes = [1, 32], strides = [1, 1]} : vector<6x32xf32> to vector<1x32xf32>
    %754 = vector.broadcast %753 : vector<1x32xf32> to vector<8x32xf32>
    %755 = arith.addf %752, %754 : vector<8x32xf32>
    %756 = vector.extract_strided_slice %501 {offsets = [1, 0, 0], sizes = [1, 32, 32], strides = [1, 1, 1]} : vector<6x32x32xbf16> to vector<1x32x32xbf16>
    %757 = vector.shape_cast %756 : vector<1x32x32xbf16> to vector<32x32xbf16>
    %cst_209 = arith.constant dense<0.000000e+00> : vector<8x32xf32>
    %758 = tpu.matmul %749, %757, %cst_209 {dimension_numbers = #tpu.dot_dimension_numbers<[1], [0], [0], [1], [0, 0, 1, 1], [], []>} : vector<8x32xbf16>, vector<32x32xbf16>, vector<8x32xf32> -> vector<8x32xf32>
    %759 = vector.extract_strided_slice %502 {offsets = [1, 0], sizes = [1, 32], strides = [1, 1]} : vector<6x32xf32> to vector<1x32xf32>
    %760 = vector.broadcast %759 : vector<1x32xf32> to vector<8x32xf32>
    %761 = arith.addf %758, %760 : vector<8x32xf32>
    %762 = vector.extract_strided_slice %501 {offsets = [2, 0, 0], sizes = [1, 32, 32], strides = [1, 1, 1]} : vector<6x32x32xbf16> to vector<1x32x32xbf16>
    %763 = vector.shape_cast %762 : vector<1x32x32xbf16> to vector<32x32xbf16>
    %cst_210 = arith.constant dense<0.000000e+00> : vector<8x32xf32>
    %764 = tpu.matmul %749, %763, %cst_210 {dimension_numbers = #tpu.dot_dimension_numbers<[1], [0], [0], [1], [0, 0, 1, 1], [], []>} : vector<8x32xbf16>, vector<32x32xbf16>, vector<8x32xf32> -> vector<8x32xf32>
    %765 = vector.extract_strided_slice %502 {offsets = [2, 0], sizes = [1, 32], strides = [1, 1]} : vector<6x32xf32> to vector<1x32xf32>
    %766 = vector.broadcast %765 : vector<1x32xf32> to vector<8x32xf32>
    %767 = arith.addf %764, %766 : vector<8x32xf32>
    %768 = vector.extract_strided_slice %508 {offsets = [40, 0], sizes = [8, 32], strides = [1, 1]} : vector<48x32xf32> to vector<8x32xf32>
    %769 = arith.addf %768, %755 : vector<8x32xf32>
    %770 = arith.negf %769 : vector<8x32xf32>
    %771 = math.exp %770 : vector<8x32xf32>
    %cst_211 = arith.constant 1.000000e+00 : f32
    %772 = vector.broadcast %cst_211 : f32 to vector<8x32xf32>
    %773 = arith.addf %772, %771 : vector<8x32xf32>
    %774 = arith.divf %772, %773 : vector<8x32xf32>
    %775 = vector.extract_strided_slice %514 {offsets = [40, 0], sizes = [8, 32], strides = [1, 1]} : vector<48x32xf32> to vector<8x32xf32>
    %776 = arith.addf %775, %761 : vector<8x32xf32>
    %777 = arith.negf %776 : vector<8x32xf32>
    %778 = math.exp %777 : vector<8x32xf32>
    %cst_212 = arith.constant 1.000000e+00 : f32
    %779 = vector.broadcast %cst_212 : f32 to vector<8x32xf32>
    %780 = arith.addf %779, %778 : vector<8x32xf32>
    %781 = arith.divf %779, %780 : vector<8x32xf32>
    %782 = vector.extract_strided_slice %520 {offsets = [40, 0], sizes = [8, 32], strides = [1, 1]} : vector<48x32xf32> to vector<8x32xf32>
    %783 = arith.mulf %774, %767 : vector<8x32xf32>
    %784 = arith.addf %782, %783 : vector<8x32xf32>
    %785 = math.tanh %784 : vector<8x32xf32>
    %cst_213 = arith.constant 1.000000e+00 : f32
    %786 = vector.broadcast %cst_213 : f32 to vector<8x32xf32>
    %787 = arith.subf %786, %781 : vector<8x32xf32>
    %788 = arith.mulf %787, %785 : vector<8x32xf32>
    %789 = arith.mulf %781, %748 : vector<8x32xf32>
    %790 = arith.addf %788, %789 : vector<8x32xf32>
    %791 = arith.truncf %489 : vector<8x32xf32> to vector<8x32xbf16>
    %792 = vector.extract_strided_slice %501 {offsets = [3, 0, 0], sizes = [1, 32, 32], strides = [1, 1, 1]} : vector<6x32x32xbf16> to vector<1x32x32xbf16>
    %793 = vector.shape_cast %792 : vector<1x32x32xbf16> to vector<32x32xbf16>
    %cst_214 = arith.constant dense<0.000000e+00> : vector<8x32xf32>
    %794 = tpu.matmul %791, %793, %cst_214 {dimension_numbers = #tpu.dot_dimension_numbers<[1], [0], [0], [1], [0, 0, 1, 1], [], []>} : vector<8x32xbf16>, vector<32x32xbf16>, vector<8x32xf32> -> vector<8x32xf32>
    %795 = vector.extract_strided_slice %502 {offsets = [3, 0], sizes = [1, 32], strides = [1, 1]} : vector<6x32xf32> to vector<1x32xf32>
    %796 = vector.broadcast %795 : vector<1x32xf32> to vector<8x32xf32>
    %797 = arith.addf %794, %796 : vector<8x32xf32>
    %798 = vector.extract_strided_slice %501 {offsets = [4, 0, 0], sizes = [1, 32, 32], strides = [1, 1, 1]} : vector<6x32x32xbf16> to vector<1x32x32xbf16>
    %799 = vector.shape_cast %798 : vector<1x32x32xbf16> to vector<32x32xbf16>
    %cst_215 = arith.constant dense<0.000000e+00> : vector<8x32xf32>
    %800 = tpu.matmul %791, %799, %cst_215 {dimension_numbers = #tpu.dot_dimension_numbers<[1], [0], [0], [1], [0, 0, 1, 1], [], []>} : vector<8x32xbf16>, vector<32x32xbf16>, vector<8x32xf32> -> vector<8x32xf32>
    %801 = vector.extract_strided_slice %502 {offsets = [4, 0], sizes = [1, 32], strides = [1, 1]} : vector<6x32xf32> to vector<1x32xf32>
    %802 = vector.broadcast %801 : vector<1x32xf32> to vector<8x32xf32>
    %803 = arith.addf %800, %802 : vector<8x32xf32>
    %804 = vector.extract_strided_slice %501 {offsets = [5, 0, 0], sizes = [1, 32, 32], strides = [1, 1, 1]} : vector<6x32x32xbf16> to vector<1x32x32xbf16>
    %805 = vector.shape_cast %804 : vector<1x32x32xbf16> to vector<32x32xbf16>
    %cst_216 = arith.constant dense<0.000000e+00> : vector<8x32xf32>
    %806 = tpu.matmul %791, %805, %cst_216 {dimension_numbers = #tpu.dot_dimension_numbers<[1], [0], [0], [1], [0, 0, 1, 1], [], []>} : vector<8x32xbf16>, vector<32x32xbf16>, vector<8x32xf32> -> vector<8x32xf32>
    %807 = vector.extract_strided_slice %502 {offsets = [5, 0], sizes = [1, 32], strides = [1, 1]} : vector<6x32xf32> to vector<1x32xf32>
    %808 = vector.broadcast %807 : vector<1x32xf32> to vector<8x32xf32>
    %809 = arith.addf %806, %808 : vector<8x32xf32>
    %810 = vector.extract_strided_slice %526 {offsets = [40, 0], sizes = [8, 32], strides = [1, 1]} : vector<48x32xf32> to vector<8x32xf32>
    %811 = arith.addf %810, %797 : vector<8x32xf32>
    %812 = arith.negf %811 : vector<8x32xf32>
    %813 = math.exp %812 : vector<8x32xf32>
    %cst_217 = arith.constant 1.000000e+00 : f32
    %814 = vector.broadcast %cst_217 : f32 to vector<8x32xf32>
    %815 = arith.addf %814, %813 : vector<8x32xf32>
    %816 = arith.divf %814, %815 : vector<8x32xf32>
    %817 = vector.extract_strided_slice %532 {offsets = [40, 0], sizes = [8, 32], strides = [1, 1]} : vector<48x32xf32> to vector<8x32xf32>
    %818 = arith.addf %817, %803 : vector<8x32xf32>
    %819 = arith.negf %818 : vector<8x32xf32>
    %820 = math.exp %819 : vector<8x32xf32>
    %cst_218 = arith.constant 1.000000e+00 : f32
    %821 = vector.broadcast %cst_218 : f32 to vector<8x32xf32>
    %822 = arith.addf %821, %820 : vector<8x32xf32>
    %823 = arith.divf %821, %822 : vector<8x32xf32>
    %824 = vector.extract_strided_slice %538 {offsets = [40, 0], sizes = [8, 32], strides = [1, 1]} : vector<48x32xf32> to vector<8x32xf32>
    %825 = arith.mulf %816, %809 : vector<8x32xf32>
    %826 = arith.addf %824, %825 : vector<8x32xf32>
    %827 = math.tanh %826 : vector<8x32xf32>
    %cst_219 = arith.constant 1.000000e+00 : f32
    %828 = vector.broadcast %cst_219 : f32 to vector<8x32xf32>
    %829 = arith.subf %828, %823 : vector<8x32xf32>
    %830 = arith.mulf %829, %827 : vector<8x32xf32>
    %831 = arith.mulf %823, %489 : vector<8x32xf32>
    %832 = arith.addf %830, %831 : vector<8x32xf32>
    %833 = arith.truncf %832 : vector<8x32xf32> to vector<8x32xbf16>
    %834 = vector.extract_strided_slice %501 {offsets = [3, 0, 0], sizes = [1, 32, 32], strides = [1, 1, 1]} : vector<6x32x32xbf16> to vector<1x32x32xbf16>
    %835 = vector.shape_cast %834 : vector<1x32x32xbf16> to vector<32x32xbf16>
    %cst_220 = arith.constant dense<0.000000e+00> : vector<8x32xf32>
    %836 = tpu.matmul %833, %835, %cst_220 {dimension_numbers = #tpu.dot_dimension_numbers<[1], [0], [0], [1], [0, 0, 1, 1], [], []>} : vector<8x32xbf16>, vector<32x32xbf16>, vector<8x32xf32> -> vector<8x32xf32>
    %837 = vector.extract_strided_slice %502 {offsets = [3, 0], sizes = [1, 32], strides = [1, 1]} : vector<6x32xf32> to vector<1x32xf32>
    %838 = vector.broadcast %837 : vector<1x32xf32> to vector<8x32xf32>
    %839 = arith.addf %836, %838 : vector<8x32xf32>
    %840 = vector.extract_strided_slice %501 {offsets = [4, 0, 0], sizes = [1, 32, 32], strides = [1, 1, 1]} : vector<6x32x32xbf16> to vector<1x32x32xbf16>
    %841 = vector.shape_cast %840 : vector<1x32x32xbf16> to vector<32x32xbf16>
    %cst_221 = arith.constant dense<0.000000e+00> : vector<8x32xf32>
    %842 = tpu.matmul %833, %841, %cst_221 {dimension_numbers = #tpu.dot_dimension_numbers<[1], [0], [0], [1], [0, 0, 1, 1], [], []>} : vector<8x32xbf16>, vector<32x32xbf16>, vector<8x32xf32> -> vector<8x32xf32>
    %843 = vector.extract_strided_slice %502 {offsets = [4, 0], sizes = [1, 32], strides = [1, 1]} : vector<6x32xf32> to vector<1x32xf32>
    %844 = vector.broadcast %843 : vector<1x32xf32> to vector<8x32xf32>
    %845 = arith.addf %842, %844 : vector<8x32xf32>
    %846 = vector.extract_strided_slice %501 {offsets = [5, 0, 0], sizes = [1, 32, 32], strides = [1, 1, 1]} : vector<6x32x32xbf16> to vector<1x32x32xbf16>
    %847 = vector.shape_cast %846 : vector<1x32x32xbf16> to vector<32x32xbf16>
    %cst_222 = arith.constant dense<0.000000e+00> : vector<8x32xf32>
    %848 = tpu.matmul %833, %847, %cst_222 {dimension_numbers = #tpu.dot_dimension_numbers<[1], [0], [0], [1], [0, 0, 1, 1], [], []>} : vector<8x32xbf16>, vector<32x32xbf16>, vector<8x32xf32> -> vector<8x32xf32>
    %849 = vector.extract_strided_slice %502 {offsets = [5, 0], sizes = [1, 32], strides = [1, 1]} : vector<6x32xf32> to vector<1x32xf32>
    %850 = vector.broadcast %849 : vector<1x32xf32> to vector<8x32xf32>
    %851 = arith.addf %848, %850 : vector<8x32xf32>
    %852 = vector.extract_strided_slice %526 {offsets = [32, 0], sizes = [8, 32], strides = [1, 1]} : vector<48x32xf32> to vector<8x32xf32>
    %853 = arith.addf %852, %839 : vector<8x32xf32>
    %854 = arith.negf %853 : vector<8x32xf32>
    %855 = math.exp %854 : vector<8x32xf32>
    %cst_223 = arith.constant 1.000000e+00 : f32
    %856 = vector.broadcast %cst_223 : f32 to vector<8x32xf32>
    %857 = arith.addf %856, %855 : vector<8x32xf32>
    %858 = arith.divf %856, %857 : vector<8x32xf32>
    %859 = vector.extract_strided_slice %532 {offsets = [32, 0], sizes = [8, 32], strides = [1, 1]} : vector<48x32xf32> to vector<8x32xf32>
    %860 = arith.addf %859, %845 : vector<8x32xf32>
    %861 = arith.negf %860 : vector<8x32xf32>
    %862 = math.exp %861 : vector<8x32xf32>
    %cst_224 = arith.constant 1.000000e+00 : f32
    %863 = vector.broadcast %cst_224 : f32 to vector<8x32xf32>
    %864 = arith.addf %863, %862 : vector<8x32xf32>
    %865 = arith.divf %863, %864 : vector<8x32xf32>
    %866 = vector.extract_strided_slice %538 {offsets = [32, 0], sizes = [8, 32], strides = [1, 1]} : vector<48x32xf32> to vector<8x32xf32>
    %867 = arith.mulf %858, %851 : vector<8x32xf32>
    %868 = arith.addf %866, %867 : vector<8x32xf32>
    %869 = math.tanh %868 : vector<8x32xf32>
    %cst_225 = arith.constant 1.000000e+00 : f32
    %870 = vector.broadcast %cst_225 : f32 to vector<8x32xf32>
    %871 = arith.subf %870, %865 : vector<8x32xf32>
    %872 = arith.mulf %871, %869 : vector<8x32xf32>
    %873 = arith.mulf %865, %832 : vector<8x32xf32>
    %874 = arith.addf %872, %873 : vector<8x32xf32>
    %875 = arith.truncf %874 : vector<8x32xf32> to vector<8x32xbf16>
    %876 = vector.extract_strided_slice %501 {offsets = [3, 0, 0], sizes = [1, 32, 32], strides = [1, 1, 1]} : vector<6x32x32xbf16> to vector<1x32x32xbf16>
    %877 = vector.shape_cast %876 : vector<1x32x32xbf16> to vector<32x32xbf16>
    %cst_226 = arith.constant dense<0.000000e+00> : vector<8x32xf32>
    %878 = tpu.matmul %875, %877, %cst_226 {dimension_numbers = #tpu.dot_dimension_numbers<[1], [0], [0], [1], [0, 0, 1, 1], [], []>} : vector<8x32xbf16>, vector<32x32xbf16>, vector<8x32xf32> -> vector<8x32xf32>
    %879 = vector.extract_strided_slice %502 {offsets = [3, 0], sizes = [1, 32], strides = [1, 1]} : vector<6x32xf32> to vector<1x32xf32>
    %880 = vector.broadcast %879 : vector<1x32xf32> to vector<8x32xf32>
    %881 = arith.addf %878, %880 : vector<8x32xf32>
    %882 = vector.extract_strided_slice %501 {offsets = [4, 0, 0], sizes = [1, 32, 32], strides = [1, 1, 1]} : vector<6x32x32xbf16> to vector<1x32x32xbf16>
    %883 = vector.shape_cast %882 : vector<1x32x32xbf16> to vector<32x32xbf16>
    %cst_227 = arith.constant dense<0.000000e+00> : vector<8x32xf32>
    %884 = tpu.matmul %875, %883, %cst_227 {dimension_numbers = #tpu.dot_dimension_numbers<[1], [0], [0], [1], [0, 0, 1, 1], [], []>} : vector<8x32xbf16>, vector<32x32xbf16>, vector<8x32xf32> -> vector<8x32xf32>
    %885 = vector.extract_strided_slice %502 {offsets = [4, 0], sizes = [1, 32], strides = [1, 1]} : vector<6x32xf32> to vector<1x32xf32>
    %886 = vector.broadcast %885 : vector<1x32xf32> to vector<8x32xf32>
    %887 = arith.addf %884, %886 : vector<8x32xf32>
    %888 = vector.extract_strided_slice %501 {offsets = [5, 0, 0], sizes = [1, 32, 32], strides = [1, 1, 1]} : vector<6x32x32xbf16> to vector<1x32x32xbf16>
    %889 = vector.shape_cast %888 : vector<1x32x32xbf16> to vector<32x32xbf16>
    %cst_228 = arith.constant dense<0.000000e+00> : vector<8x32xf32>
    %890 = tpu.matmul %875, %889, %cst_228 {dimension_numbers = #tpu.dot_dimension_numbers<[1], [0], [0], [1], [0, 0, 1, 1], [], []>} : vector<8x32xbf16>, vector<32x32xbf16>, vector<8x32xf32> -> vector<8x32xf32>
    %891 = vector.extract_strided_slice %502 {offsets = [5, 0], sizes = [1, 32], strides = [1, 1]} : vector<6x32xf32> to vector<1x32xf32>
    %892 = vector.broadcast %891 : vector<1x32xf32> to vector<8x32xf32>
    %893 = arith.addf %890, %892 : vector<8x32xf32>
    %894 = vector.extract_strided_slice %526 {offsets = [24, 0], sizes = [8, 32], strides = [1, 1]} : vector<48x32xf32> to vector<8x32xf32>
    %895 = arith.addf %894, %881 : vector<8x32xf32>
    %896 = arith.negf %895 : vector<8x32xf32>
    %897 = math.exp %896 : vector<8x32xf32>
    %cst_229 = arith.constant 1.000000e+00 : f32
    %898 = vector.broadcast %cst_229 : f32 to vector<8x32xf32>
    %899 = arith.addf %898, %897 : vector<8x32xf32>
    %900 = arith.divf %898, %899 : vector<8x32xf32>
    %901 = vector.extract_strided_slice %532 {offsets = [24, 0], sizes = [8, 32], strides = [1, 1]} : vector<48x32xf32> to vector<8x32xf32>
    %902 = arith.addf %901, %887 : vector<8x32xf32>
    %903 = arith.negf %902 : vector<8x32xf32>
    %904 = math.exp %903 : vector<8x32xf32>
    %cst_230 = arith.constant 1.000000e+00 : f32
    %905 = vector.broadcast %cst_230 : f32 to vector<8x32xf32>
    %906 = arith.addf %905, %904 : vector<8x32xf32>
    %907 = arith.divf %905, %906 : vector<8x32xf32>
    %908 = vector.extract_strided_slice %538 {offsets = [24, 0], sizes = [8, 32], strides = [1, 1]} : vector<48x32xf32> to vector<8x32xf32>
    %909 = arith.mulf %900, %893 : vector<8x32xf32>
    %910 = arith.addf %908, %909 : vector<8x32xf32>
    %911 = math.tanh %910 : vector<8x32xf32>
    %cst_231 = arith.constant 1.000000e+00 : f32
    %912 = vector.broadcast %cst_231 : f32 to vector<8x32xf32>
    %913 = arith.subf %912, %907 : vector<8x32xf32>
    %914 = arith.mulf %913, %911 : vector<8x32xf32>
    %915 = arith.mulf %907, %874 : vector<8x32xf32>
    %916 = arith.addf %914, %915 : vector<8x32xf32>
    %917 = arith.truncf %916 : vector<8x32xf32> to vector<8x32xbf16>
    %918 = vector.extract_strided_slice %501 {offsets = [3, 0, 0], sizes = [1, 32, 32], strides = [1, 1, 1]} : vector<6x32x32xbf16> to vector<1x32x32xbf16>
    %919 = vector.shape_cast %918 : vector<1x32x32xbf16> to vector<32x32xbf16>
    %cst_232 = arith.constant dense<0.000000e+00> : vector<8x32xf32>
    %920 = tpu.matmul %917, %919, %cst_232 {dimension_numbers = #tpu.dot_dimension_numbers<[1], [0], [0], [1], [0, 0, 1, 1], [], []>} : vector<8x32xbf16>, vector<32x32xbf16>, vector<8x32xf32> -> vector<8x32xf32>
    %921 = vector.extract_strided_slice %502 {offsets = [3, 0], sizes = [1, 32], strides = [1, 1]} : vector<6x32xf32> to vector<1x32xf32>
    %922 = vector.broadcast %921 : vector<1x32xf32> to vector<8x32xf32>
    %923 = arith.addf %920, %922 : vector<8x32xf32>
    %924 = vector.extract_strided_slice %501 {offsets = [4, 0, 0], sizes = [1, 32, 32], strides = [1, 1, 1]} : vector<6x32x32xbf16> to vector<1x32x32xbf16>
    %925 = vector.shape_cast %924 : vector<1x32x32xbf16> to vector<32x32xbf16>
    %cst_233 = arith.constant dense<0.000000e+00> : vector<8x32xf32>
    %926 = tpu.matmul %917, %925, %cst_233 {dimension_numbers = #tpu.dot_dimension_numbers<[1], [0], [0], [1], [0, 0, 1, 1], [], []>} : vector<8x32xbf16>, vector<32x32xbf16>, vector<8x32xf32> -> vector<8x32xf32>
    %927 = vector.extract_strided_slice %502 {offsets = [4, 0], sizes = [1, 32], strides = [1, 1]} : vector<6x32xf32> to vector<1x32xf32>
    %928 = vector.broadcast %927 : vector<1x32xf32> to vector<8x32xf32>
    %929 = arith.addf %926, %928 : vector<8x32xf32>
    %930 = vector.extract_strided_slice %501 {offsets = [5, 0, 0], sizes = [1, 32, 32], strides = [1, 1, 1]} : vector<6x32x32xbf16> to vector<1x32x32xbf16>
    %931 = vector.shape_cast %930 : vector<1x32x32xbf16> to vector<32x32xbf16>
    %cst_234 = arith.constant dense<0.000000e+00> : vector<8x32xf32>
    %932 = tpu.matmul %917, %931, %cst_234 {dimension_numbers = #tpu.dot_dimension_numbers<[1], [0], [0], [1], [0, 0, 1, 1], [], []>} : vector<8x32xbf16>, vector<32x32xbf16>, vector<8x32xf32> -> vector<8x32xf32>
    %933 = vector.extract_strided_slice %502 {offsets = [5, 0], sizes = [1, 32], strides = [1, 1]} : vector<6x32xf32> to vector<1x32xf32>
    %934 = vector.broadcast %933 : vector<1x32xf32> to vector<8x32xf32>
    %935 = arith.addf %932, %934 : vector<8x32xf32>
    %936 = vector.extract_strided_slice %526 {offsets = [16, 0], sizes = [8, 32], strides = [1, 1]} : vector<48x32xf32> to vector<8x32xf32>
    %937 = arith.addf %936, %923 : vector<8x32xf32>
    %938 = arith.negf %937 : vector<8x32xf32>
    %939 = math.exp %938 : vector<8x32xf32>
    %cst_235 = arith.constant 1.000000e+00 : f32
    %940 = vector.broadcast %cst_235 : f32 to vector<8x32xf32>
    %941 = arith.addf %940, %939 : vector<8x32xf32>
    %942 = arith.divf %940, %941 : vector<8x32xf32>
    %943 = vector.extract_strided_slice %532 {offsets = [16, 0], sizes = [8, 32], strides = [1, 1]} : vector<48x32xf32> to vector<8x32xf32>
    %944 = arith.addf %943, %929 : vector<8x32xf32>
    %945 = arith.negf %944 : vector<8x32xf32>
    %946 = math.exp %945 : vector<8x32xf32>
    %cst_236 = arith.constant 1.000000e+00 : f32
    %947 = vector.broadcast %cst_236 : f32 to vector<8x32xf32>
    %948 = arith.addf %947, %946 : vector<8x32xf32>
    %949 = arith.divf %947, %948 : vector<8x32xf32>
    %950 = vector.extract_strided_slice %538 {offsets = [16, 0], sizes = [8, 32], strides = [1, 1]} : vector<48x32xf32> to vector<8x32xf32>
    %951 = arith.mulf %942, %935 : vector<8x32xf32>
    %952 = arith.addf %950, %951 : vector<8x32xf32>
    %953 = math.tanh %952 : vector<8x32xf32>
    %cst_237 = arith.constant 1.000000e+00 : f32
    %954 = vector.broadcast %cst_237 : f32 to vector<8x32xf32>
    %955 = arith.subf %954, %949 : vector<8x32xf32>
    %956 = arith.mulf %955, %953 : vector<8x32xf32>
    %957 = arith.mulf %949, %916 : vector<8x32xf32>
    %958 = arith.addf %956, %957 : vector<8x32xf32>
    %959 = arith.truncf %958 : vector<8x32xf32> to vector<8x32xbf16>
    %960 = vector.extract_strided_slice %501 {offsets = [3, 0, 0], sizes = [1, 32, 32], strides = [1, 1, 1]} : vector<6x32x32xbf16> to vector<1x32x32xbf16>
    %961 = vector.shape_cast %960 : vector<1x32x32xbf16> to vector<32x32xbf16>
    %cst_238 = arith.constant dense<0.000000e+00> : vector<8x32xf32>
    %962 = tpu.matmul %959, %961, %cst_238 {dimension_numbers = #tpu.dot_dimension_numbers<[1], [0], [0], [1], [0, 0, 1, 1], [], []>} : vector<8x32xbf16>, vector<32x32xbf16>, vector<8x32xf32> -> vector<8x32xf32>
    %963 = vector.extract_strided_slice %502 {offsets = [3, 0], sizes = [1, 32], strides = [1, 1]} : vector<6x32xf32> to vector<1x32xf32>
    %964 = vector.broadcast %963 : vector<1x32xf32> to vector<8x32xf32>
    %965 = arith.addf %962, %964 : vector<8x32xf32>
    %966 = vector.extract_strided_slice %501 {offsets = [4, 0, 0], sizes = [1, 32, 32], strides = [1, 1, 1]} : vector<6x32x32xbf16> to vector<1x32x32xbf16>
    %967 = vector.shape_cast %966 : vector<1x32x32xbf16> to vector<32x32xbf16>
    %cst_239 = arith.constant dense<0.000000e+00> : vector<8x32xf32>
    %968 = tpu.matmul %959, %967, %cst_239 {dimension_numbers = #tpu.dot_dimension_numbers<[1], [0], [0], [1], [0, 0, 1, 1], [], []>} : vector<8x32xbf16>, vector<32x32xbf16>, vector<8x32xf32> -> vector<8x32xf32>
    %969 = vector.extract_strided_slice %502 {offsets = [4, 0], sizes = [1, 32], strides = [1, 1]} : vector<6x32xf32> to vector<1x32xf32>
    %970 = vector.broadcast %969 : vector<1x32xf32> to vector<8x32xf32>
    %971 = arith.addf %968, %970 : vector<8x32xf32>
    %972 = vector.extract_strided_slice %501 {offsets = [5, 0, 0], sizes = [1, 32, 32], strides = [1, 1, 1]} : vector<6x32x32xbf16> to vector<1x32x32xbf16>
    %973 = vector.shape_cast %972 : vector<1x32x32xbf16> to vector<32x32xbf16>
    %cst_240 = arith.constant dense<0.000000e+00> : vector<8x32xf32>
    %974 = tpu.matmul %959, %973, %cst_240 {dimension_numbers = #tpu.dot_dimension_numbers<[1], [0], [0], [1], [0, 0, 1, 1], [], []>} : vector<8x32xbf16>, vector<32x32xbf16>, vector<8x32xf32> -> vector<8x32xf32>
    %975 = vector.extract_strided_slice %502 {offsets = [5, 0], sizes = [1, 32], strides = [1, 1]} : vector<6x32xf32> to vector<1x32xf32>
    %976 = vector.broadcast %975 : vector<1x32xf32> to vector<8x32xf32>
    %977 = arith.addf %974, %976 : vector<8x32xf32>
    %978 = vector.extract_strided_slice %526 {offsets = [8, 0], sizes = [8, 32], strides = [1, 1]} : vector<48x32xf32> to vector<8x32xf32>
    %979 = arith.addf %978, %965 : vector<8x32xf32>
    %980 = arith.negf %979 : vector<8x32xf32>
    %981 = math.exp %980 : vector<8x32xf32>
    %cst_241 = arith.constant 1.000000e+00 : f32
    %982 = vector.broadcast %cst_241 : f32 to vector<8x32xf32>
    %983 = arith.addf %982, %981 : vector<8x32xf32>
    %984 = arith.divf %982, %983 : vector<8x32xf32>
    %985 = vector.extract_strided_slice %532 {offsets = [8, 0], sizes = [8, 32], strides = [1, 1]} : vector<48x32xf32> to vector<8x32xf32>
    %986 = arith.addf %985, %971 : vector<8x32xf32>
    %987 = arith.negf %986 : vector<8x32xf32>
    %988 = math.exp %987 : vector<8x32xf32>
    %cst_242 = arith.constant 1.000000e+00 : f32
    %989 = vector.broadcast %cst_242 : f32 to vector<8x32xf32>
    %990 = arith.addf %989, %988 : vector<8x32xf32>
    %991 = arith.divf %989, %990 : vector<8x32xf32>
    %992 = vector.extract_strided_slice %538 {offsets = [8, 0], sizes = [8, 32], strides = [1, 1]} : vector<48x32xf32> to vector<8x32xf32>
    %993 = arith.mulf %984, %977 : vector<8x32xf32>
    %994 = arith.addf %992, %993 : vector<8x32xf32>
    %995 = math.tanh %994 : vector<8x32xf32>
    %cst_243 = arith.constant 1.000000e+00 : f32
    %996 = vector.broadcast %cst_243 : f32 to vector<8x32xf32>
    %997 = arith.subf %996, %991 : vector<8x32xf32>
    %998 = arith.mulf %997, %995 : vector<8x32xf32>
    %999 = arith.mulf %991, %958 : vector<8x32xf32>
    %1000 = arith.addf %998, %999 : vector<8x32xf32>
    %1001 = arith.truncf %1000 : vector<8x32xf32> to vector<8x32xbf16>
    %1002 = vector.extract_strided_slice %501 {offsets = [3, 0, 0], sizes = [1, 32, 32], strides = [1, 1, 1]} : vector<6x32x32xbf16> to vector<1x32x32xbf16>
    %1003 = vector.shape_cast %1002 : vector<1x32x32xbf16> to vector<32x32xbf16>
    %cst_244 = arith.constant dense<0.000000e+00> : vector<8x32xf32>
    %1004 = tpu.matmul %1001, %1003, %cst_244 {dimension_numbers = #tpu.dot_dimension_numbers<[1], [0], [0], [1], [0, 0, 1, 1], [], []>} : vector<8x32xbf16>, vector<32x32xbf16>, vector<8x32xf32> -> vector<8x32xf32>
    %1005 = vector.extract_strided_slice %502 {offsets = [3, 0], sizes = [1, 32], strides = [1, 1]} : vector<6x32xf32> to vector<1x32xf32>
    %1006 = vector.broadcast %1005 : vector<1x32xf32> to vector<8x32xf32>
    %1007 = arith.addf %1004, %1006 : vector<8x32xf32>
    %1008 = vector.extract_strided_slice %501 {offsets = [4, 0, 0], sizes = [1, 32, 32], strides = [1, 1, 1]} : vector<6x32x32xbf16> to vector<1x32x32xbf16>
    %1009 = vector.shape_cast %1008 : vector<1x32x32xbf16> to vector<32x32xbf16>
    %cst_245 = arith.constant dense<0.000000e+00> : vector<8x32xf32>
    %1010 = tpu.matmul %1001, %1009, %cst_245 {dimension_numbers = #tpu.dot_dimension_numbers<[1], [0], [0], [1], [0, 0, 1, 1], [], []>} : vector<8x32xbf16>, vector<32x32xbf16>, vector<8x32xf32> -> vector<8x32xf32>
    %1011 = vector.extract_strided_slice %502 {offsets = [4, 0], sizes = [1, 32], strides = [1, 1]} : vector<6x32xf32> to vector<1x32xf32>
    %1012 = vector.broadcast %1011 : vector<1x32xf32> to vector<8x32xf32>
    %1013 = arith.addf %1010, %1012 : vector<8x32xf32>
    %1014 = vector.extract_strided_slice %501 {offsets = [5, 0, 0], sizes = [1, 32, 32], strides = [1, 1, 1]} : vector<6x32x32xbf16> to vector<1x32x32xbf16>
    %1015 = vector.shape_cast %1014 : vector<1x32x32xbf16> to vector<32x32xbf16>
    %cst_246 = arith.constant dense<0.000000e+00> : vector<8x32xf32>
    %1016 = tpu.matmul %1001, %1015, %cst_246 {dimension_numbers = #tpu.dot_dimension_numbers<[1], [0], [0], [1], [0, 0, 1, 1], [], []>} : vector<8x32xbf16>, vector<32x32xbf16>, vector<8x32xf32> -> vector<8x32xf32>
    %1017 = vector.extract_strided_slice %502 {offsets = [5, 0], sizes = [1, 32], strides = [1, 1]} : vector<6x32xf32> to vector<1x32xf32>
    %1018 = vector.broadcast %1017 : vector<1x32xf32> to vector<8x32xf32>
    %1019 = arith.addf %1016, %1018 : vector<8x32xf32>
    %1020 = vector.extract_strided_slice %526 {offsets = [0, 0], sizes = [8, 32], strides = [1, 1]} : vector<48x32xf32> to vector<8x32xf32>
    %1021 = arith.addf %1020, %1007 : vector<8x32xf32>
    %1022 = arith.negf %1021 : vector<8x32xf32>
    %1023 = math.exp %1022 : vector<8x32xf32>
    %cst_247 = arith.constant 1.000000e+00 : f32
    %1024 = vector.broadcast %cst_247 : f32 to vector<8x32xf32>
    %1025 = arith.addf %1024, %1023 : vector<8x32xf32>
    %1026 = arith.divf %1024, %1025 : vector<8x32xf32>
    %1027 = vector.extract_strided_slice %532 {offsets = [0, 0], sizes = [8, 32], strides = [1, 1]} : vector<48x32xf32> to vector<8x32xf32>
    %1028 = arith.addf %1027, %1013 : vector<8x32xf32>
    %1029 = arith.negf %1028 : vector<8x32xf32>
    %1030 = math.exp %1029 : vector<8x32xf32>
    %cst_248 = arith.constant 1.000000e+00 : f32
    %1031 = vector.broadcast %cst_248 : f32 to vector<8x32xf32>
    %1032 = arith.addf %1031, %1030 : vector<8x32xf32>
    %1033 = arith.divf %1031, %1032 : vector<8x32xf32>
    %1034 = vector.extract_strided_slice %538 {offsets = [0, 0], sizes = [8, 32], strides = [1, 1]} : vector<48x32xf32> to vector<8x32xf32>
    %1035 = arith.mulf %1026, %1019 : vector<8x32xf32>
    %1036 = arith.addf %1034, %1035 : vector<8x32xf32>
    %1037 = math.tanh %1036 : vector<8x32xf32>
    %cst_249 = arith.constant 1.000000e+00 : f32
    %1038 = vector.broadcast %cst_249 : f32 to vector<8x32xf32>
    %1039 = arith.subf %1038, %1033 : vector<8x32xf32>
    %1040 = arith.mulf %1039, %1037 : vector<8x32xf32>
    %1041 = arith.mulf %1033, %1000 : vector<8x32xf32>
    %1042 = arith.addf %1040, %1041 : vector<8x32xf32>
    %1043 = tpu.concatenate %580, %622, %664, %706, %748, %790 in 0 : vector<8x32xf32>, vector<8x32xf32>, vector<8x32xf32>, vector<8x32xf32>, vector<8x32xf32>, vector<8x32xf32> -> vector<48x32xf32>
    %1044 = tpu.concatenate %1042, %1000, %958, %916, %874, %832 in 0 : vector<8x32xf32>, vector<8x32xf32>, vector<8x32xf32>, vector<8x32xf32>, vector<8x32xf32>, vector<8x32xf32> -> vector<48x32xf32>
    %c0_250 = arith.constant 0 : index
    %c0_251 = arith.constant 0 : index
    %1045 = vector.load %arg9[%c0_250, %c0_251] : memref<16x48xf32, #tpu.memory_space<vmem>>, vector<16x48xf32>
    %cst_252 = arith.constant dense<0.000000e+00> : vector<16x32xf32>
    %1046 = tpu.matmul %1045, %1043, %cst_252 {dimension_numbers = #tpu.dot_dimension_numbers<[1], [0], [0], [1], [0, 0, 1, 1], [], []>} : vector<16x48xf32>, vector<48x32xf32>, vector<16x32xf32> -> vector<16x32xf32>
    %cst_253 = arith.constant dense<0.000000e+00> : vector<16x32xf32>
    %1047 = tpu.matmul %1045, %1044, %cst_253 {dimension_numbers = #tpu.dot_dimension_numbers<[1], [0], [0], [1], [0, 0, 1, 1], [], []>} : vector<16x48xf32>, vector<48x32xf32>, vector<16x32xf32> -> vector<16x32xf32>
    %1048 = tpu.concatenate %1046, %1047 in 1 : vector<16x32xf32>, vector<16x32xf32> -> vector<16x64xf32>
    %c0_254 = arith.constant 0 : index
    %c0_255 = arith.constant 0 : index
    %1049 = vector.load %arg10[%c0_254, %c0_255] : memref<3x16xf32, #tpu.memory_space<vmem>>, vector<3x16xf32>
    %cst_256 = arith.constant dense<0.000000e+00> : vector<3x64xf32>
    %1050 = tpu.matmul %1049, %1048, %cst_256 {dimension_numbers = #tpu.dot_dimension_numbers<[1], [0], [0], [1], [0, 0, 1, 1], [], []>} : vector<3x16xf32>, vector<16x64xf32>, vector<3x64xf32> -> vector<3x64xf32>
    %c0_257 = arith.constant 0 : index
    %c0_258 = arith.constant 0 : index
    %1051 = vector.load %arg11[%c0_257, %c0_258] : memref<3x1xf32, #tpu.memory_space<vmem>>, vector<3x1xf32>
    %1052 = vector.broadcast %1051 : vector<3x1xf32> to vector<3x64xf32>
    %1053 = arith.divf %1050, %1052 : vector<3x64xf32>
    %c0_259 = arith.constant 0 : index
    %c0_260 = arith.constant 0 : index
    %1054 = vector.load %arg12[%c0_259, %c0_260] : memref<16x1xi32, #tpu.memory_space<vmem>>, vector<16x1xi32>
    %c0_i32_261 = arith.constant 0 : i32
    %1055 = vector.broadcast %c0_i32_261 : i32 to vector<16x1xi32>
    %1056 = arith.cmpi eq, %1054, %1055 : vector<16x1xi32>
    %cst_262 = arith.constant 0xFF800000 : f32
    %1057 = vector.shape_cast %1056 : vector<16x1xi1> to vector<16x1xi1>
    %1058 = vector.broadcast %1057 : vector<16x1xi1> to vector<16x64xi1>
    %1059 = vector.broadcast %cst_262 : f32 to vector<16x64xf32>
    %1060 = arith.select %1058, %1048, %1059 : vector<16x64xi1>, vector<16x64xf32>
    %cst_263 = arith.constant dense<0xFF800000> : vector<64xf32>
    %1061 = vector.multi_reduction <maximumf>, %1060, %cst_263 [0] : vector<16x64xf32> to vector<64xf32>
    %1062 = vector.shape_cast %1061 : vector<64xf32> to vector<1x64xf32>
    %c1_i32_264 = arith.constant 1 : i32
    %1063 = vector.broadcast %c1_i32_264 : i32 to vector<16x1xi32>
    %1064 = arith.cmpi eq, %1054, %1063 : vector<16x1xi32>
    %cst_265 = arith.constant 0xFF800000 : f32
    %1065 = vector.shape_cast %1064 : vector<16x1xi1> to vector<16x1xi1>
    %1066 = vector.broadcast %1065 : vector<16x1xi1> to vector<16x64xi1>
    %1067 = vector.broadcast %cst_265 : f32 to vector<16x64xf32>
    %1068 = arith.select %1066, %1048, %1067 : vector<16x64xi1>, vector<16x64xf32>
    %cst_266 = arith.constant dense<0xFF800000> : vector<64xf32>
    %1069 = vector.multi_reduction <maximumf>, %1068, %cst_266 [0] : vector<16x64xf32> to vector<64xf32>
    %1070 = vector.shape_cast %1069 : vector<64xf32> to vector<1x64xf32>
    %c2_i32_267 = arith.constant 2 : i32
    %1071 = vector.broadcast %c2_i32_267 : i32 to vector<16x1xi32>
    %1072 = arith.cmpi eq, %1054, %1071 : vector<16x1xi32>
    %cst_268 = arith.constant 0xFF800000 : f32
    %1073 = vector.shape_cast %1072 : vector<16x1xi1> to vector<16x1xi1>
    %1074 = vector.broadcast %1073 : vector<16x1xi1> to vector<16x64xi1>
    %1075 = vector.broadcast %cst_268 : f32 to vector<16x64xf32>
    %1076 = arith.select %1074, %1048, %1075 : vector<16x64xi1>, vector<16x64xf32>
    %cst_269 = arith.constant dense<0xFF800000> : vector<64xf32>
    %1077 = vector.multi_reduction <maximumf>, %1076, %cst_269 [0] : vector<16x64xf32> to vector<64xf32>
    %1078 = vector.shape_cast %1077 : vector<64xf32> to vector<1x64xf32>
    %1079 = tpu.concatenate %1062, %1070, %1078 in 0 : vector<1x64xf32>, vector<1x64xf32>, vector<1x64xf32> -> vector<3x64xf32>
    %1080 = tpu.concatenate %1053, %1079 in 1 : vector<3x64xf32>, vector<3x64xf32> -> vector<3x128xf32>
    %c0_270 = arith.constant 0 : index
    %c0_271 = arith.constant 0 : index
    %1081 = vector.load %arg40[%c0_270, %c0_271] : memref<3x128xf32, #tpu.memory_space<vmem>>, vector<3x128xf32>
    tpu.vector_store %arg40[%c0_270, %c0_271], %1080 {strides = array<i32>} : memref<3x128xf32, #tpu.memory_space<vmem>>, vector<3x128xf32>,
    return
  }
}

</mosaic_0001>

<bundles_post_ra>
// kernel: _lambda_.1
= control target key start
LH: loop header
LB: loop body
LE: loop exit
PB: predicated region body
PF: predicated region fallthrough
CT: control target
= control target key end

     0   :  { %s13120_s3 = smov 14   ;;  %s13121_s7 = smov 1   ;;  %vm286_vm0 = vcmask 1042432   ;;  %vm273_vm1 = vcmask 48128   ;;  %vm439_vm2 = vcmask 130048   ;;  %vm650_vm3 = vcmask 261120   ;;  %s15527_s0 = inlined_call_operand.smem [shape: u32[41], index: -1, kind: input, shape index: {}] }
   0x1   :  { %s9661_s6 = sld [smem:[%s15527_s0 + %s13120_s3]]   ;;  %s13122_s14 = smov 3   ;;  %vm1251_vm4 = vcmask 523264   ;;  %vm13133_vm5 = vmmov 0   ;;  %vm2072_vm6 = vcmask 1044480   ;;  %vm2032_vm7 = vcmask 343040  }
   0x2   :  { %s9648_s10 = sld [smem:[%s15527_s0 + %s13121_s7]]   ;;  %s13123_s18 = smov 4   ;;  %vm2484_vm8 = vcmask 654336  }
   0x3   :  { %s1_s13 = sld [smem:[%s15527_s0]]   ;;  %s13124_s22 = smov 17  }
   0x4   :  { %s13181_s17 = sld [smem:[%s15527_s0 + %s13122_s14]]   ;;  %s13125_s26 = smov 16  }
   0x5   :  { %s13186_s21 = sld [smem:[%s15527_s0 + %s13123_s18]]   ;;  %s13126_s30 = smov 18  }
   0x6   :  { %s9664_s25 = sld [smem:[%s15527_s0 + %s13124_s22]]   ;;  %s13127_s4 = smov 20  }
   0x7   :  { %v265_v0 = vld [vmem:[%s9661_s6] sm:$0x7]  ;;  %s9663_s29 = sld [smem:[%s15527_s0 + %s13125_s26]]   ;;  %s13128_s8 = smov 15  }
   0x8   :  { %12014 = vmatprep.subr.msk.bf16.mxu0 %vm286_vm0, %v265_v0  ;;  %v288_v1 = vsel %vm286_vm0, %v265_v0, 0  ;;  %v170_v2 = vld [vmem:[%s9648_s10] sm:$0xff]  ;;  %v171_v3 = vld [vmem:[%s9648_s10 + $0x8] sm:$0xff]  ;;  %v172_v4 = vld [vmem:[%s9648_s10 + $0x10] sm:$0xff]  ;;  %s13231_s3 = sld [smem:[%s15527_s0 + %s13126_s30]]   ;;  %s13129_s12 = smov 5  }
   0x9   :  { %10803 = vmatpush3.bf16.msra.mxu0 %v288_v1  ;;  %v13190_v5 = vpack.c.bf16 %v171_v3, %v170_v2  ;;  %v173_v6 = vld [vmem:[%s9648_s10 + $0x18] sm:$0xff]  ;;  %v174_v7 = vld [vmem:[%s9648_s10 + $0x20] sm:$0xff]  ;;  %v175_v8 = vld [vmem:[%s9648_s10 + $0x28] sm:$0xff]  ;;  %s9667_s7 = sld [smem:[%s15527_s0 + %s13127_s4]]   ;;  %s13130_s16 = smov 21  }
   0xa   :  { %v13192_v9 = vpack.c.bf16 %v173_v6, %v172_v4  ;;  %v13194_v10 = vpack.c.bf16 %v175_v8, %v174_v7  ;;  %v167_v11 = vld [vmem:[%s1_s13] sm:$0xff]  ;;  %v176_v12 = vld [vmem:[%s9648_s10 + $0x30] sm:$0xff]  ;;  %v168_v13 = vld [vmem:[%s1_s13 + $0x8] sm:$0xff]  ;;  %s9662_s11 = sld [smem:[%s15527_s0 + %s13128_s8]]   ;;  %s13132_s20 = smov 19  }
   0xb   :  { %10804 = vmatprep.mubr.msk.bf16.mxu0 %vm273_vm1, %v13190_v5  ;;  %v169_v14 = vpack.c.bf16 %v168_v13, %v167_v11  ;;  %v12066_v15 = vld [vmem:[%s13181_s17] sm:$0xff]   ;;  %v177_v16 = vld [vmem:[%s9648_s10 + $0x38] sm:$0xff]  ;;  %v12068_v17 = vld [vmem:[%s13181_s17 + $0x8] sm:$0xff]   ;;  %s13302_s15 = sld [smem:[%s15527_s0 + %s13129_s12]]   ;;  %s13134_s24 = smov 23  }
   0xc   :  { %10805 = vmatmul.mubr.msk.bf16.vlgmr.msra.gmra.mxu0 %vm273_vm1, %v13192_v9  ;;  %v13204_v18 = vpack.c.bf16 %v177_v16, %v176_v12  ;;  %10814 = vmatprep.mubr.msk.bf16.mxu1 %vm439_vm2, %v12066_v15  ;;  %v12070_v19 = vld [vmem:[%s13181_s17 + $0x10] sm:$0xff]   ;;  %v12067_v20 = vld [vmem:[%s13186_s21] sm:$0xff]   ;;  %v12072_v21 = vld [vmem:[%s13181_s17 + $0x18] sm:$0xff]   ;;  %s13309_s19 = sld [smem:[%s15527_s0 + %s13130_s16]]   ;;  %s13135_s28 = smov 22  }
   0xd   :  { %10808 = vmatprep.mubr.msk.bf16.mxu0 %vm273_vm1, %v13194_v10  ;;  %10812 = vmatprep.subr.bf16.mxu1 %v169_v14  ;;  %v12069_v22 = vld [vmem:[%s13186_s21 + $0x8] sm:$0xff]   ;;  %v12071_v23 = vld [vmem:[%s13186_s21 + $0x10] sm:$0xff]   ;;  %v12073_v24 = vld [vmem:[%s13186_s21 + $0x18] sm:$0xff]   ;;  %s9666_s23 = sld [smem:[%s15527_s0 + %s13132_s20]]   ;;  %s13136_s2 = smov 26  }
   0xe   :  { %10822 = vmatprep.subr.bf16.mxu0 %v169_v14  ;;  %10813 = vmatpush3.bf16.msra.mxu1 %v169_v14  ;;  %v12074_v25 = vld [vmem:[%s9664_s25 + $0x8] sm:$0xff]   ;;  %v12076_v27 = vld [vmem:[%s9664_s25] sm:$0xff]   ;;  %s13373_s27 = sld [smem:[%s15527_s0 + %s13134_s24]]   ;;  %s13137_s6 = smov 24  }
   0xf   :  { %10823 = vmatpush3.bf16.msra.mxu0 %v169_v14  ;;  %v12075_v26 = vld [vmem:[%s9663_s29 + $0x8] sm:$0xff]   ;;  %10832 = vmatprep.subr.bf16.mxu1 %v12074_v25  ;;  %v12077_v28 = vld [vmem:[%s9663_s29] sm:$0xff]   ;;  %s13389_s1 = sld [smem:[%s15527_s0 + %s13135_s28]]   ;;  %s13138_s10 = smov 25  }
  0x10   :  { %10844 = vmatprep.subr.bf16.mxu0 %v12075_v26  ;;  %v13234_v29 = vld [vmem:[%s13231_s3 + $0x8] sm:$0xff]   ;;  %v993_v30 = vld [vmem:[%s9667_s7] sm:$0x7]  ;;  %s13409_s5 = sld [smem:[%s15527_s0 + %s13136_s2]]   ;;  %s13139_s14 = smov 28  }
  0x11   :  { %10815 = vmatmul.mubr.msk.bf16.vlgmr.msra.gmra.mxu1 %vm439_vm2, %v12068_v17  ;;  %v9688_v31 = vld [vmem:[%s9662_s11] ss:$0 sm:$0xff]  ;;  %v995_v60 = vsel %vm286_vm0, %v993_v30, 0  ;;  %s13417_s9 = sld [smem:[%s15527_s0 + %s13137_s6]]   ;;  %s13140_s20 = smov 30  }
  0x12   :  { %10818 = vmatprep.mubr.msk.bf16.mxu1 %vm439_vm2, %v12070_v19  ;;  %10833 = vmatpush3.bf16.msra.mxu1 %v12074_v25  ;;  %s13442_s13 = sld [smem:[%s15527_s0 + %s13138_s10]]   ;;  %s13141_s24 = smov 27  }
  0x13   :  { %10834 = vmatprep.subr.bf16.mxu1 %v12076_v27  ;;  %s13454_s18 = sld [smem:[%s15527_s0 + %s13139_s14]]   ;;  %s13142_s29 = smov 29  }
  0x14   :  { %10809 = vmatmul.mubr.msk.bf16.gmra.mxu0 %vm273_vm1, %v13204_v18  ;;  %s13486_s28 = sld [smem:[%s15527_s0 + %s13141_s24]]   ;;  %s13143_s4 = smov 2  }
  0x15   :  { %10824 = vmatprep.mubr.msk.bf16.mxu0 %vm439_vm2, %v12067_v20  ;;  %s13532_s8 = sld [smem:[%s15527_s0 + %s13143_s4]]   ;;  %s13144_s10 = smov 6  }
  0x16   :  { %10835 = vmatpush3.bf16.msra.mxu1 %v12076_v27  ;;  %s13543_s14 = sld [smem:[%s15527_s0 + %s13144_s10]]   ;;  %s13145_s16 = smov 7  }
  0x17   :  { %10856 = vmatprep.subr.bf16.mxu1 %v13234_v29  ;;  %s13768_s21 = sld [smem:[%s15527_s0 + %s13145_s16]]   ;;  %s13146_s22 = smov 31  }
  0x18   :  { %s13787_s26 = sld [smem:[%s15527_s0 + %s13146_s22]]   ;;  %s13148_s6 = smov 33  }
  0x19   :  { %10819 = vmatmul.mubr.msk.bf16.gmra.mxu1 %vm439_vm2, %v12072_v21  ;;  %s13923_s10 = sld [smem:[%s15527_s0 + %s13148_s6]]   ;;  %s13149_s11 = smov 34  }
  0x1a   :  { %s14046_s17 = sld [smem:[%s15527_s0 + %s13149_s11]]   ;;  %s13155_s25 = smov 37  }
  0x1b   :  { %s14802_s2 = sld [smem:[%s15527_s0 + %s13155_s25]]   ;;  %s13162_s22 = smov 64  }
  0x1c   :  { %10825 = vmatmul.mubr.msk.bf16.vlgmr.msra.gmra.mxu0 %vm439_vm2, %v12069_v22 }
  0x1d   :  { %10828 = vmatprep.mubr.msk.bf16.mxu0 %vm439_vm2, %v12071_v23  ;;  %10845 = vmatpush3.bf16.msra.mxu0 %v12075_v26  ;;  %v12079_v23 = vld [vmem:[%s13231_s3] sm:$0xff]   ;;  %s13523_s3 = sld [smem:[%s15527_s0 + %s13142_s29]]   ;;  %s13147_s29 = smov 32  }
  0x1e   :  { %10846 = vmatprep.subr.bf16.mxu0 %v12077_v28  ;;  %s13886_s4 = sld [smem:[%s15527_s0 + %s13147_s29]]  }
  0x21   :  { %10847 = vmatpush3.bf16.msra.mxu0 %v12077_v28 }
  0x22   :  { %12015 = vmatprep.subr.msk.bf16.mxu0 %vm286_vm0, %v993_v30 }
  0x24   :  { %10829 = vmatmul.mubr.msk.bf16.gmra.mxu0 %vm439_vm2, %v12073_v24 }
  0xcc   :  { %v10806_v32 = vpop.f32.mrf.mxu0 }
  0xcd   :  { %v13244_v33 = vadd.f32 %v10806_v32, %v9688_v31 }
  0xce   :  { %v324_v34 = vpop.f32.mrf.mxu0 }
  0xcf   :  { %v9695_v35 = vmul.f32 -1.442695, %v13244_v33  ;;  %v13247_v36 = vadd.f32 %v9688_v31, %v324_v34 }
  0xd0   :  { %v10807_v37 = vpop.f32.mrf.mxu0 }
  0xd1   :  { %v9693_v38 = vmul.f32 -1.442695, %v13247_v36  ;;  %v13250_v39 = vadd.f32 %v10807_v37, %v9688_v31  ;;  %12206 = vpow2.f32 %v9695_v35  ;;  %v10816_v41 = vpop.f32.mrf.mxu1 }
  0xd2   :  { %v327_v40 = vpop.f32.mrf.mxu0 }
  0xd3   :  { %12208 = vpow2.f32 %v9693_v38  ;;  %v9696_v42 = vmul.f32 -1.442695, %v13250_v39  ;;  %v13253_v43 = vadd.f32 %v9688_v31, %v327_v40  ;;  %v486_v45 = vpop.f32.mrf.mxu1 }
  0xd4   :  { %v10810_v44 = vpop.f32.mrf.mxu0 }
  0xd5   :  { %12210 = vpow2.f32 %v9696_v42  ;;  %v9694_v46 = vmul.f32 -1.442695, %v13253_v43  ;;  %v13256_v47 = vadd.f32 %v10810_v44, %v9688_v31  ;;  %v10817_v49 = vpop.f32.mrf.mxu1 }
  0xd6   :  { %v340_v48 = vpop.f32.mrf.mxu0  ;;  %v627_v53 = vpack.c.bf16 %v10817_v49, %v10816_v41 }
  0xd7   :  { %12212 = vpow2.f32 %v9694_v46  ;;  %v9699_v50 = vmul.f32 -1.442695, %v13256_v47  ;;  %v13259_v51 = vadd.f32 %v9688_v31, %v340_v48  ;;  %v489_v54 = vpop.f32.mrf.mxu1 }
  0xd8   :  { %v10811_v52 = vpop.f32.mrf.mxu0  ;;  %v626_v57 = vpack.c.bf16 %v489_v54, %v486_v45 }
  0xd9   :  { %v9697_v55 = vmul.f32 -1.442695, %v13259_v51  ;;  %v13262_v56 = vadd.f32 %v10811_v52, %v9688_v31  ;;  %12214 = vpow2.f32 %v9699_v50  ;;  %v10820_v59 = vpop.f32.mrf.mxu1 }
  0xda   :  { %v343_v58 = vpop.f32.mrf.mxu0  ;;  %10848 = vmatprep.mubr.msk.bf16.mxu0 %vm650_vm3, %v626_v57 }
  0xdb   :  { %12216 = vpow2.f32 %v9697_v55  ;;  %v9700_v61 = vmul.f32 -1.442695, %v13262_v56  ;;  %v13266_v62 = vadd.f32 %v9688_v31, %v343_v58  ;;  %v502_v0 = vpop.f32.mrf.mxu1  ;;  %10849 = vmatmul.mubr.msk.bf16.vlgmr.msra.gmra.mxu0 %vm650_vm3, %v627_v53 }
  0xdc   :  { %v10826_v63 = vpop.f32.mrf.mxu0  ;;  %10869 = vmatpush3.bf16.msra.mxu0 %v995_v60 }
  0xdd   :  { %12218 = vpow2.f32 %v9700_v61  ;;  %v9698_v1 = vmul.f32 -1.442695, %v13266_v62  ;;  %v10821_v3 = vpop.f32.mrf.mxu1 }
  0xde   :  { %v591_v2 = vpop.f32.mrf.mxu0  ;;  %v12207_v4 = vpop.eup %12206  ;;  %v629_v8 = vpack.c.bf16 %v10821_v3, %v10820_v59 }
  0xdf   :  { %12220 = vpow2.f32 %v9698_v1  ;;  %v505_v11 = vpop.f32.mrf.mxu1  ;;  %v381_v15 = vadd.f32 1.0, %v12207_v4 }
  0xe0   :  { %v12209_v6 = vpop.eup %12208  ;;  %v10827_v7 = vpop.f32.mrf.mxu0  ;;  %v628_v13 = vpack.c.bf16 %v505_v11, %v502_v0 }
  0xe1   :  { %v379_v12 = vadd.f32 1.0, %v12209_v6  ;;  %v635_v21 = vpack.c.bf16 %v10827_v7, %v10826_v63 }
  0xe2   :  { %v12211_v14 = vpop.eup %12210  ;;  %v594_v16 = vpop.f32.mrf.mxu0  ;;  %10852 = vmatprep.mubr.msk.bf16.mxu0 %vm650_vm3, %v628_v13 }
  0xe3   :  { %v382_v17 = vadd.f32 1.0, %v12211_v14  ;;  %v634_v19 = vpack.c.bf16 %v594_v16, %v591_v2  ;;  %12222 = vrcp.f32 %v379_v12  ;;  %10853 = vmatmul.mubr.msk.bf16.gmra.mxu0 %vm650_vm3, %v629_v8  ;;  %v9735_v14 = vld [vmem:[%s9666_s23] ss:$0 sm:$0xff]  ;;  %s13478_s23 = sld [smem:[%s15527_s0 + %s13140_s20]]   ;;  %s13154_s20 = smov 35  }
  0xe4   :  { %v12213_v20 = vpop.eup %12212  ;;  %v10830_v22 = vpop.f32.mrf.mxu0  ;;  %10870 = vmatprep.mubr.msk.bf16.mxu0 %vm273_vm1, %v13190_v5  ;;  %s14789_s24 = sld [smem:[%s15527_s0 + %s13154_s20]]  }
  0xe5   :  { %12224 = vrcp.f32 %v382_v17  ;;  %v380_v24 = vadd.f32 1.0, %v12213_v20  ;;  %10836 = vmatprep.mubr.msk.bf16.mxu1 %vm650_vm3, %v634_v19 }
  0xe6   :  { %12226 = vrcp.f32 %v381_v15  ;;  %v607_v25 = vpop.f32.mrf.mxu0  ;;  %10837 = vmatmul.mubr.msk.bf16.vlgmr.msra.gmra.mxu1 %vm650_vm3, %v635_v21  ;;  %v12215_v26 = vpop.eup %12214 }
  0xe7   :  { %12228 = vrcp.f32 %v380_v24  ;;  %10857 = vmatpush3.bf16.msra.mxu1 %v13234_v29  ;;  %v385_v32 = vadd.f32 1.0, %v12215_v26 }
  0xe8   :  { %v12217_v27 = vpop.eup %12216  ;;  %v10831_v28 = vpop.f32.mrf.mxu0  ;;  %10858 = vmatprep.subr.bf16.mxu1 %v12079_v23 }
  0xe9   :  { %v383_v30 = vadd.f32 1.0, %v12217_v27  ;;  %v637_v40 = vpack.c.bf16 %v10831_v28, %v10830_v22 }
  0xea   :  { %v12219_v31 = vpop.eup %12218  ;;  %v610_v34 = vpop.f32.mrf.mxu0 }
  0xeb   :  { %v386_v35 = vadd.f32 1.0, %v12219_v31  ;;  %v636_v37 = vpack.c.bf16 %v610_v34, %v607_v25  ;;  %10859 = vmatpush3.bf16.msra.mxu1 %v12079_v23  ;;  %12230 = vrcp.f32 %v383_v30  ;;  %10871 = vmatmul.mubr.msk.bf16.vlgmr.msra.gmra.mxu0 %vm273_vm1, %v13192_v9 }
  0xec   :  { %v12221_v38 = vpop.eup %12220  ;;  %10874 = vmatprep.mubr.msk.bf16.mxu0 %vm273_vm1, %v13194_v10 }
  0xed   :  { %12232 = vrcp.f32 %v386_v35  ;;  %v384_v41 = vadd.f32 1.0, %v12221_v38  ;;  %10840 = vmatprep.mubr.msk.bf16.mxu1 %vm650_vm3, %v636_v37 }
  0xee   :  { %12234 = vrcp.f32 %v385_v32  ;;  %10841 = vmatmul.mubr.msk.bf16.gmra.mxu1 %vm650_vm3, %v637_v40 }
  0xef   :  { %12236 = vrcp.f32 %v384_v41 }
  0xf0   :  { %v12223_v29 = vpop.eup %12222 }
  0xf1   :  { %v403_v48 = vmul.f32 %v12223_v29, %v13247_v36 }
  0xf2   :  { %v12225_v42 = vpop.eup %12224 }
  0xf3   :  { %v12227_v44 = vpop.eup %12226  ;;  %v406_v46 = vmul.f32 %v12225_v42, %v13250_v39  ;;  %10875 = vmatmul.mubr.msk.bf16.gmra.mxu0 %vm273_vm1, %v13204_v18 }
  0xf4   :  { %v12229_v45 = vpop.eup %12228  ;;  %v405_v50 = vmul.f32 %v12227_v44, %v13244_v33 }
  0xf5   :  { %v404_v49 = vmul.f32 %v12229_v45, %v13253_v43 }
  0xf6   :  { %v822_v53 = vpack.c.bf16 %v406_v46, %v405_v50 }
  0xf7   :  { %v821_v52 = vpack.c.bf16 %v404_v49, %v403_v48 }
  0xf8   :  { %v12231_v54 = vpop.eup %12230 }
  0xf9   :  { %10860 = vmatprep.mubr.msk.bf16.mxu1 %vm650_vm3, %v821_v52  ;;  %v407_v59 = vmul.f32 %v12231_v54, %v13259_v51 }
  0xfa   :  { %v12233_v55 = vpop.eup %12232  ;;  %10861 = vmatmul.mubr.msk.bf16.vlgmr.msra.gmra.mxu1 %vm650_vm3, %v822_v53 }
  0xfb   :  { %v12235_v57 = vpop.eup %12234  ;;  %v410_v39 = vmul.f32 %v12233_v55, %v13262_v56  ;;  %v221_v56 = vld [vmem:[%s13302_s15] sm:$0xff] }
  0xfc   :  { %v12237_v58 = vpop.eup %12236  ;;  %v409_v43 = vmul.f32 %v12235_v57, %v13256_v47  ;;  %v15528_v47 = vmov 0.0  }
  0xfd   :  { %v408_v36 = vmul.f32 %v12237_v58, %v13266_v62  ;;  %10905 = vmatprep.subr.bf16.mxu0 %v15528_v47  ;;  %10913 = vmatprep.mubr.msk.bf16.mxu0 %vm13133_vm5, %v15528_v47 }
  0xfe   :  { %v824_v33 = vpack.c.bf16 %v410_v39, %v409_v43 }
  0xff   :  { %v823_v60 = vpack.c.bf16 %v408_v36, %v407_v59 }
 0x101   :  { %10864 = vmatprep.mubr.msk.bf16.mxu1 %vm650_vm3, %v823_v60 }
 0x102   :  { %10865 = vmatmul.mubr.msk.bf16.gmra.mxu1 %vm650_vm3, %v824_v33 }
 0x103   :  { %10894 = vmatprep.mubr.msk.f32.mxu1 %vm1251_vm4, %v221_v56 }
 0x19b   :  { %v10850_v61 = vpop.f32.mrf.mxu0 }
 0x19d   :  { %v786_v0 = vpop.f32.mrf.mxu0 }
 0x19f   :  { %v10851_v3 = vpop.f32.mrf.mxu0 }
 0x1a1   :  { %v789_v6 = vpop.f32.mrf.mxu0 }
 0x1a3   :  { %v10854_v8 = vpop.f32.mrf.mxu0 }
 0x1a5   :  { %v802_v16 = vpop.f32.mrf.mxu0 }
 0x1a6   :  { %v10838_v51 = vpop.f32.mrf.mxu1 }
 0x1a7   :  { %v795_v12 = vadd.f32 %v10850_v61, %v10838_v51  ;;  %v10855_v25 = vpop.f32.mrf.mxu0 }
 0x1a8   :  { %v697_v62 = vpop.f32.mrf.mxu1 }
 0x1a9   :  { %v787_v15 = vadd.f32 %v786_v0, %v697_v62  ;;  %v805_v40 = vpop.f32.mrf.mxu0 }
 0x1aa   :  { %v10839_v63 = vpop.f32.mrf.mxu1 }
 0x1ab   :  { %v798_v20 = vadd.f32 %v10851_v3, %v10839_v63 }
 0x1ac   :  { %v700_v1 = vpop.f32.mrf.mxu1 }
 0x1ad   :  { %v790_v24 = vadd.f32 %v789_v6, %v700_v1  ;;  %v10872_v1 = vpop.f32.mrf.mxu0 }
 0x1ae   :  { %v10842_v2 = vpop.f32.mrf.mxu1 }
 0x1af   :  { %v811_v30 = vadd.f32 %v10854_v8, %v10842_v2 }
 0x1b0   :  { %v713_v4 = vpop.f32.mrf.mxu1 }
 0x1b1   :  { %v803_v37 = vadd.f32 %v802_v16, %v713_v4 }
 0x1b2   :  { %v10843_v7 = vpop.f32.mrf.mxu1 }
 0x1b3   :  { %v814_v44 = vadd.f32 %v10855_v25, %v10843_v7  ;;  %v1031_v7 = vpop.f32.mrf.mxu0 }
 0x1b4   :  { %v716_v11 = vpop.f32.mrf.mxu1 }
 0x1b5   :  { %v806_v50 = vadd.f32 %v805_v40, %v716_v11 }
 0x1ba   :  { %v10862_v13 = vpop.f32.mrf.mxu1 }
 0x1bb   :  { %v916_v17 = vadd.f32 %v10862_v13, %v795_v12 }
 0x1bc   :  { %v883_v19 = vpop.f32.mrf.mxu1 }
 0x1bd   :  { %v13315_v21 = vadd.f32 %v9735_v14, %v916_v17  ;;  %v914_v22 = vadd.f32 %v883_v19, %v787_v15 }
 0x1be   :  { %v10863_v23 = vpop.f32.mrf.mxu1 }
 0x1bf   :  { %v9738_v26 = vmul.f32 -1.442695, %v13315_v21  ;;  %v13318_v27 = vadd.f32 %v9735_v14, %v914_v22  ;;  %v917_v28 = vadd.f32 %v10863_v23, %v798_v20 }
 0x1c0   :  { %v886_v31 = vpop.f32.mrf.mxu1 }
 0x1c1   :  { %12238 = vpow2.f32 %v9738_v26  ;;  %v9736_v32 = vmul.f32 -1.442695, %v13318_v27  ;;  %v13321_v34 = vadd.f32 %v9735_v14, %v917_v28  ;;  %v915_v35 = vadd.f32 %v886_v31, %v790_v24 }
 0x1c2   :  { %v10866_v38 = vpop.f32.mrf.mxu1 }
 0x1c3   :  { %12240 = vpow2.f32 %v9736_v32  ;;  %v9739_v41 = vmul.f32 -1.442695, %v13321_v34  ;;  %v930_v29 = vadd.f32 %v9735_v14, %v915_v35  ;;  %v920_v42 = vadd.f32 %v10866_v38, %v811_v30 }
 0x1c4   :  { %v899_v45 = vpop.f32.mrf.mxu1 }
 0x1c5   :  { %12242 = vpow2.f32 %v9739_v41  ;;  %v9737_v46 = vmul.f32 -1.442695, %v930_v29  ;;  %v935_v48 = vadd.f32 %v9735_v14, %v920_v42  ;;  %v918_v49 = vadd.f32 %v899_v45, %v803_v37 }
 0x1c6   :  { %v10867_v52 = vpop.f32.mrf.mxu1 }
 0x1c7   :  { %12244 = vpow2.f32 %v9737_v46  ;;  %v9742_v53 = vmul.f32 -1.442695, %v935_v48  ;;  %v933_v54 = vadd.f32 %v9735_v14, %v918_v49  ;;  %v921_v55 = vadd.f32 %v10867_v52, %v814_v44 }
 0x1c8   :  { %v902_v57 = vpop.f32.mrf.mxu1 }
 0x1c9   :  { %12246 = vpow2.f32 %v9742_v53  ;;  %v9740_v58 = vmul.f32 -1.442695, %v933_v54  ;;  %v936_v39 = vadd.f32 %v9735_v14, %v921_v55  ;;  %v919_v59 = vadd.f32 %v902_v57, %v806_v50  ;;  %v222_v57 = vld [vmem:[%s13302_s15 + $0x8] sm:$0xff] }
 0x1cb   :  { %12248 = vpow2.f32 %v9740_v58  ;;  %v9743_v36 = vmul.f32 -1.442695, %v936_v39  ;;  %v934_v43 = vadd.f32 %v9735_v14, %v919_v59  ;;  %v10873_v14 = vpop.f32.mrf.mxu0  ;;  %v12080_v58 = vld [vmem:[%s13309_s19 + $0x8] sm:$0xff]   ;;  %v12082_v59 = vld [vmem:[%s13373_s27 + $0x18] sm:$0xff]  }
 0x1cc   :  { %10906 = vmatpush3.bf16.msra.mxu0 %v12082_v59 }
 0x1cd   :  { %12250 = vpow2.f32 %v9743_v36  ;;  %v9741_v60 = vmul.f32 -1.442695, %v934_v43  ;;  %v1034_v17 = vpop.f32.mrf.mxu0  ;;  %v12083_v36 = vld [vmem:[%s13373_s27 + $0x10] sm:$0xff]   ;;  %10907 = vmatprep.subr.bf16.mxu0 %v15528_v47 }
 0x1ce   :  { %v12239_v33 = vpop.eup %12238 }
 0x1cf   :  { %v963_v56 = vadd.f32 1.0, %v12239_v33  ;;  %12252 = vpow2.f32 %v9741_v60  ;;  %v10876_v25 = vpop.f32.mrf.mxu0 }
 0x1d0   :  { %v12241_v51 = vpop.eup %12240  ;;  %10908 = vmatpush3.bf16.msra.mxu0 %v12083_v36 }
 0x1d1   :  { %v961_v61 = vadd.f32 1.0, %v12241_v51  ;;  %12254 = vrcp.f32 %v963_v56  ;;  %v1047_v35 = vpop.f32.mrf.mxu0  ;;  %10909 = vmatprep.subr.bf16.mxu0 %v15528_v47  ;;  %v12084_v56 = vld [vmem:[%s13373_s27 + $0x8] sm:$0xff]   ;;  %v12085_v51 = vld [vmem:[%s13373_s27] sm:$0xff]  }
 0x1d2   :  { %v12243_v62 = vpop.eup %12242 }
 0x1d3   :  { %v964_v63 = vadd.f32 1.0, %v12243_v62  ;;  %12256 = vrcp.f32 %v961_v61  ;;  %v10877_v41 = vpop.f32.mrf.mxu0  ;;  %v1334_v61 = vlaneseq }
 0x1d4   :  { %v12245_v0 = vpop.eup %12244  ;;  %10910 = vmatpush3.bf16.msra.mxu0 %v12084_v56 }
 0x1d5   :  { %12258 = vrcp.f32 %v964_v63  ;;  %v962_v2 = vadd.f32 1.0, %v12245_v0  ;;  %10911 = vmatprep.subr.bf16.mxu0 %v15528_v47  ;;  %v13391_v62 = vshrl.u32 %v1334_v61, 7  ;;  %v1082_v0 = vld [vmem:[%s13389_s1] sm:$0x7] }
 0x1d6   :  { %v12247_v3 = vpop.eup %12246 }
 0x1d7   :  { %12260 = vrcp.f32 %v962_v2  ;;  %v967_v4 = vadd.f32 1.0, %v12247_v3  ;;  %v13394_v63 = vsub.s32 0, %v13391_v62 }
 0x1d8   :  { %v12249_v6 = vpop.eup %12248  ;;  %10912 = vmatpush3.bf16.msra.mxu0 %v12085_v51 }
 0x1d9   :  { %v965_v8 = vadd.f32 1.0, %v12249_v6  ;;  %12262 = vrcp.f32 %v967_v4  ;;  %10929 = vmatprep.subr.bf16.mxu0 %v15528_v47  ;;  %v1337_v2 = vrot.slane %v1082_v0, %v13394_v63 }
 0x1da   :  { %v12251_v11 = vpop.eup %12250 }
 0x1db   :  { %v968_v12 = vadd.f32 1.0, %v12251_v11  ;;  %12264 = vrcp.f32 %v965_v8 }
 0x1dc   :  { %v12253_v13 = vpop.eup %12252 }
 0x1dd   :  { %12266 = vrcp.f32 %v968_v12  ;;  %v966_v15 = vadd.f32 1.0, %v12253_v13  ;;  %v12086_v12 = vld [vmem:[%s13373_s27 + $0x38] sm:$0xff]   ;;  %v12087_v13 = vld [vmem:[%s13373_s27 + $0x30] sm:$0xff]  }
 0x1de   :  { %v12255_v16 = vpop.eup %12254 }
 0x1df   :  { %12268 = vrcp.f32 %v966_v15  ;;  %v13325_v22 = vmul.f32 %v12255_v16, %v13315_v21  ;;  %v12089_v15 = vld [vmem:[%s13373_s27 + $0x20] sm:$0xff]   ;;  %v12090_v16 = vld [vmem:[%s13409_s5 + $0x8] sm:$0xff]  }
 0x1e0   :  { %v12257_v19 = vpop.eup %12256 }
 0x1e1   :  { %v13331_v26 = vmul.f32 %v12257_v19, %v13318_v27  ;;  %v1064_v53 = vmul.f32 %v10872_v1, %v13325_v22 }
 0x1e2   :  { %v12259_v20 = vpop.eup %12258 }
 0x1e3   :  { %v13328_v23 = vmul.f32 %v12259_v20, %v13321_v34  ;;  %v1062_v55 = vmul.f32 %v1031_v7, %v13331_v26 }
 0x1e4   :  { %v12261_v24 = vpop.eup %12260 }
 0x1e5   :  { %v1638_v28 = vpack.c.bf16 %v13328_v23, %v13325_v22  ;;  %v13335_v30 = vmul.f32 %v12261_v24, %v930_v29  ;;  %v1065_v52 = vmul.f32 %v10873_v14, %v13328_v23  ;;  %v12088_v14 = vld [vmem:[%s13373_s27 + $0x28] sm:$0xff]   ;;  %v12092_v22 = vld [vmem:[%s13442_s13 + $0x18] sm:$0xff]   ;;  %v12093_v23 = vld [vmem:[%s13442_s13 + $0x10] sm:$0xff]  }
 0x1e6   :  { %v12263_v32 = vpop.eup %12262 }
 0x1e7   :  { %v1637_v31 = vpack.c.bf16 %v13335_v30, %v13331_v26  ;;  %v13339_v38 = vmul.f32 %v12263_v32, %v935_v48  ;;  %v1050_v48 = vpop.f32.mrf.mxu0  ;;  %v12094_v26 = vld [vmem:[%s13442_s13 + $0x8] sm:$0xff]  }
 0x1e8   :  { %v12265_v21 = vpop.eup %12264 }
 0x1e9   :  { %v13343_v27 = vmul.f32 %v12265_v21, %v933_v54  ;;  %v1068_v45 = vmul.f32 %v10876_v25, %v13339_v38  ;;  %v1063_v54 = vmul.f32 %v1034_v17, %v13335_v30  ;;  %v1131_v17 = vld [vmem:[%s13417_s9] sm:$0x3f] }
 0x1ea   :  { %v12267_v37 = vpop.eup %12266  ;;  %v1398_v19 = vrot.slane %v1131_v17, %v13394_v63  ;;  %v1165_v30 = vld [vmem:[%s13454_s18] sm:$0x7] }
 0x1eb   :  { %v13341_v34 = vmul.f32 %v12267_v37, %v936_v39  ;;  %v1066_v50 = vmul.f32 %v1047_v35, %v13343_v27  ;;  %v12081_v39 = vld [vmem:[%s13309_s19] sm:$0xff]  }
 0x1ec   :  { %v12269_v40 = vpop.eup %12268 }
 0x1ed   :  { %v1069_v42 = vmul.f32 %v10877_v41, %v13341_v34  ;;  %v1640_v29 = vpack.c.bf16 %v13341_v34, %v13339_v38  ;;  %v13348_v44 = vmul.f32 %v12269_v40, %v934_v43 }
 0x1ef   :  { %v1639_v46 = vpack.c.bf16 %v13348_v44, %v13343_v27  ;;  %10878 = vmatprep.subr.mxu1 %v1069_v42  ;;  %v1067_v49 = vmul.f32 %v1050_v48, %v13348_v44 }
 0x1f0   :  { %10879 = vmatpush3.msra.mxu1 %v1069_v42 }
 0x1f1   :  { %10880 = vmatprep.subr.mxu1 %v1068_v45 }
 0x1f2   :  { %10881 = vmatpush3.msra.mxu1 %v1068_v45 }
 0x1f3   :  { %10882 = vmatprep.subr.mxu1 %v1067_v49 }
 0x1f4   :  { %10883 = vmatpush3.msra.mxu1 %v1067_v49 }
 0x1f5   :  { %10884 = vmatprep.subr.mxu1 %v1066_v50 }
 0x1f6   :  { %10885 = vmatpush3.msra.mxu1 %v1066_v50 }
 0x1f7   :  { %10886 = vmatprep.subr.mxu1 %v1065_v52 }
 0x1f8   :  { %10887 = vmatpush3.msra.mxu1 %v1065_v52 }
 0x1f9   :  { %10888 = vmatprep.subr.mxu1 %v1064_v53 }
 0x1fa   :  { %10889 = vmatpush3.msra.mxu1 %v1064_v53 }
 0x1fb   :  { %10890 = vmatprep.subr.mxu1 %v1063_v54 }
 0x1fc   :  { %10891 = vmatpush3.msra.mxu1 %v1063_v54 }
 0x1fd   :  { %10892 = vmatprep.subr.mxu1 %v1062_v55 }
 0x1fe   :  { %10893 = vmatpush3.msra.mxu1 %v1062_v55  ;;  %v12091_v55 = vld [vmem:[%s13409_s5] sm:$0xff]  }
 0x1ff   :  { %10895 = vmatmul.mubr.msk.f32.vlgmr.msra.gmra.mxu1 %vm1251_vm4, %v222_v57  ;;  %10897 = vmatprep.subr.bf16.mxu1 %v15528_v47 }
 0x200   :  { %10898 = vmatpush3.bf16.msra.mxu1 %v12080_v58  ;;  %10901 = vmatprep.mubr.msk.bf16.mxu1 %vm13133_vm5, %v15528_v47 }
 0x201   :  { %10899 = vmatprep.subr.bf16.mxu1 %v15528_v47 }
 0x204   :  { %10900 = vmatpush3.bf16.msra.mxu1 %v12081_v39 }
 0x205   :  { %10917 = vmatprep.subr.bf16.mxu1 %v15528_v47 }
 0x2bf   :  { %v10896_v43 = vpop.f32.mrf.mxu1 }
 0x2c1   :  { %v1324_v60 = vpop.f32.mrf.mxu1 }
 0x2c2   :  { %v1333_v33 = vpack.c.bf16 %v10896_v43, %v1324_v60 }
 0x2c4   :  { %10902 = vmatmul.mubr.msk.bf16.vlgmr.msra.gmra.mxu1 %vm650_vm3, %v1333_v33 }
 0x2c5   :  { %10925 = vmatprep.mubr.msk.bf16.mxu1 %vm13133_vm5, %v15528_v47  ;;  %10918 = vmatpush3.bf16.msra.mxu1 %v12086_v12 }
 0x2c6   :  { %10919 = vmatprep.subr.bf16.mxu1 %v15528_v47 }
 0x2c9   :  { %10920 = vmatpush3.bf16.msra.mxu1 %v12087_v13 }
 0x2ca   :  { %10921 = vmatprep.subr.bf16.mxu1 %v15528_v47 }
 0x2cd   :  { %10922 = vmatpush3.bf16.msra.mxu1 %v12088_v14 }
 0x2ce   :  { %10923 = vmatprep.subr.bf16.mxu1 %v15528_v47 }
 0x2d1   :  { %10924 = vmatpush3.bf16.msra.mxu1 %v12089_v15 }
 0x2d2   :  { %10941 = vmatprep.subr.bf16.mxu1 %v12090_v16 }
 0x384   :  { %v1387_v1 = vpop.f32.mrf.mxu1 }
 0x385   :  { %v1388_v6 = vadd.f32 %v1387_v1, %v1337_v2  ;;  %v1791_v1 = vsel %vm286_vm0, %v1165_v30, 0 }
 0x386   :  { %v10903_v3 = vpop.f32.mrf.mxu1 }
 0x387   :  { %v12097_v3 = vld [vmem:[%s13478_s23] sm:$0xff]  }
 0x388   :  { %v1390_v4 = vpop.f32.mrf.mxu1 }
 0x389   :  { %v1391_v7 = vadd.f32 %v1390_v4, %v1337_v2  ;;  %v12096_v2 = vld [vmem:[%s13478_s23 + $0x8] sm:$0xff]  }
 0x38a   :  { %v10904_v8 = vpop.f32.mrf.mxu1 }
 0x38b   :  { %v1394_v11 = vpack.c.bf16 %v1391_v7, %v1388_v6 }
 0x38d   :  { %10914 = vmatmul.mubr.msk.bf16.vlgmr.msra.gmra.mxu0 %vm1251_vm4, %v1394_v11  ;;  %v1164_v11 = vld [vmem:[%s13486_s28] sm:$0x3] }
 0x38e   :  { %10937 = vmatprep.mubr.msk.bf16.mxu0 %vm13133_vm5, %v15528_v47  ;;  %10930 = vmatpush3.bf16.msra.mxu0 %v12092_v22  ;;  %v1644_v13 = vrot.slane %v1164_v11, %v13394_v63 }
 0x38f   :  { %10931 = vmatprep.subr.bf16.mxu0 %v15528_v47 }
 0x392   :  { %10932 = vmatpush3.bf16.msra.mxu0 %v12093_v23 }
 0x393   :  { %10933 = vmatprep.subr.bf16.mxu0 %v15528_v47 }
 0x396   :  { %10934 = vmatpush3.bf16.msra.mxu0 %v12094_v26 }
 0x397   :  { %10935 = vmatprep.subr.bf16.mxu0 %v15528_v47 }
 0x44d   :  { %v1460_v20 = vpop.f32.mrf.mxu0 }
 0x44e   :  { %v1461_v24 = vadd.f32 %v1460_v20, %v1398_v19 }
 0x44f   :  { %v10915_v25 = vpop.f32.mrf.mxu0 }
 0x450   :  { %v9758_v32 = vmul.f32 -1.442695, %v1461_v24 }
 0x451   :  { %v1463_v35 = vpop.f32.mrf.mxu0 }
 0x452   :  { %12270 = vpow2.f32 %v9758_v32  ;;  %v1464_v21 = vadd.f32 %v1463_v35, %v1398_v19 }
 0x453   :  { %v10916_v37 = vpop.f32.mrf.mxu0 }
 0x454   :  { %v9759_v40 = vmul.f32 -1.442695, %v1464_v21 }
 0x456   :  { %12272 = vpow2.f32 %v9759_v40 }
 0x45f   :  { %v12271_v41 = vpop.eup %12270 }
 0x460   :  { %v1473_v42 = vadd.f32 1.0, %v12271_v41 }
 0x462   :  { %12274 = vrcp.f32 %v1473_v42 }
 0x463   :  { %v12273_v45 = vpop.eup %12272 }
 0x464   :  { %v1474_v48 = vadd.f32 1.0, %v12273_v45 }
 0x466   :  { %12276 = vrcp.f32 %v1474_v48 }
 0x46f   :  { %v12275_v49 = vpop.eup %12274 }
 0x470   :  { %v1479_v52 = vmul.f32 %v12275_v49, %v1461_v24 }
 0x473   :  { %v12277_v50 = vpop.eup %12276 }
 0x474   :  { %v1480_v53 = vmul.f32 %v12277_v50, %v1464_v21 }
 0x476   :  { %v1481_v54 = vpack.c.bf16 %v1480_v53, %v1479_v52 }
 0x478   :  { %10926 = vmatmul.mubr.msk.bf16.vlgmr.msra.gmra.mxu1 %vm1251_vm4, %v1481_v54 }
 0x479   :  { %10942 = vmatpush3.bf16.msra.mxu1 %v12090_v16  ;;  %10945 = vmatprep.mubr.msk.bf16.mxu1 %vm650_vm3, %v1637_v31  ;;  %v13459_v31 = vsub.s32 1, %v13391_v62 }
 0x47a   :  { %10943 = vmatprep.subr.bf16.mxu1 %v12091_v55 }
 0x47b   :  { %v1485_v38 = vrot.slane %v1131_v17, %v13459_v31 }
 0x47d   :  { %10944 = vmatpush3.bf16.msra.mxu1 %v12091_v55 }
 0x47e   :  { %10963 = vmatprep.subr.bf16.mxu1 %v12096_v2 }
 0x480   :  { %10946 = vmatmul.mubr.msk.bf16.vlgmr.msra.gmra.mxu1 %vm650_vm3, %v1638_v28  ;;  %v12095_v28 = vld [vmem:[%s13442_s13] sm:$0xff]  }
 0x481   :  { %10949 = vmatprep.mubr.msk.bf16.mxu1 %vm650_vm3, %v1639_v46  ;;  %10936 = vmatpush3.bf16.msra.mxu0 %v12095_v28 }
 0x482   :  { %12016 = vmatprep.subr.msk.bf16.mxu0 %vm286_vm0, %v1165_v30  ;;  %10964 = vmatpush3.bf16.msra.mxu1 %v12096_v2 }
 0x483   :  { %10965 = vmatprep.subr.bf16.mxu1 %v12097_v3 }
 0x486   :  { %10966 = vmatpush3.bf16.msra.mxu1 %v12097_v3 }
 0x487   :  { %11033 = vmatprep.subr.bf16.mxu1 %v15528_v47 }
 0x488   :  { %10950 = vmatmul.mubr.msk.bf16.gmra.mxu1 %vm650_vm3, %v1640_v29 }
 0x538   :  { %v1547_v34 = vpop.f32.mrf.mxu1 }
 0x539   :  { %v1548_v27 = vadd.f32 %v1547_v34, %v1485_v38 }
 0x53a   :  { %v10927_v29 = vpop.f32.mrf.mxu1 }
 0x53b   :  { %v9765_v44 = vmul.f32 -1.442695, %v1548_v27 }
 0x53c   :  { %v1550_v46 = vpop.f32.mrf.mxu1 }
 0x53d   :  { %12278 = vpow2.f32 %v9765_v44  ;;  %v1551_v57 = vadd.f32 %v1550_v46, %v1485_v38 }
 0x53e   :  { %v10928_v58 = vpop.f32.mrf.mxu1 }
 0x53f   :  { %v9766_v39 = vmul.f32 -1.442695, %v1551_v57 }
 0x540   :  { %v10947_v4 = vpop.f32.mrf.mxu1 }
 0x541   :  { %12280 = vpow2.f32 %v9766_v39  ;;  %v1712_v19 = vadd.f32 %v10947_v4, %v1644_v13 }
 0x542   :  { %v1703_v6 = vpop.f32.mrf.mxu1 }
 0x543   :  { %v13490_v15 = vadd.f32 %v1703_v6, %v1644_v13  ;;  %v9780_v35 = vmul.f32 -1.442695, %v1712_v19 }
 0x544   :  { %v10948_v7 = vpop.f32.mrf.mxu1 }
 0x545   :  { %v1715_v16 = vadd.f32 %v10948_v7, %v1644_v13  ;;  %v9778_v24 = vmul.f32 -1.442695, %v13490_v15 }
 0x546   :  { %v1706_v8 = vpop.f32.mrf.mxu1 }
 0x547   :  { %v1707_v17 = vadd.f32 %v1706_v8, %v1644_v13  ;;  %v9781_v25 = vmul.f32 -1.442695, %v1715_v16 }
 0x548   :  { %v10951_v12 = vpop.f32.mrf.mxu1 }
 0x549   :  { %v9779_v32 = vmul.f32 -1.442695, %v1707_v17  ;;  %v13499_v42 = vadd.f32 %v10951_v12, %v1644_v13 }
 0x54a   :  { %v12279_v59 = vpop.eup %12278  ;;  %v1719_v14 = vpop.f32.mrf.mxu1 }
 0x54b   :  { %v1560_v36 = vadd.f32 1.0, %v12279_v59  ;;  %v13493_v37 = vadd.f32 %v1719_v14, %v1644_v13  ;;  %v9784_v50 = vmul.f32 -1.442695, %v13499_v42 }
 0x54c   :  { %v10952_v20 = vpop.f32.mrf.mxu1 }
 0x54d   :  { %12282 = vrcp.f32 %v1560_v36  ;;  %v13495_v40 = vadd.f32 %v10952_v20, %v1644_v13  ;;  %v9782_v45 = vmul.f32 -1.442695, %v13493_v37 }
 0x54e   :  { %v12281_v43 = vpop.eup %12280  ;;  %v1722_v21 = vpop.f32.mrf.mxu1 }
 0x54f   :  { %v1561_v60 = vadd.f32 1.0, %v12281_v43  ;;  %v13497_v41 = vadd.f32 %v1722_v21, %v1644_v13  ;;  %v9785_v48 = vmul.f32 -1.442695, %v13495_v40 }
 0x551   :  { %12284 = vrcp.f32 %v1561_v60  ;;  %v9783_v49 = vmul.f32 -1.442695, %v13497_v41 }
 0x552   :  { %12286 = vpow2.f32 %v9778_v24 }
 0x553   :  { %12288 = vpow2.f32 %v9781_v25 }
 0x554   :  { %12290 = vpow2.f32 %v9779_v32 }
 0x555   :  { %12292 = vpow2.f32 %v9780_v35 }
 0x556   :  { %12294 = vpow2.f32 %v9782_v45 }
 0x557   :  { %12296 = vpow2.f32 %v9785_v48 }
 0x558   :  { %12298 = vpow2.f32 %v9783_v49 }
 0x559   :  { %12300 = vpow2.f32 %v9784_v50 }
 0x55a   :  { %v12283_v33 = vpop.eup %12282 }
 0x55b   :  { %v1566_v51 = vmul.f32 %v12283_v33, %v1548_v27 }
 0x55e   :  { %v12285_v56 = vpop.eup %12284 }
 0x55f   :  { %v1567_v61 = vmul.f32 %v12285_v56, %v1551_v57  ;;  %v12287_v52 = vpop.eup %12286 }
 0x560   :  { %v12289_v53 = vpop.eup %12288  ;;  %v1758_v22 = vadd.f32 1.0, %v12287_v52 }
 0x561   :  { %v1568_v0 = vpack.c.bf16 %v1567_v61, %v1566_v51  ;;  %v12291_v54 = vpop.eup %12290  ;;  %v1761_v23 = vadd.f32 1.0, %v12289_v53 }
 0x562   :  { %v12293_v55 = vpop.eup %12292  ;;  %v1759_v26 = vadd.f32 1.0, %v12291_v54  ;;  %12302 = vrcp.f32 %v1758_v22  ;;  %v182_v22 = vld [vmem:[%s13532_s8] sm:$0xff] }
 0x563   :  { %10938 = vmatmul.mubr.msk.bf16.vlgmr.msra.gmra.mxu0 %vm1251_vm4, %v1568_v0  ;;  %v1760_v28 = vadd.f32 1.0, %v12293_v55  ;;  %v12295_v30 = vpop.eup %12294  ;;  %12304 = vrcp.f32 %v1761_v23  ;;  %v183_v23 = vld [vmem:[%s13532_s8 + $0x8] sm:$0xff] }
 0x564   :  { %10954 = vmatpush3.bf16.msra.mxu0 %v1791_v1  ;;  %10955 = vmatprep.mubr.msk.bf16.mxu0 %vm273_vm1, %v13190_v5  ;;  %v12297_v38 = vpop.eup %12296  ;;  %12306 = vrcp.f32 %v1759_v26  ;;  %v1762_v29 = vadd.f32 1.0, %v12295_v30  ;;  %v13538_v26 = vpack.c.bf16 %v183_v23, %v182_v22  ;;  %v185_v30 = vld [vmem:[%s13532_s8 + $0x18] sm:$0xff]  ;;  %v207_v22 = vld [vmem:[%s13532_s8 + $0xc8] sm:$0xff] }
 0x565   :  { %10975 = vmatprep.subr.bf16.mxu0 %v15528_v47  ;;  %v12299_v34 = vpop.eup %12298  ;;  %12308 = vrcp.f32 %v1760_v28  ;;  %v1765_v44 = vadd.f32 1.0, %v12297_v38  ;;  %v184_v28 = vld [vmem:[%s13532_s8 + $0x10] sm:$0xff] }
 0x566   :  { %v12301_v27 = vpop.eup %12300  ;;  %v1763_v57 = vadd.f32 1.0, %v12299_v34  ;;  %12310 = vrcp.f32 %v1762_v29  ;;  %v13552_v38 = vpack.c.bf16 %v185_v30, %v184_v28  ;;  %v186_v34 = vld [vmem:[%s13532_s8 + $0x20] sm:$0xff] }
 0x567   :  { %v1764_v58 = vadd.f32 1.0, %v12301_v27  ;;  %12312 = vrcp.f32 %v1765_v44  ;;  %v187_v27 = vld [vmem:[%s13532_s8 + $0x28] sm:$0xff]  ;;  %v188_v44 = vld [vmem:[%s13532_s8 + $0x30] sm:$0xff] }
 0x568   :  { %12314 = vrcp.f32 %v1763_v57  ;;  %v13560_v29 = vpack.c.bf16 %v187_v27, %v186_v34  ;;  %v189_v57 = vld [vmem:[%s13532_s8 + $0x38] sm:$0xff] }
 0x569   :  { %12316 = vrcp.f32 %v1764_v58  ;;  %v13568_v58 = vpack.c.bf16 %v189_v57, %v188_v44 }
 0x56b   :  { %10956 = vmatmul.mubr.msk.bf16.vlgmr.msra.gmra.mxu0 %vm273_vm1, %v13192_v9 }
 0x56c   :  { %10959 = vmatprep.mubr.msk.bf16.mxu0 %vm273_vm1, %v13194_v10 }
 0x56f   :  { %v12303_v43 = vpop.eup %12302 }
 0x570   :  { %v12305_v33 = vpop.eup %12304  ;;  %v1782_v3 = vmul.f32 %v12303_v43, %v13490_v15 }
 0x571   :  { %v12307_v56 = vpop.eup %12306  ;;  %v1785_v0 = vmul.f32 %v12305_v33, %v1715_v16  ;;  %v193_v33 = vld [vmem:[%s13532_s8 + $0x58] sm:$0xff] }
 0x572   :  { %v12309_v61 = vpop.eup %12308  ;;  %v1783_v2 = vmul.f32 %v12307_v56, %v1707_v17 }
 0x573   :  { %10960 = vmatmul.mubr.msk.bf16.gmra.mxu0 %vm273_vm1, %v13204_v18  ;;  %v1784_v4 = vmul.f32 %v12309_v61, %v1712_v19  ;;  %v12311_v12 = vpop.eup %12310  ;;  %v195_v61 = vld [vmem:[%s13532_s8 + $0x68] sm:$0xff] }
 0x574   :  { %10981 = vmatprep.mubr.msk.bf16.mxu0 %vm13133_vm5, %v15528_v47  ;;  %v12313_v20 = vpop.eup %12312  ;;  %v1786_v19 = vmul.f32 %v12311_v12, %v13493_v37  ;;  %v12098_v37 = vld [vmem:[%s13523_s3 + $0x10] sm:$0x1f]   ;;  %v201_v12 = vld [vmem:[%s13532_s8 + $0x98] sm:$0xff] }
 0x575   :  { %v12315_v25 = vpop.eup %12314  ;;  %v1789_v16 = vmul.f32 %v12313_v20, %v13495_v40  ;;  %v2074_v40 = vsel %vm2072_vm6, %v12098_v37, 0 }
 0x576   :  { %v12317_v21 = vpop.eup %12316  ;;  %v1787_v15 = vmul.f32 %v12315_v25, %v13497_v41  ;;  %10976 = vmatpush3.bf16.msra.mxu0 %v2074_v40  ;;  %v12099_v41 = vld [vmem:[%s13523_s3 + $0x8] sm:$0xff]  }
 0x577   :  { %v1788_v45 = vmul.f32 %v12317_v21, %v13499_v42  ;;  %10977 = vmatprep.subr.bf16.mxu0 %v15528_v47  ;;  %v12100_v42 = vld [vmem:[%s13523_s3] sm:$0xff]  }
 0x57a   :  { %10978 = vmatpush3.bf16.msra.mxu0 %v12099_v41 }
 0x57b   :  { %10979 = vmatprep.subr.bf16.mxu0 %v15528_v47 }
 0x57e   :  { %10980 = vmatpush3.bf16.msra.mxu0 %v12100_v42  ;;  %v206_v42 = vld [vmem:[%s13532_s8 + $0xc0] sm:$0xff] }
 0x57f   :  { %2509 = vmatprep.subr.mxu0 %v15528_v47  ;;  %v13652_v28 = vpack.c.bf16 %v207_v22, %v206_v42  ;;  %v12105_v42 = vld [vmem:[%s13543_s14 + $0x20] sm:$0xff]   ;;  %v12106_v22 = vld [vmem:[%s13543_s14 + $0x28] sm:$0xff]  }
 0x581   :  { %10982 = vmatmul.mubr.msk.bf16.vlgmr.msra.gmra.mxu0 %vm2032_vm7, %v13538_v26  ;;  %15553 = vst [vmem:[#allocation12_spill] sm:$0xff] %v13652_v28 }
 0x582   :  { %10985 = vmatprep.mubr.msk.bf16.mxu0 %vm13133_vm5, %v15528_v47 }
 0x589   :  { %10986 = vmatmul.mubr.msk.bf16.gmra.mxu0 %vm2032_vm7, %v13552_v38 }
 0x58a   :  { %10989 = vmatprep.mubr.msk.bf16.mxu0 %vm13133_vm5, %v15528_v47 }
 0x591   :  { %10990 = vmatmul.mubr.msk.bf16.gmra.mxu0 %vm2032_vm7, %v13560_v29 }
 0x592   :  { %10993 = vmatprep.mubr.msk.bf16.mxu0 %vm13133_vm5, %v15528_v47 }
 0x599   :  { %10994 = vmatmul.mubr.msk.bf16.gmra.mxu0 %vm2032_vm7, %v13568_v58 }
 0x59a   :  { %10997 = vmatprep.mubr.msk.bf16.mxu0 %vm13133_vm5, %v15528_v47 }
 0x623   :  { %v13505_v46 = vpop.f32.mrf.mxu0 }
 0x624   :  { %15543 = vst [vmem:[#allocation2_spill] sm:$0xff] %v13505_v46 }
 0x625   :  { %v10939_v39 = vpop.f32.mrf.mxu0 }
 0x626   :  { %v190_v39 = vld [vmem:[%s13532_s8 + $0x40] sm:$0xff] }
 0x627   :  { %v13507_v59 = vpop.f32.mrf.mxu0 }
 0x628   :  { %15544 = vst [vmem:[#allocation3_spill] sm:$0xff] %v13507_v59 }
 0x629   :  { %v10940_v36 = vpop.f32.mrf.mxu0 }
 0x62a   :  { %v191_v36 = vld [vmem:[%s13532_s8 + $0x48] sm:$0xff] }
 0x62b   :  { %v10957_v60 = vpop.f32.mrf.mxu0  ;;  %v13576_v43 = vpack.c.bf16 %v191_v36, %v190_v39 }
 0x62c   :  { %v1860_v13 = vmul.f32 %v10957_v60, %v1784_v4  ;;  %v192_v60 = vld [vmem:[%s13532_s8 + $0x50] sm:$0xff]  ;;  %v198_v4 = vld [vmem:[%s13532_s8 + $0x80] sm:$0xff] }
 0x62d   :  { %v1827_v51 = vpop.f32.mrf.mxu0  ;;  %15545 = vst [vmem:[#allocation4_spill] sm:$0xff] %v13576_v43  ;;  %10998 = vmatmul.mubr.msk.bf16.gmra.mxu0 %vm2032_vm7, %v13576_v43  ;;  %v13584_v56 = vpack.c.bf16 %v193_v33, %v192_v60 }
 0x62e   :  { %v1858_v8 = vmul.f32 %v1827_v51, %v1782_v3  ;;  %11001 = vmatprep.mubr.msk.bf16.mxu0 %vm13133_vm5, %v15528_v47  ;;  %v194_v51 = vld [vmem:[%s13532_s8 + $0x60] sm:$0xff] }
 0x62f   :  { %v10958_v1 = vpop.f32.mrf.mxu0  ;;  %15546 = vst [vmem:[#allocation5_spill] sm:$0xff] %v13584_v56 }
 0x630   :  { %v1861_v6 = vmul.f32 %v10958_v1, %v1785_v0  ;;  %v13592_v0 = vpack.c.bf16 %v195_v61, %v194_v51  ;;  %v196_v1 = vld [vmem:[%s13532_s8 + $0x70] sm:$0xff] }
 0x631   :  { %v1830_v7 = vpop.f32.mrf.mxu0 }
 0x632   :  { %v1859_v11 = vmul.f32 %v1830_v7, %v1783_v2  ;;  %v1867_v32 = vpack.c.bf16 %v1861_v6, %v1860_v13  ;;  %15547 = vst [vmem:[#allocation6_spill] sm:$0xff] %v13592_v0  ;;  %v197_v2 = vld [vmem:[%s13532_s8 + $0x78] sm:$0xff]  ;;  %v199_v6 = vld [vmem:[%s13532_s8 + $0x88] sm:$0xff] }
 0x633   :  { %v10961_v14 = vpop.f32.mrf.mxu0  ;;  %v13600_v3 = vpack.c.bf16 %v197_v2, %v196_v1  ;;  %v13608_v7 = vpack.c.bf16 %v199_v6, %v198_v4 }
 0x634   :  { %v1866_v24 = vpack.c.bf16 %v1859_v11, %v1858_v8  ;;  %v1864_v53 = vmul.f32 %v10961_v14, %v1788_v45  ;;  %v200_v11 = vld [vmem:[%s13532_s8 + $0x90] sm:$0xff] }
 0x635   :  { %v1843_v35 = vpop.f32.mrf.mxu0  ;;  %11002 = vmatmul.mubr.msk.bf16.gmra.mxu0 %vm2032_vm7, %v13584_v56  ;;  %15548 = vst [vmem:[#allocation7_spill] sm:$0xff] %v13600_v3  ;;  %15549 = vst [vmem:[#allocation8_spill] sm:$0xff] %v13608_v7  ;;  %v13618_v13 = vpack.c.bf16 %v201_v12, %v200_v11 }
 0x636   :  { %10967 = vmatprep.mubr.msk.bf16.mxu1 %vm650_vm3, %v1866_v24  ;;  %v1862_v50 = vmul.f32 %v1843_v35, %v1786_v19  ;;  %11005 = vmatprep.mubr.msk.bf16.mxu0 %vm13133_vm5, %v15528_v47  ;;  %v203_v35 = vld [vmem:[%s13532_s8 + $0xa8] sm:$0xff] }
 0x637   :  { %v10962_v17 = vpop.f32.mrf.mxu0  ;;  %10968 = vmatmul.mubr.msk.bf16.vlgmr.msra.gmra.mxu1 %vm650_vm3, %v1867_v32  ;;  %15550 = vst [vmem:[#allocation9_spill] sm:$0xff] %v13618_v13  ;;  %v202_v32 = vld [vmem:[%s13532_s8 + $0xa0] sm:$0xff] }
 0x638   :  { %v1865_v48 = vmul.f32 %v10962_v17, %v1789_v16  ;;  %v13632_v16 = vpack.c.bf16 %v203_v35, %v202_v32 }
 0x639   :  { %v1846_v49 = vpop.f32.mrf.mxu0 }
 0x63a   :  { %v1863_v52 = vmul.f32 %v1846_v49, %v1787_v15  ;;  %v1869_v55 = vpack.c.bf16 %v1865_v48, %v1864_v53  ;;  %15551 = vst [vmem:[#allocation10_spill] sm:$0xff] %v13632_v16 }
 0x63c   :  { %v1868_v54 = vpack.c.bf16 %v1863_v52, %v1862_v50 }
 0x63d   :  { %11006 = vmatmul.mubr.msk.bf16.gmra.mxu0 %vm2032_vm7, %v13592_v0 }
 0x63e   :  { %10971 = vmatprep.mubr.msk.bf16.mxu1 %vm650_vm3, %v1868_v54  ;;  %11009 = vmatprep.mubr.msk.bf16.mxu0 %vm13133_vm5, %v15528_v47  ;;  %v204_v54 = vld [vmem:[%s13532_s8 + $0xb0] sm:$0xff] }
 0x63f   :  { %10972 = vmatmul.mubr.msk.bf16.gmra.mxu1 %vm650_vm3, %v1869_v55  ;;  %v205_v55 = vld [vmem:[%s13532_s8 + $0xb8] sm:$0xff] }
 0x640   :  { %11041 = vmatprep.mubr.msk.bf16.mxu1 %vm13133_vm5, %v15528_v47  ;;  %v13644_v40 = vpack.c.bf16 %v205_v55, %v204_v54 }
 0x642   :  { %15552 = vst [vmem:[#allocation11_spill] sm:$0xff] %v13644_v40 }
 0x645   :  { %11010 = vmatmul.mubr.msk.bf16.gmra.mxu0 %vm2032_vm7, %v13600_v3 }
 0x646   :  { %11013 = vmatprep.mubr.msk.bf16.mxu0 %vm13133_vm5, %v15528_v47 }
 0x64d   :  { %11014 = vmatmul.mubr.msk.bf16.gmra.mxu0 %vm2032_vm7, %v13608_v7 }
 0x64e   :  { %11017 = vmatprep.mubr.msk.bf16.mxu0 %vm13133_vm5, %v15528_v47 }
 0x655   :  { %11018 = vmatmul.mubr.msk.bf16.gmra.mxu0 %vm2032_vm7, %v13618_v13 }
 0x656   :  { %11021 = vmatprep.mubr.msk.bf16.mxu0 %vm13133_vm5, %v15528_v47 }
 0x65d   :  { %11022 = vmatmul.mubr.msk.bf16.gmra.mxu0 %vm2032_vm7, %v13632_v16 }
 0x65e   :  { %11025 = vmatprep.mubr.msk.bf16.mxu0 %vm13133_vm5, %v15528_v47 }
 0x665   :  { %11026 = vmatmul.mubr.msk.bf16.gmra.mxu0 %vm2032_vm7, %v13644_v40 }
 0x666   :  { %11029 = vmatprep.mubr.msk.bf16.mxu0 %vm13133_vm5, %v15528_v47 }
 0x66d   :  { %11030 = vmatmul.mubr.msk.bf16.gmra.mxu0 %vm2032_vm7, %v13652_v28 }
 0x6f7   :  { %v13614_v8 = vpop.f32.mrf.mxu1 }
 0x6f8   :  { %v9798_v45 = vmul.f32 -1.442695, %v13614_v8 }
 0x6f9   :  { %v13620_v14 = vpop.f32.mrf.mxu1 }
 0x6fa   :  { %v9796_v37 = vmul.f32 -1.442695, %v13620_v14 }
 0x6fb   :  { %v13624_v20 = vpop.f32.mrf.mxu1 }
 0x6fc   :  { %v9799_v17 = vmul.f32 -1.442695, %v13624_v20 }
 0x6fd   :  { %v13628_v24 = vpop.f32.mrf.mxu1 }
 0x6fe   :  { %v9797_v52 = vmul.f32 -1.442695, %v13628_v24 }
 0x6ff   :  { %v10973_v25 = vpop.f32.mrf.mxu1 }
 0x700   :  { %v9802_v21 = vmul.f32 -1.442695, %v10973_v25 }
 0x701   :  { %v1944_v15 = vpop.f32.mrf.mxu1 }
 0x702   :  { %12318 = vpow2.f32 %v9802_v21  ;;  %v9800_v19 = vmul.f32 -1.442695, %v1944_v15 }
 0x703   :  { %v10974_v48 = vpop.f32.mrf.mxu1 }
 0x704   :  { %12320 = vpow2.f32 %v9800_v19  ;;  %v9803_v49 = vmul.f32 -1.442695, %v10974_v48 }
 0x705   :  { %12322 = vpow2.f32 %v9799_v17  ;;  %v1947_v50 = vpop.f32.mrf.mxu1 }
 0x706   :  { %12324 = vpow2.f32 %v9803_v49  ;;  %v9801_v53 = vmul.f32 -1.442695, %v1947_v50 }
 0x707   :  { %12326 = vpow2.f32 %v9798_v45 }
 0x708   :  { %12328 = vpow2.f32 %v9801_v53 }
 0x709   :  { %12330 = vpow2.f32 %v9797_v52 }
 0x70a   :  { %12332 = vpow2.f32 %v9796_v37 }
 0x70f   :  { %v12319_v41 = vpop.eup %12318 }
 0x710   :  { %v1989_v23 = vadd.f32 1.0, %v12319_v41  ;;  %v12101_v41 = vld [vmem:[%s13543_s14] sm:$0xff]  }
 0x711   :  { %v12321_v30 = vpop.eup %12320 }
 0x712   :  { %v12323_v34 = vpop.eup %12322  ;;  %v1987_v44 = vadd.f32 1.0, %v12321_v30  ;;  %12334 = vrcp.f32 %v1989_v23  ;;  %v12107_v23 = vld [vmem:[%s13543_s14 + $0x30] sm:$0xff]   ;;  %v12108_v30 = vld [vmem:[%s13543_s14 + $0x38] sm:$0xff]  }
 0x713   :  { %v12325_v27 = vpop.eup %12324  ;;  %v1986_v60 = vadd.f32 1.0, %v12323_v34  ;;  %v13695_v34 = vpop.f32.mrf.mxu0 }
 0x714   :  { %v12327_v57 = vpop.eup %12326  ;;  %v1990_v39 = vadd.f32 1.0, %v12325_v27  ;;  %v12109_v27 = vld [vmem:[%s13543_s14 + $0x40] sm:$0xff]  }
 0x715   :  { %v12329_v36 = vpop.eup %12328  ;;  %v1985_v61 = vadd.f32 1.0, %v12327_v57 }
 0x716   :  { %12336 = vrcp.f32 %v1990_v39  ;;  %v1988_v33 = vadd.f32 1.0, %v12329_v36  ;;  %v12331_v51 = vpop.eup %12330 }
 0x717   :  { %12338 = vrcp.f32 %v1987_v44  ;;  %v12333_v1 = vpop.eup %12332  ;;  %v1984_v2 = vadd.f32 1.0, %v12331_v51  ;;  %v10983_v44 = vpop.f32.mrf.mxu0 }
 0x718   :  { %12340 = vrcp.f32 %v1988_v33  ;;  %v1983_v4 = vadd.f32 1.0, %v12333_v1 }
 0x719   :  { %12342 = vrcp.f32 %v1986_v60  ;;  %v13698_v57 = vpop.f32.mrf.mxu0  ;;  %v12110_v60 = vld [vmem:[%s13543_s14 + $0x48] sm:$0xff]  }
 0x71a   :  { %12344 = vrcp.f32 %v1985_v61 }
 0x71b   :  { %12346 = vrcp.f32 %v1984_v2  ;;  %v10984_v39 = vpop.f32.mrf.mxu0  ;;  %v12111_v2 = vld [vmem:[%s13543_s14 + $0x50] sm:$0xff]  }
 0x71c   :  { %12348 = vrcp.f32 %v1983_v4 }
 0x71d   :  { %v13703_v36 = vpop.f32.mrf.mxu0 }
 0x71f   :  { %v12335_v6 = vpop.eup %12334  ;;  %v10987_v33 = vpop.f32.mrf.mxu0 }
 0x720   :  { %v2013_v32 = vmul.f32 %v12335_v6, %v10973_v25 }
 0x721   :  { %v13706_v51 = vpop.f32.mrf.mxu0 }
 0x723   :  { %v12337_v11 = vpop.eup %12336  ;;  %v10988_v61 = vpop.f32.mrf.mxu0 }
 0x724   :  { %v12339_v12 = vpop.eup %12338  ;;  %v2014_v35 = vmul.f32 %v12337_v11, %v10974_v48 }
 0x725   :  { %v12341_v21 = vpop.eup %12340  ;;  %v2011_v49 = vmul.f32 %v12339_v12, %v1944_v15  ;;  %v13711_v1 = vpop.f32.mrf.mxu0 }
 0x726   :  { %v2216_v17 = vpack.c.bf16 %v2014_v35, %v2013_v32  ;;  %v2012_v19 = vmul.f32 %v12341_v21, %v1947_v50  ;;  %v12343_v45 = vpop.eup %12342  ;;  %v12112_v32 = vld [vmem:[%s13543_s14 + $0x58] sm:$0xff]  }
 0x727   :  { %v12345_v52 = vpop.eup %12344  ;;  %v2010_v53 = vmul.f32 %v12343_v45, %v13624_v20  ;;  %v10991_v4 = vpop.f32.mrf.mxu0  ;;  %v12113_v45 = vld [vmem:[%s13543_s14 + $0x60] sm:$0xff]  }
 0x728   :  { %11034 = vmatpush3.bf16.msra.mxu1 %v2216_v17  ;;  %v2215_v54 = vpack.c.bf16 %v2012_v19, %v2011_v49  ;;  %v12347_v55 = vpop.eup %12346  ;;  %v2009_v37 = vmul.f32 %v12345_v52, %v13614_v8  ;;  %v12102_v8 = vld [vmem:[%s13543_s14 + $0x8] sm:$0xff]  }
 0x729   :  { %11035 = vmatprep.subr.bf16.mxu1 %v15528_v47  ;;  %v12349_v25 = vpop.eup %12348  ;;  %v2008_v15 = vmul.f32 %v12347_v55, %v13628_v24  ;;  %v12104_v24 = vld [vmem:[%s13543_s14 + $0x18] sm:$0xff]   ;;  %v13714_v6 = vpop.f32.mrf.mxu0 }
 0x72a   :  { %v2214_v48 = vpack.c.bf16 %v2010_v53, %v2009_v37  ;;  %v2007_v50 = vmul.f32 %v12349_v25, %v13620_v14  ;;  %v12103_v14 = vld [vmem:[%s13543_s14 + $0x10] sm:$0xff]  }
 0x72b   :  { %v10992_v11 = vpop.f32.mrf.mxu0 }
 0x72c   :  { %11036 = vmatpush3.bf16.msra.mxu1 %v2215_v54  ;;  %v2213_v20 = vpack.c.bf16 %v2008_v15, %v2007_v50 }
 0x72d   :  { %11037 = vmatprep.subr.bf16.mxu1 %v15528_v47  ;;  %v13719_v12 = vpop.f32.mrf.mxu0 }
 0x72f   :  { %v10995_v35 = vpop.f32.mrf.mxu0 }
 0x730   :  { %11038 = vmatpush3.bf16.msra.mxu1 %v2214_v48 }
 0x731   :  { %11039 = vmatprep.subr.bf16.mxu1 %v15528_v47  ;;  %v13722_v21 = vpop.f32.mrf.mxu0 }
 0x733   :  { %v10996_v17 = vpop.f32.mrf.mxu0 }
 0x734   :  { %11040 = vmatpush3.bf16.msra.mxu1 %v2213_v20 }
 0x735   :  { %v13727_v19 = vpop.f32.mrf.mxu0 }
 0x737   :  { %11042 = vmatmul.mubr.msk.bf16.vlgmr.msra.gmra.mxu1 %vm1251_vm4, %v12101_v41  ;;  %v10999_v49 = vpop.f32.mrf.mxu0 }
 0x738   :  { %11045 = vmatprep.mubr.msk.bf16.mxu1 %vm13133_vm5, %v15528_v47 }
 0x739   :  { %v13730_v52 = vpop.f32.mrf.mxu0 }
 0x73b   :  { %v11000_v53 = vpop.f32.mrf.mxu0 }
 0x73d   :  { %v13733_v54 = vpop.f32.mrf.mxu0 }
 0x73f   :  { %11046 = vmatmul.mubr.msk.bf16.gmra.mxu1 %vm1251_vm4, %v12102_v8  ;;  %v11003_v55 = vpop.f32.mrf.mxu0 }
 0x740   :  { %11049 = vmatprep.mubr.msk.bf16.mxu1 %vm13133_vm5, %v15528_v47 }
 0x741   :  { %v13735_v37 = vpop.f32.mrf.mxu0 }
 0x743   :  { %v11004_v25 = vpop.f32.mrf.mxu0 }
 0x744   :  { %v224_v25 = vld [vmem:[%s13768_s21 + $0x8] sm:$0xff] }
 0x745   :  { %v13737_v48 = vpop.f32.mrf.mxu0  ;;  %9846 = vmatprep.mubr.msk.f32.mxu0 %vm2484_vm8, %v224_v25 }
 0x747   :  { %11050 = vmatmul.mubr.msk.bf16.gmra.mxu1 %vm1251_vm4, %v12103_v14  ;;  %v11007_v15 = vpop.f32.mrf.mxu0 }
 0x748   :  { %11053 = vmatprep.mubr.msk.bf16.mxu1 %vm13133_vm5, %v15528_v47 }
 0x749   :  { %v13739_v50 = vpop.f32.mrf.mxu0 }
 0x74b   :  { %v11008_v20 = vpop.f32.mrf.mxu0 }
 0x74d   :  { %v13741_v41 = vpop.f32.mrf.mxu0 }
 0x74f   :  { %11054 = vmatmul.mubr.msk.bf16.gmra.mxu1 %vm1251_vm4, %v12104_v24  ;;  %v11011_v8 = vpop.f32.mrf.mxu0 }
 0x750   :  { %11057 = vmatprep.mubr.msk.bf16.mxu1 %vm13133_vm5, %v15528_v47 }
 0x751   :  { %v13743_v14 = vpop.f32.mrf.mxu0 }
 0x753   :  { %v11012_v24 = vpop.f32.mrf.mxu0 }
 0x757   :  { %11058 = vmatmul.mubr.msk.bf16.gmra.mxu1 %vm1251_vm4, %v12105_v42  ;;  %v13745_v42 = vpop.f32.mrf.mxu0 }
 0x758   :  { %11061 = vmatprep.mubr.msk.bf16.mxu1 %vm13133_vm5, %v15528_v47 }
 0x75f   :  { %11062 = vmatmul.mubr.msk.bf16.gmra.mxu1 %vm1251_vm4, %v12106_v22  ;;  %v11015_v22 = vpop.f32.mrf.mxu0 }
 0x760   :  { %11065 = vmatprep.mubr.msk.bf16.mxu1 %vm13133_vm5, %v15528_v47 }
 0x767   :  { %11066 = vmatmul.mubr.msk.bf16.gmra.mxu1 %vm1251_vm4, %v12107_v23  ;;  %v13747_v23 = vpop.f32.mrf.mxu0 }
 0x768   :  { %11069 = vmatprep.mubr.msk.bf16.mxu1 %vm13133_vm5, %v15528_v47 }
 0x76f   :  { %11070 = vmatmul.mubr.msk.bf16.gmra.mxu1 %vm1251_vm4, %v12108_v30  ;;  %v11016_v30 = vpop.f32.mrf.mxu0 }
 0x770   :  { %11073 = vmatprep.mubr.msk.bf16.mxu1 %vm13133_vm5, %v15528_v47 }
 0x777   :  { %11074 = vmatmul.mubr.msk.bf16.gmra.mxu1 %vm1251_vm4, %v12109_v27  ;;  %v13749_v27 = vpop.f32.mrf.mxu0 }
 0x778   :  { %11077 = vmatprep.mubr.msk.bf16.mxu1 %vm13133_vm5, %v15528_v47 }
 0x779   :  { %v11019_v44 = vpop.f32.mrf.mxu0 }
 0x77b   :  { %v13751_v39 = vpop.f32.mrf.mxu0 }
 0x77f   :  { %11078 = vmatmul.mubr.msk.bf16.gmra.mxu1 %vm1251_vm4, %v12110_v60  ;;  %v11020_v60 = vpop.f32.mrf.mxu0 }
 0x780   :  { %11081 = vmatprep.mubr.msk.bf16.mxu1 %vm13133_vm5, %v15528_v47 }
 0x781   :  { %v13753_v33 = vpop.f32.mrf.mxu0 }
 0x783   :  { %v11023_v61 = vpop.f32.mrf.mxu0 }
 0x787   :  { %11082 = vmatmul.mubr.msk.bf16.gmra.mxu1 %vm1251_vm4, %v12111_v2  ;;  %v13755_v2 = vpop.f32.mrf.mxu0 }
 0x788   :  { %11085 = vmatprep.mubr.msk.bf16.mxu1 %vm13133_vm5, %v15528_v47 }
 0x789   :  { %v11024_v4 = vpop.f32.mrf.mxu0 }
 0x78b   :  { %v13757_v11 = vpop.f32.mrf.mxu0 }
 0x78f   :  { %11086 = vmatmul.mubr.msk.bf16.gmra.mxu1 %vm1251_vm4, %v12112_v32  ;;  %v11027_v32 = vpop.f32.mrf.mxu0 }
 0x790   :  { %11089 = vmatprep.mubr.msk.bf16.mxu1 %vm13133_vm5, %v15528_v47 }
 0x791   :  { %v13759_v35 = vpop.f32.mrf.mxu0 }
 0x793   :  { %v11028_v17 = vpop.f32.mrf.mxu0 }
 0x797   :  { %11090 = vmatmul.mubr.msk.bf16.gmra.mxu1 %vm1251_vm4, %v12113_v45  ;;  %v13761_v45 = vpop.f32.mrf.mxu0 }
 0x799   :  { %v11031_v49 = vpop.f32.mrf.mxu0 }
 0x79b   :  { %v13763_v53 = vpop.f32.mrf.mxu0 }
 0x79d   :  { %v11032_v55 = vpop.f32.mrf.mxu0 }
 0x7f7   :  { %v13772_v15 = vpop.f32.mrf.mxu1 }
 0x7f9   :  { %v11043_v20 = vpop.f32.mrf.mxu1 }
 0x7fa   :  { %v12114_v20 = vld [vmem:[%s13787_s26] sm:$0xff]  }
 0x7fb   :  { %v13774_v8 = vpop.f32.mrf.mxu1  ;;  %11093 = vmatprep.subr.bf16.mxu1 %v12114_v20 }
 0x7fc   :  { %11094 = vmatpush3.bf16.msra.mxu1 %v12114_v20 }
 0x7fd   :  { %v11044_v24 = vpop.f32.mrf.mxu1 }
 0x7ff   :  { %v13776_v22 = vpop.f32.mrf.mxu1 }
 0x801   :  { %v11047_v30 = vpop.f32.mrf.mxu1 }
 0x803   :  { %v13778_v44 = vpop.f32.mrf.mxu1 }
 0x805   :  { %v11048_v60 = vpop.f32.mrf.mxu1 }
 0x807   :  { %v13780_v61 = vpop.f32.mrf.mxu1 }
 0x809   :  { %v11051_v4 = vpop.f32.mrf.mxu1 }
 0x80b   :  { %v13782_v32 = vpop.f32.mrf.mxu1 }
 0x80d   :  { %v11052_v17 = vpop.f32.mrf.mxu1 }
 0x80f   :  { %v2379_v49 = vpop.f32.mrf.mxu1 }
 0x811   :  { %v11055_v55 = vpop.f32.mrf.mxu1 }
 0x813   :  { %v2382_v25 = vpop.f32.mrf.mxu1 }
 0x815   :  { %v11056_v24 = vpop.f32.mrf.mxu1 }
 0x817   :  { %v2387_v30 = vpop.f32.mrf.mxu1 }
 0x819   :  { %v11059_v60 = vpop.f32.mrf.mxu1 }
 0x81b   :  { %v2390_v4 = vpop.f32.mrf.mxu1 }
 0x81d   :  { %v11060_v47 = vpop.f32.mrf.mxu1 }
 0x81e   :  { %v15554_v47 = vmov 0.0  }
 0x81f   :  { %v2395_v59 = vpop.f32.mrf.mxu1 }
 0x821   :  { %v11063_v17 = vpop.f32.mrf.mxu1 }
 0x822   :  { %v230_v17 = vld [vmem:[%s13768_s21 + $0x38] sm:$0xff] }
 0x823   :  { %v2398_v46 = vpop.f32.mrf.mxu1 }
 0x825   :  { %v11064_v28 = vpop.f32.mrf.mxu1 }
 0x827   :  { %v2403_v40 = vpop.f32.mrf.mxu1 }
 0x829   :  { %v11067_v16 = vpop.f32.mrf.mxu1 }
 0x82a   :  { %v2468_v16 = vmul.f32 %v2395_v59, %v13733_v54  ;;  %v2464_v54 = vmul.f32 %v2379_v49, %v13719_v12  ;;  %v2461_v12 = vmul.f32 %v13778_v44, %v13706_v51  ;;  %v2458_v51 = vmul.f32 %v13772_v15, %v13695_v34 }
 0x82b   :  { %v2406_v13 = vpop.f32.mrf.mxu1 }
 0x82c   :  { %v2471_v60 = vmul.f32 %v2406_v13, %v13739_v50  ;;  %v2467_v13 = vmul.f32 %v2390_v4, %v13730_v52  ;;  %v2463_v50 = vmul.f32 %v13782_v32, %v13714_v6  ;;  %v2460_v6 = vmul.f32 %v13776_v22, %v13703_v36 }
 0x82d   :  { %v11068_v7 = vpop.f32.mrf.mxu1 }
 0x82e   :  { %v2470_v7 = vmul.f32 %v2403_v40, %v13737_v48  ;;  %v2466_v48 = vmul.f32 %v2387_v30, %v13727_v19 }
 0x82f   :  { %v2411_v3 = vpop.f32.mrf.mxu1 }
 0x830   :  { %v2472_v43 = vmul.f32 %v2411_v3, %v13741_v41  ;;  %v2469_v3 = vmul.f32 %v2398_v46, %v13735_v37  ;;  %v2465_v37 = vmul.f32 %v2382_v25, %v13722_v21  ;;  %v2462_v21 = vmul.f32 %v13780_v61, %v13711_v1 }
 0x831   :  { %v11071_v0 = vpop.f32.mrf.mxu1  ;;  %v2459_v1 = vmul.f32 %v13774_v8, %v13698_v57 }
 0x833   :  { %v2414_v55 = vpop.f32.mrf.mxu1 }
 0x834   :  { %v2473_v56 = vmul.f32 %v2414_v55, %v13743_v14  ;;  %v229_v55 = vld [vmem:[%s13768_s21 + $0x30] sm:$0xff] }
 0x835   :  { %v11072_v24 = vpop.f32.mrf.mxu1 }
 0x836   :  { %2510 = vmatpush1.msra.mxu0 %v2473_v56  ;;  %v232_v24 = vld [vmem:[%s13768_s21 + $0x48] sm:$0xff] }
 0x837   :  { %v13792_v20 = vpop.f32.mrf.mxu1  ;;  %2511 = vmatprep.subr.mxu0 %v15554_v47 }
 0x838   :  { %2512 = vmatpush1.msra.mxu0 %v2472_v43 }
 0x839   :  { %v11075_v28 = vpop.f32.mrf.mxu1  ;;  %2513 = vmatprep.subr.mxu0 %v15554_v47 }
 0x83a   :  { %2514 = vmatpush1.msra.mxu0 %v2471_v60  ;;  %v234_v60 = vld [vmem:[%s13768_s21 + $0x58] sm:$0xff]  ;;  %v233_v28 = vld [vmem:[%s13768_s21 + $0x50] sm:$0xff] }
 0x83b   :  { %v13798_v0 = vpop.f32.mrf.mxu1  ;;  %2515 = vmatprep.subr.mxu0 %v15554_v47 }
 0x83c   :  { %2516 = vmatpush1.msra.mxu0 %v2470_v7  ;;  %v236_v7 = vld [vmem:[%s13768_s21 + $0x68] sm:$0xff] }
 0x83d   :  { %v11076_v56 = vpop.f32.mrf.mxu1  ;;  %2517 = vmatprep.subr.mxu0 %v15554_v47 }
 0x83e   :  { %2518 = vmatpush1.msra.mxu0 %v2469_v3  ;;  %v238_v3 = vld [vmem:[%s13768_s21 + $0x78] sm:$0xff]  ;;  %v237_v56 = vld [vmem:[%s13768_s21 + $0x70] sm:$0xff] }
 0x83f   :  { %v13804_v43 = vpop.f32.mrf.mxu1  ;;  %2519 = vmatprep.subr.mxu0 %v15554_v47 }
 0x840   :  { %2520 = vmatpush1.msra.mxu0 %v2468_v16 }
 0x841   :  { %v11079_v40 = vpop.f32.mrf.mxu1  ;;  %2521 = vmatprep.subr.mxu0 %v15554_v47 }
 0x842   :  { %2522 = vmatpush1.msra.mxu0 %v2467_v13 }
 0x843   :  { %v2430_v46 = vpop.f32.mrf.mxu1  ;;  %2523 = vmatprep.subr.mxu0 %v15554_v47 }
 0x844   :  { %2524 = vmatpush1.msra.mxu0 %v2466_v48 }
 0x845   :  { %v11080_v59 = vpop.f32.mrf.mxu1  ;;  %2525 = vmatprep.subr.mxu0 %v15554_v47 }
 0x846   :  { %2526 = vmatpush1.msra.mxu0 %v2465_v37 }
 0x847   :  { %v2435_v52 = vpop.f32.mrf.mxu1  ;;  %2527 = vmatprep.subr.mxu0 %v15554_v47 }
 0x848   :  { %2528 = vmatpush1.msra.mxu0 %v2464_v54 }
 0x849   :  { %v11083_v19 = vpop.f32.mrf.mxu1  ;;  %2529 = vmatprep.subr.mxu0 %v15554_v47 }
 0x84a   :  { %2530 = vmatpush1.msra.mxu0 %v2463_v50 }
 0x84b   :  { %v2438_v41 = vpop.f32.mrf.mxu1  ;;  %2531 = vmatprep.subr.mxu0 %v15554_v47 }
 0x84c   :  { %2532 = vmatpush1.msra.mxu0 %v2462_v21  ;;  %v2479_v4 = vmul.f32 %v2438_v41, %v13755_v2  ;;  %v2476_v2 = vmul.f32 %v13804_v43, %v13749_v27  ;;  %v226_v27 = vld [vmem:[%s13768_s21 + $0x18] sm:$0xff] }
 0x84d   :  { %v11084_v14 = vpop.f32.mrf.mxu1  ;;  %2533 = vmatprep.subr.mxu0 %v15554_v47 }
 0x84e   :  { %2534 = vmatpush1.msra.mxu0 %v2461_v12 }
 0x84f   :  { %v2443_v32 = vpop.f32.mrf.mxu1  ;;  %2535 = vmatprep.subr.mxu0 %v15554_v47 }
 0x850   :  { %2536 = vmatpush1.msra.mxu0 %v2460_v6  ;;  %v2480_v15 = vmul.f32 %v2443_v32, %v13757_v11  ;;  %v223_v11 = vld [vmem:[%s13768_s21] sm:$0xff] }
 0x851   :  { %v11087_v61 = vpop.f32.mrf.mxu1  ;;  %2537 = vmatprep.subr.mxu0 %v15554_v47 }
 0x852   :  { %2538 = vmatpush1.msra.mxu0 %v2459_v1 }
 0x853   :  { %v2446_v44 = vpop.f32.mrf.mxu1  ;;  %2539 = vmatprep.subr.mxu0 %v15554_v47 }
 0x854   :  { %2540 = vmatpush1.msra.mxu0 %v2458_v51  ;;  %v2481_v34 = vmul.f32 %v2446_v44, %v13759_v35  ;;  %v2477_v35 = vmul.f32 %v2430_v46, %v13751_v39  ;;  %v2474_v39 = vmul.f32 %v13792_v20, %v13745_v42  ;;  %v227_v42 = vld [vmem:[%s13768_s21 + $0x20] sm:$0xff]  ;;  %v12115_v51 = vld [vmem:[%s13886_s4 + $0x8] sm:$0xff]  }
 0x855   :  { %v11088_v36 = vpop.f32.mrf.mxu1  ;;  %2553 = vmatprep.subr.mxu0 %v15554_v47  ;;  %v231_v20 = vld [vmem:[%s13768_s21 + $0x40] sm:$0xff]  ;;  %11103 = vmatprep.subr.bf16.mxu1 %v12115_v51 }
 0x856   :  { %v12116_v44 = vld [vmem:[%s13886_s4] sm:$0xff]  }
 0x857   :  { %v2451_v22 = vpop.f32.mrf.mxu1 }
 0x858   :  { %v2482_v30 = vmul.f32 %v2451_v22, %v13761_v45  ;;  %v2478_v45 = vmul.f32 %v2435_v52, %v13753_v33  ;;  %v2475_v33 = vmul.f32 %v13798_v0, %v13747_v23  ;;  %v225_v23 = vld [vmem:[%s13768_s21 + $0x10] sm:$0xff]  ;;  %v235_v0 = vld [vmem:[%s13768_s21 + $0x60] sm:$0xff] }
 0x859   :  { %v11091_v49 = vpop.f32.mrf.mxu1 }
 0x85b   :  { %v2454_v25 = vpop.f32.mrf.mxu1 }
 0x85c   :  { %v2483_v57 = vmul.f32 %v2454_v25, %v13763_v53  ;;  %v228_v53 = vld [vmem:[%s13768_s21 + $0x28] sm:$0xff] }
 0x85d   :  { %v11092_v8 = vpop.f32.mrf.mxu1 }
 0x85e   :  { %2554 = vmatpush2.msra.mxu0 %v2483_v57 }
 0x85f   :  { %2555 = vmatprep.subr.mxu0 %v15554_v47 }
 0x860   :  { %2556 = vmatpush2.msra.mxu0 %v2482_v30 }
 0x861   :  { %2557 = vmatprep.subr.mxu0 %v15554_v47 }
 0x862   :  { %2558 = vmatpush2.msra.mxu0 %v2481_v34 }
 0x863   :  { %2559 = vmatprep.subr.mxu0 %v15554_v47 }
 0x864   :  { %2560 = vmatpush2.msra.mxu0 %v2480_v15 }
 0x865   :  { %2561 = vmatprep.subr.mxu0 %v15554_v47 }
 0x866   :  { %2562 = vmatpush2.msra.mxu0 %v2479_v4 }
 0x867   :  { %2563 = vmatprep.subr.mxu0 %v15554_v47 }
 0x868   :  { %2564 = vmatpush2.msra.mxu0 %v2478_v45 }
 0x869   :  { %2565 = vmatprep.subr.mxu0 %v15554_v47 }
 0x86a   :  { %2566 = vmatpush2.msra.mxu0 %v2477_v35 }
 0x86b   :  { %2567 = vmatprep.subr.mxu0 %v15554_v47 }
 0x86c   :  { %2568 = vmatpush2.msra.mxu0 %v2476_v2 }
 0x86d   :  { %2569 = vmatprep.subr.mxu0 %v15554_v47 }
 0x86e   :  { %2570 = vmatpush2.msra.mxu0 %v2475_v33 }
 0x86f   :  { %2571 = vmatprep.subr.mxu0 %v15554_v47 }
 0x870   :  { %2572 = vmatpush2.msra.mxu0 %v2474_v39 }
 0x871   :  { %2574 = vmatmul.mubr.f32.vlgmr.msra.gmra.mxu0 %v223_v11 }
 0x872   :  { %9847 = vmatprep.mubr.msk.f32.mxu0 %vm2484_vm8, %v226_v27 }
 0x875   :  { %2579 = vmatmul.mubr.f32.gmra.mxu0 %v225_v23 }
 0x876   :  { %9848 = vmatprep.mubr.msk.f32.mxu0 %vm2484_vm8, %v228_v53 }
 0x879   :  { %2584 = vmatmul.mubr.f32.gmra.mxu0 %v227_v42 }
 0x87a   :  { %9849 = vmatprep.mubr.msk.f32.mxu0 %vm2484_vm8, %v230_v17 }
 0x87d   :  { %2589 = vmatmul.mubr.f32.gmra.mxu0 %v229_v55 }
 0x87e   :  { %9850 = vmatprep.mubr.msk.f32.mxu0 %vm2484_vm8, %v232_v24 }
 0x881   :  { %2594 = vmatmul.mubr.f32.gmra.mxu0 %v231_v20 }
 0x882   :  { %9851 = vmatprep.mubr.msk.f32.mxu0 %vm2484_vm8, %v234_v60 }
 0x885   :  { %2599 = vmatmul.mubr.f32.gmra.mxu0 %v233_v28 }
 0x886   :  { %9852 = vmatprep.mubr.msk.f32.mxu0 %vm2484_vm8, %v236_v7 }
 0x889   :  { %2604 = vmatmul.mubr.f32.gmra.mxu0 %v235_v0 }
 0x88a   :  { %9853 = vmatprep.mubr.msk.f32.mxu0 %vm2484_vm8, %v238_v3 }
 0x88d   :  { %2609 = vmatmul.mubr.f32.gmra.mxu0 %v237_v56 }
 0x931   :  { %v2575_v16 = vpop.f32.mrf.mxu0 }
 0x933   :  { %v2577_v43 = vpop.f32.mrf.mxu0 }
 0x935   :  { %v2580_v13 = vpop.f32.mrf.mxu0 }
 0x936   :  { %v2614_v40 = vpack.c.bf16 %v2580_v13, %v2575_v16 }
 0x937   :  { %v2582_v48 = vpop.f32.mrf.mxu0 }
 0x938   :  { %11095 = vmatprep.mubr.msk.bf16.mxu1 %vm439_vm2, %v2614_v40 }
 0x939   :  { %v2585_v46 = vpop.f32.mrf.mxu0 }
 0x93b   :  { %v2587_v37 = vpop.f32.mrf.mxu0 }
 0x93d   :  { %v2590_v59 = vpop.f32.mrf.mxu0 }
 0x93e   :  { %v2615_v54 = vpack.c.bf16 %v2590_v59, %v2585_v46 }
 0x93f   :  { %v2592_v52 = vpop.f32.mrf.mxu0 }
 0x940   :  { %11096 = vmatmul.mubr.msk.bf16.vlgmr.msra.gmra.mxu1 %vm439_vm2, %v2615_v54 }
 0x941   :  { %v2595_v50 = vpop.f32.mrf.mxu0  ;;  %11104 = vmatpush3.bf16.msra.mxu1 %v12115_v51 }
 0x942   :  { %11105 = vmatprep.subr.bf16.mxu1 %v12116_v44 }
 0x943   :  { %v2597_v19 = vpop.f32.mrf.mxu0 }
 0x945   :  { %v2600_v21 = vpop.f32.mrf.mxu0  ;;  %11106 = vmatpush3.bf16.msra.mxu1 %v12116_v44 }
 0x946   :  { %v2616_v41 = vpack.c.bf16 %v2600_v21, %v2595_v50 }
 0x947   :  { %v2602_v12 = vpop.f32.mrf.mxu0 }
 0x948   :  { %11099 = vmatprep.mubr.msk.bf16.mxu1 %vm439_vm2, %v2616_v41 }
 0x949   :  { %v2605_v14 = vpop.f32.mrf.mxu0 }
 0x94b   :  { %v2607_v6 = vpop.f32.mrf.mxu0 }
 0x94d   :  { %v2610_v32 = vpop.f32.mrf.mxu0 }
 0x94e   :  { %v2617_v1 = vpack.c.bf16 %v2610_v32, %v2605_v14 }
 0x94f   :  { %v2612_v61 = vpop.f32.mrf.mxu0 }
 0x950   :  { %11100 = vmatmul.mubr.msk.bf16.gmra.mxu1 %vm439_vm2, %v2617_v1 }
 0xa00   :  { %v11097_v36 = vpop.f32.mrf.mxu1 }
 0xa01   :  { %v9861_v22 = vmul.f32 -1.442695, %v11097_v36 }
 0xa02   :  { %v2670_v49 = vpop.f32.mrf.mxu1 }
 0xa03   :  { %12350 = vpow2.f32 %v9861_v22  ;;  %v9859_v25 = vmul.f32 -1.442695, %v2670_v49  ;;  %v12118_v22 = vld [vmem:[%s13886_s4 + $0x10] sm:$0xff]  }
 0xa04   :  { %v11098_v57 = vpop.f32.mrf.mxu1 }
 0xa05   :  { %12352 = vpow2.f32 %v9859_v25  ;;  %v9862_v8 = vmul.f32 -1.442695, %v11098_v57 }
 0xa06   :  { %v2673_v30 = vpop.f32.mrf.mxu1 }
 0xa07   :  { %12354 = vpow2.f32 %v9862_v8  ;;  %v9860_v34 = vmul.f32 -1.442695, %v2673_v30 }
 0xa09   :  { %12356 = vpow2.f32 %v9860_v34 }
 0xa10   :  { %v12351_v15 = vpop.eup %12350  ;;  %v11101_v4 = vpop.f32.mrf.mxu1 }
 0xa11   :  { %v2727_v45 = vadd.f32 1.0, %v12351_v15  ;;  %v9865_v35 = vmul.f32 -1.442695, %v11101_v4 }
 0xa12   :  { %v12353_v2 = vpop.eup %12352  ;;  %v2686_v33 = vpop.f32.mrf.mxu1 }
 0xa13   :  { %12358 = vrcp.f32 %v2727_v45  ;;  %v2725_v39 = vadd.f32 1.0, %v12353_v2  ;;  %v9863_v11 = vmul.f32 -1.442695, %v2686_v33 }
 0xa14   :  { %v12355_v27 = vpop.eup %12354  ;;  %12360 = vpow2.f32 %v9865_v35  ;;  %v11102_v23 = vpop.f32.mrf.mxu1 }
 0xa15   :  { %12362 = vrcp.f32 %v2725_v39  ;;  %v2728_v53 = vadd.f32 1.0, %v12355_v27  ;;  %v9866_v42 = vmul.f32 -1.442695, %v11102_v23 }
 0xa16   :  { %v12357_v17 = vpop.eup %12356  ;;  %12364 = vpow2.f32 %v9863_v11  ;;  %v2689_v55 = vpop.f32.mrf.mxu1 }
 0xa17   :  { %12366 = vrcp.f32 %v2728_v53  ;;  %v2726_v24 = vadd.f32 1.0, %v12357_v17  ;;  %v9864_v20 = vmul.f32 -1.442695, %v2689_v55 }
 0xa18   :  { %12368 = vpow2.f32 %v9866_v42 }
 0xa19   :  { %12370 = vrcp.f32 %v2726_v24 }
 0xa1a   :  { %12372 = vpow2.f32 %v9864_v20 }
 0xa20   :  { %v12359_v60 = vpop.eup %12358 }
 0xa21   :  { %v12361_v28 = vpop.eup %12360  ;;  %v13896_v54 = vmul.f32 %v12359_v60, %v11097_v36  ;;  %v12117_v36 = vld [vmem:[%s13886_s4 + $0x18] sm:$0xff]  }
 0xa22   :  { %v12363_v7 = vpop.eup %12362  ;;  %v2731_v43 = vadd.f32 1.0, %v12361_v28  ;;  %11115 = vmatprep.subr.bf16.mxu0 %v12117_v36 }
 0xa23   :  { %v12365_v0 = vpop.eup %12364  ;;  %v13892_v37 = vmul.f32 %v12363_v7, %v2670_v49  ;;  %11116 = vmatpush3.bf16.msra.mxu0 %v12117_v36  ;;  %v13926_v49 = vld [vmem:[%s13923_s10] sm:$0xff] }
 0xa24   :  { %v12367_v3 = vpop.eup %12366  ;;  %v2729_v56 = vadd.f32 1.0, %v12365_v0  ;;  %11117 = vmatprep.subr.bf16.mxu0 %v12118_v22  ;;  %v2764_v25 = vrot.slane %v13926_v49, %v13394_v63 }
 0xa25   :  { %v12369_v16 = vpop.eup %12368  ;;  %v13890_v40 = vmul.f32 %v12367_v3, %v11098_v57 }
 0xa26   :  { %v12371_v13 = vpop.eup %12370  ;;  %v2732_v48 = vadd.f32 1.0, %v12369_v16  ;;  %12374 = vrcp.f32 %v2729_v56 }
 0xa27   :  { %v12373_v46 = vpop.eup %12372  ;;  %v13894_v59 = vmul.f32 %v12371_v13, %v2673_v30  ;;  %v2758_v19 = vpack.c.bf16 %v13890_v40, %v13896_v54  ;;  %11118 = vmatpush3.bf16.msra.mxu0 %v12118_v22 }
 0xa28   :  { %12376 = vrcp.f32 %v2732_v48  ;;  %v2730_v52 = vadd.f32 1.0, %v12373_v46 }
 0xa29   :  { %v2757_v50 = vpack.c.bf16 %v13894_v59, %v13892_v37  ;;  %12378 = vrcp.f32 %v2731_v43 }
 0xa2a   :  { %12380 = vrcp.f32 %v2730_v52 }
 0xa2b   :  { %11107 = vmatprep.mubr.msk.bf16.mxu1 %vm650_vm3, %v2757_v50 }
 0xa2c   :  { %11108 = vmatmul.mubr.msk.bf16.vlgmr.msra.gmra.mxu1 %vm650_vm3, %v2758_v19 }
 0xa33   :  { %v12375_v21 = vpop.eup %12374 }
 0xa34   :  { %v13906_v32 = vmul.f32 %v12375_v21, %v2686_v33 }
 0xa35   :  { %v12377_v41 = vpop.eup %12376 }
 0xa36   :  { %v12379_v12 = vpop.eup %12378  ;;  %v13904_v6 = vmul.f32 %v12377_v41, %v11102_v23 }
 0xa37   :  { %v12381_v14 = vpop.eup %12380  ;;  %v13910_v61 = vmul.f32 %v12379_v12, %v11101_v4 }
 0xa38   :  { %v13908_v1 = vmul.f32 %v12381_v14, %v2689_v55 }
 0xa39   :  { %v2760_v44 = vpack.c.bf16 %v13904_v6, %v13910_v61 }
 0xa3a   :  { %v2759_v51 = vpack.c.bf16 %v13908_v1, %v13906_v32 }
 0xa3c   :  { %11111 = vmatprep.mubr.msk.bf16.mxu1 %vm650_vm3, %v2759_v51 }
 0xa3d   :  { %11112 = vmatmul.mubr.msk.bf16.gmra.mxu1 %vm650_vm3, %v2760_v44 }
 0xaec   :  { %v11109_v57 = vpop.f32.mrf.mxu1 }
 0xaed   :  { %v2832_v8 = vadd.f32 %v11109_v57, %v2764_v25 }
 0xaee   :  { %v2823_v30 = vpop.f32.mrf.mxu1 }
 0xaef   :  { %v9875_v34 = vmul.f32 -1.442695, %v2832_v8  ;;  %v2824_v15 = vadd.f32 %v2823_v30, %v2764_v25 }
 0xaf0   :  { %v11110_v4 = vpop.f32.mrf.mxu1 }
 0xaf1   :  { %12382 = vpow2.f32 %v9875_v34  ;;  %v9873_v45 = vmul.f32 -1.442695, %v2824_v15  ;;  %v2835_v35 = vadd.f32 %v11110_v4, %v2764_v25 }
 0xaf2   :  { %v2826_v2 = vpop.f32.mrf.mxu1 }
 0xaf3   :  { %12384 = vpow2.f32 %v9873_v45  ;;  %v9876_v33 = vmul.f32 -1.442695, %v2835_v35  ;;  %v2827_v39 = vadd.f32 %v2826_v2, %v2764_v25 }
 0xaf5   :  { %12386 = vpow2.f32 %v9876_v33  ;;  %v9874_v11 = vmul.f32 -1.442695, %v2827_v39 }
 0xaf7   :  { %12388 = vpow2.f32 %v9874_v11 }
 0xafd   :  { %v11113_v27 = vpop.f32.mrf.mxu1 }
 0xafe   :  { %v12383_v23 = vpop.eup %12382  ;;  %v2848_v53 = vadd.f32 %v11113_v27, %v2764_v25 }
 0xaff   :  { %v2880_v42 = vadd.f32 1.0, %v12383_v23  ;;  %v2839_v17 = vpop.f32.mrf.mxu1 }
 0xb00   :  { %v12385_v55 = vpop.eup %12384  ;;  %v9879_v24 = vmul.f32 -1.442695, %v2848_v53  ;;  %v2840_v20 = vadd.f32 %v2839_v17, %v2764_v25 }
 0xb01   :  { %12390 = vrcp.f32 %v2880_v42  ;;  %v2878_v60 = vadd.f32 1.0, %v12385_v55  ;;  %v11114_v28 = vpop.f32.mrf.mxu1 }
 0xb02   :  { %v12387_v7 = vpop.eup %12386  ;;  %12392 = vpow2.f32 %v9879_v24  ;;  %v9877_v0 = vmul.f32 -1.442695, %v2840_v20  ;;  %v2851_v3 = vadd.f32 %v11114_v28, %v2764_v25  ;;  %v12119_v24 = vld [vmem:[%s13886_s4 + $0x28] sm:$0xff]   ;;  %v2917_v28 = vrot.slane %v13926_v49, %v13459_v31 }
 0xb03   :  { %12394 = vrcp.f32 %v2878_v60  ;;  %v2881_v56 = vadd.f32 1.0, %v12387_v7  ;;  %v2842_v16 = vpop.f32.mrf.mxu1  ;;  %11127 = vmatprep.subr.bf16.mxu1 %v12119_v24  ;;  %v12120_v60 = vld [vmem:[%s13886_s4 + $0x20] sm:$0xff]  }
 0xb04   :  { %v12389_v43 = vpop.eup %12388  ;;  %12396 = vpow2.f32 %v9877_v0  ;;  %v9880_v13 = vmul.f32 -1.442695, %v2851_v3  ;;  %v2843_v48 = vadd.f32 %v2842_v16, %v2764_v25  ;;  %11128 = vmatpush3.bf16.msra.mxu1 %v12119_v24 }
 0xb05   :  { %12398 = vrcp.f32 %v2881_v56  ;;  %v2879_v46 = vadd.f32 1.0, %v12389_v43  ;;  %11129 = vmatprep.subr.bf16.mxu1 %v12120_v60 }
 0xb06   :  { %12400 = vpow2.f32 %v9880_v13  ;;  %v9878_v52 = vmul.f32 -1.442695, %v2843_v48 }
 0xb07   :  { %12402 = vrcp.f32 %v2879_v46 }
 0xb08   :  { %12404 = vpow2.f32 %v9878_v52  ;;  %11130 = vmatpush3.bf16.msra.mxu1 %v12120_v60 }
 0xb0e   :  { %v12391_v50 = vpop.eup %12390 }
 0xb0f   :  { %v12393_v19 = vpop.eup %12392  ;;  %v2904_v4 = vmul.f32 %v12391_v50, %v2832_v8 }
 0xb10   :  { %v12395_v21 = vpop.eup %12394  ;;  %v2884_v44 = vadd.f32 1.0, %v12393_v19 }
 0xb11   :  { %v12397_v41 = vpop.eup %12396  ;;  %v2902_v34 = vmul.f32 %v12395_v21, %v2824_v15 }
 0xb12   :  { %v12399_v12 = vpop.eup %12398  ;;  %v2882_v14 = vadd.f32 1.0, %v12397_v41 }
 0xb13   :  { %v12401_v51 = vpop.eup %12400  ;;  %v2905_v22 = vmul.f32 %v12399_v12, %v2835_v35 }
 0xb14   :  { %v12403_v36 = vpop.eup %12402  ;;  %v2885_v57 = vadd.f32 1.0, %v12401_v51  ;;  %12406 = vrcp.f32 %v2882_v14 }
 0xb15   :  { %v12405_v30 = vpop.eup %12404  ;;  %v2903_v25 = vmul.f32 %v12403_v36, %v2827_v39  ;;  %v2911_v33 = vpack.c.bf16 %v2905_v22, %v2904_v4 }
 0xb16   :  { %12408 = vrcp.f32 %v2885_v57  ;;  %v2883_v45 = vadd.f32 1.0, %v12405_v30 }
 0xb17   :  { %v2910_v2 = vpack.c.bf16 %v2903_v25, %v2902_v34  ;;  %12410 = vrcp.f32 %v2884_v44 }
 0xb18   :  { %12412 = vrcp.f32 %v2883_v45 }
 0xb19   :  { %11119 = vmatprep.mubr.msk.bf16.mxu0 %vm650_vm3, %v2910_v2 }
 0xb1a   :  { %11120 = vmatmul.mubr.msk.bf16.vlgmr.msra.gmra.mxu0 %vm650_vm3, %v2911_v33 }
 0xb21   :  { %v12407_v11 = vpop.eup %12406 }
 0xb22   :  { %v2906_v39 = vmul.f32 %v12407_v11, %v2840_v20 }
 0xb23   :  { %v12409_v35 = vpop.eup %12408 }
 0xb24   :  { %v12411_v27 = vpop.eup %12410  ;;  %v2909_v15 = vmul.f32 %v12409_v35, %v2851_v3 }
 0xb25   :  { %v12413_v23 = vpop.eup %12412  ;;  %v2908_v8 = vmul.f32 %v12411_v27, %v2848_v53 }
 0xb26   :  { %v2907_v42 = vmul.f32 %v12413_v23, %v2843_v48 }
 0xb27   :  { %v2913_v55 = vpack.c.bf16 %v2909_v15, %v2908_v8 }
 0xb28   :  { %v2912_v17 = vpack.c.bf16 %v2907_v42, %v2906_v39 }
 0xb2a   :  { %11123 = vmatprep.mubr.msk.bf16.mxu0 %vm650_vm3, %v2912_v17 }
 0xb2b   :  { %11124 = vmatmul.mubr.msk.bf16.gmra.mxu0 %vm650_vm3, %v2913_v55 }
 0xbda   :  { %v11121_v7 = vpop.f32.mrf.mxu0 }
 0xbdb   :  { %v2985_v0 = vadd.f32 %v11121_v7, %v2917_v28 }
 0xbdc   :  { %v2976_v20 = vpop.f32.mrf.mxu0 }
 0xbdd   :  { %v9889_v3 = vmul.f32 -1.442695, %v2985_v0  ;;  %v2977_v53 = vadd.f32 %v2976_v20, %v2917_v28 }
 0xbde   :  { %v11122_v56 = vpop.f32.mrf.mxu0 }
 0xbdf   :  { %12414 = vpow2.f32 %v9889_v3  ;;  %v9887_v16 = vmul.f32 -1.442695, %v2977_v53  ;;  %v2988_v43 = vadd.f32 %v11122_v56, %v2917_v28 }
 0xbe0   :  { %v2979_v13 = vpop.f32.mrf.mxu0 }
 0xbe1   :  { %12416 = vpow2.f32 %v9887_v16  ;;  %v9890_v48 = vmul.f32 -1.442695, %v2988_v43  ;;  %v2980_v46 = vadd.f32 %v2979_v13, %v2917_v28 }
 0xbe3   :  { %12418 = vpow2.f32 %v9890_v48  ;;  %v9888_v52 = vmul.f32 -1.442695, %v2980_v46 }
 0xbe5   :  { %12420 = vpow2.f32 %v9888_v52 }
 0xbeb   :  { %v11125_v50 = vpop.f32.mrf.mxu0 }
 0xbec   :  { %v12415_v19 = vpop.eup %12414  ;;  %v3001_v21 = vadd.f32 %v11125_v50, %v2917_v28 }
 0xbed   :  { %v3033_v41 = vadd.f32 1.0, %v12415_v19  ;;  %v2992_v12 = vpop.f32.mrf.mxu0 }
 0xbee   :  { %v12417_v14 = vpop.eup %12416  ;;  %v9893_v51 = vmul.f32 -1.442695, %v3001_v21  ;;  %v2993_v44 = vadd.f32 %v2992_v12, %v2917_v28 }
 0xbef   :  { %12422 = vrcp.f32 %v3033_v41  ;;  %v3031_v36 = vadd.f32 1.0, %v12417_v14  ;;  %v11126_v22 = vpop.f32.mrf.mxu0 }
 0xbf0   :  { %v12419_v57 = vpop.eup %12418  ;;  %12424 = vpow2.f32 %v9893_v51  ;;  %v9891_v30 = vmul.f32 -1.442695, %v2993_v44  ;;  %v3004_v34 = vadd.f32 %v11126_v22, %v2917_v28 }
 0xbf1   :  { %12426 = vrcp.f32 %v3031_v36  ;;  %v3034_v25 = vadd.f32 1.0, %v12419_v57  ;;  %v2995_v4 = vpop.f32.mrf.mxu0 }
 0xbf2   :  { %v12421_v45 = vpop.eup %12420  ;;  %12428 = vpow2.f32 %v9891_v30  ;;  %v9894_v2 = vmul.f32 -1.442695, %v3004_v34  ;;  %v2996_v33 = vadd.f32 %v2995_v4, %v2917_v28  ;;  %v12122_v30 = vld [vmem:[%s13886_s4 + $0x30] sm:$0xff]  }
 0xbf3   :  { %12430 = vrcp.f32 %v3034_v25  ;;  %v3032_v11 = vadd.f32 1.0, %v12421_v45 }
 0xbf4   :  { %12432 = vpow2.f32 %v9894_v2  ;;  %v9892_v35 = vmul.f32 -1.442695, %v2996_v33 }
 0xbf5   :  { %12434 = vrcp.f32 %v3032_v11 }
 0xbf6   :  { %12436 = vpow2.f32 %v9892_v35 }
 0xbfc   :  { %v12423_v27 = vpop.eup %12422 }
 0xbfd   :  { %v12425_v23 = vpop.eup %12424  ;;  %v3057_v20 = vmul.f32 %v12423_v27, %v2985_v0 }
 0xbfe   :  { %v12427_v15 = vpop.eup %12426  ;;  %v3037_v42 = vadd.f32 1.0, %v12425_v23 }
 0xbff   :  { %v12429_v39 = vpop.eup %12428  ;;  %v3055_v24 = vmul.f32 %v12427_v15, %v2977_v53  ;;  %v3065_v50 = vadd.f32 %v3057_v20, %v13896_v54 }
 0xc00   :  { %v12431_v8 = vpop.eup %12430  ;;  %v3035_v17 = vadd.f32 1.0, %v12429_v39 }
 0xc01   :  { %v12433_v55 = vpop.eup %12432  ;;  %v3058_v60 = vmul.f32 %v12431_v8, %v2988_v43  ;;  %v3063_v48 = vadd.f32 %v3055_v24, %v13892_v37 }
 0xc02   :  { %v12435_v7 = vpop.eup %12434  ;;  %12438 = vrcp.f32 %v3035_v17  ;;  %v3038_v28 = vadd.f32 1.0, %v12433_v55 }
 0xc03   :  { %v12437_v3 = vpop.eup %12436  ;;  %v3056_v56 = vmul.f32 %v12435_v7, %v2980_v46  ;;  %12440 = vrcp.f32 %v3037_v42  ;;  %v3066_v16 = vadd.f32 %v3058_v60, %v13890_v40 }
 0xc04   :  { %12442 = vrcp.f32 %v3038_v28  ;;  %v3036_v13 = vadd.f32 1.0, %v12437_v3 }
 0xc05   :  { %v3064_v52 = vadd.f32 %v3056_v56, %v13894_v59  ;;  %v3072_v43 = vpack.c.bf16 %v3066_v16, %v3065_v50 }
 0xc06   :  { %12444 = vrcp.f32 %v3036_v13 }
 0xc07   :  { %v3071_v53 = vpack.c.bf16 %v3064_v52, %v3063_v48 }
 0xc09   :  { %11131 = vmatprep.mubr.msk.bf16.mxu1 %vm650_vm3, %v3071_v53 }
 0xc0a   :  { %11132 = vmatmul.mubr.msk.bf16.vlgmr.msra.gmra.mxu1 %vm650_vm3, %v3072_v43 }
 0xc0f   :  { %v12439_v0 = vpop.eup %12438 }
 0xc10   :  { %v12441_v46 = vpop.eup %12440  ;;  %v3059_v40 = vmul.f32 %v12439_v0, %v2993_v44  ;;  %v12121_v44 = vld [vmem:[%s13886_s4 + $0x38] sm:$0xff]  }
 0xc11   :  { %v12443_v19 = vpop.eup %12442  ;;  %v3061_v37 = vmul.f32 %v12441_v46, %v3001_v21  ;;  %11139 = vmatprep.subr.bf16.mxu0 %v12121_v44 }
 0xc12   :  { %v3062_v41 = vmul.f32 %v12443_v19, %v3004_v34  ;;  %v3067_v54 = vadd.f32 %v3059_v40, %v13906_v32  ;;  %11140 = vmatpush3.bf16.msra.mxu0 %v12121_v44 }
 0xc13   :  { %v12445_v12 = vpop.eup %12444  ;;  %v3069_v36 = vadd.f32 %v3061_v37, %v13910_v61  ;;  %11141 = vmatprep.subr.bf16.mxu0 %v12122_v30 }
 0xc14   :  { %v3060_v14 = vmul.f32 %v12445_v12, %v2996_v33  ;;  %v3070_v59 = vadd.f32 %v3062_v41, %v13904_v6  ;;  %v13953_v6 = vsub.s32 2, %v13391_v62 }
 0xc16   :  { %v3068_v51 = vadd.f32 %v3060_v14, %v13908_v1  ;;  %v3074_v57 = vpack.c.bf16 %v3070_v59, %v3069_v36  ;;  %11142 = vmatpush3.bf16.msra.mxu0 %v12122_v30  ;;  %v3078_v32 = vrot.slane %v13926_v49, %v13953_v6 }
 0xc18   :  { %v3073_v22 = vpack.c.bf16 %v3068_v51, %v3067_v54 }
 0xc1a   :  { %11135 = vmatprep.mubr.msk.bf16.mxu1 %vm650_vm3, %v3073_v22 }
 0xc1b   :  { %11136 = vmatmul.mubr.msk.bf16.gmra.mxu1 %vm650_vm3, %v3074_v57 }
 0xcca   :  { %v11133_v1 = vpop.f32.mrf.mxu1 }
 0xccb   :  { %v3146_v61 = vadd.f32 %v11133_v1, %v3078_v32 }
 0xccc   :  { %v3137_v21 = vpop.f32.mrf.mxu1 }
 0xccd   :  { %v9903_v34 = vmul.f32 -1.442695, %v3146_v61  ;;  %v3138_v25 = vadd.f32 %v3137_v21, %v3078_v32 }
 0xcce   :  { %v11134_v4 = vpop.f32.mrf.mxu1 }
 0xccf   :  { %12446 = vpow2.f32 %v9903_v34  ;;  %v9901_v45 = vmul.f32 -1.442695, %v3138_v25  ;;  %v3149_v2 = vadd.f32 %v11134_v4, %v3078_v32 }
 0xcd0   :  { %v3140_v33 = vpop.f32.mrf.mxu1 }
 0xcd1   :  { %12448 = vpow2.f32 %v9901_v45  ;;  %v9904_v11 = vmul.f32 -1.442695, %v3149_v2  ;;  %v3141_v35 = vadd.f32 %v3140_v33, %v3078_v32 }
 0xcd3   :  { %12450 = vpow2.f32 %v9904_v11  ;;  %v9902_v27 = vmul.f32 -1.442695, %v3141_v35 }
 0xcd5   :  { %12452 = vpow2.f32 %v9902_v27  ;;  %v12124_v27 = vld [vmem:[%s13886_s4 + $0x40] sm:$0xff]  }
 0xcdb   :  { %v11137_v23 = vpop.f32.mrf.mxu1 }
 0xcdc   :  { %v12447_v15 = vpop.eup %12446  ;;  %v3162_v39 = vadd.f32 %v11137_v23, %v3078_v32  ;;  %v13988_v23 = vsub.s32 3, %v13391_v62 }
 0xcdd   :  { %v3194_v42 = vadd.f32 1.0, %v12447_v15  ;;  %v3153_v8 = vpop.f32.mrf.mxu1 }
 0xcde   :  { %v12449_v17 = vpop.eup %12448  ;;  %v9907_v55 = vmul.f32 -1.442695, %v3162_v39  ;;  %v3154_v24 = vadd.f32 %v3153_v8, %v3078_v32  ;;  %v3231_v15 = vrot.slane %v13926_v49, %v13988_v23 }
 0xcdf   :  { %12454 = vrcp.f32 %v3194_v42  ;;  %v3192_v60 = vadd.f32 1.0, %v12449_v17  ;;  %v11138_v7 = vpop.f32.mrf.mxu1 }
 0xce0   :  { %v12451_v20 = vpop.eup %12450  ;;  %12456 = vpow2.f32 %v9907_v55  ;;  %v9905_v28 = vmul.f32 -1.442695, %v3154_v24  ;;  %v3165_v3 = vadd.f32 %v11138_v7, %v3078_v32 }
 0xce1   :  { %12458 = vrcp.f32 %v3192_v60  ;;  %v3195_v56 = vadd.f32 1.0, %v12451_v20  ;;  %v3156_v16 = vpop.f32.mrf.mxu1 }
 0xce2   :  { %v12453_v13 = vpop.eup %12452  ;;  %12460 = vpow2.f32 %v9905_v28  ;;  %v9908_v48 = vmul.f32 -1.442695, %v3165_v3  ;;  %v3157_v52 = vadd.f32 %v3156_v16, %v3078_v32 }
 0xce3   :  { %12462 = vrcp.f32 %v3195_v56  ;;  %v3193_v50 = vadd.f32 1.0, %v12453_v13 }
 0xce4   :  { %12464 = vpow2.f32 %v9908_v48  ;;  %v9906_v53 = vmul.f32 -1.442695, %v3157_v52 }
 0xce5   :  { %12466 = vrcp.f32 %v3193_v50 }
 0xce6   :  { %12468 = vpow2.f32 %v9906_v53 }
 0xcec   :  { %v12455_v43 = vpop.eup %12454 }
 0xced   :  { %v12457_v0 = vpop.eup %12456  ;;  %v13963_v57 = vmul.f32 %v12455_v43, %v3146_v61 }
 0xcee   :  { %v12459_v46 = vpop.eup %12458  ;;  %v3198_v37 = vadd.f32 1.0, %v12457_v0 }
 0xcef   :  { %v12461_v19 = vpop.eup %12460  ;;  %v13959_v36 = vmul.f32 %v12459_v46, %v3138_v25 }
 0xcf0   :  { %v12463_v40 = vpop.eup %12462  ;;  %v3196_v41 = vadd.f32 1.0, %v12461_v19 }
 0xcf1   :  { %v12465_v12 = vpop.eup %12464  ;;  %v13957_v59 = vmul.f32 %v12463_v40, %v3149_v2 }
 0xcf2   :  { %v12467_v14 = vpop.eup %12466  ;;  %v3199_v54 = vadd.f32 1.0, %v12465_v12  ;;  %12470 = vrcp.f32 %v3196_v41 }
 0xcf3   :  { %v12469_v51 = vpop.eup %12468  ;;  %v13961_v22 = vmul.f32 %v12467_v14, %v3141_v35  ;;  %v3225_v32 = vpack.c.bf16 %v13957_v59, %v13963_v57  ;;  %v12123_v35 = vld [vmem:[%s13886_s4 + $0x48] sm:$0xff]  }
 0xcf4   :  { %12472 = vrcp.f32 %v3199_v54  ;;  %v3197_v44 = vadd.f32 1.0, %v12469_v51  ;;  %11151 = vmatprep.subr.bf16.mxu1 %v12123_v35 }
 0xcf5   :  { %v3224_v30 = vpack.c.bf16 %v13961_v22, %v13959_v36  ;;  %12474 = vrcp.f32 %v3198_v37  ;;  %11152 = vmatpush3.bf16.msra.mxu1 %v12123_v35 }
 0xcf6   :  { %12476 = vrcp.f32 %v3197_v44  ;;  %11153 = vmatprep.subr.bf16.mxu1 %v12124_v27 }
 0xcf7   :  { %11143 = vmatprep.mubr.msk.bf16.mxu0 %vm650_vm3, %v3224_v30 }
 0xcf8   :  { %11144 = vmatmul.mubr.msk.bf16.vlgmr.msra.gmra.mxu0 %vm650_vm3, %v3225_v32 }
 0xcf9   :  { %11154 = vmatpush3.bf16.msra.mxu1 %v12124_v27 }
 0xcff   :  { %v12471_v1 = vpop.eup %12470 }
 0xd00   :  { %v13973_v4 = vmul.f32 %v12471_v1, %v3154_v24 }
 0xd01   :  { %v12473_v21 = vpop.eup %12472 }
 0xd02   :  { %v12475_v61 = vpop.eup %12474  ;;  %v13971_v25 = vmul.f32 %v12473_v21, %v3165_v3 }
 0xd03   :  { %v12477_v34 = vpop.eup %12476  ;;  %v13977_v2 = vmul.f32 %v12475_v61, %v3162_v39 }
 0xd04   :  { %v13975_v45 = vmul.f32 %v12477_v34, %v3157_v52 }
 0xd05   :  { %v3227_v11 = vpack.c.bf16 %v13971_v25, %v13977_v2 }
 0xd06   :  { %v3226_v33 = vpack.c.bf16 %v13975_v45, %v13973_v4 }
 0xd08   :  { %11147 = vmatprep.mubr.msk.bf16.mxu0 %vm650_vm3, %v3226_v33 }
 0xd09   :  { %11148 = vmatmul.mubr.msk.bf16.gmra.mxu0 %vm650_vm3, %v3227_v11 }
 0xdb8   :  { %v11145_v39 = vpop.f32.mrf.mxu0 }
 0xdb9   :  { %v3299_v42 = vadd.f32 %v11145_v39, %v3231_v15 }
 0xdba   :  { %v3290_v8 = vpop.f32.mrf.mxu0 }
 0xdbb   :  { %v9917_v17 = vmul.f32 -1.442695, %v3299_v42  ;;  %v3291_v55 = vadd.f32 %v3290_v8, %v3231_v15 }
 0xdbc   :  { %v11146_v24 = vpop.f32.mrf.mxu0 }
 0xdbd   :  { %12478 = vpow2.f32 %v9917_v17  ;;  %v9915_v60 = vmul.f32 -1.442695, %v3291_v55  ;;  %v3302_v7 = vadd.f32 %v11146_v24, %v3231_v15 }
 0xdbe   :  { %v3293_v20 = vpop.f32.mrf.mxu0 }
 0xdbf   :  { %12480 = vpow2.f32 %v9915_v60  ;;  %v9918_v28 = vmul.f32 -1.442695, %v3302_v7  ;;  %v3294_v3 = vadd.f32 %v3293_v20, %v3231_v15 }
 0xdc1   :  { %12482 = vpow2.f32 %v9918_v28  ;;  %v9916_v56 = vmul.f32 -1.442695, %v3294_v3 }
 0xdc3   :  { %12484 = vpow2.f32 %v9916_v56 }
 0xdc9   :  { %v11149_v16 = vpop.f32.mrf.mxu0 }
 0xdca   :  { %v12479_v13 = vpop.eup %12478  ;;  %v3315_v48 = vadd.f32 %v11149_v16, %v3231_v15 }
 0xdcb   :  { %v3347_v52 = vadd.f32 1.0, %v12479_v13  ;;  %v3306_v50 = vpop.f32.mrf.mxu0 }
 0xdcc   :  { %v12481_v53 = vpop.eup %12480  ;;  %v9921_v43 = vmul.f32 -1.442695, %v3315_v48  ;;  %v3307_v0 = vadd.f32 %v3306_v50, %v3231_v15 }
 0xdcd   :  { %12486 = vrcp.f32 %v3347_v52  ;;  %v3345_v46 = vadd.f32 1.0, %v12481_v53  ;;  %v11150_v19 = vpop.f32.mrf.mxu0 }
 0xdce   :  { %v12483_v40 = vpop.eup %12482  ;;  %12488 = vpow2.f32 %v9921_v43  ;;  %v9919_v41 = vmul.f32 -1.442695, %v3307_v0  ;;  %v3318_v12 = vadd.f32 %v11150_v19, %v3231_v15  ;;  %v12125_v19 = vld [vmem:[%s13886_s4 + $0x58] sm:$0xff]  }
 0xdcf   :  { %12490 = vrcp.f32 %v3345_v46  ;;  %v3348_v37 = vadd.f32 1.0, %v12483_v40  ;;  %v3309_v14 = vpop.f32.mrf.mxu0  ;;  %11163 = vmatprep.subr.bf16.mxu0 %v12125_v19  ;;  %v12126_v40 = vld [vmem:[%s13886_s4 + $0x50] sm:$0xff]  }
 0xdd0   :  { %v12485_v54 = vpop.eup %12484  ;;  %12492 = vpow2.f32 %v9919_v41  ;;  %v9922_v51 = vmul.f32 -1.442695, %v3318_v12  ;;  %v3310_v44 = vadd.f32 %v3309_v14, %v3231_v15  ;;  %11164 = vmatpush3.bf16.msra.mxu0 %v12125_v19  ;;  %v13999_v41 = vsub.s32 4, %v13391_v62 }
 0xdd1   :  { %12494 = vrcp.f32 %v3348_v37  ;;  %v3346_v30 = vadd.f32 1.0, %v12485_v54  ;;  %11165 = vmatprep.subr.bf16.mxu0 %v12126_v40 }
 0xdd2   :  { %12496 = vpow2.f32 %v9922_v51  ;;  %v9920_v32 = vmul.f32 -1.442695, %v3310_v44 }
 0xdd3   :  { %12498 = vrcp.f32 %v3346_v30 }
 0xdd4   :  { %12500 = vpow2.f32 %v9920_v32  ;;  %11166 = vmatpush3.bf16.msra.mxu0 %v12126_v40 }
 0xdda   :  { %v12487_v1 = vpop.eup %12486 }
 0xddb   :  { %v12489_v21 = vpop.eup %12488  ;;  %v3371_v20 = vmul.f32 %v12487_v1, %v3299_v42 }
 0xddc   :  { %v12491_v61 = vpop.eup %12490  ;;  %v3351_v27 = vadd.f32 1.0, %v12489_v21 }
 0xddd   :  { %v12493_v34 = vpop.eup %12492  ;;  %v3369_v60 = vmul.f32 %v12491_v61, %v3291_v55 }
 0xdde   :  { %v12495_v33 = vpop.eup %12494  ;;  %v3349_v11 = vadd.f32 1.0, %v12493_v34 }
 0xddf   :  { %v12497_v35 = vpop.eup %12496  ;;  %v3372_v8 = vmul.f32 %v12495_v33, %v3302_v7 }
 0xde0   :  { %v12499_v39 = vpop.eup %12498  ;;  %v3352_v17 = vadd.f32 1.0, %v12497_v35  ;;  %12502 = vrcp.f32 %v3349_v11 }
 0xde1   :  { %v12501_v24 = vpop.eup %12500  ;;  %v3370_v15 = vmul.f32 %v12499_v39, %v3294_v3  ;;  %v3378_v16 = vpack.c.bf16 %v3372_v8, %v3371_v20 }
 0xde2   :  { %12504 = vrcp.f32 %v3352_v17  ;;  %v3350_v28 = vadd.f32 1.0, %v12501_v24 }
 0xde3   :  { %v3377_v56 = vpack.c.bf16 %v3370_v15, %v3369_v60  ;;  %12506 = vrcp.f32 %v3351_v27 }
 0xde4   :  { %12508 = vrcp.f32 %v3350_v28 }
 0xde5   :  { %11155 = vmatprep.mubr.msk.bf16.mxu1 %vm650_vm3, %v3377_v56 }
 0xde6   :  { %11156 = vmatmul.mubr.msk.bf16.vlgmr.msra.gmra.mxu1 %vm650_vm3, %v3378_v16 }
 0xded   :  { %v12503_v13 = vpop.eup %12502 }
 0xdee   :  { %v3373_v3 = vmul.f32 %v12503_v13, %v3307_v0  ;;  %v3384_v0 = vrot.slane %v13926_v49, %v13999_v41 }
 0xdef   :  { %v12505_v7 = vpop.eup %12504 }
 0xdf0   :  { %v12507_v52 = vpop.eup %12506  ;;  %v3376_v55 = vmul.f32 %v12505_v7, %v3318_v12 }
 0xdf1   :  { %v12509_v50 = vpop.eup %12508  ;;  %v3375_v42 = vmul.f32 %v12507_v52, %v3315_v48 }
 0xdf2   :  { %v3374_v53 = vmul.f32 %v12509_v50, %v3310_v44 }
 0xdf3   :  { %v3380_v46 = vpack.c.bf16 %v3376_v55, %v3375_v42 }
 0xdf4   :  { %v3379_v43 = vpack.c.bf16 %v3374_v53, %v3373_v3 }
 0xdf6   :  { %11159 = vmatprep.mubr.msk.bf16.mxu1 %vm650_vm3, %v3379_v43 }
 0xdf7   :  { %11160 = vmatmul.mubr.msk.bf16.gmra.mxu1 %vm650_vm3, %v3380_v46 }
 0xea6   :  { %v11157_v12 = vpop.f32.mrf.mxu1 }
 0xea7   :  { %v3452_v48 = vadd.f32 %v11157_v12, %v3384_v0 }
 0xea8   :  { %v3443_v37 = vpop.f32.mrf.mxu1 }
 0xea9   :  { %v9931_v14 = vmul.f32 -1.442695, %v3452_v48  ;;  %v3444_v54 = vadd.f32 %v3443_v37, %v3384_v0 }
 0xeaa   :  { %v11158_v51 = vpop.f32.mrf.mxu1 }
 0xeab   :  { %12510 = vpow2.f32 %v9931_v14  ;;  %v9929_v44 = vmul.f32 -1.442695, %v3444_v54  ;;  %v3455_v30 = vadd.f32 %v11158_v51, %v3384_v0 }
 0xeac   :  { %v3446_v32 = vpop.f32.mrf.mxu1 }
 0xead   :  { %12512 = vpow2.f32 %v9929_v44  ;;  %v9932_v1 = vmul.f32 -1.442695, %v3455_v30  ;;  %v3447_v21 = vadd.f32 %v3446_v32, %v3384_v0 }
 0xeaf   :  { %12514 = vpow2.f32 %v9932_v1  ;;  %v9930_v61 = vmul.f32 -1.442695, %v3447_v21 }
 0xeb1   :  { %12516 = vpow2.f32 %v9930_v61 }
 0xeb7   :  { %v11161_v34 = vpop.f32.mrf.mxu1 }
 0xeb8   :  { %v12511_v33 = vpop.eup %12510  ;;  %v3468_v11 = vadd.f32 %v11161_v34, %v3384_v0 }
 0xeb9   :  { %v3500_v35 = vadd.f32 1.0, %v12511_v33  ;;  %v3459_v27 = vpop.f32.mrf.mxu1 }
 0xeba   :  { %v12513_v39 = vpop.eup %12512  ;;  %v9935_v8 = vmul.f32 -1.442695, %v3468_v11  ;;  %v3460_v17 = vadd.f32 %v3459_v27, %v3384_v0 }
 0xebb   :  { %12518 = vrcp.f32 %v3500_v35  ;;  %v3498_v24 = vadd.f32 1.0, %v12513_v39  ;;  %v11162_v60 = vpop.f32.mrf.mxu1 }
 0xebc   :  { %v12515_v15 = vpop.eup %12514  ;;  %12520 = vpow2.f32 %v9935_v8  ;;  %v9933_v20 = vmul.f32 -1.442695, %v3460_v17  ;;  %v3471_v28 = vadd.f32 %v11162_v60, %v3384_v0 }
 0xebd   :  { %12522 = vrcp.f32 %v3498_v24  ;;  %v3501_v56 = vadd.f32 1.0, %v12515_v15  ;;  %v3462_v16 = vpop.f32.mrf.mxu1 }
 0xebe   :  { %v12517_v13 = vpop.eup %12516  ;;  %12524 = vpow2.f32 %v9933_v20  ;;  %v9936_v7 = vmul.f32 -1.442695, %v3471_v28  ;;  %v3463_v52 = vadd.f32 %v3462_v16, %v3384_v0 }
 0xebf   :  { %12526 = vrcp.f32 %v3501_v56  ;;  %v3499_v50 = vadd.f32 1.0, %v12517_v13 }
 0xec0   :  { %12528 = vpow2.f32 %v9936_v7  ;;  %v9934_v55 = vmul.f32 -1.442695, %v3463_v52 }
 0xec1   :  { %12530 = vrcp.f32 %v3499_v50 }
 0xec2   :  { %12532 = vpow2.f32 %v9934_v55 }
 0xec8   :  { %v12519_v3 = vpop.eup %12518 }
 0xec9   :  { %v12521_v53 = vpop.eup %12520  ;;  %v3524_v44 = vmul.f32 %v12519_v3, %v3452_v48 }
 0xeca   :  { %v12523_v42 = vpop.eup %12522  ;;  %v3504_v46 = vadd.f32 1.0, %v12521_v53 }
 0xecb   :  { %v12525_v43 = vpop.eup %12524  ;;  %v3522_v37 = vmul.f32 %v12523_v42, %v3444_v54  ;;  %v14013_v54 = vadd.f32 %v3524_v44, %v13963_v57 }
 0xecc   :  { %v12527_v19 = vpop.eup %12526  ;;  %v3502_v40 = vadd.f32 1.0, %v12525_v43 }
 0xecd   :  { %v12529_v12 = vpop.eup %12528  ;;  %v3525_v14 = vmul.f32 %v12527_v19, %v3455_v30  ;;  %v14007_v33 = vadd.f32 %v3522_v37, %v13959_v36 }
 0xece   :  { %v12531_v51 = vpop.eup %12530  ;;  %12534 = vrcp.f32 %v3502_v40  ;;  %v3505_v0 = vadd.f32 1.0, %v12529_v12 }
 0xecf   :  { %v12533_v32 = vpop.eup %12532  ;;  %v3523_v1 = vmul.f32 %v12531_v51, %v3447_v21  ;;  %12536 = vrcp.f32 %v3504_v46  ;;  %v14004_v61 = vadd.f32 %v3525_v14, %v13957_v59 }
 0xed0   :  { %12538 = vrcp.f32 %v3505_v0  ;;  %v3503_v34 = vadd.f32 1.0, %v12533_v32 }
 0xed1   :  { %v14010_v35 = vadd.f32 %v3523_v1, %v13961_v22  ;;  %v3539_v30 = vpack.c.bf16 %v14004_v61, %v14013_v54 }
 0xed2   :  { %12540 = vrcp.f32 %v3503_v34 }
 0xed3   :  { %v3538_v48 = vpack.c.bf16 %v14010_v35, %v14007_v33 }
 0xed5   :  { %11167 = vmatprep.mubr.msk.bf16.mxu0 %vm650_vm3, %v3538_v48 }
 0xed6   :  { %11168 = vmatmul.mubr.msk.bf16.vlgmr.msra.gmra.mxu0 %vm650_vm3, %v3539_v30 }
 0xedb   :  { %v12535_v59 = vpop.eup %12534 }
 0xedc   :  { %v12537_v36 = vpop.eup %12536  ;;  %v3526_v22 = vmul.f32 %v12535_v59, %v3460_v17 }
 0xedd   :  { %v12539_v21 = vpop.eup %12538  ;;  %v3528_v39 = vmul.f32 %v12537_v36, %v3468_v11  ;;  %v14061_v11 = vsub.s32 5, %v13391_v62 }
 0xede   :  { %v3529_v27 = vmul.f32 %v12539_v21, %v3471_v28  ;;  %v14025_v60 = vadd.f32 %v3526_v22, %v13973_v4  ;;  %v12128_v4 = vld [vmem:[%s13886_s4 + $0x60] sm:$0xff]  }
 0xedf   :  { %v12541_v57 = vpop.eup %12540  ;;  %v14031_v20 = vadd.f32 %v3528_v39, %v13977_v2  ;;  %15555 = vst [vmem:[#allocation13_spill] sm:$0xff] %v14061_v11  ;;  %v3545_v56 = vrot.slane %v13926_v49, %v14061_v11 }
 0xee0   :  { %v3527_v8 = vmul.f32 %v12541_v57, %v3463_v52  ;;  %v14022_v24 = vadd.f32 %v3529_v27, %v13971_v25  ;;  %v12127_v25 = vld [vmem:[%s13886_s4 + $0x68] sm:$0xff]  }
 0xee1   :  { %11175 = vmatprep.subr.bf16.mxu1 %v12127_v25 }
 0xee2   :  { %v14028_v15 = vadd.f32 %v3527_v8, %v13975_v45  ;;  %v3541_v28 = vpack.c.bf16 %v14022_v24, %v14031_v20  ;;  %11176 = vmatpush3.bf16.msra.mxu1 %v12127_v25  ;;  %v1249_v45 = vld [vmem:[%s14046_s17] sm:$0x7] }
 0xee3   :  { %11177 = vmatprep.subr.bf16.mxu1 %v12128_v4  ;;  %12017 = vmatprep.subr.msk.bf16.mxu0 %vm286_vm0, %v1249_v45  ;;  %v3853_v2 = vsel %vm286_vm0, %v1249_v45, 0 }
 0xee4   :  { %v3540_v17 = vpack.c.bf16 %v14028_v15, %v14025_v60  ;;  %11188 = vmatpush3.bf16.msra.mxu0 %v3853_v2 }
 0xee5   :  { %11216 = vmatprep.subr.bf16.mxu0 %v15554_v47 }
 0xee6   :  { %11171 = vmatprep.mubr.msk.bf16.mxu0 %vm650_vm3, %v3540_v17  ;;  %11178 = vmatpush3.bf16.msra.mxu1 %v12128_v4 }
 0xee7   :  { %11172 = vmatmul.mubr.msk.bf16.gmra.mxu0 %vm650_vm3, %v3541_v28 }
 0xee8   :  { %11189 = vmatprep.mubr.msk.bf16.mxu0 %vm273_vm1, %v13190_v5 }
 0xeef   :  { %11190 = vmatmul.mubr.msk.bf16.vlgmr.msra.gmra.mxu0 %vm273_vm1, %v13192_v9 }
 0xef0   :  { %11193 = vmatprep.mubr.msk.bf16.mxu0 %vm273_vm1, %v13194_v10 }
 0xef7   :  { %11194 = vmatmul.mubr.msk.bf16.gmra.mxu0 %vm273_vm1, %v13204_v18 }
 0xef8   :  { %11220 = vmatprep.mubr.msk.bf16.mxu0 %vm13133_vm5, %v15554_v47 }
 0xf96   :  { %v11169_v16 = vpop.f32.mrf.mxu0 }
 0xf97   :  { %v3613_v13 = vadd.f32 %v11169_v16, %v3545_v56 }
 0xf98   :  { %v3604_v7 = vpop.f32.mrf.mxu0 }
 0xf99   :  { %v9945_v52 = vmul.f32 -1.442695, %v3613_v13  ;;  %v3605_v50 = vadd.f32 %v3604_v7, %v3545_v56 }
 0xf9a   :  { %v11170_v55 = vpop.f32.mrf.mxu0 }
 0xf9b   :  { %12542 = vpow2.f32 %v9945_v52  ;;  %v9943_v3 = vmul.f32 -1.442695, %v3605_v50  ;;  %v3616_v53 = vadd.f32 %v11170_v55, %v3545_v56 }
 0xf9c   :  { %v3607_v42 = vpop.f32.mrf.mxu0 }
 0xf9d   :  { %12544 = vpow2.f32 %v9943_v3  ;;  %v9946_v43 = vmul.f32 -1.442695, %v3616_v53  ;;  %v3608_v46 = vadd.f32 %v3607_v42, %v3545_v56 }
 0xf9f   :  { %12546 = vpow2.f32 %v9946_v43  ;;  %v9944_v19 = vmul.f32 -1.442695, %v3608_v46 }
 0xfa1   :  { %12548 = vpow2.f32 %v9944_v19 }
 0xfa7   :  { %v11173_v40 = vpop.f32.mrf.mxu0 }
 0xfa8   :  { %v12543_v12 = vpop.eup %12542  ;;  %v3629_v37 = vadd.f32 %v11173_v40, %v3545_v56 }
 0xfa9   :  { %v3661_v49 = vadd.f32 1.0, %v12543_v12  ;;  %v3620_v14 = vpop.f32.mrf.mxu0 }
 0xfaa   :  { %v12545_v51 = vpop.eup %12544  ;;  %v9949_v44 = vmul.f32 -1.442695, %v3629_v37  ;;  %v3621_v0 = vadd.f32 %v3620_v14, %v3545_v56 }
 0xfab   :  { %12550 = vrcp.f32 %v3661_v49  ;;  %v3659_v32 = vadd.f32 1.0, %v12545_v51  ;;  %v11174_v1 = vpop.f32.mrf.mxu0 }
 0xfac   :  { %v12547_v34 = vpop.eup %12546  ;;  %12552 = vpow2.f32 %v9949_v44  ;;  %v9947_v48 = vmul.f32 -1.442695, %v3621_v0  ;;  %v3632_v30 = vadd.f32 %v11174_v1, %v3545_v56 }
 0xfad   :  { %12554 = vrcp.f32 %v3659_v32  ;;  %v3662_v59 = vadd.f32 1.0, %v12547_v34  ;;  %v3623_v36 = vpop.f32.mrf.mxu0  ;;  %v13080_v34 = vld [vmem:[%s13302_s15] sm:$0xff] }
 0xfae   :  { %v12549_v21 = vpop.eup %12548  ;;  %12556 = vpow2.f32 %v9947_v48  ;;  %v9950_v22 = vmul.f32 -1.442695, %v3632_v30  ;;  %v3624_v27 = vadd.f32 %v3623_v36, %v3545_v56  ;;  %v12129_v48 = vld [vmem:[%s13309_s19 + $0x18] sm:$0xff]   ;;  %v13081_v36 = vld [vmem:[%s13923_s10] sm:$0xff] }
 0xfaf   :  { %12558 = vrcp.f32 %v3662_v59  ;;  %v3660_v57 = vadd.f32 1.0, %v12549_v21  ;;  %11217 = vmatpush3.bf16.msra.mxu0 %v12129_v48  ;;  %v3697_v59 = vsub.s32 6, %v13391_v62 }
 0xfb0   :  { %12560 = vpow2.f32 %v9950_v22  ;;  %v9948_v39 = vmul.f32 -1.442695, %v3624_v27  ;;  %11218 = vmatprep.subr.bf16.mxu0 %v15554_v47 }
 0xfb1   :  { %12562 = vrcp.f32 %v3660_v57 }
 0xfb2   :  { %12564 = vpow2.f32 %v9948_v39 }
 0xfb8   :  { %v12551_v8 = vpop.eup %12550 }
 0xfb9   :  { %v12553_v17 = vpop.eup %12552  ;;  %v3685_v43 = vmul.f32 %v12551_v8, %v3613_v13 }
 0xfba   :  { %v12555_v28 = vpop.eup %12554  ;;  %v3665_v16 = vadd.f32 1.0, %v12553_v17 }
 0xfbb   :  { %v12557_v25 = vpop.eup %12556  ;;  %v3683_v42 = vmul.f32 %v12555_v28, %v3605_v50 }
 0xfbc   :  { %v12559_v4 = vpop.eup %12558  ;;  %v3663_v45 = vadd.f32 1.0, %v12557_v25 }
 0xfbd   :  { %v12561_v2 = vpop.eup %12560  ;;  %v3686_v52 = vmul.f32 %v12559_v4, %v3616_v53 }
 0xfbe   :  { %v12563_v7 = vpop.eup %12562  ;;  %v3666_v55 = vadd.f32 1.0, %v12561_v2  ;;  %12566 = vrcp.f32 %v3663_v45 }
 0xfbf   :  { %v12565_v3 = vpop.eup %12564  ;;  %v3684_v56 = vmul.f32 %v12563_v7, %v3608_v46  ;;  %v3692_v12 = vpack.c.bf16 %v3686_v52, %v3685_v43 }
 0xfc0   :  { %12568 = vrcp.f32 %v3666_v55  ;;  %v3664_v19 = vadd.f32 1.0, %v12565_v3 }
 0xfc1   :  { %v3691_v40 = vpack.c.bf16 %v3684_v56, %v3683_v42  ;;  %12570 = vrcp.f32 %v3665_v16 }
 0xfc2   :  { %12572 = vrcp.f32 %v3664_v19 }
 0xfc3   :  { %11179 = vmatprep.mubr.msk.bf16.mxu1 %vm650_vm3, %v3691_v40 }
 0xfc4   :  { %11180 = vmatmul.mubr.msk.bf16.vlgmr.msra.gmra.mxu1 %vm650_vm3, %v3692_v12 }
 0xfcb   :  { %v12567_v49 = vpop.eup %12566 }
 0xfcc   :  { %v3687_v51 = vmul.f32 %v12567_v49, %v3621_v0 }
 0xfcd   :  { %v12569_v53 = vpop.eup %12568 }
 0xfce   :  { %v12571_v14 = vpop.eup %12570  ;;  %v3690_v46 = vmul.f32 %v12569_v53, %v3632_v30  ;;  %v3698_v30 = vrot.slane %v13081_v36, %v3697_v59  ;;  %v11191_v36 = vpop.f32.mrf.mxu0 }
 0xfcf   :  { %v12573_v50 = vpop.eup %12572  ;;  %v3689_v44 = vmul.f32 %v12571_v14, %v3629_v37 }
 0xfd0   :  { %v3688_v13 = vmul.f32 %v12573_v50, %v3624_v27 }
 0xfd1   :  { %v3694_v1 = vpack.c.bf16 %v3690_v46, %v3689_v44 }
 0xfd2   :  { %v3693_v32 = vpack.c.bf16 %v3688_v13, %v3687_v51 }
 0xfd4   :  { %11183 = vmatprep.mubr.msk.bf16.mxu1 %vm650_vm3, %v3693_v32 }
 0xfd5   :  { %11184 = vmatmul.mubr.msk.bf16.gmra.mxu1 %vm650_vm3, %v3694_v1 }
 0xfd6   :  { %11213 = vmatprep.mubr.msk.f32.mxu1 %vm1251_vm4, %v13080_v34 }
0x1084   :  { %v11181_v0 = vpop.f32.mrf.mxu1 }
0x1085   :  { %v3766_v21 = vadd.f32 %v11181_v0, %v3698_v30 }
0x1086   :  { %v3757_v37 = vpop.f32.mrf.mxu1 }
0x1087   :  { %v9959_v22 = vmul.f32 -1.442695, %v3766_v21  ;;  %v3758_v27 = vadd.f32 %v3757_v37, %v3698_v30 }
0x1088   :  { %v11182_v57 = vpop.f32.mrf.mxu1 }
0x1089   :  { %12574 = vpow2.f32 %v9959_v22  ;;  %v9957_v39 = vmul.f32 -1.442695, %v3758_v27  ;;  %v3769_v8 = vadd.f32 %v11182_v57, %v3698_v30 }
0x108a   :  { %v3760_v17 = vpop.f32.mrf.mxu1 }
0x108b   :  { %12576 = vpow2.f32 %v9957_v39  ;;  %v9960_v28 = vmul.f32 -1.442695, %v3769_v8  ;;  %v3761_v25 = vadd.f32 %v3760_v17, %v3698_v30 }
0x108d   :  { %12578 = vpow2.f32 %v9960_v28  ;;  %v9958_v4 = vmul.f32 -1.442695, %v3761_v25 }
0x108f   :  { %12580 = vpow2.f32 %v9958_v4 }
0x1095   :  { %v11185_v45 = vpop.f32.mrf.mxu1 }
0x1096   :  { %v12575_v2 = vpop.eup %12574  ;;  %v3782_v16 = vadd.f32 %v11185_v45, %v3698_v30 }
0x1097   :  { %v3814_v7 = vadd.f32 1.0, %v12575_v2  ;;  %v3773_v52 = vpop.f32.mrf.mxu1  ;;  %v3889_v2 = vpop.f32.mrf.mxu0 }
0x1098   :  { %v12577_v55 = vpop.eup %12576  ;;  %v9963_v3 = vmul.f32 -1.442695, %v3782_v16  ;;  %v3774_v42 = vadd.f32 %v3773_v52, %v3698_v30 }
0x1099   :  { %12582 = vrcp.f32 %v3814_v7  ;;  %v3812_v56 = vadd.f32 1.0, %v12577_v55  ;;  %v11186_v43 = vpop.f32.mrf.mxu1 }
0x109a   :  { %v12579_v19 = vpop.eup %12578  ;;  %12584 = vpow2.f32 %v9963_v3  ;;  %v9961_v40 = vmul.f32 -1.442695, %v3774_v42  ;;  %v3785_v12 = vadd.f32 %v11186_v43, %v3698_v30 }
0x109b   :  { %12586 = vrcp.f32 %v3812_v56  ;;  %v3815_v49 = vadd.f32 1.0, %v12579_v19  ;;  %v3776_v53 = vpop.f32.mrf.mxu1 }
0x109c   :  { %v12581_v14 = vpop.eup %12580  ;;  %12588 = vpow2.f32 %v9961_v40  ;;  %v9964_v50 = vmul.f32 -1.442695, %v3785_v12  ;;  %v3777_v46 = vadd.f32 %v3776_v53, %v3698_v30 }
0x109d   :  { %12590 = vrcp.f32 %v3815_v49  ;;  %v3813_v51 = vadd.f32 1.0, %v12581_v14 }
0x109e   :  { %12592 = vpow2.f32 %v9964_v50  ;;  %v9962_v13 = vmul.f32 -1.442695, %v3777_v46 }
0x109f   :  { %12594 = vrcp.f32 %v3813_v51 }
0x10a0   :  { %12596 = vpow2.f32 %v9962_v13 }
0x10a6   :  { %v12583_v44 = vpop.eup %12582 }
0x10a7   :  { %v12585_v32 = vpop.eup %12584  ;;  %v3838_v59 = vmul.f32 %v12583_v44, %v3766_v21 }
0x10a8   :  { %v12587_v1 = vpop.eup %12586  ;;  %v3818_v34 = vadd.f32 1.0, %v12585_v32 }
0x10a9   :  { %v12589_v48 = vpop.eup %12588  ;;  %v3836_v57 = vmul.f32 %v12587_v1, %v3758_v27  ;;  %v14076_v45 = vadd.f32 %v3838_v59, %v14013_v54  ;;  %v12130_v59 = vld [vmem:[%s13309_s19 + $0x10] sm:$0xff]  }
0x10aa   :  { %v12591_v0 = vpop.eup %12590  ;;  %12598 = vrcp.f32 %v3818_v34  ;;  %v3816_v37 = vadd.f32 1.0, %v12589_v48  ;;  %v13082_v48 = vld [vmem:[%s13302_s15 + $0x8] sm:$0xff]  ;;  %11219 = vmatpush3.bf16.msra.mxu0 %v12130_v59 }
0x10ab   :  { %v12593_v22 = vpop.eup %12592  ;;  %v3839_v39 = vmul.f32 %v12591_v0, %v3769_v8  ;;  %v14082_v52 = vadd.f32 %v3836_v57, %v14007_v33  ;;  %v3922_v32 = vmul.f32 %v11191_v36, %v14076_v45  ;;  %11236 = vmatprep.subr.bf16.mxu0 %v15554_v47  ;;  %v12131_v36 = vld [vmem:[%s13373_s27 + $0x58] sm:$0xff]   ;;  %v12132_v0 = vld [vmem:[%s13373_s27 + $0x50] sm:$0xff]  }
0x10ac   :  { %v12595_v30 = vpop.eup %12594  ;;  %12600 = vrcp.f32 %v3816_v37  ;;  %v3819_v17 = vadd.f32 1.0, %v12593_v22 }
0x10ad   :  { %v12597_v28 = vpop.eup %12596  ;;  %v3837_v4 = vmul.f32 %v12595_v30, %v3761_v25  ;;  %v14079_v7 = vadd.f32 %v3839_v39, %v14004_v61  ;;  %v11192_v25 = vpop.f32.mrf.mxu0  ;;  %v3920_v34 = vmul.f32 %v3889_v2, %v14082_v52  ;;  %v12133_v39 = vld [vmem:[%s13373_s27 + $0x48] sm:$0xff]   ;;  %v12134_v30 = vld [vmem:[%s13373_s27 + $0x40] sm:$0xff]  }
0x10ae   :  { %12602 = vrcp.f32 %v3819_v17  ;;  %v3817_v21 = vadd.f32 1.0, %v12597_v28  ;;  %v13083_v28 = vld [vmem:[%s13389_s1] sm:$0x7] }
0x10af   :  { %v4308_v27 = vpack.c.bf16 %v14079_v7, %v14076_v45  ;;  %v14087_v8 = vadd.f32 %v3837_v4, %v14010_v35  ;;  %v3892_v55 = vpop.f32.mrf.mxu0  ;;  %v4007_v4 = vrot.slane %v13083_v28, %v13459_v31  ;;  %v12143_v45 = vld [vmem:[%s13442_s13 + $0x28] sm:$0xff]  }
0x10b0   :  { %12604 = vrcp.f32 %v3817_v21 }
0x10b1   :  { %v4307_v54 = vpack.c.bf16 %v14087_v8, %v14082_v52  ;;  %v11195_v61 = vpop.f32.mrf.mxu0  ;;  %v3921_v1 = vmul.f32 %v3892_v55, %v14087_v8  ;;  %v12141_v52 = vld [vmem:[%s13442_s13 + $0x38] sm:$0xff]   ;;  %v12142_v8 = vld [vmem:[%s13442_s13 + $0x30] sm:$0xff]  }
0x10b3   :  { %v3905_v40 = vpop.f32.mrf.mxu0 }
0x10b5   :  { %v11196_v51 = vpop.f32.mrf.mxu0 }
0x10b7   :  { %v12599_v3 = vpop.eup %12598 }
0x10b8   :  { %v3842_v43 = vmul.f32 %v12599_v3, %v3782_v16 }
0x10b9   :  { %v12601_v56 = vpop.eup %12600 }
0x10ba   :  { %v3840_v33 = vmul.f32 %v12601_v56, %v3774_v42  ;;  %v14092_v50 = vadd.f32 %v3842_v43, %v14031_v20  ;;  %v12135_v56 = vld [vmem:[%s13373_s27 + $0x78] sm:$0xff]   ;;  %v12136_v43 = vld [vmem:[%s13373_s27 + $0x70] sm:$0xff]  }
0x10bb   :  { %v12603_v19 = vpop.eup %12602 }
0x10bc   :  { %v3843_v49 = vmul.f32 %v12603_v19, %v3785_v12  ;;  %v14098_v13 = vadd.f32 %v3840_v33, %v14025_v60  ;;  %v3926_v12 = vmul.f32 %v11195_v61, %v14092_v50  ;;  %v12137_v19 = vld [vmem:[%s13373_s27 + $0x68] sm:$0xff]   ;;  %v12139_v33 = vld [vmem:[%s13409_s5 + $0x18] sm:$0xff]  }
0x10bd   :  { %v12605_v53 = vpop.eup %12604 }
0x10be   :  { %v3841_v14 = vmul.f32 %v12605_v53, %v3777_v46  ;;  %v14095_v35 = vadd.f32 %v3843_v49, %v14022_v24  ;;  %v3908_v24 = vpop.f32.mrf.mxu0  ;;  %v3924_v60 = vmul.f32 %v3905_v40, %v14098_v13  ;;  %v12138_v40 = vld [vmem:[%s13373_s27 + $0x60] sm:$0xff]  }
0x10bf   :  { %v13084_v49 = vld [vmem:[%s13417_s9] sm:$0x3f] }
0x10c0   :  { %v3927_v44 = vmul.f32 %v11196_v51, %v14095_v35  ;;  %v4310_v16 = vpack.c.bf16 %v14095_v35, %v14092_v50  ;;  %v14104_v42 = vadd.f32 %v3841_v14, %v14028_v15  ;;  %v3923_v15 = vmul.f32 %v11192_v25, %v14079_v7  ;;  %v12144_v7 = vld [vmem:[%s13442_s13 + $0x20] sm:$0xff]  }
0x10c1   :  { %v4068_v53 = vrot.slane %v13084_v49, %v13953_v6 }
0x10c2   :  { %v4309_v20 = vpack.c.bf16 %v14104_v42, %v14098_v13  ;;  %11197 = vmatprep.subr.mxu1 %v3927_v44  ;;  %v3925_v46 = vmul.f32 %v3908_v24, %v14104_v42 }
0x10c3   :  { %11198 = vmatpush3.msra.mxu1 %v3927_v44 }
0x10c4   :  { %11199 = vmatprep.subr.mxu1 %v3926_v12 }
0x10c5   :  { %11200 = vmatpush3.msra.mxu1 %v3926_v12 }
0x10c6   :  { %11201 = vmatprep.subr.mxu1 %v3925_v46 }
0x10c7   :  { %11202 = vmatpush3.msra.mxu1 %v3925_v46 }
0x10c8   :  { %11203 = vmatprep.subr.mxu1 %v3924_v60 }
0x10c9   :  { %11204 = vmatpush3.msra.mxu1 %v3924_v60 }
0x10ca   :  { %11205 = vmatprep.subr.mxu1 %v3923_v15 }
0x10cb   :  { %11206 = vmatpush3.msra.mxu1 %v3923_v15 }
0x10cc   :  { %11207 = vmatprep.subr.mxu1 %v3922_v32 }
0x10cd   :  { %11208 = vmatpush3.msra.mxu1 %v3922_v32 }
0x10ce   :  { %11209 = vmatprep.subr.mxu1 %v3921_v1 }
0x10cf   :  { %11210 = vmatpush3.msra.mxu1 %v3921_v1 }
0x10d0   :  { %11211 = vmatprep.subr.mxu1 %v3920_v34 }
0x10d1   :  { %11212 = vmatpush3.msra.mxu1 %v3920_v34 }
0x10d2   :  { %11214 = vmatmul.mubr.msk.f32.vlgmr.msra.gmra.mxu1 %vm1251_vm4, %v13082_v48  ;;  %11224 = vmatprep.subr.bf16.mxu1 %v15554_v47 }
0x10d3   :  { %11232 = vmatprep.mubr.msk.bf16.mxu1 %vm13133_vm5, %v15554_v47  ;;  %11225 = vmatpush3.bf16.msra.mxu1 %v12131_v36 }
0x10d4   :  { %11226 = vmatprep.subr.bf16.mxu1 %v15554_v47 }
0x10d7   :  { %11227 = vmatpush3.bf16.msra.mxu1 %v12132_v0 }
0x10d8   :  { %11228 = vmatprep.subr.bf16.mxu1 %v15554_v47 }
0x10db   :  { %11229 = vmatpush3.bf16.msra.mxu1 %v12133_v39 }
0x10dc   :  { %11230 = vmatprep.subr.bf16.mxu1 %v15554_v47 }
0x10df   :  { %11231 = vmatpush3.bf16.msra.mxu1 %v12134_v30 }
0x10e0   :  { %11248 = vmatprep.subr.bf16.mxu1 %v15554_v47 }
0x1192   :  { %v11215_v37 = vpop.f32.mrf.mxu1 }
0x1194   :  { %v3994_v22 = vpop.f32.mrf.mxu1 }
0x1195   :  { %v4003_v57 = vpack.c.bf16 %v11215_v37, %v3994_v22 }
0x1197   :  { %11221 = vmatmul.mubr.msk.bf16.vlgmr.msra.gmra.mxu0 %vm650_vm3, %v4003_v57  ;;  %v12140_v57 = vld [vmem:[%s13409_s5 + $0x10] sm:$0xff]   ;;  %s13152_s5 = smov 8  }
0x1198   :  { %11244 = vmatprep.mubr.msk.bf16.mxu0 %vm13133_vm5, %v15554_v47  ;;  %11237 = vmatpush3.bf16.msra.mxu0 %v12135_v56 }
0x1199   :  { %11238 = vmatprep.subr.bf16.mxu0 %v15554_v47 }
0x119c   :  { %11239 = vmatpush3.bf16.msra.mxu0 %v12136_v43  ;;  %v12145_v43 = vld [vmem:[%s13478_s23 + $0x18] sm:$0xff]  }
0x119d   :  { %11240 = vmatprep.subr.bf16.mxu0 %v15554_v47 }
0x11a0   :  { %11241 = vmatpush3.bf16.msra.mxu0 %v12137_v19  ;;  %v12146_v19 = vld [vmem:[%s13478_s23 + $0x10] sm:$0xff]   ;;  %s13153_s23 = smov 39  }
0x11a1   :  { %11242 = vmatprep.subr.bf16.mxu0 %v15554_v47 }
0x11a4   :  { %11243 = vmatpush3.bf16.msra.mxu0 %v12138_v40 }
0x11a5   :  { %11260 = vmatprep.subr.bf16.mxu0 %v12139_v33 }
0x1257   :  { %v4057_v17 = vpop.f32.mrf.mxu0 }
0x1258   :  { %v4058_v25 = vadd.f32 %v4057_v17, %v4007_v4 }
0x1259   :  { %v11222_v2 = vpop.f32.mrf.mxu0 }
0x125b   :  { %v4060_v21 = vpop.f32.mrf.mxu0 }
0x125c   :  { %v4061_v55 = vadd.f32 %v4060_v21, %v4007_v4 }
0x125d   :  { %v11223_v3 = vpop.f32.mrf.mxu0 }
0x125e   :  { %v4064_v61 = vpack.c.bf16 %v4061_v55, %v4058_v25 }
0x1260   :  { %11233 = vmatmul.mubr.msk.bf16.vlgmr.msra.gmra.mxu1 %vm1251_vm4, %v4064_v61 }
0x1261   :  { %11256 = vmatprep.mubr.msk.bf16.mxu1 %vm13133_vm5, %v15554_v47  ;;  %11249 = vmatpush3.bf16.msra.mxu1 %v12141_v52 }
0x1262   :  { %11250 = vmatprep.subr.bf16.mxu1 %v15554_v47 }
0x1265   :  { %11251 = vmatpush3.bf16.msra.mxu1 %v12142_v8 }
0x1266   :  { %11252 = vmatprep.subr.bf16.mxu1 %v15554_v47 }
0x1269   :  { %11253 = vmatpush3.bf16.msra.mxu1 %v12143_v45 }
0x126a   :  { %11254 = vmatprep.subr.bf16.mxu1 %v15554_v47 }
0x126d   :  { %11255 = vmatpush3.bf16.msra.mxu1 %v12144_v7 }
0x1320   :  { %v4130_v14 = vpop.f32.mrf.mxu1 }
0x1321   :  { %v4131_v51 = vadd.f32 %v4130_v14, %v4068_v53 }
0x1322   :  { %v11234_v44 = vpop.f32.mrf.mxu1 }
0x1323   :  { %v9979_v12 = vmul.f32 -1.442695, %v4131_v51 }
0x1324   :  { %v4133_v24 = vpop.f32.mrf.mxu1 }
0x1325   :  { %12606 = vpow2.f32 %v9979_v12  ;;  %v4134_v46 = vadd.f32 %v4133_v24, %v4068_v53 }
0x1326   :  { %v11235_v60 = vpop.f32.mrf.mxu1 }
0x1327   :  { %v9980_v15 = vmul.f32 -1.442695, %v4134_v46 }
0x1329   :  { %12608 = vpow2.f32 %v9980_v15 }
0x1332   :  { %v12607_v32 = vpop.eup %12606 }
0x1333   :  { %v4143_v1 = vadd.f32 1.0, %v12607_v32 }
0x1335   :  { %12610 = vrcp.f32 %v4143_v1 }
0x1336   :  { %v12609_v34 = vpop.eup %12608 }
0x1337   :  { %v4144_v48 = vadd.f32 1.0, %v12609_v34 }
0x1339   :  { %12612 = vrcp.f32 %v4144_v48 }
0x1342   :  { %v12611_v59 = vpop.eup %12610 }
0x1343   :  { %v4149_v0 = vmul.f32 %v12611_v59, %v4131_v51  ;;  %v13085_v51 = vld [vmem:[%s13486_s28] sm:$0x3] }
0x1344   :  { %v4314_v44 = vrot.slane %v13085_v51, %v13459_v31 }
0x1346   :  { %v12613_v36 = vpop.eup %12612 }
0x1347   :  { %v4150_v37 = vmul.f32 %v12613_v36, %v4134_v46 }
0x1349   :  { %v4151_v22 = vpack.c.bf16 %v4150_v37, %v4149_v0 }
0x134b   :  { %11245 = vmatmul.mubr.msk.bf16.vlgmr.msra.gmra.mxu0 %vm1251_vm4, %v4151_v22 }
0x134c   :  { %11261 = vmatpush3.bf16.msra.mxu0 %v12139_v33  ;;  %11264 = vmatprep.mubr.msk.bf16.mxu0 %vm650_vm3, %v4307_v54  ;;  %v4155_v54 = vrot.slane %v13084_v49, %v13988_v23 }
0x134d   :  { %11262 = vmatprep.subr.bf16.mxu0 %v12140_v57 }
0x1350   :  { %11263 = vmatpush3.bf16.msra.mxu0 %v12140_v57 }
0x1351   :  { %11282 = vmatprep.subr.bf16.mxu0 %v12145_v43 }
0x1353   :  { %11265 = vmatmul.mubr.msk.bf16.vlgmr.msra.gmra.mxu0 %vm650_vm3, %v4308_v27  ;;  %v1166_v27 = vld [vmem:[%s13454_s18 + $0x4] sm:$0x7]  ;;  %s14754_s18 = sld [smem:[%s15527_s0 + %s13152_s5]]  }
0x1354   :  { %11268 = vmatprep.mubr.msk.bf16.mxu0 %vm650_vm3, %v4309_v20  ;;  %12018 = vmatprep.subr.msk.bf16.mxu1 %vm286_vm0, %v1166_v27  ;;  %v4461_v56 = vsel %vm286_vm0, %v1166_v27, 0 }
0x1355   :  { %11283 = vmatpush3.bf16.msra.mxu0 %v12145_v43 }
0x1356   :  { %11284 = vmatprep.subr.bf16.mxu0 %v12146_v19 }
0x1359   :  { %11285 = vmatpush3.bf16.msra.mxu0 %v12146_v19 }
0x135a   :  { %11352 = vmatprep.subr.bf16.mxu0 %v15554_v47 }
0x135b   :  { %11269 = vmatmul.mubr.msk.bf16.gmra.mxu0 %vm650_vm3, %v4310_v16 }
0x140b   :  { %v4217_v50 = vpop.f32.mrf.mxu0 }
0x140c   :  { %v4218_v35 = vadd.f32 %v4217_v50, %v4155_v54 }
0x140d   :  { %v11246_v13 = vpop.f32.mrf.mxu0 }
0x140e   :  { %v9986_v16 = vmul.f32 -1.442695, %v4218_v35 }
0x140f   :  { %v4220_v42 = vpop.f32.mrf.mxu0 }
0x1410   :  { %12614 = vpow2.f32 %v9986_v16  ;;  %v4221_v20 = vadd.f32 %v4220_v42, %v4155_v54 }
0x1411   :  { %v11247_v39 = vpop.f32.mrf.mxu0 }
0x1412   :  { %v9987_v30 = vmul.f32 -1.442695, %v4221_v20 }
0x1413   :  { %v11266_v40 = vpop.f32.mrf.mxu0 }
0x1414   :  { %12616 = vpow2.f32 %v9987_v30  ;;  %v4382_v15 = vadd.f32 %v11266_v40, %v4314_v44 }
0x1415   :  { %v4373_v33 = vpop.f32.mrf.mxu0 }
0x1416   :  { %v14194_v24 = vadd.f32 %v4373_v33, %v4314_v44  ;;  %v10001_v59 = vmul.f32 -1.442695, %v4382_v15 }
0x1417   :  { %v11267_v49 = vpop.f32.mrf.mxu0 }
0x1418   :  { %v4385_v46 = vadd.f32 %v11267_v49, %v4314_v44  ;;  %v9999_v1 = vmul.f32 -1.442695, %v14194_v24 }
0x1419   :  { %v4376_v53 = vpop.f32.mrf.mxu0 }
0x141a   :  { %v4377_v60 = vadd.f32 %v4376_v53, %v4314_v44  ;;  %v10002_v34 = vmul.f32 -1.442695, %v4385_v46 }
0x141b   :  { %v11270_v14 = vpop.f32.mrf.mxu0 }
0x141c   :  { %v10000_v48 = vmul.f32 -1.442695, %v4377_v60  ;;  %v14203_v57 = vadd.f32 %v11270_v14, %v4314_v44 }
0x141d   :  { %v12615_v17 = vpop.eup %12614  ;;  %v4389_v12 = vpop.f32.mrf.mxu0 }
0x141e   :  { %v4230_v28 = vadd.f32 1.0, %v12615_v17  ;;  %v14197_v0 = vadd.f32 %v4389_v12, %v4314_v44  ;;  %v10005_v7 = vmul.f32 -1.442695, %v14203_v57 }
0x141f   :  { %v11271_v32 = vpop.f32.mrf.mxu0 }
0x1420   :  { %12618 = vrcp.f32 %v4230_v28  ;;  %v14199_v37 = vadd.f32 %v11271_v32, %v4314_v44  ;;  %v10003_v52 = vmul.f32 -1.442695, %v14197_v0 }
0x1421   :  { %v12617_v4 = vpop.eup %12616  ;;  %v4392_v36 = vpop.f32.mrf.mxu0 }
0x1422   :  { %v4231_v2 = vadd.f32 1.0, %v12617_v4  ;;  %v14201_v22 = vadd.f32 %v4392_v36, %v4314_v44  ;;  %v10006_v8 = vmul.f32 -1.442695, %v14199_v37 }
0x1424   :  { %12620 = vrcp.f32 %v4231_v2  ;;  %v10004_v45 = vmul.f32 -1.442695, %v14201_v22 }
0x1425   :  { %12622 = vpow2.f32 %v9999_v1 }
0x1426   :  { %12624 = vpow2.f32 %v10002_v34 }
0x1427   :  { %12626 = vpow2.f32 %v10000_v48 }
0x1428   :  { %12628 = vpow2.f32 %v10001_v59 }
0x1429   :  { %12630 = vpow2.f32 %v10003_v52 }
0x142a   :  { %12632 = vpow2.f32 %v10006_v8 }
0x142b   :  { %12634 = vpow2.f32 %v10004_v45 }
0x142c   :  { %12636 = vpow2.f32 %v10005_v7 }
0x142d   :  { %v12619_v21 = vpop.eup %12618 }
0x142e   :  { %v4236_v55 = vmul.f32 %v12619_v21, %v4218_v35 }
0x1431   :  { %v12621_v25 = vpop.eup %12620 }
0x1432   :  { %v4237_v3 = vmul.f32 %v12621_v25, %v4221_v20  ;;  %v12623_v27 = vpop.eup %12622 }
0x1433   :  { %v12625_v54 = vpop.eup %12624  ;;  %v4428_v13 = vadd.f32 1.0, %v12623_v27 }
0x1434   :  { %v4238_v61 = vpack.c.bf16 %v4237_v3, %v4236_v55  ;;  %v12627_v50 = vpop.eup %12626  ;;  %v4431_v16 = vadd.f32 1.0, %v12625_v54 }
0x1435   :  { %v12629_v35 = vpop.eup %12628  ;;  %v4429_v42 = vadd.f32 1.0, %v12627_v50  ;;  %12638 = vrcp.f32 %v4428_v13 }
0x1436   :  { %11257 = vmatmul.mubr.msk.bf16.vlgmr.msra.gmra.mxu1 %vm1251_vm4, %v4238_v61  ;;  %v4430_v20 = vadd.f32 1.0, %v12629_v35  ;;  %v12631_v39 = vpop.eup %12630  ;;  %12640 = vrcp.f32 %v4431_v16 }
0x1437   :  { %11273 = vmatpush3.bf16.msra.mxu1 %v4461_v56  ;;  %11274 = vmatprep.mubr.msk.bf16.mxu1 %vm273_vm1, %v13190_v5  ;;  %v12633_v30 = vpop.eup %12632  ;;  %12642 = vrcp.f32 %v4429_v42  ;;  %v4432_v4 = vadd.f32 1.0, %v12631_v39 }
0x1438   :  { %11294 = vmatprep.subr.bf16.mxu1 %v15554_v47  ;;  %v12635_v17 = vpop.eup %12634  ;;  %12644 = vrcp.f32 %v4430_v20  ;;  %v4435_v2 = vadd.f32 1.0, %v12633_v30 }
0x1439   :  { %v12637_v28 = vpop.eup %12636  ;;  %v4433_v25 = vadd.f32 1.0, %v12635_v17  ;;  %12646 = vrcp.f32 %v4432_v4  ;;  %v15562_v4 = vld [vmem:[#allocation8_spill] sm:$0xff] }
0x143a   :  { %v4434_v55 = vadd.f32 1.0, %v12637_v28  ;;  %12648 = vrcp.f32 %v4435_v2 }
0x143b   :  { %12650 = vrcp.f32 %v4433_v25 }
0x143c   :  { %12652 = vrcp.f32 %v4434_v55  ;;  %v15563_v55 = vld [vmem:[#allocation9_spill] sm:$0xff] }
0x143e   :  { %11275 = vmatmul.mubr.msk.bf16.vlgmr.msra.gmra.mxu1 %vm273_vm1, %v13192_v9 }
0x143f   :  { %11278 = vmatprep.mubr.msk.bf16.mxu1 %vm273_vm1, %v13194_v10 }
0x1442   :  { %v12639_v43 = vpop.eup %12638 }
0x1443   :  { %v12641_v40 = vpop.eup %12640  ;;  %v4452_v12 = vmul.f32 %v12639_v43, %v14194_v24 }
0x1444   :  { %v12643_v33 = vpop.eup %12642  ;;  %v4455_v14 = vmul.f32 %v12641_v40, %v4385_v46 }
0x1445   :  { %v12645_v53 = vpop.eup %12644  ;;  %v4453_v44 = vmul.f32 %v12643_v33, %v4377_v60 }
0x1446   :  { %11279 = vmatmul.mubr.msk.bf16.gmra.mxu1 %vm273_vm1, %v13204_v18  ;;  %v4454_v32 = vmul.f32 %v12645_v53, %v4382_v15  ;;  %v12647_v36 = vpop.eup %12646  ;;  %v15564_v53 = vld [vmem:[#allocation10_spill] sm:$0xff] }
0x1447   :  { %11300 = vmatprep.mubr.msk.bf16.mxu1 %vm13133_vm5, %v15554_v47  ;;  %v12649_v45 = vpop.eup %12648  ;;  %v4456_v15 = vmul.f32 %v12647_v36, %v14197_v0 }
0x1448   :  { %v12651_v27 = vpop.eup %12650  ;;  %v4459_v46 = vmul.f32 %v12649_v45, %v14199_v37  ;;  %v12147_v37 = vld [vmem:[%s13523_s3 + $0x28] sm:$0x1f]   ;;  %v15566_v45 = vld [vmem:[#allocation12_spill] sm:$0xff] }
0x1449   :  { %v12653_v35 = vpop.eup %12652  ;;  %v4457_v60 = vmul.f32 %v12651_v27, %v14201_v22  ;;  %v4703_v0 = vsel %vm2072_vm6, %v12147_v37, 0  ;;  %v12148_v22 = vld [vmem:[%s13523_s3 + $0x20] sm:$0xff]  }
0x144a   :  { %v4458_v13 = vmul.f32 %v12653_v35, %v14203_v57  ;;  %11295 = vmatpush3.bf16.msra.mxu1 %v4703_v0  ;;  %v12149_v57 = vld [vmem:[%s13523_s3 + $0x18] sm:$0xff]  }
0x144b   :  { %11296 = vmatprep.subr.bf16.mxu1 %v15554_v47 }
0x144e   :  { %11297 = vmatpush3.bf16.msra.mxu1 %v12148_v22 }
0x144f   :  { %11298 = vmatprep.subr.bf16.mxu1 %v15554_v47 }
0x1452   :  { %11299 = vmatpush3.bf16.msra.mxu1 %v12149_v57 }
0x1453   :  { %5009 = vmatprep.subr.mxu1 %v15554_v47 }
0x1455   :  { %11301 = vmatmul.mubr.msk.bf16.vlgmr.msra.gmra.mxu1 %vm2032_vm7, %v13538_v26  ;;  %v15558_v26 = vld [vmem:[#allocation4_spill] sm:$0xff] }
0x1456   :  { %11304 = vmatprep.mubr.msk.bf16.mxu1 %vm13133_vm5, %v15554_v47 }
0x145d   :  { %11305 = vmatmul.mubr.msk.bf16.gmra.mxu1 %vm2032_vm7, %v13552_v38  ;;  %v15559_v38 = vld [vmem:[#allocation5_spill] sm:$0xff] }
0x145e   :  { %11308 = vmatprep.mubr.msk.bf16.mxu1 %vm13133_vm5, %v15554_v47 }
0x1465   :  { %11309 = vmatmul.mubr.msk.bf16.gmra.mxu1 %vm2032_vm7, %v13560_v29  ;;  %v15560_v29 = vld [vmem:[#allocation6_spill] sm:$0xff] }
0x1466   :  { %11312 = vmatprep.mubr.msk.bf16.mxu1 %vm13133_vm5, %v15554_v47 }
0x146d   :  { %11313 = vmatmul.mubr.msk.bf16.gmra.mxu1 %vm2032_vm7, %v13568_v58  ;;  %v15561_v58 = vld [vmem:[#allocation7_spill] sm:$0xff] }
0x146e   :  { %11316 = vmatprep.mubr.msk.bf16.mxu1 %vm13133_vm5, %v15554_v47 }
0x1475   :  { %11317 = vmatmul.mubr.msk.bf16.gmra.mxu1 %vm2032_vm7, %v15558_v26 }
0x1476   :  { %11320 = vmatprep.mubr.msk.bf16.mxu1 %vm13133_vm5, %v15554_v47 }
0x147d   :  { %11321 = vmatmul.mubr.msk.bf16.gmra.mxu1 %vm2032_vm7, %v15559_v38 }
0x147e   :  { %11324 = vmatprep.mubr.msk.bf16.mxu1 %vm13133_vm5, %v15554_v47 }
0x1485   :  { %11325 = vmatmul.mubr.msk.bf16.gmra.mxu1 %vm2032_vm7, %v15560_v29 }
0x1486   :  { %11328 = vmatprep.mubr.msk.bf16.mxu1 %vm13133_vm5, %v15554_v47 }
0x148d   :  { %11329 = vmatmul.mubr.msk.bf16.gmra.mxu1 %vm2032_vm7, %v15561_v58 }
0x148e   :  { %11332 = vmatprep.mubr.msk.bf16.mxu1 %vm13133_vm5, %v15554_v47 }
0x1495   :  { %11333 = vmatmul.mubr.msk.bf16.gmra.mxu1 %vm2032_vm7, %v15562_v4 }
0x1496   :  { %11336 = vmatprep.mubr.msk.bf16.mxu1 %vm13133_vm5, %v15554_v47 }
0x149d   :  { %11337 = vmatmul.mubr.msk.bf16.gmra.mxu1 %vm2032_vm7, %v15563_v55 }
0x149e   :  { %11340 = vmatprep.mubr.msk.bf16.mxu1 %vm13133_vm5, %v15554_v47 }
0x14a5   :  { %11341 = vmatmul.mubr.msk.bf16.gmra.mxu1 %vm2032_vm7, %v15564_v53  ;;  %v13087_v53 = vld [vmem:[%s13543_s14] sm:$0xff]  }
0x14a6   :  { %11344 = vmatprep.mubr.msk.bf16.mxu1 %vm13133_vm5, %v15554_v47 }
0x14f6   :  { %v14209_v21 = vpop.f32.mrf.mxu1 }
0x14f7   :  { %15556 = vst [vmem:[#allocation14_spill] sm:$0xff] %v14209_v21 }
0x14f8   :  { %v11258_v3 = vpop.f32.mrf.mxu1 }
0x14fa   :  { %v14211_v61 = vpop.f32.mrf.mxu1 }
0x14fb   :  { %15557 = vst [vmem:[#allocation15_spill] sm:$0xff] %v14211_v61 }
0x14fc   :  { %v11259_v56 = vpop.f32.mrf.mxu1 }
0x14fe   :  { %v11276_v19 = vpop.f32.mrf.mxu1 }
0x14ff   :  { %v4530_v52 = vmul.f32 %v11276_v19, %v4454_v32 }
0x1500   :  { %v4497_v49 = vpop.f32.mrf.mxu1 }
0x1501   :  { %v4528_v48 = vmul.f32 %v4497_v49, %v4452_v12 }
0x1502   :  { %v11277_v51 = vpop.f32.mrf.mxu1 }
0x1503   :  { %v4531_v1 = vmul.f32 %v11277_v51, %v4455_v14 }
0x1504   :  { %v4500_v34 = vpop.f32.mrf.mxu1 }
0x1505   :  { %v4529_v59 = vmul.f32 %v4500_v34, %v4453_v44  ;;  %v4537_v54 = vpack.c.bf16 %v4531_v1, %v4530_v52 }
0x1506   :  { %v11280_v8 = vpop.f32.mrf.mxu1 }
0x1507   :  { %v4536_v7 = vpack.c.bf16 %v4529_v59, %v4528_v48  ;;  %v4534_v30 = vmul.f32 %v11280_v8, %v4458_v13  ;;  %v15565_v48 = vld [vmem:[#allocation11_spill] sm:$0xff] }
0x1508   :  { %v4513_v50 = vpop.f32.mrf.mxu1  ;;  %11345 = vmatmul.mubr.msk.bf16.gmra.mxu1 %vm2032_vm7, %v15565_v48  ;;  %v13095_v48 = vld [vmem:[%s13543_s14 + $0x40] sm:$0xff]  }
0x1509   :  { %11286 = vmatprep.mubr.msk.bf16.mxu0 %vm650_vm3, %v4536_v7  ;;  %v4532_v20 = vmul.f32 %v4513_v50, %v4456_v15  ;;  %11348 = vmatprep.mubr.msk.bf16.mxu1 %vm13133_vm5, %v15554_v47 }
0x150a   :  { %v11281_v24 = vpop.f32.mrf.mxu1  ;;  %11287 = vmatmul.mubr.msk.bf16.vlgmr.msra.gmra.mxu0 %vm650_vm3, %v4537_v54  ;;  %v13086_v54 = vld [vmem:[%s13768_s21 + $0x8] sm:$0xff] }
0x150b   :  { %v4535_v16 = vmul.f32 %v11281_v24, %v4459_v46 }
0x150c   :  { %v4516_v42 = vpop.f32.mrf.mxu1 }
0x150d   :  { %v4533_v39 = vmul.f32 %v4516_v42, %v4457_v60  ;;  %v4539_v28 = vpack.c.bf16 %v4535_v16, %v4534_v30 }
0x150f   :  { %v4538_v17 = vpack.c.bf16 %v4533_v39, %v4532_v20 }
0x1510   :  { %11349 = vmatmul.mubr.msk.bf16.gmra.mxu1 %vm2032_vm7, %v15566_v45  ;;  %v13096_v45 = vld [vmem:[%s13543_s14 + $0x48] sm:$0xff]  }
0x1511   :  { %11290 = vmatprep.mubr.msk.bf16.mxu0 %vm650_vm3, %v4538_v17  ;;  %10054 = vmatprep.mubr.msk.f32.mxu1 %vm2484_vm8, %v13086_v54 }
0x1512   :  { %11291 = vmatmul.mubr.msk.bf16.gmra.mxu0 %vm650_vm3, %v4539_v28 }
0x1513   :  { %11360 = vmatprep.mubr.msk.bf16.mxu0 %vm13133_vm5, %v15554_v47 }
0x15ca   :  { %v14267_v2 = vpop.f32.mrf.mxu0 }
0x15cb   :  { %v10019_v14 = vmul.f32 -1.442695, %v14267_v2 }
0x15cc   :  { %v14269_v25 = vpop.f32.mrf.mxu0 }
0x15cd   :  { %v10017_v34 = vmul.f32 -1.442695, %v14269_v25 }
0x15ce   :  { %v14273_v3 = vpop.f32.mrf.mxu0 }
0x15cf   :  { %v10020_v40 = vmul.f32 -1.442695, %v14273_v3 }
0x15d0   :  { %v14277_v56 = vpop.f32.mrf.mxu0 }
0x15d1   :  { %v10018_v32 = vmul.f32 -1.442695, %v14277_v56 }
0x15d2   :  { %v11292_v43 = vpop.f32.mrf.mxu0 }
0x15d3   :  { %v10023_v19 = vmul.f32 -1.442695, %v11292_v43 }
0x15d4   :  { %v4614_v33 = vpop.f32.mrf.mxu0 }
0x15d5   :  { %12654 = vpow2.f32 %v10023_v19  ;;  %v10021_v49 = vmul.f32 -1.442695, %v4614_v33 }
0x15d6   :  { %v11293_v51 = vpop.f32.mrf.mxu0 }
0x15d7   :  { %12656 = vpow2.f32 %v10021_v49  ;;  %v10024_v44 = vmul.f32 -1.442695, %v11293_v51 }
0x15d8   :  { %12658 = vpow2.f32 %v10020_v40  ;;  %v4617_v12 = vpop.f32.mrf.mxu0 }
0x15d9   :  { %12660 = vpow2.f32 %v10024_v44  ;;  %v10022_v1 = vmul.f32 -1.442695, %v4617_v12  ;;  %v13093_v44 = vld [vmem:[%s13543_s14 + $0x30] sm:$0xff]  }
0x15da   :  { %12662 = vpow2.f32 %v10019_v14  ;;  %v13091_v14 = vld [vmem:[%s13543_s14 + $0x20] sm:$0xff]  }
0x15db   :  { %12664 = vpow2.f32 %v10022_v1 }
0x15dc   :  { %12666 = vpow2.f32 %v10018_v32  ;;  %v14334_v32 = vpop.f32.mrf.mxu1 }
0x15dd   :  { %12668 = vpow2.f32 %v10017_v34 }
0x15de   :  { %v11302_v1 = vpop.f32.mrf.mxu1 }
0x15e0   :  { %v14336_v34 = vpop.f32.mrf.mxu1 }
0x15e2   :  { %v12655_v59 = vpop.eup %12654 }
0x15e3   :  { %v4659_v36 = vadd.f32 1.0, %v12655_v59  ;;  %v11303_v59 = vpop.f32.mrf.mxu1 }
0x15e4   :  { %v12657_v52 = vpop.eup %12656 }
0x15e5   :  { %v12659_v8 = vpop.eup %12658  ;;  %v4657_v27 = vadd.f32 1.0, %v12657_v52  ;;  %12670 = vrcp.f32 %v4659_v36  ;;  %v14342_v36 = vpop.f32.mrf.mxu1 }
0x15e6   :  { %v12661_v7 = vpop.eup %12660  ;;  %v4656_v24 = vadd.f32 1.0, %v12659_v8 }
0x15e7   :  { %v12663_v50 = vpop.eup %12662  ;;  %v4660_v35 = vadd.f32 1.0, %v12661_v7  ;;  %v11306_v52 = vpop.f32.mrf.mxu1 }
0x15e8   :  { %v12665_v46 = vpop.eup %12664  ;;  %v4655_v13 = vadd.f32 1.0, %v12663_v50 }
0x15e9   :  { %12672 = vrcp.f32 %v4660_v35  ;;  %v4658_v60 = vadd.f32 1.0, %v12665_v46  ;;  %v12667_v15 = vpop.eup %12666  ;;  %v14344_v8 = vpop.f32.mrf.mxu1  ;;  %v13097_v35 = vld [vmem:[%s13543_s14 + $0x50] sm:$0xff]  }
0x15ea   :  { %12674 = vrcp.f32 %v4657_v27  ;;  %v12669_v16 = vpop.eup %12668  ;;  %v4654_v42 = vadd.f32 1.0, %v12667_v15 }
0x15eb   :  { %12676 = vrcp.f32 %v4658_v60  ;;  %v4653_v20 = vadd.f32 1.0, %v12669_v16  ;;  %v11307_v7 = vpop.f32.mrf.mxu1 }
0x15ec   :  { %12678 = vrcp.f32 %v4656_v24 }
0x15ed   :  { %12680 = vrcp.f32 %v4655_v13  ;;  %v14350_v27 = vpop.f32.mrf.mxu1  ;;  %v13098_v13 = vld [vmem:[%s13543_s14 + $0x58] sm:$0xff]  }
0x15ee   :  { %12682 = vrcp.f32 %v4654_v42 }
0x15ef   :  { %12684 = vrcp.f32 %v4653_v20  ;;  %v11310_v54 = vpop.f32.mrf.mxu1 }
0x15f1   :  { %v14352_v50 = vpop.f32.mrf.mxu1 }
0x15f2   :  { %v12671_v39 = vpop.eup %12670 }
0x15f3   :  { %v4683_v28 = vmul.f32 %v12671_v39, %v11292_v43  ;;  %v11311_v46 = vpop.f32.mrf.mxu1 }
0x15f5   :  { %v14358_v24 = vpop.f32.mrf.mxu1 }
0x15f6   :  { %v12673_v30 = vpop.eup %12672 }
0x15f7   :  { %v12675_v17 = vpop.eup %12674  ;;  %v4684_v37 = vmul.f32 %v12673_v30, %v11293_v51  ;;  %v13092_v51 = vld [vmem:[%s13543_s14 + $0x28] sm:$0xff]   ;;  %v11314_v60 = vpop.f32.mrf.mxu1  ;;  %v13099_v30 = vld [vmem:[%s13543_s14 + $0x60] sm:$0xff]  }
0x15f8   :  { %v12677_v0 = vpop.eup %12676  ;;  %v4681_v38 = vmul.f32 %v12675_v17, %v4614_v33 }
0x15f9   :  { %v4845_v22 = vpack.c.bf16 %v4684_v37, %v4683_v28  ;;  %v4682_v57 = vmul.f32 %v12677_v0, %v4617_v12  ;;  %v12679_v26 = vpop.eup %12678  ;;  %v13094_v12 = vld [vmem:[%s13543_s14 + $0x38] sm:$0xff]   ;;  %v14360_v15 = vpop.f32.mrf.mxu1 }
0x15fa   :  { %v12681_v29 = vpop.eup %12680  ;;  %v4680_v58 = vmul.f32 %v12679_v26, %v14273_v3 }
0x15fb   :  { %11353 = vmatpush3.bf16.msra.mxu0 %v4845_v22  ;;  %v4844_v4 = vpack.c.bf16 %v4682_v57, %v4681_v38  ;;  %v12683_v55 = vpop.eup %12682  ;;  %v4679_v19 = vmul.f32 %v12681_v29, %v14267_v2  ;;  %v13088_v2 = vld [vmem:[%s13543_s14 + $0x8] sm:$0xff]   ;;  %v11315_v16 = vpop.f32.mrf.mxu1 }
0x15fc   :  { %11354 = vmatprep.subr.bf16.mxu0 %v15554_v47  ;;  %v12685_v43 = vpop.eup %12684  ;;  %v4678_v33 = vmul.f32 %v12683_v55, %v14277_v56  ;;  %v13090_v56 = vld [vmem:[%s13543_s14 + $0x18] sm:$0xff]  }
0x15fd   :  { %v4843_v40 = vpack.c.bf16 %v4680_v58, %v4679_v19  ;;  %v4677_v49 = vmul.f32 %v12685_v43, %v14269_v25  ;;  %v13089_v25 = vld [vmem:[%s13543_s14 + $0x10] sm:$0xff]   ;;  %v14366_v42 = vpop.f32.mrf.mxu1  ;;  %s9686_s14 = sld [smem:[%s15527_s0 + %s13153_s23]]  }
0x15ff   :  { %11355 = vmatpush3.bf16.msra.mxu0 %v4844_v4  ;;  %v4842_v3 = vpack.c.bf16 %v4678_v33, %v4677_v49  ;;  %v11318_v20 = vpop.f32.mrf.mxu1 }
0x1600   :  { %11356 = vmatprep.subr.bf16.mxu0 %v15554_v47 }
0x1601   :  { %v14368_v39 = vpop.f32.mrf.mxu1 }
0x1603   :  { %11357 = vmatpush3.bf16.msra.mxu0 %v4843_v40  ;;  %v11319_v17 = vpop.f32.mrf.mxu1 }
0x1604   :  { %11358 = vmatprep.subr.bf16.mxu0 %v15554_v47 }
0x1605   :  { %v14372_v28 = vpop.f32.mrf.mxu1 }
0x1607   :  { %11359 = vmatpush3.bf16.msra.mxu0 %v4842_v3  ;;  %v11322_v37 = vpop.f32.mrf.mxu1 }
0x1609   :  { %v14374_v0 = vpop.f32.mrf.mxu1 }
0x160a   :  { %11361 = vmatmul.mubr.msk.bf16.vlgmr.msra.gmra.mxu0 %vm1251_vm4, %v13087_v53 }
0x160b   :  { %11364 = vmatprep.mubr.msk.bf16.mxu0 %vm13133_vm5, %v15554_v47  ;;  %v11323_v22 = vpop.f32.mrf.mxu1 }
0x160d   :  { %v14376_v57 = vpop.f32.mrf.mxu1 }
0x160f   :  { %v11326_v26 = vpop.f32.mrf.mxu1 }
0x1611   :  { %v14378_v38 = vpop.f32.mrf.mxu1 }
0x1612   :  { %11365 = vmatmul.mubr.msk.bf16.gmra.mxu0 %vm1251_vm4, %v13088_v2 }
0x1613   :  { %11368 = vmatprep.mubr.msk.bf16.mxu0 %vm13133_vm5, %v15554_v47  ;;  %v11327_v29 = vpop.f32.mrf.mxu1 }
0x1615   :  { %v4795_v58 = vpop.f32.mrf.mxu1 }
0x1617   :  { %v11330_v4 = vpop.f32.mrf.mxu1 }
0x1618   :  { %v12150_v4 = vld [vmem:[%s13787_s26 + $0x8] sm:$0xff]  }
0x1619   :  { %v4798_v55 = vpop.f32.mrf.mxu1  ;;  %11412 = vmatprep.subr.bf16.mxu0 %v12150_v4 }
0x161a   :  { %11369 = vmatmul.mubr.msk.bf16.gmra.mxu0 %vm1251_vm4, %v13089_v25 }
0x161b   :  { %11372 = vmatprep.mubr.msk.bf16.mxu0 %vm13133_vm5, %v15554_v47  ;;  %v11331_v19 = vpop.f32.mrf.mxu1  ;;  %11413 = vmatpush3.bf16.msra.mxu0 %v12150_v4 }
0x161d   :  { %v14380_v43 = vpop.f32.mrf.mxu1 }
0x161f   :  { %v11334_v40 = vpop.f32.mrf.mxu1 }
0x1621   :  { %v14382_v33 = vpop.f32.mrf.mxu1 }
0x1622   :  { %11373 = vmatmul.mubr.msk.bf16.gmra.mxu0 %vm1251_vm4, %v13090_v56 }
0x1623   :  { %11376 = vmatprep.mubr.msk.bf16.mxu0 %vm13133_vm5, %v15554_v47  ;;  %v11335_v49 = vpop.f32.mrf.mxu1 }
0x1625   :  { %v14384_v3 = vpop.f32.mrf.mxu1 }
0x1627   :  { %v11338_v53 = vpop.f32.mrf.mxu1 }
0x1629   :  { %v14386_v2 = vpop.f32.mrf.mxu1 }
0x162a   :  { %11377 = vmatmul.mubr.msk.bf16.gmra.mxu0 %vm1251_vm4, %v13091_v14 }
0x162b   :  { %11380 = vmatprep.mubr.msk.bf16.mxu0 %vm13133_vm5, %v15554_v47  ;;  %v11339_v25 = vpop.f32.mrf.mxu1 }
0x162d   :  { %v14388_v56 = vpop.f32.mrf.mxu1 }
0x162f   :  { %v11342_v14 = vpop.f32.mrf.mxu1 }
0x1632   :  { %11381 = vmatmul.mubr.msk.bf16.gmra.mxu0 %vm1251_vm4, %v13092_v51  ;;  %v14390_v51 = vpop.f32.mrf.mxu1 }
0x1633   :  { %11384 = vmatprep.mubr.msk.bf16.mxu0 %vm13133_vm5, %v15554_v47 }
0x163a   :  { %11385 = vmatmul.mubr.msk.bf16.gmra.mxu0 %vm1251_vm4, %v13093_v44  ;;  %v11343_v44 = vpop.f32.mrf.mxu1 }
0x163b   :  { %11388 = vmatprep.mubr.msk.bf16.mxu0 %vm13133_vm5, %v15554_v47 }
0x1642   :  { %11389 = vmatmul.mubr.msk.bf16.gmra.mxu0 %vm1251_vm4, %v13094_v12  ;;  %v14392_v12 = vpop.f32.mrf.mxu1 }
0x1643   :  { %11392 = vmatprep.mubr.msk.bf16.mxu0 %vm13133_vm5, %v15554_v47 }
0x1644   :  { %v11346_v1 = vpop.f32.mrf.mxu1 }
0x164a   :  { %11393 = vmatmul.mubr.msk.bf16.gmra.mxu0 %vm1251_vm4, %v13095_v48  ;;  %v14394_v48 = vpop.f32.mrf.mxu1 }
0x164b   :  { %11396 = vmatprep.mubr.msk.bf16.mxu0 %vm13133_vm5, %v15554_v47 }
0x164c   :  { %v11347_v59 = vpop.f32.mrf.mxu1 }
0x164e   :  { %v14396_v52 = vpop.f32.mrf.mxu1 }
0x1652   :  { %11397 = vmatmul.mubr.msk.bf16.gmra.mxu0 %vm1251_vm4, %v13096_v45  ;;  %v11350_v45 = vpop.f32.mrf.mxu1 }
0x1653   :  { %11400 = vmatprep.mubr.msk.bf16.mxu0 %vm13133_vm5, %v15554_v47 }
0x1654   :  { %v14398_v7 = vpop.f32.mrf.mxu1 }
0x1656   :  { %v11351_v54 = vpop.f32.mrf.mxu1 }
0x165a   :  { %11401 = vmatmul.mubr.msk.bf16.gmra.mxu0 %vm1251_vm4, %v13097_v35 }
0x165b   :  { %11404 = vmatprep.mubr.msk.bf16.mxu0 %vm13133_vm5, %v15554_v47 }
0x1662   :  { %11405 = vmatmul.mubr.msk.bf16.gmra.mxu0 %vm1251_vm4, %v13098_v13 }
0x1663   :  { %11408 = vmatprep.mubr.msk.bf16.mxu0 %vm13133_vm5, %v15554_v47 }
0x166a   :  { %11409 = vmatmul.mubr.msk.bf16.gmra.mxu0 %vm1251_vm4, %v13099_v30 }
0x16ca   :  { %v14400_v35 = vpop.f32.mrf.mxu0 }
0x16cc   :  { %v11362_v46 = vpop.f32.mrf.mxu0 }
0x16ce   :  { %v14402_v60 = vpop.f32.mrf.mxu0 }
0x16d0   :  { %v11363_v13 = vpop.f32.mrf.mxu0 }
0x16d2   :  { %v14404_v16 = vpop.f32.mrf.mxu0 }
0x16d4   :  { %v11366_v20 = vpop.f32.mrf.mxu0 }
0x16d6   :  { %v14406_v30 = vpop.f32.mrf.mxu0 }
0x16d8   :  { %v11367_v17 = vpop.f32.mrf.mxu0 }
0x16da   :  { %v14408_v37 = vpop.f32.mrf.mxu0 }
0x16dc   :  { %v11370_v22 = vpop.f32.mrf.mxu0 }
0x16de   :  { %v4899_v26 = vpop.f32.mrf.mxu0 }
0x16e0   :  { %v11371_v29 = vpop.f32.mrf.mxu0 }
0x16e2   :  { %v4904_v19 = vpop.f32.mrf.mxu0 }
0x16e4   :  { %v11374_v40 = vpop.f32.mrf.mxu0 }
0x16e6   :  { %v4907_v49 = vpop.f32.mrf.mxu0 }
0x16e8   :  { %v11375_v53 = vpop.f32.mrf.mxu0 }
0x16ea   :  { %v4912_v25 = vpop.f32.mrf.mxu0 }
0x16ec   :  { %v11378_v14 = vpop.f32.mrf.mxu0 }
0x16ee   :  { %v4915_v44 = vpop.f32.mrf.mxu0 }
0x16f0   :  { %v11379_v1 = vpop.f32.mrf.mxu0 }
0x16f2   :  { %v4920_v59 = vpop.f32.mrf.mxu0 }
0x16f4   :  { %v11382_v45 = vpop.f32.mrf.mxu0 }
0x16f6   :  { %v4923_v54 = vpop.f32.mrf.mxu0 }
0x16f8   :  { %v11383_v46 = vpop.f32.mrf.mxu0 }
0x16fa   :  { %v4928_v13 = vpop.f32.mrf.mxu0 }
0x16fb   :  { %v4995_v45 = vmul.f32 %v4928_v13, %v14376_v57  ;;  %v4992_v57 = vmul.f32 %v4915_v44, %v14368_v39  ;;  %v4988_v44 = vmul.f32 %v4899_v26, %v14352_v50  ;;  %v4985_v50 = vmul.f32 %v14404_v16, %v14342_v36 }
0x16fc   :  { %v11386_v20 = vpop.f32.mrf.mxu0 }
0x16fe   :  { %v4931_v17 = vpop.f32.mrf.mxu0 }
0x16ff   :  { %v4996_v14 = vmul.f32 %v4931_v17, %v14378_v38 }
0x1700   :  { %v11387_v22 = vpop.f32.mrf.mxu0 }
0x1701   :  { %v13105_v22 = vld [vmem:[%s13768_s21 + $0x38] sm:$0xff] }
0x1702   :  { %v4936_v29 = vpop.f32.mrf.mxu0 }
0x1703   :  { %v4997_v40 = vmul.f32 %v4936_v29, %v4795_v58  ;;  %v13106_v29 = vld [vmem:[%s13768_s21 + $0x30] sm:$0xff] }
0x1704   :  { %v11390_v61 = vpop.f32.mrf.mxu0 }
0x1705   :  { %v4993_v61 = vmul.f32 %v4920_v59, %v14372_v28  ;;  %v4989_v59 = vmul.f32 %v4904_v19, %v14358_v24  ;;  %v4986_v24 = vmul.f32 %v14406_v30, %v14344_v8  ;;  %v4983_v8 = vmul.f32 %v14400_v35, %v14334_v32 }
0x1706   :  { %v4939_v21 = vpop.f32.mrf.mxu0 }
0x1707   :  { %v4998_v11 = vmul.f32 %v4939_v21, %v4798_v55  ;;  %v4994_v21 = vmul.f32 %v4923_v54, %v14374_v0  ;;  %v4991_v55 = vmul.f32 %v4912_v25, %v14366_v42  ;;  %v4990_v54 = vmul.f32 %v4907_v49, %v14360_v15 }
0x1708   :  { %v11391_v4 = vpop.f32.mrf.mxu0  ;;  %v4987_v25 = vmul.f32 %v14408_v37, %v14350_v27  ;;  %v4984_v27 = vmul.f32 %v14402_v60, %v14336_v34 }
0x1709   :  { %5010 = vmatpush1.msra.mxu1 %v4998_v11  ;;  %v13107_v4 = vld [vmem:[%s13768_s21 + $0x48] sm:$0xff] }
0x170a   :  { %v14411_v53 = vpop.f32.mrf.mxu0  ;;  %5011 = vmatprep.subr.mxu1 %v15554_v47 }
0x170b   :  { %5012 = vmatpush1.msra.mxu1 %v4997_v40  ;;  %v13108_v40 = vld [vmem:[%s13768_s21 + $0x40] sm:$0xff] }
0x170c   :  { %v11394_v1 = vpop.f32.mrf.mxu0  ;;  %5013 = vmatprep.subr.mxu1 %v15554_v47 }
0x170d   :  { %5014 = vmatpush1.msra.mxu1 %v4996_v14  ;;  %v13110_v14 = vld [vmem:[%s13768_s21 + $0x50] sm:$0xff]  ;;  %v13111_v1 = vld [vmem:[%s13768_s21 + $0x68] sm:$0xff] }
0x170e   :  { %v14417_v46 = vpop.f32.mrf.mxu0  ;;  %5015 = vmatprep.subr.mxu1 %v15554_v47 }
0x170f   :  { %5016 = vmatpush1.msra.mxu1 %v4995_v45  ;;  %v13112_v45 = vld [vmem:[%s13768_s21 + $0x60] sm:$0xff] }
0x1710   :  { %v11395_v11 = vpop.f32.mrf.mxu0  ;;  %5017 = vmatprep.subr.mxu1 %v15554_v47 }
0x1711   :  { %5018 = vmatpush1.msra.mxu1 %v4994_v21  ;;  %v13114_v21 = vld [vmem:[%s13768_s21 + $0x70] sm:$0xff] }
0x1712   :  { %v14423_v38 = vpop.f32.mrf.mxu0  ;;  %5019 = vmatprep.subr.mxu1 %v15554_v47 }
0x1713   :  { %5020 = vmatpush1.msra.mxu1 %v4993_v61 }
0x1714   :  { %v11398_v58 = vpop.f32.mrf.mxu0  ;;  %5021 = vmatprep.subr.mxu1 %v15554_v47 }
0x1715   :  { %5022 = vmatpush1.msra.mxu1 %v4992_v57 }
0x1716   :  { %v4955_v0 = vpop.f32.mrf.mxu0  ;;  %5023 = vmatprep.subr.mxu1 %v15554_v47 }
0x1717   :  { %5024 = vmatpush1.msra.mxu1 %v4991_v55 }
0x1718   :  { %v11399_v28 = vpop.f32.mrf.mxu0  ;;  %5025 = vmatprep.subr.mxu1 %v15554_v47 }
0x1719   :  { %5026 = vmatpush1.msra.mxu1 %v4990_v54 }
0x171a   :  { %v4960_v39 = vpop.f32.mrf.mxu0  ;;  %5027 = vmatprep.subr.mxu1 %v15554_v47 }
0x171b   :  { %5028 = vmatpush1.msra.mxu1 %v4989_v59 }
0x171c   :  { %v11402_v42 = vpop.f32.mrf.mxu0  ;;  %5029 = vmatprep.subr.mxu1 %v15554_v47 }
0x171d   :  { %5030 = vmatpush1.msra.mxu1 %v4988_v44 }
0x171e   :  { %v4963_v15 = vpop.f32.mrf.mxu0  ;;  %5031 = vmatprep.subr.mxu1 %v15554_v47 }
0x171f   :  { %5032 = vmatpush1.msra.mxu1 %v4987_v25  ;;  %v5004_v17 = vmul.f32 %v4963_v15, %v14390_v51  ;;  %v13101_v51 = vld [vmem:[%s13768_s21 + $0x18] sm:$0xff] }
0x1720   :  { %v11403_v19 = vpop.f32.mrf.mxu0  ;;  %5033 = vmatprep.subr.mxu1 %v15554_v47 }
0x1721   :  { %5034 = vmatpush1.msra.mxu1 %v4986_v24 }
0x1722   :  { %v4968_v26 = vpop.f32.mrf.mxu0  ;;  %5035 = vmatprep.subr.mxu1 %v15554_v47 }
0x1723   :  { %5036 = vmatpush1.msra.mxu1 %v4985_v50  ;;  %v5005_v35 = vmul.f32 %v4968_v26, %v14392_v12  ;;  %v5001_v12 = vmul.f32 %v14423_v38, %v14384_v3  ;;  %v13100_v3 = vld [vmem:[%s13768_s21] sm:$0xff] }
0x1724   :  { %v11406_v37 = vpop.f32.mrf.mxu0  ;;  %5037 = vmatprep.subr.mxu1 %v15554_v47 }
0x1725   :  { %5038 = vmatpush1.msra.mxu1 %v4984_v27  ;;  %v12151_v37 = vld [vmem:[%s13886_s4 + $0x78] sm:$0xff]  }
0x1726   :  { %v4971_v30 = vpop.f32.mrf.mxu0  ;;  %5039 = vmatprep.subr.mxu1 %v15554_v47  ;;  %11422 = vmatprep.subr.bf16.mxu0 %v12151_v37 }
0x1727   :  { %5040 = vmatpush1.msra.mxu1 %v4983_v8  ;;  %v5006_v32 = vmul.f32 %v4971_v30, %v14394_v48  ;;  %v5002_v48 = vmul.f32 %v4955_v0, %v14386_v2  ;;  %v4999_v2 = vmul.f32 %v14411_v53, %v14380_v43  ;;  %v13104_v43 = vld [vmem:[%s13768_s21 + $0x20] sm:$0xff]  ;;  %v13109_v53 = vld [vmem:[%s13768_s21 + $0x58] sm:$0xff]  ;;  %v12152_v8 = vld [vmem:[%s13886_s4 + $0x70] sm:$0xff]  }
0x1728   :  { %v11407_v36 = vpop.f32.mrf.mxu0  ;;  %5053 = vmatprep.subr.mxu1 %v15554_v47 }
0x172a   :  { %v4976_v16 = vpop.f32.mrf.mxu0 }
0x172b   :  { %v5007_v20 = vmul.f32 %v4976_v16, %v14396_v52  ;;  %v5003_v52 = vmul.f32 %v4960_v39, %v14388_v56  ;;  %v5000_v56 = vmul.f32 %v14417_v46, %v14382_v33  ;;  %v13102_v33 = vld [vmem:[%s13768_s21 + $0x10] sm:$0xff]  ;;  %v13113_v46 = vld [vmem:[%s13768_s21 + $0x78] sm:$0xff] }
0x172c   :  { %v11410_v49 = vpop.f32.mrf.mxu0 }
0x172e   :  { %v4979_v13 = vpop.f32.mrf.mxu0 }
0x172f   :  { %v5008_v34 = vmul.f32 %v4979_v13, %v14398_v7  ;;  %v13103_v7 = vld [vmem:[%s13768_s21 + $0x28] sm:$0xff] }
0x1730   :  { %v11411_v60 = vpop.f32.mrf.mxu0 }
0x1731   :  { %5054 = vmatpush2.msra.mxu1 %v5008_v34 }
0x1732   :  { %5055 = vmatprep.subr.mxu1 %v15554_v47 }
0x1733   :  { %5056 = vmatpush2.msra.mxu1 %v5007_v20 }
0x1734   :  { %5057 = vmatprep.subr.mxu1 %v15554_v47 }
0x1735   :  { %5058 = vmatpush2.msra.mxu1 %v5006_v32 }
0x1736   :  { %5059 = vmatprep.subr.mxu1 %v15554_v47 }
0x1737   :  { %5060 = vmatpush2.msra.mxu1 %v5005_v35 }
0x1738   :  { %5061 = vmatprep.subr.mxu1 %v15554_v47 }
0x1739   :  { %5062 = vmatpush2.msra.mxu1 %v5004_v17 }
0x173a   :  { %5063 = vmatprep.subr.mxu1 %v15554_v47 }
0x173b   :  { %5064 = vmatpush2.msra.mxu1 %v5003_v52 }
0x173c   :  { %5065 = vmatprep.subr.mxu1 %v15554_v47 }
0x173d   :  { %5066 = vmatpush2.msra.mxu1 %v5002_v48 }
0x173e   :  { %5067 = vmatprep.subr.mxu1 %v15554_v47 }
0x173f   :  { %5068 = vmatpush2.msra.mxu1 %v5001_v12 }
0x1740   :  { %5069 = vmatprep.subr.mxu1 %v15554_v47 }
0x1741   :  { %5070 = vmatpush2.msra.mxu1 %v5000_v56 }
0x1742   :  { %5071 = vmatprep.subr.mxu1 %v15554_v47 }
0x1743   :  { %5072 = vmatpush2.msra.mxu1 %v4999_v2 }
0x1744   :  { %5074 = vmatmul.mubr.f32.vlgmr.msra.gmra.mxu1 %v13100_v3 }
0x1745   :  { %10055 = vmatprep.mubr.msk.f32.mxu1 %vm2484_vm8, %v13101_v51 }
0x1748   :  { %5079 = vmatmul.mubr.f32.gmra.mxu1 %v13102_v33 }
0x1749   :  { %10056 = vmatprep.mubr.msk.f32.mxu1 %vm2484_vm8, %v13103_v7 }
0x174c   :  { %5084 = vmatmul.mubr.f32.gmra.mxu1 %v13104_v43 }
0x174d   :  { %10057 = vmatprep.mubr.msk.f32.mxu1 %vm2484_vm8, %v13105_v22 }
0x1750   :  { %5089 = vmatmul.mubr.f32.gmra.mxu1 %v13106_v29 }
0x1751   :  { %10058 = vmatprep.mubr.msk.f32.mxu1 %vm2484_vm8, %v13107_v4 }
0x1754   :  { %5094 = vmatmul.mubr.f32.gmra.mxu1 %v13108_v40 }
0x1755   :  { %10059 = vmatprep.mubr.msk.f32.mxu1 %vm2484_vm8, %v13109_v53 }
0x1758   :  { %5099 = vmatmul.mubr.f32.gmra.mxu1 %v13110_v14 }
0x1759   :  { %10060 = vmatprep.mubr.msk.f32.mxu1 %vm2484_vm8, %v13111_v1 }
0x175c   :  { %5104 = vmatmul.mubr.f32.gmra.mxu1 %v13112_v45 }
0x175d   :  { %10061 = vmatprep.mubr.msk.f32.mxu1 %vm2484_vm8, %v13113_v46 }
0x1760   :  { %5109 = vmatmul.mubr.f32.gmra.mxu1 %v13114_v21 }
0x1804   :  { %v5075_v11 = vpop.f32.mrf.mxu1 }
0x1806   :  { %v5077_v61 = vpop.f32.mrf.mxu1 }
0x1808   :  { %v5080_v38 = vpop.f32.mrf.mxu1 }
0x1809   :  { %v5114_v57 = vpack.c.bf16 %v5080_v38, %v5075_v11 }
0x180a   :  { %v5082_v58 = vpop.f32.mrf.mxu1 }
0x180b   :  { %11414 = vmatprep.mubr.msk.bf16.mxu0 %vm439_vm2, %v5114_v57 }
0x180c   :  { %v5085_v55 = vpop.f32.mrf.mxu1 }
0x180e   :  { %v5087_v0 = vpop.f32.mrf.mxu1 }
0x1810   :  { %v5090_v54 = vpop.f32.mrf.mxu1 }
0x1811   :  { %v5115_v28 = vpack.c.bf16 %v5090_v54, %v5085_v55 }
0x1812   :  { %v5092_v59 = vpop.f32.mrf.mxu1 }
0x1813   :  { %11415 = vmatmul.mubr.msk.bf16.vlgmr.msra.gmra.mxu0 %vm439_vm2, %v5115_v28 }
0x1814   :  { %v5095_v39 = vpop.f32.mrf.mxu1  ;;  %11423 = vmatpush3.bf16.msra.mxu0 %v12151_v37 }
0x1815   :  { %11424 = vmatprep.subr.bf16.mxu0 %v12152_v8 }
0x1816   :  { %v5097_v44 = vpop.f32.mrf.mxu1 }
0x1818   :  { %v5100_v42 = vpop.f32.mrf.mxu1  ;;  %11425 = vmatpush3.bf16.msra.mxu0 %v12152_v8  ;;  %v12153_v8 = vld [vmem:[%s13886_s4 + $0x88] sm:$0xff]  }
0x1819   :  { %v5116_v25 = vpack.c.bf16 %v5100_v42, %v5095_v39  ;;  %11434 = vmatprep.subr.bf16.mxu1 %v12153_v8 }
0x181a   :  { %v5102_v15 = vpop.f32.mrf.mxu1  ;;  %11435 = vmatpush3.bf16.msra.mxu1 %v12153_v8 }
0x181b   :  { %11418 = vmatprep.mubr.msk.bf16.mxu0 %vm439_vm2, %v5116_v25 }
0x181c   :  { %v5105_v24 = vpop.f32.mrf.mxu1 }
0x181e   :  { %v5107_v19 = vpop.f32.mrf.mxu1 }
0x1820   :  { %v5110_v50 = vpop.f32.mrf.mxu1 }
0x1821   :  { %v5117_v26 = vpack.c.bf16 %v5110_v50, %v5105_v24 }
0x1822   :  { %v5112_v27 = vpop.f32.mrf.mxu1 }
0x1823   :  { %11419 = vmatmul.mubr.msk.bf16.gmra.mxu0 %vm439_vm2, %v5117_v26 }
0x18d3   :  { %v11416_v30 = vpop.f32.mrf.mxu0 }
0x18d4   :  { %v10069_v36 = vmul.f32 -1.442695, %v11416_v30 }
0x18d5   :  { %v5170_v16 = vpop.f32.mrf.mxu0 }
0x18d6   :  { %12686 = vpow2.f32 %v10069_v36  ;;  %v10067_v49 = vmul.f32 -1.442695, %v5170_v16  ;;  %v5263_v36 = vsub.s32 7, %v13391_v62 }
0x18d7   :  { %v11417_v13 = vpop.f32.mrf.mxu0 }
0x18d8   :  { %12688 = vpow2.f32 %v10067_v49  ;;  %v10070_v34 = vmul.f32 -1.442695, %v11417_v13 }
0x18d9   :  { %v5173_v60 = vpop.f32.mrf.mxu0 }
0x18da   :  { %12690 = vpow2.f32 %v10070_v34  ;;  %v10068_v20 = vmul.f32 -1.442695, %v5173_v60 }
0x18dc   :  { %12692 = vpow2.f32 %v10068_v20 }
0x18e3   :  { %v12687_v32 = vpop.eup %12686  ;;  %v11420_v35 = vpop.f32.mrf.mxu0 }
0x18e4   :  { %v5227_v17 = vadd.f32 1.0, %v12687_v32  ;;  %v10073_v52 = vmul.f32 -1.442695, %v11420_v35 }
0x18e5   :  { %v12689_v48 = vpop.eup %12688  ;;  %v5186_v12 = vpop.f32.mrf.mxu0 }
0x18e6   :  { %12694 = vrcp.f32 %v5227_v17  ;;  %v5225_v56 = vadd.f32 1.0, %v12689_v48  ;;  %v10071_v2 = vmul.f32 -1.442695, %v5186_v12 }
0x18e7   :  { %v12691_v3 = vpop.eup %12690  ;;  %12696 = vpow2.f32 %v10073_v52  ;;  %v11421_v51 = vpop.f32.mrf.mxu0 }
0x18e8   :  { %12698 = vrcp.f32 %v5225_v56  ;;  %v5228_v33 = vadd.f32 1.0, %v12691_v3  ;;  %v10074_v7 = vmul.f32 -1.442695, %v11421_v51 }
0x18e9   :  { %v12693_v43 = vpop.eup %12692  ;;  %12700 = vpow2.f32 %v10071_v2  ;;  %v5189_v22 = vpop.f32.mrf.mxu0 }
0x18ea   :  { %12702 = vrcp.f32 %v5228_v33  ;;  %v5226_v29 = vadd.f32 1.0, %v12693_v43  ;;  %v10072_v4 = vmul.f32 -1.442695, %v5189_v22 }
0x18eb   :  { %12704 = vpow2.f32 %v10074_v7 }
0x18ec   :  { %12706 = vrcp.f32 %v5226_v29 }
0x18ed   :  { %12708 = vpow2.f32 %v10072_v4 }
0x18f3   :  { %v12695_v40 = vpop.eup %12694 }
0x18f4   :  { %v12697_v53 = vpop.eup %12696  ;;  %v14508_v54 = vmul.f32 %v12695_v40, %v11416_v30  ;;  %v12154_v30 = vld [vmem:[%s13886_s4 + $0x80] sm:$0xff]  }
0x18f5   :  { %v12699_v14 = vpop.eup %12698  ;;  %v5231_v11 = vadd.f32 1.0, %v12697_v53  ;;  %11436 = vmatprep.subr.bf16.mxu1 %v12154_v30 }
0x18f6   :  { %v12701_v1 = vpop.eup %12700  ;;  %v14504_v55 = vmul.f32 %v12699_v14, %v5170_v16  ;;  %11437 = vmatpush3.bf16.msra.mxu1 %v12154_v30  ;;  %v13115_v16 = vld [vmem:[%s13923_s10] sm:$0xff] }
0x18f7   :  { %v12703_v45 = vpop.eup %12702  ;;  %v5229_v46 = vadd.f32 1.0, %v12701_v1  ;;  %v5264_v49 = vrot.slane %v13115_v16, %v5263_v36 }
0x18f8   :  { %v12705_v21 = vpop.eup %12704  ;;  %v14502_v38 = vmul.f32 %v12703_v45, %v11417_v13 }
0x18f9   :  { %v12707_v61 = vpop.eup %12706  ;;  %v5232_v57 = vadd.f32 1.0, %v12705_v21  ;;  %12710 = vrcp.f32 %v5229_v46 }
0x18fa   :  { %v12709_v58 = vpop.eup %12708  ;;  %v14506_v0 = vmul.f32 %v12707_v61, %v5173_v60  ;;  %v5258_v39 = vpack.c.bf16 %v14502_v38, %v14508_v54 }
0x18fb   :  { %12712 = vrcp.f32 %v5232_v57  ;;  %v5230_v28 = vadd.f32 1.0, %v12709_v58 }
0x18fc   :  { %v5257_v59 = vpack.c.bf16 %v14506_v0, %v14504_v55  ;;  %12714 = vrcp.f32 %v5231_v11 }
0x18fd   :  { %12716 = vrcp.f32 %v5230_v28 }
0x18fe   :  { %11426 = vmatprep.mubr.msk.bf16.mxu0 %vm650_vm3, %v5257_v59 }
0x18ff   :  { %11427 = vmatmul.mubr.msk.bf16.vlgmr.msra.gmra.mxu0 %vm650_vm3, %v5258_v39 }
0x1906   :  { %v12711_v44 = vpop.eup %12710 }
0x1907   :  { %v14518_v19 = vmul.f32 %v12711_v44, %v5186_v12 }
0x1908   :  { %v12713_v42 = vpop.eup %12712 }
0x1909   :  { %v12715_v25 = vpop.eup %12714  ;;  %v14516_v24 = vmul.f32 %v12713_v42, %v11421_v51 }
0x190a   :  { %v12717_v15 = vpop.eup %12716  ;;  %v14522_v26 = vmul.f32 %v12715_v25, %v11420_v35 }
0x190b   :  { %v14520_v50 = vmul.f32 %v12717_v15, %v5189_v22 }
0x190c   :  { %v5260_v37 = vpack.c.bf16 %v14516_v24, %v14522_v26 }
0x190d   :  { %v5259_v27 = vpack.c.bf16 %v14520_v50, %v14518_v19 }
0x190f   :  { %11430 = vmatprep.mubr.msk.bf16.mxu0 %vm650_vm3, %v5259_v27 }
0x1910   :  { %11431 = vmatmul.mubr.msk.bf16.gmra.mxu0 %vm650_vm3, %v5260_v37 }
0x19bf   :  { %v11428_v13 = vpop.f32.mrf.mxu0 }
0x19c0   :  { %v5332_v34 = vadd.f32 %v11428_v13, %v5264_v49 }
0x19c1   :  { %v5323_v60 = vpop.f32.mrf.mxu0 }
0x19c2   :  { %v10083_v20 = vmul.f32 -1.442695, %v5332_v34  ;;  %v5324_v32 = vadd.f32 %v5323_v60, %v5264_v49 }
0x19c3   :  { %v11429_v35 = vpop.f32.mrf.mxu0 }
0x19c4   :  { %12718 = vpow2.f32 %v10083_v20  ;;  %v10081_v17 = vmul.f32 -1.442695, %v5324_v32  ;;  %v5335_v52 = vadd.f32 %v11429_v35, %v5264_v49 }
0x19c5   :  { %v5326_v48 = vpop.f32.mrf.mxu0 }
0x19c6   :  { %12720 = vpow2.f32 %v10081_v17  ;;  %v10084_v12 = vmul.f32 -1.442695, %v5335_v52  ;;  %v5327_v56 = vadd.f32 %v5326_v48, %v5264_v49 }
0x19c8   :  { %12722 = vpow2.f32 %v10084_v12  ;;  %v10082_v2 = vmul.f32 -1.442695, %v5327_v56 }
0x19ca   :  { %12724 = vpow2.f32 %v10082_v2 }
0x19d0   :  { %v11432_v3 = vpop.f32.mrf.mxu0 }
0x19d1   :  { %v12719_v62 = vpop.eup %12718  ;;  %v5348_v51 = vadd.f32 %v11432_v3, %v5264_v49 }
0x19d2   :  { %v5380_v33 = vadd.f32 1.0, %v12719_v62  ;;  %v5339_v7 = vpop.f32.mrf.mxu0 }
0x19d3   :  { %v12721_v43 = vpop.eup %12720  ;;  %v10087_v22 = vmul.f32 -1.442695, %v5348_v51  ;;  %v5340_v29 = vadd.f32 %v5339_v7, %v5264_v49  ;;  %v12156_v7 = vld [vmem:[%s13886_s4 + $0x90] sm:$0xff]  }
0x19d4   :  { %12726 = vrcp.f32 %v5380_v33  ;;  %v5378_v4 = vadd.f32 1.0, %v12721_v43  ;;  %v11433_v40 = vpop.f32.mrf.mxu0  ;;  %v12155_v33 = vld [vmem:[%s13886_s4 + $0x98] sm:$0xff]   ;;  %v14541_v43 = vld [vmem:[%s13923_s10 + $0x8] sm:$0x3f]  ;;  %s13157_s10 = smov 38  }
0x19d5   :  { %v12723_v53 = vpop.eup %12722  ;;  %12728 = vpow2.f32 %v10087_v22  ;;  %v10085_v14 = vmul.f32 -1.442695, %v5340_v29  ;;  %v5351_v1 = vadd.f32 %v11433_v40, %v5264_v49  ;;  %11446 = vmatprep.subr.bf16.mxu0 %v12155_v33  ;;  %v5417_v22 = vrot.slane %v14541_v43, %v13394_v63  ;;  %s9685_s16 = sld [smem:[%s15527_s0 + %s13157_s10]]  }
0x19d6   :  { %12730 = vrcp.f32 %v5378_v4  ;;  %v5381_v45 = vadd.f32 1.0, %v12723_v53  ;;  %v5342_v46 = vpop.f32.mrf.mxu0  ;;  %11447 = vmatpush3.bf16.msra.mxu0 %v12155_v33 }
0x19d7   :  { %v12725_v21 = vpop.eup %12724  ;;  %12732 = vpow2.f32 %v10085_v14  ;;  %v10088_v11 = vmul.f32 -1.442695, %v5351_v1  ;;  %v5343_v61 = vadd.f32 %v5342_v46, %v5264_v49  ;;  %11448 = vmatprep.subr.bf16.mxu0 %v12156_v7 }
0x19d8   :  { %12734 = vrcp.f32 %v5381_v45  ;;  %v5379_v57 = vadd.f32 1.0, %v12725_v21 }
0x19d9   :  { %12736 = vpow2.f32 %v10088_v11  ;;  %v10086_v58 = vmul.f32 -1.442695, %v5343_v61 }
0x19da   :  { %12738 = vrcp.f32 %v5379_v57  ;;  %11449 = vmatpush3.bf16.msra.mxu0 %v12156_v7 }
0x19db   :  { %12740 = vpow2.f32 %v10086_v58 }
0x19e1   :  { %v12727_v28 = vpop.eup %12726 }
0x19e2   :  { %v12729_v59 = vpop.eup %12728  ;;  %v5404_v13 = vmul.f32 %v12727_v28, %v5332_v34 }
0x19e3   :  { %v12731_v39 = vpop.eup %12730  ;;  %v5384_v27 = vadd.f32 1.0, %v12729_v59 }
0x19e4   :  { %v12733_v44 = vpop.eup %12732  ;;  %v5402_v16 = vmul.f32 %v12731_v39, %v5324_v32 }
0x19e5   :  { %v12735_v42 = vpop.eup %12734  ;;  %v5382_v25 = vadd.f32 1.0, %v12733_v44 }
0x19e6   :  { %v12737_v15 = vpop.eup %12736  ;;  %v5405_v8 = vmul.f32 %v12735_v42, %v5335_v52 }
0x19e7   :  { %v12739_v37 = vpop.eup %12738  ;;  %v5385_v30 = vadd.f32 1.0, %v12737_v15  ;;  %12742 = vrcp.f32 %v5382_v25 }
0x19e8   :  { %v12741_v36 = vpop.eup %12740  ;;  %v5403_v49 = vmul.f32 %v12739_v37, %v5327_v56  ;;  %v5411_v35 = vpack.c.bf16 %v5405_v8, %v5404_v13 }
0x19e9   :  { %12744 = vrcp.f32 %v5385_v30  ;;  %v5383_v60 = vadd.f32 1.0, %v12741_v36 }
0x19ea   :  { %v5410_v20 = vpack.c.bf16 %v5403_v49, %v5402_v16  ;;  %12746 = vrcp.f32 %v5384_v27 }
0x19eb   :  { %12748 = vrcp.f32 %v5383_v60 }
0x19ec   :  { %11438 = vmatprep.mubr.msk.bf16.mxu1 %vm650_vm3, %v5410_v20 }
0x19ed   :  { %11439 = vmatmul.mubr.msk.bf16.vlgmr.msra.gmra.mxu1 %vm650_vm3, %v5411_v35 }
0x19f4   :  { %v12743_v17 = vpop.eup %12742 }
0x19f5   :  { %v5406_v56 = vmul.f32 %v12743_v17, %v5340_v29 }
0x19f6   :  { %v12745_v52 = vpop.eup %12744 }
0x19f7   :  { %v12747_v48 = vpop.eup %12746  ;;  %v5409_v12 = vmul.f32 %v12745_v52, %v5351_v1 }
0x19f8   :  { %v12749_v32 = vpop.eup %12748  ;;  %v5408_v2 = vmul.f32 %v12747_v48, %v5348_v51 }
0x19f9   :  { %v5407_v34 = vmul.f32 %v12749_v32, %v5343_v61 }
0x19fa   :  { %v5413_v62 = vpack.c.bf16 %v5409_v12, %v5408_v2 }
0x19fb   :  { %v5412_v3 = vpack.c.bf16 %v5407_v34, %v5406_v56 }
0x19fd   :  { %11442 = vmatprep.mubr.msk.bf16.mxu1 %vm650_vm3, %v5412_v3 }
0x19fe   :  { %11443 = vmatmul.mubr.msk.bf16.gmra.mxu1 %vm650_vm3, %v5413_v62 }
0x1aad   :  { %v11440_v29 = vpop.f32.mrf.mxu1 }
0x1aae   :  { %v5485_v4 = vadd.f32 %v11440_v29, %v5417_v22 }
0x1aaf   :  { %v5476_v51 = vpop.f32.mrf.mxu1 }
0x1ab0   :  { %v10097_v40 = vmul.f32 -1.442695, %v5485_v4  ;;  %v5477_v53 = vadd.f32 %v5476_v51, %v5417_v22 }
0x1ab1   :  { %v11441_v14 = vpop.f32.mrf.mxu1 }
0x1ab2   :  { %12750 = vpow2.f32 %v10097_v40  ;;  %v10095_v1 = vmul.f32 -1.442695, %v5477_v53  ;;  %v5488_v45 = vadd.f32 %v11441_v14, %v5417_v22 }
0x1ab3   :  { %v5479_v46 = vpop.f32.mrf.mxu1 }
0x1ab4   :  { %12752 = vpow2.f32 %v10095_v1  ;;  %v10098_v21 = vmul.f32 -1.442695, %v5488_v45  ;;  %v5480_v11 = vadd.f32 %v5479_v46, %v5417_v22 }
0x1ab6   :  { %12754 = vpow2.f32 %v10098_v21  ;;  %v10096_v61 = vmul.f32 -1.442695, %v5480_v11 }
0x1ab8   :  { %12756 = vpow2.f32 %v10096_v61 }
0x1abe   :  { %v11444_v57 = vpop.f32.mrf.mxu1 }
0x1abf   :  { %v12751_v58 = vpop.eup %12750  ;;  %v5501_v28 = vadd.f32 %v11444_v57, %v5417_v22 }
0x1ac0   :  { %v5533_v59 = vadd.f32 1.0, %v12751_v58  ;;  %v5492_v39 = vpop.f32.mrf.mxu1 }
0x1ac1   :  { %v12753_v44 = vpop.eup %12752  ;;  %v10101_v42 = vmul.f32 -1.442695, %v5501_v28  ;;  %v5493_v25 = vadd.f32 %v5492_v39, %v5417_v22 }
0x1ac2   :  { %12758 = vrcp.f32 %v5533_v59  ;;  %v5531_v15 = vadd.f32 1.0, %v12753_v44  ;;  %v11445_v27 = vpop.f32.mrf.mxu1 }
0x1ac3   :  { %v12755_v37 = vpop.eup %12754  ;;  %12760 = vpow2.f32 %v10101_v42  ;;  %v10099_v8 = vmul.f32 -1.442695, %v5493_v25  ;;  %v5504_v30 = vadd.f32 %v11445_v27, %v5417_v22  ;;  %v12158_v27 = vld [vmem:[%s13886_s4 + $0xa0] sm:$0xff]  }
0x1ac4   :  { %12762 = vrcp.f32 %v5531_v15  ;;  %v5534_v36 = vadd.f32 1.0, %v12755_v37  ;;  %v5495_v16 = vpop.f32.mrf.mxu1 }
0x1ac5   :  { %v12757_v49 = vpop.eup %12756  ;;  %12764 = vpow2.f32 %v10099_v8  ;;  %v10102_v13 = vmul.f32 -1.442695, %v5504_v30  ;;  %v5496_v60 = vadd.f32 %v5495_v16, %v5417_v22 }
0x1ac6   :  { %12766 = vrcp.f32 %v5534_v36  ;;  %v5532_v20 = vadd.f32 1.0, %v12757_v49 }
0x1ac7   :  { %12768 = vpow2.f32 %v10102_v13  ;;  %v10100_v35 = vmul.f32 -1.442695, %v5496_v60 }
0x1ac8   :  { %12770 = vrcp.f32 %v5532_v20 }
0x1ac9   :  { %12772 = vpow2.f32 %v10100_v35 }
0x1acf   :  { %v12759_v17 = vpop.eup %12758 }
0x1ad0   :  { %v12761_v52 = vpop.eup %12760  ;;  %v5557_v7 = vmul.f32 %v12759_v17, %v5485_v4 }
0x1ad1   :  { %v12763_v48 = vpop.eup %12762  ;;  %v5537_v12 = vadd.f32 1.0, %v12761_v52 }
0x1ad2   :  { %v12765_v32 = vpop.eup %12764  ;;  %v5555_v3 = vmul.f32 %v12763_v48, %v5477_v53  ;;  %v5565_v21 = vadd.f32 %v5557_v7, %v14508_v54 }
0x1ad3   :  { %v12767_v56 = vpop.eup %12766  ;;  %v5535_v34 = vadd.f32 1.0, %v12765_v32 }
0x1ad4   :  { %v12769_v2 = vpop.eup %12768  ;;  %v5558_v62 = vmul.f32 %v12767_v56, %v5488_v45  ;;  %v5563_v1 = vadd.f32 %v5555_v3, %v14504_v55 }
0x1ad5   :  { %v12771_v33 = vpop.eup %12770  ;;  %12774 = vrcp.f32 %v5535_v34  ;;  %v5538_v22 = vadd.f32 1.0, %v12769_v2 }
0x1ad6   :  { %v12773_v29 = vpop.eup %12772  ;;  %v5556_v51 = vmul.f32 %v12771_v33, %v5480_v11  ;;  %12776 = vrcp.f32 %v5537_v12  ;;  %v5566_v40 = vadd.f32 %v5558_v62, %v14502_v38 }
0x1ad7   :  { %12778 = vrcp.f32 %v5538_v22  ;;  %v5536_v14 = vadd.f32 1.0, %v12773_v29 }
0x1ad8   :  { %v5564_v46 = vadd.f32 %v5556_v51, %v14506_v0  ;;  %v5572_v45 = vpack.c.bf16 %v5566_v40, %v5565_v21 }
0x1ad9   :  { %12780 = vrcp.f32 %v5536_v14 }
0x1ada   :  { %v5571_v53 = vpack.c.bf16 %v5564_v46, %v5563_v1 }
0x1adc   :  { %11450 = vmatprep.mubr.msk.bf16.mxu0 %vm650_vm3, %v5571_v53 }
0x1add   :  { %11451 = vmatmul.mubr.msk.bf16.vlgmr.msra.gmra.mxu0 %vm650_vm3, %v5572_v45 }
0x1ae2   :  { %v12775_v4 = vpop.eup %12774 }
0x1ae3   :  { %v12777_v11 = vpop.eup %12776  ;;  %v5559_v38 = vmul.f32 %v12775_v4, %v5493_v25  ;;  %v12157_v25 = vld [vmem:[%s13886_s4 + $0xa8] sm:$0xff]  }
0x1ae4   :  { %v12779_v61 = vpop.eup %12778  ;;  %v5561_v55 = vmul.f32 %v12777_v11, %v5501_v28  ;;  %11458 = vmatprep.subr.bf16.mxu1 %v12157_v25 }
0x1ae5   :  { %v5562_v57 = vmul.f32 %v12779_v61, %v5504_v30  ;;  %v5567_v54 = vadd.f32 %v5559_v38, %v14518_v19  ;;  %11459 = vmatpush3.bf16.msra.mxu1 %v12157_v25 }
0x1ae6   :  { %v12781_v58 = vpop.eup %12780  ;;  %v5569_v44 = vadd.f32 %v5561_v55, %v14522_v26  ;;  %11460 = vmatprep.subr.bf16.mxu1 %v12158_v27 }
0x1ae7   :  { %v5560_v59 = vmul.f32 %v12781_v58, %v5496_v60  ;;  %v5570_v0 = vadd.f32 %v5562_v57, %v14516_v24  ;;  %v5578_v24 = vrot.slane %v14541_v43, %v13459_v31 }
0x1ae9   :  { %v5568_v39 = vadd.f32 %v5560_v59, %v14520_v50  ;;  %v5574_v15 = vpack.c.bf16 %v5570_v0, %v5569_v44  ;;  %11461 = vmatpush3.bf16.msra.mxu1 %v12158_v27 }
0x1aeb   :  { %v5573_v42 = vpack.c.bf16 %v5568_v39, %v5567_v54 }
0x1aed   :  { %11454 = vmatprep.mubr.msk.bf16.mxu0 %vm650_vm3, %v5573_v42 }
0x1aee   :  { %11455 = vmatmul.mubr.msk.bf16.gmra.mxu0 %vm650_vm3, %v5574_v15 }
0x1b9d   :  { %v11452_v19 = vpop.f32.mrf.mxu0 }
0x1b9e   :  { %v5646_v28 = vadd.f32 %v11452_v19, %v5578_v24 }
0x1b9f   :  { %v5637_v50 = vpop.f32.mrf.mxu0 }
0x1ba0   :  { %v10111_v37 = vmul.f32 -1.442695, %v5646_v28  ;;  %v5638_v26 = vadd.f32 %v5637_v50, %v5578_v24 }
0x1ba1   :  { %v11453_v8 = vpop.f32.mrf.mxu0 }
0x1ba2   :  { %12782 = vpow2.f32 %v10111_v37  ;;  %v10109_v30 = vmul.f32 -1.442695, %v5638_v26  ;;  %v5649_v36 = vadd.f32 %v11453_v8, %v5578_v24 }
0x1ba3   :  { %v5640_v16 = vpop.f32.mrf.mxu0 }
0x1ba4   :  { %12784 = vpow2.f32 %v10109_v30  ;;  %v10112_v49 = vmul.f32 -1.442695, %v5649_v36  ;;  %v5641_v13 = vadd.f32 %v5640_v16, %v5578_v24  ;;  %v12160_v16 = vld [vmem:[%s13886_s4 + $0xb0] sm:$0xff]  }
0x1ba6   :  { %12786 = vpow2.f32 %v10112_v49  ;;  %v10110_v60 = vmul.f32 -1.442695, %v5641_v13  ;;  %v5731_v49 = vrot.slane %v14541_v43, %v13953_v6 }
0x1ba8   :  { %12788 = vpow2.f32 %v10110_v60 }
0x1bae   :  { %v11456_v20 = vpop.f32.mrf.mxu0 }
0x1baf   :  { %v12783_v35 = vpop.eup %12782  ;;  %v5662_v17 = vadd.f32 %v11456_v20, %v5578_v24 }
0x1bb0   :  { %v5694_v52 = vadd.f32 1.0, %v12783_v35  ;;  %v5653_v48 = vpop.f32.mrf.mxu0 }
0x1bb1   :  { %v12785_v32 = vpop.eup %12784  ;;  %v10115_v12 = vmul.f32 -1.442695, %v5662_v17  ;;  %v5654_v56 = vadd.f32 %v5653_v48, %v5578_v24 }
0x1bb2   :  { %12790 = vrcp.f32 %v5694_v52  ;;  %v5692_v34 = vadd.f32 1.0, %v12785_v32  ;;  %v11457_v2 = vpop.f32.mrf.mxu0 }
0x1bb3   :  { %v12787_v3 = vpop.eup %12786  ;;  %12792 = vpow2.f32 %v10115_v12  ;;  %v10113_v62 = vmul.f32 -1.442695, %v5654_v56  ;;  %v5665_v33 = vadd.f32 %v11457_v2, %v5578_v24 }
0x1bb4   :  { %12794 = vrcp.f32 %v5692_v34  ;;  %v5695_v7 = vadd.f32 1.0, %v12787_v3  ;;  %v5656_v22 = vpop.f32.mrf.mxu0 }
0x1bb5   :  { %v12789_v29 = vpop.eup %12788  ;;  %12796 = vpow2.f32 %v10113_v62  ;;  %v10116_v51 = vmul.f32 -1.442695, %v5665_v33  ;;  %v5657_v40 = vadd.f32 %v5656_v22, %v5578_v24 }
0x1bb6   :  { %12798 = vrcp.f32 %v5695_v7  ;;  %v5693_v14 = vadd.f32 1.0, %v12789_v29 }
0x1bb7   :  { %12800 = vpow2.f32 %v10116_v51  ;;  %v10114_v1 = vmul.f32 -1.442695, %v5657_v40 }
0x1bb8   :  { %12802 = vrcp.f32 %v5693_v14 }
0x1bb9   :  { %12804 = vpow2.f32 %v10114_v1 }
0x1bbf   :  { %v12791_v46 = vpop.eup %12790 }
0x1bc0   :  { %v12793_v21 = vpop.eup %12792  ;;  %v14567_v39 = vmul.f32 %v12791_v46, %v5646_v28 }
0x1bc1   :  { %v12795_v53 = vpop.eup %12794  ;;  %v5698_v38 = vadd.f32 1.0, %v12793_v21 }
0x1bc2   :  { %v12797_v45 = vpop.eup %12796  ;;  %v14563_v0 = vmul.f32 %v12795_v53, %v5638_v26 }
0x1bc3   :  { %v12799_v4 = vpop.eup %12798  ;;  %v5696_v11 = vadd.f32 1.0, %v12797_v45 }
0x1bc4   :  { %v12801_v61 = vpop.eup %12800  ;;  %v14561_v58 = vmul.f32 %v12799_v4, %v5649_v36  ;;  %v12159_v36 = vld [vmem:[%s13886_s4 + $0xb8] sm:$0xff]  }
0x1bc5   :  { %v12803_v57 = vpop.eup %12802  ;;  %v5699_v55 = vadd.f32 1.0, %v12801_v61  ;;  %12806 = vrcp.f32 %v5696_v11  ;;  %11470 = vmatprep.subr.bf16.mxu0 %v12159_v36 }
0x1bc6   :  { %v12805_v59 = vpop.eup %12804  ;;  %v14565_v54 = vmul.f32 %v12803_v57, %v5641_v13  ;;  %v5725_v15 = vpack.c.bf16 %v14561_v58, %v14567_v39  ;;  %11471 = vmatpush3.bf16.msra.mxu0 %v12159_v36 }
0x1bc7   :  { %12808 = vrcp.f32 %v5699_v55  ;;  %v5697_v44 = vadd.f32 1.0, %v12805_v59  ;;  %11472 = vmatprep.subr.bf16.mxu0 %v12160_v16 }
0x1bc8   :  { %v5724_v42 = vpack.c.bf16 %v14565_v54, %v14563_v0  ;;  %12810 = vrcp.f32 %v5698_v38 }
0x1bc9   :  { %12812 = vrcp.f32 %v5697_v44 }
0x1bca   :  { %11462 = vmatprep.mubr.msk.bf16.mxu1 %vm650_vm3, %v5724_v42  ;;  %11473 = vmatpush3.bf16.msra.mxu0 %v12160_v16 }
0x1bcb   :  { %11463 = vmatmul.mubr.msk.bf16.vlgmr.msra.gmra.mxu1 %vm650_vm3, %v5725_v15 }
0x1bd2   :  { %v12807_v25 = vpop.eup %12806 }
0x1bd3   :  { %v14577_v50 = vmul.f32 %v12807_v25, %v5654_v56 }
0x1bd4   :  { %v12809_v27 = vpop.eup %12808 }
0x1bd5   :  { %v12811_v24 = vpop.eup %12810  ;;  %v14575_v28 = vmul.f32 %v12809_v27, %v5665_v33 }
0x1bd6   :  { %v12813_v19 = vpop.eup %12812  ;;  %v14581_v26 = vmul.f32 %v12811_v24, %v5662_v17 }
0x1bd7   :  { %v14579_v37 = vmul.f32 %v12813_v19, %v5657_v40 }
0x1bd8   :  { %v5727_v30 = vpack.c.bf16 %v14575_v28, %v14581_v26 }
0x1bd9   :  { %v5726_v8 = vpack.c.bf16 %v14579_v37, %v14577_v50 }
0x1bdb   :  { %11466 = vmatprep.mubr.msk.bf16.mxu1 %vm650_vm3, %v5726_v8 }
0x1bdc   :  { %11467 = vmatmul.mubr.msk.bf16.gmra.mxu1 %vm650_vm3, %v5727_v30 }
0x1c8b   :  { %v11464_v13 = vpop.f32.mrf.mxu1 }
0x1c8c   :  { %v5799_v60 = vadd.f32 %v11464_v13, %v5731_v49 }
0x1c8d   :  { %v5790_v20 = vpop.f32.mrf.mxu1 }
0x1c8e   :  { %v10125_v35 = vmul.f32 -1.442695, %v5799_v60  ;;  %v5791_v17 = vadd.f32 %v5790_v20, %v5731_v49 }
0x1c8f   :  { %v11465_v52 = vpop.f32.mrf.mxu1 }
0x1c90   :  { %12814 = vpow2.f32 %v10125_v35  ;;  %v10123_v48 = vmul.f32 -1.442695, %v5791_v17  ;;  %v5802_v32 = vadd.f32 %v11465_v52, %v5731_v49 }
0x1c91   :  { %v5793_v12 = vpop.f32.mrf.mxu1 }
0x1c92   :  { %12816 = vpow2.f32 %v10123_v48  ;;  %v10126_v56 = vmul.f32 -1.442695, %v5802_v32  ;;  %v5794_v34 = vadd.f32 %v5793_v12, %v5731_v49 }
0x1c94   :  { %12818 = vpow2.f32 %v10126_v56  ;;  %v10124_v2 = vmul.f32 -1.442695, %v5794_v34 }
0x1c96   :  { %12820 = vpow2.f32 %v10124_v2 }
0x1c9c   :  { %v11468_v3 = vpop.f32.mrf.mxu1 }
0x1c9d   :  { %v12815_v62 = vpop.eup %12814  ;;  %v5815_v33 = vadd.f32 %v11468_v3, %v5731_v49 }
0x1c9e   :  { %v5847_v7 = vadd.f32 1.0, %v12815_v62  ;;  %v5806_v22 = vpop.f32.mrf.mxu1 }
0x1c9f   :  { %v12817_v29 = vpop.eup %12816  ;;  %v10129_v51 = vmul.f32 -1.442695, %v5815_v33  ;;  %v5807_v40 = vadd.f32 %v5806_v22, %v5731_v49  ;;  %v12161_v22 = vld [vmem:[%s13886_s4 + $0xc8] sm:$0xff]  }
0x1ca0   :  { %12822 = vrcp.f32 %v5847_v7  ;;  %v5845_v14 = vadd.f32 1.0, %v12817_v29  ;;  %v11469_v1 = vpop.f32.mrf.mxu1  ;;  %11482 = vmatprep.subr.bf16.mxu1 %v12161_v22  ;;  %v12162_v29 = vld [vmem:[%s13886_s4 + $0xc0] sm:$0xff]  }
0x1ca1   :  { %v12819_v46 = vpop.eup %12818  ;;  %12824 = vpow2.f32 %v10129_v51  ;;  %v10127_v21 = vmul.f32 -1.442695, %v5807_v40  ;;  %v5818_v53 = vadd.f32 %v11469_v1, %v5731_v49  ;;  %11483 = vmatpush3.bf16.msra.mxu1 %v12161_v22  ;;  %v5884_v51 = vrot.slane %v14541_v43, %v13988_v23 }
0x1ca2   :  { %12826 = vrcp.f32 %v5845_v14  ;;  %v5848_v45 = vadd.f32 1.0, %v12819_v46  ;;  %v5809_v4 = vpop.f32.mrf.mxu1  ;;  %11484 = vmatprep.subr.bf16.mxu1 %v12162_v29 }
0x1ca3   :  { %v12821_v11 = vpop.eup %12820  ;;  %12828 = vpow2.f32 %v10127_v21  ;;  %v10130_v61 = vmul.f32 -1.442695, %v5818_v53  ;;  %v5810_v38 = vadd.f32 %v5809_v4, %v5731_v49 }
0x1ca4   :  { %12830 = vrcp.f32 %v5848_v45  ;;  %v5846_v57 = vadd.f32 1.0, %v12821_v11 }
0x1ca5   :  { %12832 = vpow2.f32 %v10130_v61  ;;  %v10128_v55 = vmul.f32 -1.442695, %v5810_v38  ;;  %11485 = vmatpush3.bf16.msra.mxu1 %v12162_v29 }
0x1ca6   :  { %12834 = vrcp.f32 %v5846_v57 }
0x1ca7   :  { %12836 = vpow2.f32 %v10128_v55 }
0x1cad   :  { %v12823_v59 = vpop.eup %12822 }
0x1cae   :  { %v12825_v44 = vpop.eup %12824  ;;  %v5871_v20 = vmul.f32 %v12823_v59, %v5799_v60 }
0x1caf   :  { %v12827_v42 = vpop.eup %12826  ;;  %v5851_v19 = vadd.f32 1.0, %v12825_v44 }
0x1cb0   :  { %v12829_v15 = vpop.eup %12828  ;;  %v5869_v13 = vmul.f32 %v12827_v42, %v5791_v17 }
0x1cb1   :  { %v12831_v25 = vpop.eup %12830  ;;  %v5849_v27 = vadd.f32 1.0, %v12829_v15 }
0x1cb2   :  { %v12833_v24 = vpop.eup %12832  ;;  %v5872_v30 = vmul.f32 %v12831_v25, %v5802_v32 }
0x1cb3   :  { %v12835_v8 = vpop.eup %12834  ;;  %v5852_v36 = vadd.f32 1.0, %v12833_v24  ;;  %12838 = vrcp.f32 %v5849_v27 }
0x1cb4   :  { %v12837_v16 = vpop.eup %12836  ;;  %v5870_v49 = vmul.f32 %v12835_v8, %v5794_v34  ;;  %v5878_v48 = vpack.c.bf16 %v5872_v30, %v5871_v20 }
0x1cb5   :  { %12840 = vrcp.f32 %v5852_v36  ;;  %v5850_v35 = vadd.f32 1.0, %v12837_v16 }
0x1cb6   :  { %v5877_v52 = vpack.c.bf16 %v5870_v49, %v5869_v13  ;;  %12842 = vrcp.f32 %v5851_v19 }
0x1cb7   :  { %12844 = vrcp.f32 %v5850_v35 }
0x1cb8   :  { %11474 = vmatprep.mubr.msk.bf16.mxu0 %vm650_vm3, %v5877_v52 }
0x1cb9   :  { %11475 = vmatmul.mubr.msk.bf16.vlgmr.msra.gmra.mxu0 %vm650_vm3, %v5878_v48 }
0x1cc0   :  { %v12839_v12 = vpop.eup %12838 }
0x1cc1   :  { %v5873_v34 = vmul.f32 %v12839_v12, %v5807_v40 }
0x1cc2   :  { %v12841_v32 = vpop.eup %12840 }
0x1cc3   :  { %v12843_v56 = vpop.eup %12842  ;;  %v5876_v17 = vmul.f32 %v12841_v32, %v5818_v53 }
0x1cc4   :  { %v12845_v2 = vpop.eup %12844  ;;  %v5875_v60 = vmul.f32 %v12843_v56, %v5815_v33 }
0x1cc5   :  { %v5874_v3 = vmul.f32 %v12845_v2, %v5810_v38 }
0x1cc6   :  { %v5880_v7 = vpack.c.bf16 %v5876_v17, %v5875_v60 }
0x1cc7   :  { %v5879_v62 = vpack.c.bf16 %v5874_v3, %v5873_v34 }
0x1cc9   :  { %11478 = vmatprep.mubr.msk.bf16.mxu0 %vm650_vm3, %v5879_v62 }
0x1cca   :  { %11479 = vmatmul.mubr.msk.bf16.gmra.mxu0 %vm650_vm3, %v5880_v7 }
0x1d79   :  { %v11476_v14 = vpop.f32.mrf.mxu0 }
0x1d7a   :  { %v5952_v1 = vadd.f32 %v11476_v14, %v5884_v51 }
0x1d7b   :  { %v5943_v40 = vpop.f32.mrf.mxu0 }
0x1d7c   :  { %v10139_v46 = vmul.f32 -1.442695, %v5952_v1  ;;  %v5944_v33 = vadd.f32 %v5943_v40, %v5884_v51 }
0x1d7d   :  { %v11477_v21 = vpop.f32.mrf.mxu0 }
0x1d7e   :  { %12846 = vpow2.f32 %v10139_v46  ;;  %v10137_v53 = vmul.f32 -1.442695, %v5944_v33  ;;  %v5955_v45 = vadd.f32 %v11477_v21, %v5884_v51 }
0x1d7f   :  { %v5946_v4 = vpop.f32.mrf.mxu0 }
0x1d80   :  { %12848 = vpow2.f32 %v10137_v53  ;;  %v10140_v11 = vmul.f32 -1.442695, %v5955_v45  ;;  %v5947_v61 = vadd.f32 %v5946_v4, %v5884_v51 }
0x1d82   :  { %12850 = vpow2.f32 %v10140_v11  ;;  %v10138_v38 = vmul.f32 -1.442695, %v5947_v61 }
0x1d84   :  { %12852 = vpow2.f32 %v10138_v38 }
0x1d8a   :  { %v11480_v57 = vpop.f32.mrf.mxu0 }
0x1d8b   :  { %v12847_v55 = vpop.eup %12846  ;;  %v5968_v59 = vadd.f32 %v11480_v57, %v5884_v51 }
0x1d8c   :  { %v6000_v44 = vadd.f32 1.0, %v12847_v55  ;;  %v5959_v42 = vpop.f32.mrf.mxu0 }
0x1d8d   :  { %v12849_v15 = vpop.eup %12848  ;;  %v10143_v25 = vmul.f32 -1.442695, %v5968_v59  ;;  %v5960_v27 = vadd.f32 %v5959_v42, %v5884_v51 }
0x1d8e   :  { %12854 = vrcp.f32 %v6000_v44  ;;  %v5998_v24 = vadd.f32 1.0, %v12849_v15  ;;  %v11481_v19 = vpop.f32.mrf.mxu0 }
0x1d8f   :  { %v12851_v8 = vpop.eup %12850  ;;  %12856 = vpow2.f32 %v10143_v25  ;;  %v10141_v30 = vmul.f32 -1.442695, %v5960_v27  ;;  %v5971_v36 = vadd.f32 %v11481_v19, %v5884_v51 }
0x1d90   :  { %12858 = vrcp.f32 %v5998_v24  ;;  %v6001_v16 = vadd.f32 1.0, %v12851_v8  ;;  %v5962_v13 = vpop.f32.mrf.mxu0 }
0x1d91   :  { %v12853_v49 = vpop.eup %12852  ;;  %12860 = vpow2.f32 %v10141_v30  ;;  %v10144_v20 = vmul.f32 -1.442695, %v5971_v36  ;;  %v5963_v35 = vadd.f32 %v5962_v13, %v5884_v51 }
0x1d92   :  { %12862 = vrcp.f32 %v6001_v16  ;;  %v5999_v52 = vadd.f32 1.0, %v12853_v49 }
0x1d93   :  { %12864 = vpow2.f32 %v10144_v20  ;;  %v10142_v48 = vmul.f32 -1.442695, %v5963_v35 }
0x1d94   :  { %12866 = vrcp.f32 %v5999_v52 }
0x1d95   :  { %12868 = vpow2.f32 %v10142_v48 }
0x1d9b   :  { %v12855_v12 = vpop.eup %12854 }
0x1d9c   :  { %v12857_v32 = vpop.eup %12856  ;;  %v6024_v29 = vmul.f32 %v12855_v12, %v5952_v1 }
0x1d9d   :  { %v12859_v56 = vpop.eup %12858  ;;  %v6004_v17 = vadd.f32 1.0, %v12857_v32 }
0x1d9e   :  { %v12861_v2 = vpop.eup %12860  ;;  %v6022_v62 = vmul.f32 %v12859_v56, %v5944_v33  ;;  %v14611_v33 = vadd.f32 %v6024_v29, %v14567_v39 }
0x1d9f   :  { %v12863_v34 = vpop.eup %12862  ;;  %v6002_v3 = vadd.f32 1.0, %v12861_v2 }
0x1da0   :  { %v12865_v60 = vpop.eup %12864  ;;  %v6025_v7 = vmul.f32 %v12863_v34, %v5955_v45  ;;  %v14605_v53 = vadd.f32 %v6022_v62, %v14563_v0 }
0x1da1   :  { %v12867_v22 = vpop.eup %12866  ;;  %12870 = vrcp.f32 %v6002_v3  ;;  %v6005_v51 = vadd.f32 1.0, %v12865_v60 }
0x1da2   :  { %v12869_v14 = vpop.eup %12868  ;;  %v6023_v40 = vmul.f32 %v12867_v22, %v5947_v61  ;;  %12872 = vrcp.f32 %v6004_v17  ;;  %v14602_v46 = vadd.f32 %v6025_v7, %v14561_v58 }
0x1da3   :  { %12874 = vrcp.f32 %v6005_v51  ;;  %v6003_v21 = vadd.f32 1.0, %v12869_v14 }
0x1da4   :  { %v14608_v4 = vadd.f32 %v6023_v40, %v14565_v54  ;;  %v6039_v45 = vpack.c.bf16 %v14602_v46, %v14611_v33 }
0x1da5   :  { %12876 = vrcp.f32 %v6003_v21 }
0x1da6   :  { %v6038_v1 = vpack.c.bf16 %v14608_v4, %v14605_v53 }
0x1da8   :  { %11486 = vmatprep.mubr.msk.bf16.mxu1 %vm650_vm3, %v6038_v1 }
0x1da9   :  { %11487 = vmatmul.mubr.msk.bf16.vlgmr.msra.gmra.mxu1 %vm650_vm3, %v6039_v45 }
0x1dae   :  { %v12871_v58 = vpop.eup %12870 }
0x1daf   :  { %v12873_v0 = vpop.eup %12872  ;;  %v6026_v54 = vmul.f32 %v12871_v58, %v5960_v27 }
0x1db0   :  { %v12875_v11 = vpop.eup %12874  ;;  %v6028_v38 = vmul.f32 %v12873_v0, %v5968_v59 }
0x1db1   :  { %v6029_v61 = vmul.f32 %v12875_v11, %v5971_v36  ;;  %v14623_v44 = vadd.f32 %v6026_v54, %v14577_v50  ;;  %v12164_v50 = vld [vmem:[%s13886_s4 + $0xd0] sm:$0xff]  }
0x1db2   :  { %v12877_v39 = vpop.eup %12876  ;;  %v14629_v15 = vadd.f32 %v6028_v38, %v14581_v26 }
0x1db3   :  { %v6027_v57 = vmul.f32 %v12877_v39, %v5963_v35  ;;  %v14620_v55 = vadd.f32 %v6029_v61, %v14575_v28  ;;  %v12163_v28 = vld [vmem:[%s13886_s4 + $0xd8] sm:$0xff]   ;;  %s13156_s4 = smov 36  }
0x1db4   :  { %11494 = vmatprep.subr.bf16.mxu0 %v12163_v28  ;;  %s9683_s8 = sld [smem:[%s15527_s0 + %s13156_s4]]  }
0x1db5   :  { %v14626_v42 = vadd.f32 %v6027_v57, %v14579_v37  ;;  %v6041_v59 = vpack.c.bf16 %v14620_v55, %v14629_v15  ;;  %11495 = vmatpush3.bf16.msra.mxu0 %v12163_v28  ;;  %v1250_v37 = vld [vmem:[%s14046_s17 + $0x4] sm:$0x7]  ;;  %s13158_s17 = smov 9  }
0x1db6   :  { %11496 = vmatprep.subr.bf16.mxu0 %v12164_v50  ;;  %12019 = vmatprep.subr.msk.bf16.mxu1 %vm286_vm0, %v1250_v37  ;;  %v6353_v26 = vsel %vm286_vm0, %v1250_v37, 0 }
0x1db7   :  { %v6040_v25 = vpack.c.bf16 %v14626_v42, %v14623_v44  ;;  %11507 = vmatpush3.bf16.msra.mxu1 %v6353_v26 }
0x1db8   :  { %11543 = vmatprep.subr.bf16.mxu1 %v15554_v47 }
0x1db9   :  { %11490 = vmatprep.mubr.msk.bf16.mxu1 %vm650_vm3, %v6040_v25  ;;  %11497 = vmatpush3.bf16.msra.mxu0 %v12164_v50 }
0x1dba   :  { %11491 = vmatmul.mubr.msk.bf16.gmra.mxu1 %vm650_vm3, %v6041_v59 }
0x1dbb   :  { %11508 = vmatprep.mubr.msk.bf16.mxu1 %vm273_vm1, %v13190_v5  ;;  %v6045_v5 = vrot.slane %v14541_v43, %v13999_v41 }
0x1dc2   :  { %11509 = vmatmul.mubr.msk.bf16.vlgmr.msra.gmra.mxu1 %vm273_vm1, %v13192_v9 }
0x1dc3   :  { %11512 = vmatprep.mubr.msk.bf16.mxu1 %vm273_vm1, %v13194_v10 }
0x1dca   :  { %11513 = vmatmul.mubr.msk.bf16.gmra.mxu1 %vm273_vm1, %v13204_v18 }
0x1dcb   :  { %11551 = vmatprep.mubr.msk.bf16.mxu1 %vm13133_vm5, %v15554_v47 }
0x1e69   :  { %v11488_v27 = vpop.f32.mrf.mxu1 }
0x1e6a   :  { %v6113_v24 = vadd.f32 %v11488_v27, %v6045_v5 }
0x1e6b   :  { %v6104_v19 = vpop.f32.mrf.mxu1 }
0x1e6c   :  { %v10153_v8 = vmul.f32 -1.442695, %v6113_v24  ;;  %v6105_v30 = vadd.f32 %v6104_v19, %v6045_v5 }
0x1e6d   :  { %v11489_v36 = vpop.f32.mrf.mxu1 }
0x1e6e   :  { %12878 = vpow2.f32 %v10153_v8  ;;  %v10151_v9 = vmul.f32 -1.442695, %v6105_v30  ;;  %v6116_v16 = vadd.f32 %v11489_v36, %v6045_v5 }
0x1e6f   :  { %v6107_v13 = vpop.f32.mrf.mxu1 }
0x1e70   :  { %12880 = vpow2.f32 %v10151_v9  ;;  %v10154_v10 = vmul.f32 -1.442695, %v6116_v16  ;;  %v6108_v49 = vadd.f32 %v6107_v13, %v6045_v5 }
0x1e72   :  { %12882 = vpow2.f32 %v10154_v10  ;;  %v10152_v18 = vmul.f32 -1.442695, %v6108_v49 }
0x1e74   :  { %12884 = vpow2.f32 %v10152_v18  ;;  %v13116_v18 = vld [vmem:[%s13302_s15] sm:$0xff] }
0x1e7a   :  { %v11492_v20 = vpop.f32.mrf.mxu1 }
0x1e7b   :  { %v12879_v35 = vpop.eup %12878  ;;  %v6129_v52 = vadd.f32 %v11492_v20, %v6045_v5 }
0x1e7c   :  { %v6161_v48 = vadd.f32 1.0, %v12879_v35  ;;  %v6120_v12 = vpop.f32.mrf.mxu1 }
0x1e7d   :  { %v12881_v32 = vpop.eup %12880  ;;  %v10157_v56 = vmul.f32 -1.442695, %v6129_v52  ;;  %v6121_v2 = vadd.f32 %v6120_v12, %v6045_v5  ;;  %v15567_v12 = vld [vmem:[#allocation13_spill] sm:$0xff] }
0x1e7e   :  { %12886 = vrcp.f32 %v6161_v48  ;;  %v6159_v17 = vadd.f32 1.0, %v12881_v32  ;;  %v11493_v34 = vpop.f32.mrf.mxu1  ;;  %v6198_v32 = vrot.slane %v14541_v43, %v15567_v12 }
0x1e7f   :  { %v12883_v3 = vpop.eup %12882  ;;  %12888 = vpow2.f32 %v10157_v56  ;;  %v10155_v60 = vmul.f32 -1.442695, %v6121_v2  ;;  %v6132_v62 = vadd.f32 %v11493_v34, %v6045_v5 }
0x1e80   :  { %12890 = vrcp.f32 %v6159_v17  ;;  %v6162_v7 = vadd.f32 1.0, %v12883_v3  ;;  %v6123_v22 = vpop.f32.mrf.mxu1 }
0x1e81   :  { %v12885_v29 = vpop.eup %12884  ;;  %12892 = vpow2.f32 %v10155_v60  ;;  %v10158_v51 = vmul.f32 -1.442695, %v6132_v62  ;;  %v6124_v14 = vadd.f32 %v6123_v22, %v6045_v5 }
0x1e82   :  { %12894 = vrcp.f32 %v6162_v7  ;;  %v6160_v40 = vadd.f32 1.0, %v12885_v29 }
0x1e83   :  { %12896 = vpow2.f32 %v10158_v51  ;;  %v10156_v21 = vmul.f32 -1.442695, %v6124_v14 }
0x1e84   :  { %12898 = vrcp.f32 %v6160_v40 }
0x1e85   :  { %12900 = vpow2.f32 %v10156_v21 }
0x1e8b   :  { %v12887_v1 = vpop.eup %12886 }
0x1e8c   :  { %v12889_v45 = vpop.eup %12888  ;;  %v6185_v37 = vmul.f32 %v12887_v1, %v6113_v24 }
0x1e8d   :  { %v12891_v58 = vpop.eup %12890  ;;  %v6165_v39 = vadd.f32 1.0, %v12889_v45 }
0x1e8e   :  { %v12893_v0 = vpop.eup %12892  ;;  %v6183_v28 = vmul.f32 %v12891_v58, %v6105_v30 }
0x1e8f   :  { %v12895_v11 = vpop.eup %12894  ;;  %v6163_v54 = vadd.f32 1.0, %v12893_v0 }
0x1e90   :  { %v12897_v61 = vpop.eup %12896  ;;  %v6186_v57 = vmul.f32 %v12895_v11, %v6116_v16 }
0x1e91   :  { %v12899_v38 = vpop.eup %12898  ;;  %v6166_v25 = vadd.f32 1.0, %v12897_v61  ;;  %12902 = vrcp.f32 %v6163_v54 }
0x1e92   :  { %v12901_v59 = vpop.eup %12900  ;;  %v6184_v50 = vmul.f32 %v12899_v38, %v6108_v49  ;;  %v6192_v27 = vpack.c.bf16 %v6186_v57, %v6185_v37  ;;  %v14675_v57 = vpop.f32.mrf.mxu1 }
0x1e93   :  { %12904 = vrcp.f32 %v6166_v25  ;;  %v6164_v26 = vadd.f32 1.0, %v12901_v59 }
0x1e94   :  { %v6191_v5 = vpack.c.bf16 %v6184_v50, %v6183_v28  ;;  %12906 = vrcp.f32 %v6165_v39 }
0x1e95   :  { %12908 = vrcp.f32 %v6164_v26 }
0x1e96   :  { %11498 = vmatprep.mubr.msk.bf16.mxu0 %vm650_vm3, %v6191_v5 }
0x1e97   :  { %11499 = vmatmul.mubr.msk.bf16.vlgmr.msra.gmra.mxu0 %vm650_vm3, %v6192_v27  ;;  %v6389_v27 = vpop.f32.mrf.mxu1 }
0x1e9e   :  { %v12903_v19 = vpop.eup %12902 }
0x1e9f   :  { %v6187_v30 = vmul.f32 %v12903_v19, %v6121_v2 }
0x1ea0   :  { %v12905_v8 = vpop.eup %12904 }
0x1ea1   :  { %v12907_v36 = vpop.eup %12906  ;;  %v6190_v16 = vmul.f32 %v12905_v8, %v6132_v62 }
0x1ea2   :  { %v12909_v9 = vpop.eup %12908  ;;  %v6189_v10 = vmul.f32 %v12907_v36, %v6129_v52 }
0x1ea3   :  { %v6188_v13 = vmul.f32 %v12909_v9, %v6124_v14 }
0x1ea4   :  { %v6194_v49 = vpack.c.bf16 %v6190_v16, %v6189_v10  ;;  %v11511_v16 = vpop.f32.mrf.mxu1 }
0x1ea5   :  { %v6193_v24 = vpack.c.bf16 %v6188_v13, %v6187_v30 }
0x1ea6   :  { %v6392_v13 = vpop.f32.mrf.mxu1 }
0x1ea7   :  { %11502 = vmatprep.mubr.msk.bf16.mxu0 %vm650_vm3, %v6193_v24 }
0x1ea8   :  { %11503 = vmatmul.mubr.msk.bf16.gmra.mxu0 %vm650_vm3, %v6194_v49  ;;  %v11514_v24 = vpop.f32.mrf.mxu1 }
0x1ea9   :  { %11532 = vmatprep.mubr.msk.f32.mxu0 %vm1251_vm4, %v13116_v18 }
0x1f57   :  { %v11500_v20 = vpop.f32.mrf.mxu0 }
0x1f58   :  { %v14665_v17 = vadd.f32 %v11500_v20, %v6198_v32 }
0x1f59   :  { %v6257_v35 = vpop.f32.mrf.mxu0 }
0x1f5a   :  { %v10167_v29 = vmul.f32 -1.442695, %v14665_v17  ;;  %v14671_v14 = vadd.f32 %v6257_v35, %v6198_v32  ;;  %v6405_v35 = vpop.f32.mrf.mxu1 }
0x1f5b   :  { %v11501_v48 = vpop.f32.mrf.mxu0 }
0x1f5c   :  { %v14663_v56 = vadd.f32 %v11501_v48, %v6198_v32  ;;  %v10165_v0 = vmul.f32 -1.442695, %v14671_v14 }
0x1f5d   :  { %v6260_v2 = vpop.f32.mrf.mxu0 }
0x1f5e   :  { %v10168_v3 = vmul.f32 -1.442695, %v14663_v56  ;;  %v14668_v60 = vadd.f32 %v6260_v2, %v6198_v32 }
0x1f60   :  { %v10166_v21 = vmul.f32 -1.442695, %v14668_v60 }
0x1f68   :  { %v11504_v52 = vpop.f32.mrf.mxu0 }
0x1f69   :  { %v6282_v34 = vadd.f32 %v11504_v52, %v6198_v32 }
0x1f6a   :  { %v6273_v62 = vpop.f32.mrf.mxu0 }
0x1f6b   :  { %v10171_v7 = vmul.f32 -1.442695, %v6282_v34  ;;  %v6274_v22 = vadd.f32 %v6273_v62, %v6198_v32 }
0x1f6c   :  { %v11505_v51 = vpop.f32.mrf.mxu0 }
0x1f6d   :  { %12910 = vpow2.f32 %v10171_v7  ;;  %v10169_v43 = vmul.f32 -1.442695, %v6274_v22  ;;  %v6285_v40 = vadd.f32 %v11505_v51, %v6198_v32  ;;  %v11515_v51 = vpop.f32.mrf.mxu1 }
0x1f6e   :  { %12912 = vpow2.f32 %v10168_v3  ;;  %v6276_v1 = vpop.f32.mrf.mxu0 }
0x1f6f   :  { %12914 = vpow2.f32 %v10169_v43  ;;  %v10172_v45 = vmul.f32 -1.442695, %v6285_v40  ;;  %v6277_v58 = vadd.f32 %v6276_v1, %v6198_v32 }
0x1f70   :  { %12916 = vpow2.f32 %v10167_v29 }
0x1f71   :  { %12918 = vpow2.f32 %v10172_v45  ;;  %v10170_v11 = vmul.f32 -1.442695, %v6277_v58 }
0x1f72   :  { %12920 = vpow2.f32 %v10166_v21 }
0x1f73   :  { %12922 = vpow2.f32 %v10170_v11 }
0x1f74   :  { %12924 = vpow2.f32 %v10165_v0 }
0x1f7a   :  { %v12911_v54 = vpop.eup %12910 }
0x1f7b   :  { %v12913_v61 = vpop.eup %12912  ;;  %v6318_v39 = vadd.f32 1.0, %v12911_v54 }
0x1f7c   :  { %v12915_v38 = vpop.eup %12914  ;;  %v6315_v50 = vadd.f32 1.0, %v12913_v61  ;;  %v12165_v61 = vld [vmem:[%s13309_s19 + $0x28] sm:$0xff]  }
0x1f7d   :  { %v12917_v25 = vpop.eup %12916  ;;  %12926 = vrcp.f32 %v6318_v39  ;;  %v6316_v59 = vadd.f32 1.0, %v12915_v38  ;;  %v12167_v39 = vld [vmem:[%s13373_s27 + $0x98] sm:$0xff]   ;;  %v12168_v38 = vld [vmem:[%s13373_s27 + $0x90] sm:$0xff]  }
0x1f7e   :  { %v12919_v28 = vpop.eup %12918  ;;  %v6314_v19 = vadd.f32 1.0, %v12917_v25  ;;  %11544 = vmatpush3.bf16.msra.mxu1 %v12167_v39 }
0x1f7f   :  { %v12921_v37 = vpop.eup %12920  ;;  %v6319_v26 = vadd.f32 1.0, %v12919_v28  ;;  %12928 = vrcp.f32 %v6316_v59  ;;  %11545 = vmatprep.subr.bf16.mxu1 %v15554_v47  ;;  %v12169_v28 = vld [vmem:[%s13373_s27 + $0x88] sm:$0xff]  }
0x1f80   :  { %v12923_v5 = vpop.eup %12922  ;;  %v6313_v9 = vadd.f32 1.0, %v12921_v37 }
0x1f81   :  { %12930 = vrcp.f32 %v6319_v26  ;;  %v6317_v8 = vadd.f32 1.0, %v12923_v5  ;;  %v12925_v36 = vpop.eup %12924  ;;  %v13118_v26 = vld [vmem:[%s13389_s1] sm:$0x7] }
0x1f82   :  { %12932 = vrcp.f32 %v6315_v50  ;;  %v6312_v30 = vadd.f32 1.0, %v12925_v36  ;;  %11546 = vmatpush3.bf16.msra.mxu1 %v12168_v38  ;;  %v12170_v50 = vld [vmem:[%s13373_s27 + $0x80] sm:$0xff]   ;;  %v6507_v5 = vrot.slane %v13118_v26, %v13953_v6 }
0x1f83   :  { %12934 = vrcp.f32 %v6317_v8  ;;  %11547 = vmatprep.subr.bf16.mxu1 %v15554_v47 }
0x1f84   :  { %12936 = vrcp.f32 %v6314_v19 }
0x1f85   :  { %12938 = vrcp.f32 %v6313_v9 }
0x1f86   :  { %12940 = vrcp.f32 %v6312_v30  ;;  %11548 = vmatpush3.bf16.msra.mxu1 %v12169_v28  ;;  %v12171_v30 = vld [vmem:[%s13373_s27 + $0xb8] sm:$0xff]  }
0x1f87   :  { %11549 = vmatprep.subr.bf16.mxu1 %v15554_v47 }
0x1f8a   :  { %v12927_v10 = vpop.eup %12926  ;;  %11550 = vmatpush3.bf16.msra.mxu1 %v12170_v50 }
0x1f8b   :  { %v6342_v18 = vmul.f32 %v12927_v10, %v6282_v34  ;;  %11567 = vmatprep.subr.bf16.mxu1 %v15554_v47  ;;  %v12173_v10 = vld [vmem:[%s13373_s27 + $0xa8] sm:$0xff]  }
0x1f8c   :  { %v12929_v49 = vpop.eup %12928 }
0x1f8d   :  { %v6340_v52 = vmul.f32 %v12929_v49, %v6274_v22  ;;  %v6350_v62 = vadd.f32 %v6342_v18, %v14629_v15  ;;  %v13119_v49 = vld [vmem:[%s13417_s9] sm:$0x3f] }
0x1f8e   :  { %v12931_v20 = vpop.eup %12930  ;;  %v6568_v18 = vrot.slane %v13119_v49, %v13999_v41 }
0x1f8f   :  { %v12933_v48 = vpop.eup %12932  ;;  %v6343_v32 = vmul.f32 %v12931_v20, %v6285_v40  ;;  %v6426_v0 = vmul.f32 %v11514_v24, %v6350_v62  ;;  %v6348_v40 = vadd.f32 %v6340_v52, %v14623_v44  ;;  %v12174_v24 = vld [vmem:[%s13373_s27 + $0xa0] sm:$0xff]  }
0x1f90   :  { %v12935_v2 = vpop.eup %12934  ;;  %v6339_v43 = vmul.f32 %v12933_v48, %v14663_v56 }
0x1f91   :  { %v6341_v3 = vmul.f32 %v12935_v2, %v6277_v58  ;;  %v6351_v7 = vadd.f32 %v6343_v32, %v14620_v55  ;;  %v12937_v29 = vpop.eup %12936  ;;  %v6408_v58 = vpop.f32.mrf.mxu1  ;;  %v6424_v54 = vmul.f32 %v6405_v35, %v6348_v40  ;;  %v12175_v40 = vld [vmem:[%s13442_s13 + $0x58] sm:$0xff]  }
0x1f92   :  { %v12939_v45 = vpop.eup %12938  ;;  %v6338_v34 = vmul.f32 %v12937_v29, %v14665_v17  ;;  %v6347_v55 = vadd.f32 %v6339_v43, %v14602_v46 }
0x1f93   :  { %v6427_v21 = vmul.f32 %v11515_v51, %v6351_v7  ;;  %v6349_v1 = vadd.f32 %v6341_v3, %v14626_v42  ;;  %v12941_v22 = vpop.eup %12940  ;;  %v6337_v15 = vmul.f32 %v12939_v45, %v14668_v60 }
0x1f94   :  { %v6336_v56 = vmul.f32 %v12941_v22, %v14671_v14  ;;  %v6346_v42 = vadd.f32 %v6338_v34, %v14611_v33  ;;  %v6423_v44 = vmul.f32 %v11511_v16, %v6347_v55  ;;  %v12176_v22 = vld [vmem:[%s13442_s13 + $0x50] sm:$0xff]   ;;  %v15541_v55 = vmov 0  }
0x1f95   :  { %11516 = vmatprep.subr.mxu0 %v6427_v21  ;;  %v6425_v11 = vmul.f32 %v6408_v58, %v6349_v1  ;;  %v6345_v17 = vadd.f32 %v6337_v15, %v14608_v4  ;;  %v13117_v4 = vld [vmem:[%s13302_s15 + $0x8] sm:$0xff]  ;;  %v12178_v15 = vld [vmem:[%s13442_s13 + $0x40] sm:$0xff]   ;;  %12064 = vset.pattern.permute.xlu0 %v15541_v55  ;;  %s13151_s15 = smov 13  }
0x1f96   :  { %11517 = vmatpush3.msra.mxu0 %v6427_v21  ;;  %v6422_v60 = vmul.f32 %v14675_v57, %v6346_v42  ;;  %v6344_v46 = vadd.f32 %v6336_v56, %v14605_v53  ;;  %v12166_v53 = vld [vmem:[%s13309_s19 + $0x20] sm:$0xff]   ;;  %v12177_v58 = vld [vmem:[%s13442_s13 + $0x48] sm:$0xff]   ;;  %s9660_s1 = sld [smem:[%s15527_s0 + %s13151_s15]]   ;;  %12065 = vset.pattern.permute.xlu1 %v15541_v55 }
0x1f97   :  { %11518 = vmatprep.subr.mxu0 %v6426_v0  ;;  %v6421_v14 = vmul.f32 %v6392_v13, %v6345_v17  ;;  %v12172_v13 = vld [vmem:[%s13373_s27 + $0xb0] sm:$0xff]   ;;  %s9656_s27 = sld [smem:[%s15527_s0 + %s13158_s17]]  }
0x1f98   :  { %11519 = vmatpush3.msra.mxu0 %v6426_v0  ;;  %v6420_v33 = vmul.f32 %v6389_v27, %v6344_v46 }
0x1f99   :  { %11520 = vmatprep.subr.mxu0 %v6425_v11 }
0x1f9a   :  { %11521 = vmatpush3.msra.mxu0 %v6425_v11 }
0x1f9b   :  { %11522 = vmatprep.subr.mxu0 %v6424_v54 }
0x1f9c   :  { %11523 = vmatpush3.msra.mxu0 %v6424_v54  ;;  %v6807_v11 = vld [vmem:[%s9660_s1] sm:$0xff]  ;;  %v6808_v56 = vld [vmem:[%s9660_s1 + $0x8] sm:$0xff]  ;;  %s13159_s1 = smov 12  }
0x1f9d   :  { %11524 = vmatprep.subr.mxu0 %v6423_v44  ;;  %vm6809_vm9 = vcmp.eq.s32.totalorder %v6807_v11, 0  ;;  %vm6832_vm10 = vcmp.eq.s32.totalorder %v6807_v11, 1  ;;  %vm6810_vm11 = vcmp.eq.s32.totalorder %v6808_v56, 0  ;;  %vm6833_vm12 = vcmp.eq.s32.totalorder %v6808_v56, 1  ;;  %s9659_s13 = sld [smem:[%s15527_s0 + %s13159_s1]]  }
0x1f9e   :  { %11525 = vmatpush3.msra.mxu0 %v6423_v44  ;;  %v6811_v42 = vsel %vm6809_vm9, 1, %v15541_v55  ;;  %v6834_v54 = vsel %vm6832_vm10, 1, %v15541_v55  ;;  %v6812_v44 = vsel %vm6810_vm11, 1, %v15541_v55  ;;  %v6835_v17 = vsel %vm6833_vm12, 1, %v15541_v55 }
0x1f9f   :  { %11526 = vmatprep.subr.mxu0 %v6422_v60  ;;  %6814 = vperm.xlu0 %12064, %v6811_v42   ;;  %vm6855_vm13 = vcmp.eq.s32.totalorder %v6807_v11, 2  ;;  %vm6856_vm14 = vcmp.eq.s32.totalorder %v6808_v56, 2  ;;  %vm6878_vm10 = vcmask 1040384   ;;  %vm6880_vm11 = vcmask 1041408  }
0x1fa0   :  { %11527 = vmatpush3.msra.mxu0 %v6422_v60  ;;  %6837 = vperm.xlu1 %12065, %v6834_v54   ;;  %v6857_v60 = vsel %vm6855_vm13, 1, %v15541_v55  ;;  %v6858_v46 = vsel %vm6856_vm14, 1, %v15541_v55  ;;  %v15062_v55 = vld [vmem:[%s9685_s16] sm:$0x3f] }
0x1fa1   :  { %11528 = vmatprep.subr.mxu0 %v6421_v14 }
0x1fa2   :  { %11529 = vmatpush3.msra.mxu0 %v6421_v14  ;;  %v6655_v14 = vrot.slane %v13119_v49, %v15567_v12 }
0x1fa3   :  { %11530 = vmatprep.subr.mxu0 %v6420_v33  ;;  %6817 = vperm.xlu0 %12064, %v6812_v44  }
0x1fa4   :  { %11531 = vmatpush3.msra.mxu0 %v6420_v33  ;;  %6840 = vperm.xlu1 %12065, %v6835_v17  }
0x1fa5   :  { %11533 = vmatmul.mubr.msk.f32.vlgmr.msra.gmra.mxu0 %vm1251_vm4, %v13117_v4  ;;  %11535 = vmatprep.subr.bf16.mxu0 %v15554_v47 }
0x1fa6   :  { %11536 = vmatpush3.bf16.msra.mxu0 %v12165_v61  ;;  %11539 = vmatprep.mubr.msk.bf16.mxu0 %vm13133_vm5, %v15554_v47 }
0x1fa7   :  { %11537 = vmatprep.subr.bf16.mxu0 %v15554_v47  ;;  %6860 = vperm.xlu0 %12064, %v6857_v60  }
0x1fa8   :  { %6863 = vperm.xlu1 %12065, %v6858_v46  }
0x1faa   :  { %11538 = vmatpush3.bf16.msra.mxu0 %v12166_v53 }
0x1fab   :  { %11555 = vmatprep.subr.bf16.mxu0 %v15554_v47 }
0x2065   :  { %v11534_v57 = vpop.f32.mrf.mxu0 }
0x2067   :  { %v6494_v25 = vpop.f32.mrf.mxu0 }
0x2068   :  { %v6503_v59 = vpack.c.bf16 %v11534_v57, %v6494_v25 }
0x206a   :  { %11540 = vmatmul.mubr.msk.bf16.vlgmr.msra.gmra.mxu0 %vm650_vm3, %v6503_v59 }
0x206b   :  { %11563 = vmatprep.mubr.msk.bf16.mxu0 %vm13133_vm5, %v15554_v47  ;;  %11556 = vmatpush3.bf16.msra.mxu0 %v12171_v30 }
0x206c   :  { %11557 = vmatprep.subr.bf16.mxu0 %v15554_v47 }
0x206f   :  { %11558 = vmatpush3.bf16.msra.mxu0 %v12172_v13 }
0x2070   :  { %11559 = vmatprep.subr.bf16.mxu0 %v15554_v47 }
0x2073   :  { %11560 = vmatpush3.bf16.msra.mxu0 %v12173_v10  ;;  %v15568_v10 = vld [vmem:[#allocation2_spill] sm:$0xff] }
0x2074   :  { %11561 = vmatprep.subr.bf16.mxu0 %v15554_v47 }
0x2077   :  { %11562 = vmatpush3.bf16.msra.mxu0 %v12174_v24  ;;  %v15569_v24 = vld [vmem:[#allocation14_spill] sm:$0xff] }
0x2078   :  { %11579 = vmatprep.subr.bf16.mxu0 %v15554_v47  ;;  %v4301_v49 = vadd.f32 %v15569_v24, %v15568_v10  ;;  %v12181_v10 = vld [vmem:[%s14754_s18 + $0x10] sm:$0xff]   ;;  %v12182_v24 = vld [vmem:[%s14789_s24 + $0x8] sm:$0xff]  }
0x212a   :  { %v6557_v37 = vpop.f32.mrf.mxu0 }
0x212b   :  { %v6558_v8 = vadd.f32 %v6557_v37, %v6507_v5 }
0x212c   :  { %v11541_v27 = vpop.f32.mrf.mxu0 }
0x212e   :  { %v6560_v19 = vpop.f32.mrf.mxu0 }
0x212f   :  { %v6561_v36 = vadd.f32 %v6560_v19, %v6507_v5 }
0x2130   :  { %v11542_v9 = vpop.f32.mrf.mxu0 }
0x2131   :  { %v6564_v16 = vpack.c.bf16 %v6561_v36, %v6558_v8  ;;  %v6815_v36 = vpop.permute.xlu0 %6814  ;;  %v6838_v9 = vpop.permute.xlu1 %6837 }
0x2132   :  { %vm6819_vm15 = vcmp.eq.s32.totalorder %v6815_v36, 1  ;;  %vm6842_vm1 = vcmp.eq.s32.totalorder %v6838_v9, 1 }
0x2133   :  { %11552 = vmatmul.mubr.msk.bf16.vlgmr.msra.gmra.mxu1 %vm1251_vm4, %v6564_v16 }
0x2134   :  { %11575 = vmatprep.mubr.msk.bf16.mxu1 %vm13133_vm5, %v15554_v47  ;;  %11568 = vmatpush3.bf16.msra.mxu1 %v12175_v40 }
0x2135   :  { %11569 = vmatprep.subr.bf16.mxu1 %v15554_v47  ;;  %v6818_v16 = vpop.permute.xlu0 %6817  ;;  %v6841_v30 = vpop.permute.xlu1 %6840 }
0x2136   :  { %vm6820_vm7 = vcmp.eq.s32.totalorder %v6818_v16, 1  ;;  %vm6843_vm8 = vcmp.eq.s32.totalorder %v6841_v30, 1 }
0x2138   :  { %11570 = vmatpush3.bf16.msra.mxu1 %v12176_v22 }
0x2139   :  { %11571 = vmatprep.subr.bf16.mxu1 %v15554_v47  ;;  %v6861_v13 = vpop.permute.xlu0 %6860 }
0x213a   :  { %vm6865_vm6 = vcmp.eq.s32.totalorder %v6861_v13, 1 }
0x213c   :  { %11572 = vmatpush3.bf16.msra.mxu1 %v12177_v58 }
0x213d   :  { %11573 = vmatprep.subr.bf16.mxu1 %v15554_v47 }
0x2140   :  { %11574 = vmatpush3.bf16.msra.mxu1 %v12178_v15 }
0x2141   :  { %11593 = vmatprep.subr.bf16.mxu1 %v15554_v47 }
0x21f3   :  { %v6630_v20 = vpop.f32.mrf.mxu1 }
0x21f4   :  { %v6631_v35 = vadd.f32 %v6630_v20, %v6568_v18 }
0x21f5   :  { %v11553_v48 = vpop.f32.mrf.mxu1 }
0x21f6   :  { %v10187_v32 = vmul.f32 -1.442695, %v6631_v35  ;;  %v6864_v48 = vpop.permute.xlu1 %6863 }
0x21f7   :  { %v6633_v2 = vpop.f32.mrf.mxu1  ;;  %vm6866_vm9 = vcmp.eq.s32.totalorder %v6864_v48, 1 }
0x21f8   :  { %12942 = vpow2.f32 %v10187_v32  ;;  %v6634_v52 = vadd.f32 %v6633_v2, %v6568_v18  ;;  %v15570_v2 = vld [vmem:[#allocation3_spill] sm:$0xff] }
0x21f9   :  { %v11554_v3 = vpop.f32.mrf.mxu1 }
0x21fa   :  { %v10188_v62 = vmul.f32 -1.442695, %v6634_v52 }
0x21fc   :  { %12944 = vpow2.f32 %v10188_v62 }
0x2205   :  { %v12943_v7 = vpop.eup %12942 }
0x2206   :  { %v6643_v29 = vadd.f32 1.0, %v12943_v7 }
0x2208   :  { %12946 = vrcp.f32 %v6643_v29 }
0x2209   :  { %v12945_v51 = vpop.eup %12944 }
0x220a   :  { %v6644_v43 = vadd.f32 1.0, %v12945_v51 }
0x220c   :  { %12948 = vrcp.f32 %v6644_v43 }
0x2215   :  { %v12947_v21 = vpop.eup %12946 }
0x2216   :  { %v6649_v45 = vmul.f32 %v12947_v21, %v6631_v35  ;;  %v10201_v35 = vld [vmem:[%s9686_s14] ss:$0 sm:$0xff] }
0x2219   :  { %v12949_v1 = vpop.eup %12948 }
0x221a   :  { %v6650_v34 = vmul.f32 %v12949_v1, %v6634_v52  ;;  %v15571_v52 = vld [vmem:[#allocation15_spill] sm:$0xff] }
0x221b   :  { %v4304_v3 = vadd.f32 %v15571_v52, %v15570_v2  ;;  %v12186_v52 = vld [vmem:[%s14789_s24 + $0x28] sm:$0xff]  }
0x221c   :  { %v6651_v0 = vpack.c.bf16 %v6650_v34, %v6649_v45 }
0x221e   :  { %11564 = vmatmul.mubr.msk.bf16.vlgmr.msra.gmra.mxu0 %vm1251_vm4, %v6651_v0 }
0x221f   :  { %11581 = vmatprep.mubr.msk.bf16.mxu0 %vm13133_vm5, %v15554_v47 }
0x22de   :  { %v6717_v33 = vpop.f32.mrf.mxu0 }
0x22df   :  { %v6718_v61 = vadd.f32 %v6717_v33, %v6655_v14 }
0x22e0   :  { %v11565_v4 = vpop.f32.mrf.mxu0 }
0x22e1   :  { %v10194_v53 = vmul.f32 -1.442695, %v6718_v61 }
0x22e2   :  { %v6720_v39 = vpop.f32.mrf.mxu0 }
0x22e3   :  { %12950 = vpow2.f32 %v10194_v53  ;;  %v6721_v38 = vadd.f32 %v6720_v39, %v6655_v14  ;;  %v12179_v53 = vld [vmem:[%s14754_s18] sm:$0xff]  }
0x22e4   :  { %v11566_v57 = vpop.f32.mrf.mxu0 }
0x22e5   :  { %v10195_v25 = vmul.f32 -1.442695, %v6721_v38 }
0x22e7   :  { %12952 = vpow2.f32 %v10195_v25 }
0x22f0   :  { %v12951_v59 = vpop.eup %12950 }
0x22f1   :  { %v6730_v28 = vadd.f32 1.0, %v12951_v59 }
0x22f3   :  { %12954 = vrcp.f32 %v6730_v28 }
0x22f4   :  { %v12953_v50 = vpop.eup %12952 }
0x22f5   :  { %v6731_v37 = vadd.f32 1.0, %v12953_v50 }
0x22f7   :  { %12956 = vrcp.f32 %v6731_v37 }
0x2300   :  { %v12955_v26 = vpop.eup %12954 }
0x2301   :  { %v6736_v27 = vmul.f32 %v12955_v26, %v6718_v61 }
0x2304   :  { %v12957_v5 = vpop.eup %12956 }
0x2305   :  { %v6737_v19 = vmul.f32 %v12957_v5, %v6721_v38 }
0x2307   :  { %v6738_v8 = vpack.c.bf16 %v6737_v19, %v6736_v27 }
0x2309   :  { %11576 = vmatmul.mubr.msk.bf16.vlgmr.msra.gmra.mxu1 %vm1251_vm4, %v6738_v8  ;;  %v12180_v8 = vld [vmem:[%s14754_s18 + $0x8] sm:$0xff]   ;;  %s13160_s18 = smov 11  }
0x230a   :  { %11597 = vmatprep.mubr.msk.bf16.mxu1 %vm13133_vm5, %v15554_v47  ;;  %11594 = vmatpush3.bf16.msra.mxu1 %v12182_v24  ;;  %s9658_s3 = sld [smem:[%s15527_s0 + %s13160_s18]]  }
0x230b   :  { %11595 = vmatprep.subr.bf16.mxu1 %v15554_v47 }
0x23c9   :  { %v6800_v18 = vpop.f32.mrf.mxu1 }
0x23ca   :  { %v6801_v20 = vadd.f32 %v6800_v18, %v4301_v49  ;;  %v12183_v49 = vld [vmem:[%s14789_s24 + $0x18] sm:$0xff]   ;;  %v12184_v18 = vld [vmem:[%s14789_s24] sm:$0xff]  }
0x23cb   :  { %v11577_v32 = vpop.f32.mrf.mxu1  ;;  %11596 = vmatpush3.bf16.msra.mxu1 %v12184_v18 }
0x23cc   :  { %v6821_v62 = vsel %vm6819_vm15, %v6801_v20, -inf  ;;  %v6844_v7 = vsel %vm6842_vm1, %v6801_v20, -inf  ;;  %v6867_v29 = vsel %vm6865_vm6, %v6801_v20, -inf  ;;  %v6890_v51 = vadd.f32 %v10201_v35, %v6801_v20  ;;  %v12185_v20 = vld [vmem:[%s14789_s24 + $0x10] sm:$0xff]   ;;  %11625 = vmatprep.subr.bf16.mxu1 %v15554_v47 }
0x23cd   :  { %v6803_v43 = vpop.f32.mrf.mxu1  ;;  %v6823_v1 = vsel %vm650_vm3, %v6821_v62, -inf  ;;  %v6846_v45 = vsel %vm650_vm3, %v6844_v7, -inf  ;;  %v6869_v34 = vsel %vm650_vm3, %v6867_v29, -inf  ;;  %v12188_v29 = vld [vmem:[%s14789_s24 + $0x20] sm:$0xff]  }
0x23ce   :  { %v6804_v21 = vadd.f32 %v6803_v43, %v4304_v3  ;;  %v6892_v11 = vmax.f32 %v6890_v51, 0.0  ;;  %v12187_v3 = vld [vmem:[%s14789_s24 + $0x38] sm:$0xff]   ;;  %v12189_v51 = vld [vmem:[%s14789_s24 + $0x30] sm:$0xff]  }
0x23cf   :  { %v11578_v0 = vpop.f32.mrf.mxu1 }
0x23d0   :  { %v6822_v40 = vsel %vm6820_vm7, %v6804_v21, -inf  ;;  %v6845_v22 = vsel %vm6843_vm8, %v6804_v21, -inf  ;;  %v6891_v58 = vadd.f32 %v10201_v35, %v6804_v21  ;;  %v6868_v15 = vsel %vm6866_vm9, %v6804_v21, -inf }
0x23d1   :  { %v6824_v56 = vsel %vm650_vm3, %v6822_v40, -inf  ;;  %v6847_v42 = vsel %vm650_vm3, %v6845_v22, -inf  ;;  %v6870_v54 = vsel %vm650_vm3, %v6868_v15, -inf  ;;  %v12190_v15 = vld [vmem:[%s14789_s24 + $0x48] sm:$0xff]  }
0x23d2   :  { %v6825_v44 = vmax.f32 %v6823_v1, %v6824_v56  ;;  %v6848_v17 = vmax.f32 %v6846_v45, %v6847_v42  ;;  %v6893_v60 = vmax.f32 %v6891_v58, 0.0  ;;  %v6871_v46 = vmax.f32 %v6869_v34, %v6870_v54  ;;  %v12192_v56 = vld [vmem:[%s14789_s24 + $0x40] sm:$0xff]   ;;  %v12193_v42 = vld [vmem:[%s14789_s24 + $0x50] sm:$0xff]   ;;  %v14857_v54 = vld [vmem:[%s14802_s2 + $0x8] sm:$0xff]  }
0x23d4   :  { %v6826_v14 = vrot.slane %v6825_v44, 4  ;;  %v6849_v33 = vrot.slane %v6848_v17, 4  ;;  %v6872_v61 = vrot.slane %v6871_v46, 4  ;;  %v6900_v4 = vpack.c.bf16 %v6893_v60, %v6892_v11  ;;  %v12191_v11 = vld [vmem:[%s14789_s24 + $0x58] sm:$0xff]   ;;  %s13163_s24 = smov 40  }
0x23d5   :  { %v14893_v60 = vld [vmem:[%s14802_s2 + $0x18] sm:$0xff]   ;;  %s9687_s30 = sld [smem:[%s15527_s0 + %s13163_s24]]  }
0x23d6   :  { %v6827_v39 = vmax.f32 %v6825_v44, %v6826_v14  ;;  %v6850_v38 = vmax.f32 %v6848_v17, %v6849_v33  ;;  %v6873_v57 = vmax.f32 %v6871_v46, %v6872_v61  ;;  %11580 = vmatpush3.bf16.msra.mxu0 %v6900_v4  ;;  %v14867_v44 = vld [vmem:[%s14802_s2] sm:$0xff]   ;;  %v14903_v14 = vld [vmem:[%s14802_s2 + $0x10] sm:$0xff]   ;;  %v14910_v33 = vld [vmem:[%s14802_s2 + $0x28] sm:$0xff]  }
0x23d7   :  { %11609 = vmatprep.subr.bf16.mxu0 %v15554_v47  ;;  %v14917_v61 = vld [vmem:[%s14802_s2 + $0x20] sm:$0xff]  }
0x23d8   :  { %v6828_v25 = vrot.slane %v6827_v39, 2  ;;  %v6851_v59 = vrot.slane %v6850_v38, 2  ;;  %v6874_v28 = vrot.slane %v6873_v57, 2  ;;  %v14935_v4 = vld [vmem:[%s9683_s8] sm:$0x3f] }
0x23d9   :  { %11582 = vmatmul.mubr.msk.bf16.vlgmr.msra.gmra.mxu0 %vm439_vm2, %v12179_v53 }
0x23da   :  { %v6829_v50 = vmax.f32 %v6827_v39, %v6828_v25  ;;  %v6852_v37 = vmax.f32 %v6850_v38, %v6851_v59  ;;  %v6875_v26 = vmax.f32 %v6873_v57, %v6874_v28  ;;  %11585 = vmatprep.mubr.msk.bf16.mxu0 %vm13133_vm5, %v15554_v47  ;;  %11610 = vmatpush3.bf16.msra.mxu0 %v12183_v49 }
0x23db   :  { %11611 = vmatprep.subr.bf16.mxu0 %v15554_v47  ;;  %v14943_v25 = vrot.slane %v14935_v4, %v13394_v63  ;;  %v14947_v59 = vrot.slane %v14935_v4, %v13459_v31 }
0x23dc   :  { %v6830_v5 = vrot.slane %v6829_v50, 1  ;;  %v6853_v27 = vrot.slane %v6852_v37, 1  ;;  %v6876_v19 = vrot.slane %v6875_v26, 1 }
0x23de   :  { %v6831_v36 = vmax.f32 %v6829_v50, %v6830_v5  ;;  %v6854_v9 = vmax.f32 %v6852_v37, %v6853_v27  ;;  %v6877_v16 = vmax.f32 %v6875_v26, %v6876_v19  ;;  %11612 = vmatpush3.bf16.msra.mxu0 %v12185_v20 }
0x23df   :  { %11641 = vmatprep.subr.bf16.mxu0 %v15554_v47 }
0x23e0   :  { %v6879_v30 = vsel %vm6878_vm10, %v6831_v36, %v6854_v9 }
0x23e1   :  { %v14777_v13 = vsel %vm6880_vm11, %v6879_v30, %v6877_v16  ;;  %11586 = vmatmul.mubr.msk.bf16.gmra.mxu0 %vm439_vm2, %v12180_v8 }
0x23e2   :  { %11589 = vmatprep.mubr.msk.bf16.mxu0 %vm13133_vm5, %v15554_v47  ;;  %v14890_v17 = vsel %vm286_vm0, %v14777_v13, 0.0  ;;  %vm9316_vm0 = vcmask 392192  }
0x23e3   :  { %v14897_v46 = vpack.c.bf16 %v14890_v17, %v14890_v17 }
0x23e9   :  { %11590 = vmatmul.mubr.msk.bf16.gmra.mxu0 %vm439_vm2, %v12181_v10 }
0x23ea   :  { %11613 = vmatprep.mubr.msk.bf16.mxu0 %vm13133_vm5, %v15554_v47 }
0x2499   :  { %v6959_v35 = vpop.f32.mrf.mxu0 }
0x249b   :  { %v11583_v48 = vpop.f32.mrf.mxu0 }
0x249d   :  { %v6962_v32 = vpop.f32.mrf.mxu0 }
0x249e   :  { %v6982_v2 = vpack.c.bf16 %v6962_v32, %v6959_v35 }
0x249f   :  { %v11584_v62 = vpop.f32.mrf.mxu0 }
0x24a0   :  { %11598 = vmatmul.mubr.msk.bf16.vlgmr.msra.gmra.mxu1 %vm650_vm3, %v6982_v2  ;;  %11614 = vmatmul.mubr.msk.bf16.vlgmr.msra.gmra.mxu0 %vm650_vm3, %v6982_v2 }
0x24a1   :  { %v6967_v7 = vpop.f32.mrf.mxu0  ;;  %11601 = vmatprep.mubr.msk.bf16.mxu1 %vm13133_vm5, %v15554_v47  ;;  %11617 = vmatprep.mubr.msk.bf16.mxu0 %vm13133_vm5, %v15554_v47 }
0x24a2   :  { %11626 = vmatpush3.bf16.msra.mxu1 %v12186_v52  ;;  %11642 = vmatpush3.bf16.msra.mxu0 %v12187_v3 }
0x24a3   :  { %v11587_v43 = vpop.f32.mrf.mxu0  ;;  %11627 = vmatprep.subr.bf16.mxu1 %v15554_v47  ;;  %11643 = vmatprep.subr.bf16.mxu0 %v15554_v47 }
0x24a4   :  { %v14981_v43 = vrot.slane %v14935_v4, %v13988_v23 }
0x24a5   :  { %v6970_v21 = vpop.f32.mrf.mxu0 }
0x24a6   :  { %v6983_v1 = vpack.c.bf16 %v6970_v21, %v6967_v7  ;;  %11628 = vmatpush3.bf16.msra.mxu1 %v12188_v29  ;;  %11644 = vmatpush3.bf16.msra.mxu0 %v12189_v51 }
0x24a7   :  { %v11588_v45 = vpop.f32.mrf.mxu0  ;;  %11657 = vmatprep.subr.bf16.mxu1 %v15554_v47  ;;  %11673 = vmatprep.subr.bf16.mxu0 %v15554_v47 }
0x24a8   :  { %11602 = vmatmul.mubr.msk.bf16.gmra.mxu1 %vm650_vm3, %v6983_v1  ;;  %11618 = vmatmul.mubr.msk.bf16.gmra.mxu0 %vm650_vm3, %v6983_v1 }
0x24a9   :  { %v6975_v34 = vpop.f32.mrf.mxu0  ;;  %11605 = vmatprep.mubr.msk.bf16.mxu1 %vm13133_vm5, %v15554_v47  ;;  %11621 = vmatprep.mubr.msk.bf16.mxu0 %vm13133_vm5, %v15554_v47 }
0x24ab   :  { %v11591_v0 = vpop.f32.mrf.mxu0 }
0x24ad   :  { %v6978_v40 = vpop.f32.mrf.mxu0 }
0x24ae   :  { %v6984_v22 = vpack.c.bf16 %v6978_v40, %v6975_v34 }
0x24af   :  { %v11592_v58 = vpop.f32.mrf.mxu0 }
0x24b0   :  { %11606 = vmatmul.mubr.msk.bf16.gmra.mxu1 %vm650_vm3, %v6984_v22  ;;  %11622 = vmatmul.mubr.msk.bf16.gmra.mxu0 %vm650_vm3, %v6984_v22  ;;  %v14990_v58 = vrot.slane %v14935_v4, %v13953_v6 }
0x24b1   :  { %11629 = vmatprep.mubr.msk.bf16.mxu1 %vm13133_vm5, %v15554_v47  ;;  %11645 = vmatprep.mubr.msk.bf16.mxu0 %vm13133_vm5, %v15554_v47 }
0x24b8   :  { %11630 = vmatmul.mubr.msk.bf16.vlgmr.msra.gmra.mxu1 %vm650_vm3, %v6982_v2  ;;  %11646 = vmatmul.mubr.msk.bf16.vlgmr.msra.gmra.mxu0 %vm650_vm3, %v6982_v2 }
0x24b9   :  { %11633 = vmatprep.mubr.msk.bf16.mxu1 %vm13133_vm5, %v15554_v47  ;;  %11649 = vmatprep.mubr.msk.bf16.mxu0 %vm13133_vm5, %v15554_v47 }
0x24ba   :  { %11658 = vmatpush3.bf16.msra.mxu1 %v12190_v15  ;;  %11674 = vmatpush3.bf16.msra.mxu0 %v12191_v11 }
0x24bb   :  { %11659 = vmatprep.subr.bf16.mxu1 %v15554_v47  ;;  %11675 = vmatprep.subr.bf16.mxu0 %v15554_v47 }
0x24be   :  { %11660 = vmatpush3.bf16.msra.mxu1 %v12192_v56  ;;  %11676 = vmatpush3.bf16.msra.mxu0 %v12193_v42 }
0x24bf   :  { %11689 = vmatprep.subr.bf16.mxu1 %v15554_v47  ;;  %11713 = vmatprep.subr.bf16.mxu0 %v15554_v47 }
0x24c0   :  { %11634 = vmatmul.mubr.msk.bf16.gmra.mxu1 %vm650_vm3, %v6983_v1  ;;  %11650 = vmatmul.mubr.msk.bf16.gmra.mxu0 %vm650_vm3, %v6983_v1 }
0x24c1   :  { %11637 = vmatprep.mubr.msk.bf16.mxu1 %vm13133_vm5, %v15554_v47  ;;  %11653 = vmatprep.mubr.msk.bf16.mxu0 %vm13133_vm5, %v15554_v47 }
0x24c8   :  { %11638 = vmatmul.mubr.msk.bf16.gmra.mxu1 %vm650_vm3, %v6984_v22  ;;  %11654 = vmatmul.mubr.msk.bf16.gmra.mxu0 %vm650_vm3, %v6984_v22 }
0x24c9   :  { %11661 = vmatprep.mubr.msk.bf16.mxu1 %vm13133_vm5, %v15554_v47  ;;  %11677 = vmatprep.mubr.msk.bf16.mxu0 %vm13133_vm5, %v15554_v47 }
0x24d0   :  { %11662 = vmatmul.mubr.msk.bf16.vlgmr.msra.gmra.mxu1 %vm650_vm3, %v6982_v2  ;;  %11678 = vmatmul.mubr.msk.bf16.vlgmr.msra.gmra.mxu0 %vm650_vm3, %v6982_v2 }
0x24d1   :  { %11665 = vmatprep.mubr.msk.bf16.mxu1 %vm13133_vm5, %v15554_v47  ;;  %11681 = vmatprep.mubr.msk.bf16.mxu0 %vm13133_vm5, %v15554_v47 }
0x24d2   :  { %11690 = vmatpush3.bf16.msra.mxu1 %v14857_v54  ;;  %11714 = vmatpush3.bf16.msra.mxu0 %v14857_v54 }
0x24d3   :  { %11691 = vmatprep.subr.bf16.mxu1 %v15554_v47  ;;  %11715 = vmatprep.subr.bf16.mxu0 %v15554_v47 }
0x24d6   :  { %11692 = vmatpush3.bf16.msra.mxu1 %v14867_v44  ;;  %11716 = vmatpush3.bf16.msra.mxu0 %v14867_v44 }
0x24d7   :  { %11697 = vmatprep.subr.bf16.mxu1 %v15554_v47  ;;  %11729 = vmatprep.subr.bf16.mxu0 %v15554_v47 }
0x24d8   :  { %11666 = vmatmul.mubr.msk.bf16.gmra.mxu1 %vm650_vm3, %v6983_v1  ;;  %11682 = vmatmul.mubr.msk.bf16.gmra.mxu0 %vm650_vm3, %v6983_v1 }
0x24d9   :  { %11669 = vmatprep.mubr.msk.bf16.mxu1 %vm13133_vm5, %v15554_v47  ;;  %11685 = vmatprep.mubr.msk.bf16.mxu0 %vm13133_vm5, %v15554_v47 }
0x24e0   :  { %11670 = vmatmul.mubr.msk.bf16.gmra.mxu1 %vm650_vm3, %v6984_v22  ;;  %11686 = vmatmul.mubr.msk.bf16.gmra.mxu0 %vm650_vm3, %v6984_v22 }
0x24e1   :  { %11693 = vmatprep.mubr.msk.bf16.mxu1 %vm13133_vm5, %v15554_v47  ;;  %11717 = vmatprep.mubr.msk.bf16.mxu0 %vm13133_vm5, %v15554_v47 }
0x24e8   :  { %11694 = vmatmul.mubr.msk.bf16.vlgmr.msra.gmra.mxu1 %vm650_vm3, %v14897_v46 }
0x24e9   :  { %11698 = vmatpush3.bf16.msra.mxu1 %v14893_v60  ;;  %11701 = vmatprep.mubr.msk.bf16.mxu1 %vm13133_vm5, %v15554_v47 }
0x24ea   :  { %11699 = vmatprep.subr.bf16.mxu1 %v15554_v47 }
0x24ed   :  { %11700 = vmatpush3.bf16.msra.mxu1 %v14903_v14 }
0x24ee   :  { %11705 = vmatprep.subr.bf16.mxu1 %v15554_v47 }
0x24f0   :  { %11702 = vmatmul.mubr.msk.bf16.vlgmr.msra.gmra.mxu1 %vm650_vm3, %v14897_v46 }
0x24f1   :  { %11706 = vmatpush3.bf16.msra.mxu1 %v14910_v33  ;;  %11709 = vmatprep.mubr.msk.bf16.mxu1 %vm13133_vm5, %v15554_v47 }
0x24f2   :  { %11707 = vmatprep.subr.bf16.mxu1 %v15554_v47 }
0x24f5   :  { %11708 = vmatpush3.bf16.msra.mxu1 %v14917_v61 }
0x24f6   :  { %11721 = vmatprep.subr.bf16.mxu1 %v15554_v47 }
0x24f8   :  { %11710 = vmatmul.mubr.msk.bf16.vlgmr.msra.gmra.mxu1 %vm650_vm3, %v14897_v46 }
0x24f9   :  { %11722 = vmatpush3.bf16.msra.mxu1 %v14893_v60  ;;  %11725 = vmatprep.mubr.msk.bf16.mxu1 %vm13133_vm5, %v15554_v47 }
0x24fa   :  { %11723 = vmatprep.subr.bf16.mxu1 %v15554_v47 }
0x24fd   :  { %11724 = vmatpush3.bf16.msra.mxu1 %v14903_v14 }
0x24fe   :  { %11737 = vmatprep.subr.bf16.mxu1 %v15554_v47 }
0x2560   :  { %v14937_v53 = vpop.f32.mrf.mxu1  ;;  %v14939_v39 = vpop.f32.mrf.mxu0 }
0x2562   :  { %v11599_v38 = vpop.f32.mrf.mxu1  ;;  %v11615_v57 = vpop.f32.mrf.mxu0 }
0x2564   :  { %v7097_v28 = vpop.f32.mrf.mxu1  ;;  %v7170_v50 = vpop.f32.mrf.mxu0 }
0x2565   :  { %v14950_v37 = vadd.f32 %v7097_v28, %v14943_v25  ;;  %v14953_v26 = vadd.f32 %v7170_v50, %v14947_v59 }
0x2566   :  { %v11600_v5 = vpop.f32.mrf.mxu1  ;;  %v11616_v27 = vpop.f32.mrf.mxu0 }
0x2568   :  { %v7102_v19 = vpop.f32.mrf.mxu1  ;;  %v7175_v8 = vpop.f32.mrf.mxu0 }
0x2569   :  { %v14956_v36 = vadd.f32 %v7102_v19, %v14943_v25  ;;  %v14959_v9 = vadd.f32 %v7175_v8, %v14947_v59 }
0x256a   :  { %v11603_v16 = vpop.f32.mrf.mxu1  ;;  %v11619_v30 = vpop.f32.mrf.mxu0 }
0x256c   :  { %v7105_v13 = vpop.f32.mrf.mxu1  ;;  %v7178_v10 = vpop.f32.mrf.mxu0 }
0x256d   :  { %v14962_v24 = vadd.f32 %v7105_v13, %v14943_v25  ;;  %v14965_v49 = vadd.f32 %v7178_v10, %v14947_v59 }
0x256e   :  { %v11604_v18 = vpop.f32.mrf.mxu1  ;;  %v11620_v20 = vpop.f32.mrf.mxu0 }
0x2570   :  { %v7110_v35 = vpop.f32.mrf.mxu1  ;;  %v7183_v48 = vpop.f32.mrf.mxu0 }
0x2571   :  { %v14968_v32 = vadd.f32 %v7110_v35, %v14943_v25  ;;  %v14971_v2 = vadd.f32 %v7183_v48, %v14947_v59 }
0x2572   :  { %v11607_v52 = vpop.f32.mrf.mxu1  ;;  %v11623_v3 = vpop.f32.mrf.mxu0 }
0x2574   :  { %v7113_v62 = vpop.f32.mrf.mxu1  ;;  %v7186_v7 = vpop.f32.mrf.mxu0 }
0x2575   :  { %v14974_v29 = vadd.f32 %v7113_v62, %v14943_v25  ;;  %v14977_v51 = vadd.f32 %v7186_v7, %v14947_v59 }
0x2576   :  { %v11608_v21 = vpop.f32.mrf.mxu1  ;;  %v11624_v1 = vpop.f32.mrf.mxu0 }
0x2578   :  { %v14983_v45 = vpop.f32.mrf.mxu1  ;;  %v7313_v34 = vpop.f32.mrf.mxu0 }
0x2579   :  { %v14986_v0 = vadd.f32 %v7313_v34, %v14981_v43 }
0x257a   :  { %v11631_v40 = vpop.f32.mrf.mxu1  ;;  %v11647_v22 = vpop.f32.mrf.mxu0 }
0x257b   :  { %15572 = vst [vmem:[#allocation4_spill] sm:$0xff] %v14986_v0  ;;  %v15023_v40 = vrot.slane %v14935_v4, %v13999_v41  ;;  %v15027_v22 = vrot.slane %v14935_v4, %v15567_v12 }
0x257c   :  { %v7243_v15 = vpop.f32.mrf.mxu1  ;;  %v7316_v11 = vpop.f32.mrf.mxu0 }
0x257d   :  { %v14993_v56 = vadd.f32 %v7243_v15, %v14990_v58  ;;  %v14996_v42 = vadd.f32 %v7316_v11, %v14981_v43 }
0x257e   :  { %v11632_v38 = vpop.f32.mrf.mxu1  ;;  %v11648_v57 = vpop.f32.mrf.mxu0 }
0x257f   :  { %15573 = vst [vmem:[#allocation5_spill] sm:$0xff] %v14996_v42 }
0x2580   :  { %v7248_v28 = vpop.f32.mrf.mxu1  ;;  %v7321_v50 = vpop.f32.mrf.mxu0 }
0x2581   :  { %v14999_v5 = vadd.f32 %v7248_v28, %v14990_v58  ;;  %v15002_v27 = vadd.f32 %v7321_v50, %v14981_v43 }
0x2582   :  { %v11635_v19 = vpop.f32.mrf.mxu1  ;;  %v11651_v8 = vpop.f32.mrf.mxu0 }
0x2584   :  { %v7251_v16 = vpop.f32.mrf.mxu1  ;;  %v7324_v30 = vpop.f32.mrf.mxu0 }
0x2585   :  { %v15005_v13 = vadd.f32 %v7251_v16, %v14990_v58  ;;  %v15008_v10 = vadd.f32 %v7324_v30, %v14981_v43 }
0x2586   :  { %v11636_v18 = vpop.f32.mrf.mxu1  ;;  %v11652_v20 = vpop.f32.mrf.mxu0 }
0x2588   :  { %v7256_v35 = vpop.f32.mrf.mxu1  ;;  %v7329_v48 = vpop.f32.mrf.mxu0 }
0x2589   :  { %v15011_v52 = vadd.f32 %v7256_v35, %v14990_v58  ;;  %v15014_v3 = vadd.f32 %v7329_v48, %v14981_v43 }
0x258a   :  { %v11639_v62 = vpop.f32.mrf.mxu1  ;;  %v11655_v7 = vpop.f32.mrf.mxu0 }
0x258c   :  { %v7259_v21 = vpop.f32.mrf.mxu1  ;;  %v15016_v1 = vpop.f32.mrf.mxu0 }
0x258d   :  { %v15019_v34 = vadd.f32 %v7259_v21, %v14990_v58 }
0x258e   :  { %v11640_v15 = vpop.f32.mrf.mxu1  ;;  %v11656_v11 = vpop.f32.mrf.mxu0 }
0x2590   :  { %v7386_v38 = vpop.f32.mrf.mxu1  ;;  %v7459_v57 = vpop.f32.mrf.mxu0 }
0x2591   :  { %v15030_v28 = vadd.f32 %v7386_v38, %v15023_v40  ;;  %v15033_v50 = vadd.f32 %v7459_v57, %v15027_v22 }
0x2592   :  { %v11663_v19 = vpop.f32.mrf.mxu1  ;;  %v11679_v8 = vpop.f32.mrf.mxu0 }
0x2593   :  { %15574 = vst [vmem:[#allocation6_spill] sm:$0xff] %v15030_v28  ;;  %15575 = vst [vmem:[#allocation7_spill] sm:$0xff] %v15033_v50 }
0x2594   :  { %v7389_v16 = vpop.f32.mrf.mxu1  ;;  %v7462_v30 = vpop.f32.mrf.mxu0 }
0x2595   :  { %v15036_v18 = vadd.f32 %v7389_v16, %v15023_v40  ;;  %v15039_v4 = vadd.f32 %v7462_v30, %v15027_v22 }
0x2596   :  { %v11664_v20 = vpop.f32.mrf.mxu1  ;;  %v11680_v35 = vpop.f32.mrf.mxu0 }
0x2597   :  { %15576 = vst [vmem:[#allocation8_spill] sm:$0xff] %v15036_v18  ;;  %15577 = vst [vmem:[#allocation9_spill] sm:$0xff] %v15039_v4  ;;  %v15077_v18 = vrot.slane %v15062_v55, %v13459_v31 }
0x2598   :  { %v7394_v48 = vpop.f32.mrf.mxu1  ;;  %v7467_v62 = vpop.f32.mrf.mxu0 }
0x2599   :  { %v15042_v7 = vadd.f32 %v7394_v48, %v15023_v40  ;;  %v15045_v21 = vadd.f32 %v7467_v62, %v15027_v22 }
0x259a   :  { %v11667_v15 = vpop.f32.mrf.mxu1  ;;  %v11683_v11 = vpop.f32.mrf.mxu0 }
0x259b   :  { %15578 = vst [vmem:[#allocation10_spill] sm:$0xff] %v15042_v7  ;;  %15579 = vst [vmem:[#allocation11_spill] sm:$0xff] %v15045_v21 }
0x259c   :  { %v7397_v38 = vpop.f32.mrf.mxu1  ;;  %v7470_v57 = vpop.f32.mrf.mxu0 }
0x259d   :  { %v15051_v19 = vadd.f32 %v7397_v38, %v15023_v40  ;;  %v15054_v8 = vadd.f32 %v7470_v57, %v15027_v22  ;;  %v15070_v57 = vrot.slane %v15062_v55, %v13394_v63 }
0x259e   :  { %v11668_v16 = vpop.f32.mrf.mxu1  ;;  %v11684_v30 = vpop.f32.mrf.mxu0 }
0x25a0   :  { %v7402_v20 = vpop.f32.mrf.mxu1  ;;  %v7475_v35 = vpop.f32.mrf.mxu0 }
0x25a1   :  { %v15057_v48 = vadd.f32 %v7402_v20, %v15023_v40  ;;  %v15060_v62 = vadd.f32 %v7475_v35, %v15027_v22  ;;  %v7095_v20 = vadd.f32 %v14937_v53, %v14943_v25 }
0x25a2   :  { %v11671_v15 = vpop.f32.mrf.mxu1  ;;  %v11687_v11 = vpop.f32.mrf.mxu0 }
0x25a4   :  { %v15064_v50 = vpop.f32.mrf.mxu1  ;;  %v15066_v38 = vpop.f32.mrf.mxu0 }
0x25a6   :  { %v11672_v16 = vpop.f32.mrf.mxu1  ;;  %v11688_v30 = vpop.f32.mrf.mxu0 }
0x25a7   :  { %v7168_v16 = vadd.f32 %v14939_v39, %v14947_v59 }
0x25a8   :  { %v7536_v28 = vpop.f32.mrf.mxu1 }
0x25a9   :  { %v7537_v35 = vadd.f32 %v7536_v28, %v15070_v57 }
0x25aa   :  { %v11695_v15 = vpop.f32.mrf.mxu1 }
0x25ab   :  { %v7654_v11 = vadd.f32 %v7537_v35, %v7095_v20 }
0x25ac   :  { %v7539_v0 = vpop.f32.mrf.mxu1 }
0x25ad   :  { %v10247_v4 = vmul.f32 -1.442695, %v7654_v11 }
0x25ae   :  { %v11696_v42 = vpop.f32.mrf.mxu1 }
0x25af   :  { %12958 = vpow2.f32 %v10247_v4  ;;  %v15084_v4 = vrot.slane %v15062_v55, %v13953_v6 }
0x25b0   :  { %v7592_v63 = vpop.f32.mrf.mxu1 }
0x25b1   :  { %v7593_v30 = vadd.f32 %v7592_v63, %v15077_v18  ;;  %v7241_v63 = vadd.f32 %v14983_v45, %v14990_v58 }
0x25b2   :  { %v11703_v21 = vpop.f32.mrf.mxu1 }
0x25b3   :  { %v7661_v53 = vadd.f32 %v7593_v30, %v7168_v16 }
0x25b4   :  { %v7595_v25 = vpop.f32.mrf.mxu1 }
0x25b5   :  { %v10248_v28 = vmul.f32 -1.442695, %v7661_v53 }
0x25b6   :  { %v11704_v15 = vpop.f32.mrf.mxu1 }
0x25b7   :  { %12960 = vpow2.f32 %v10248_v28 }
0x25b8   :  { %v7648_v20 = vpop.f32.mrf.mxu1 }
0x25b9   :  { %v7649_v59 = vadd.f32 %v7648_v20, %v15084_v4 }
0x25ba   :  { %v11711_v0 = vpop.f32.mrf.mxu1 }
0x25bc   :  { %v12959_v35 = vpop.eup %12958  ;;  %v7651_v11 = vpop.f32.mrf.mxu1 }
0x25bd   :  { %v7658_v31 = vadd.f32 1.0, %v12959_v35 }
0x25be   :  { %v11712_v7 = vpop.f32.mrf.mxu1 }
0x25bf   :  { %12962 = vrcp.f32 %v7658_v31 }
0x25c4   :  { %v12961_v42 = vpop.eup %12960 }
0x25c5   :  { %v7665_v39 = vadd.f32 1.0, %v12961_v42 }
0x25c7   :  { %12964 = vrcp.f32 %v7665_v39 }
0x25cc   :  { %v12963_v21 = vpop.eup %12962 }
0x25cd   :  { %v7668_v16 = vmul.f32 %v12963_v21, %v7649_v59 }
0x25cf   :  { %v7669_v30 = vadd.f32 %v7668_v16, %v7241_v63 }
0x25d1   :  { %12966 = vtanh.f32 %v7669_v30 }
0x25d4   :  { %v12965_v53 = vpop.eup %12964 }
0x25d5   :  { %v7671_v25 = vsub.f32 1.0, %v12965_v53  ;;  %v7673_v28 = vmul.f32 %v12965_v53, %v14890_v17 }
0x25de   :  { %v12967_v7 = vpop.eup %12966 }
0x25df   :  { %v7672_v15 = vmul.f32 %v12967_v7, %v7671_v25 }
0x25e1   :  { %v15090_v0 = vadd.f32 %v7673_v28, %v7672_v15 }
0x25e3   :  { %v7675_v6 = vpack.c.bf16 %v15090_v0, %v15090_v0 }
0x25e5   :  { %11718 = vmatmul.mubr.msk.bf16.vlgmr.msra.gmra.mxu0 %vm650_vm3, %v7675_v6  ;;  %11726 = vmatmul.mubr.msk.bf16.vlgmr.msra.gmra.mxu1 %vm650_vm3, %v7675_v6 }
0x25e6   :  { %11730 = vmatpush3.bf16.msra.mxu0 %v14910_v33  ;;  %11733 = vmatprep.mubr.msk.bf16.mxu0 %vm13133_vm5, %v15554_v47 }
0x25e7   :  { %11731 = vmatprep.subr.bf16.mxu0 %v15554_v47  ;;  %11738 = vmatpush3.bf16.msra.mxu1 %v14857_v54 }
0x25e8   :  { %11739 = vmatprep.subr.bf16.mxu1 %v15554_v47  ;;  %11741 = vmatprep.mubr.msk.bf16.mxu1 %vm13133_vm5, %v15554_v47 }
0x25ea   :  { %11732 = vmatpush3.bf16.msra.mxu0 %v14917_v61 }
0x25eb   :  { %11745 = vmatprep.subr.bf16.mxu0 %v15554_v47  ;;  %11740 = vmatpush3.bf16.msra.mxu1 %v14867_v44 }
0x25ec   :  { %11753 = vmatprep.subr.bf16.mxu1 %v15554_v47 }
0x25ed   :  { %11734 = vmatmul.mubr.msk.bf16.vlgmr.msra.gmra.mxu0 %vm650_vm3, %v7675_v6 }
0x25ee   :  { %11746 = vmatpush3.bf16.msra.mxu0 %v14893_v60  ;;  %11749 = vmatprep.mubr.msk.bf16.mxu0 %vm13133_vm5, %v15554_v47 }
0x25ef   :  { %11747 = vmatprep.subr.bf16.mxu0 %v15554_v47 }
0x25f2   :  { %11748 = vmatpush3.bf16.msra.mxu0 %v14903_v14 }
0x25f3   :  { %11761 = vmatprep.subr.bf16.mxu0 %v15554_v47 }
0x26a5   :  { %v7713_v45 = vpop.f32.mrf.mxu0  ;;  %v7753_v58 = vpop.f32.mrf.mxu1 }
0x26a6   :  { %v7714_v20 = vadd.f32 %v7713_v45, %v15070_v57  ;;  %v7754_v21 = vadd.f32 %v7753_v58, %v15077_v18 }
0x26a7   :  { %v11719_v35 = vpop.f32.mrf.mxu0  ;;  %v11727_v11 = vpop.f32.mrf.mxu1 }
0x26a8   :  { %v7799_v31 = vadd.f32 %v7714_v20, %v14950_v37  ;;  %v7806_v53 = vadd.f32 %v7754_v21, %v14953_v26 }
0x26a9   :  { %v7716_v42 = vpop.f32.mrf.mxu0  ;;  %v7756_v39 = vpop.f32.mrf.mxu1 }
0x26aa   :  { %v10252_v59 = vmul.f32 -1.442695, %v7799_v31  ;;  %v10253_v28 = vmul.f32 -1.442695, %v7806_v53 }
0x26ab   :  { %v11720_v63 = vpop.f32.mrf.mxu0  ;;  %v11728_v16 = vpop.f32.mrf.mxu1 }
0x26ac   :  { %12968 = vpow2.f32 %v10252_v59 }
0x26ad   :  { %v7793_v30 = vpop.f32.mrf.mxu0  ;;  %12970 = vpow2.f32 %v10253_v28 }
0x26ae   :  { %v7794_v35 = vadd.f32 %v7793_v30, %v15084_v4 }
0x26af   :  { %v11735_v25 = vpop.f32.mrf.mxu0 }
0x26b1   :  { %v7796_v7 = vpop.f32.mrf.mxu0 }
0x26b3   :  { %v11736_v15 = vpop.f32.mrf.mxu0 }
0x26b9   :  { %v12969_v6 = vpop.eup %12968 }
0x26ba   :  { %v7803_v45 = vadd.f32 1.0, %v12969_v6  ;;  %v12971_v37 = vpop.eup %12970 }
0x26bb   :  { %v7810_v20 = vadd.f32 1.0, %v12971_v37 }
0x26bc   :  { %12972 = vrcp.f32 %v7803_v45 }
0x26bd   :  { %12974 = vrcp.f32 %v7810_v20 }
0x26c9   :  { %v12973_v11 = vpop.eup %12972 }
0x26ca   :  { %v7813_v58 = vmul.f32 %v12973_v11, %v7794_v35  ;;  %v12975_v42 = vpop.eup %12974 }
0x26cb   :  { %v7816_v26 = vsub.f32 1.0, %v12975_v42  ;;  %v7818_v59 = vmul.f32 %v12975_v42, %v15090_v0 }
0x26cc   :  { %v7814_v31 = vadd.f32 %v7813_v58, %v14993_v56 }
0x26ce   :  { %12976 = vtanh.f32 %v7814_v31 }
0x26db   :  { %v12977_v39 = vpop.eup %12976 }
0x26dc   :  { %v7817_v21 = vmul.f32 %v12977_v39, %v7816_v26 }
0x26de   :  { %v15122_v63 = vadd.f32 %v7818_v59, %v7817_v21 }
0x26e0   :  { %v7820_v16 = vpack.c.bf16 %v15122_v63, %v15122_v63 }
0x26e2   :  { %11742 = vmatmul.mubr.msk.bf16.vlgmr.msra.gmra.mxu1 %vm650_vm3, %v7820_v16  ;;  %11750 = vmatmul.mubr.msk.bf16.vlgmr.msra.gmra.mxu0 %vm650_vm3, %v7820_v16 }
0x26e3   :  { %11754 = vmatpush3.bf16.msra.mxu1 %v14910_v33  ;;  %11757 = vmatprep.mubr.msk.bf16.mxu1 %vm13133_vm5, %v15554_v47 }
0x26e4   :  { %11755 = vmatprep.subr.bf16.mxu1 %v15554_v47  ;;  %11762 = vmatpush3.bf16.msra.mxu0 %v14857_v54 }
0x26e5   :  { %11763 = vmatprep.subr.bf16.mxu0 %v15554_v47  ;;  %11765 = vmatprep.mubr.msk.bf16.mxu0 %vm13133_vm5, %v15554_v47 }
0x26e7   :  { %11756 = vmatpush3.bf16.msra.mxu1 %v14917_v61 }
0x26e8   :  { %11769 = vmatprep.subr.bf16.mxu1 %v15554_v47  ;;  %11764 = vmatpush3.bf16.msra.mxu0 %v14867_v44 }
0x26e9   :  { %11777 = vmatprep.subr.bf16.mxu0 %v15554_v47 }
0x26ea   :  { %11758 = vmatmul.mubr.msk.bf16.vlgmr.msra.gmra.mxu1 %vm650_vm3, %v7820_v16 }
0x26eb   :  { %11770 = vmatpush3.bf16.msra.mxu1 %v14893_v60  ;;  %11773 = vmatprep.mubr.msk.bf16.mxu1 %vm13133_vm5, %v15554_v47 }
0x26ec   :  { %11771 = vmatprep.subr.bf16.mxu1 %v15554_v47 }
0x26ef   :  { %11772 = vmatpush3.bf16.msra.mxu1 %v14903_v14 }
0x26f0   :  { %11785 = vmatprep.subr.bf16.mxu1 %v15554_v47 }
0x27a2   :  { %v7858_v56 = vpop.f32.mrf.mxu1  ;;  %v7898_v30 = vpop.f32.mrf.mxu0 }
0x27a3   :  { %v7859_v53 = vadd.f32 %v7858_v56, %v15070_v57  ;;  %v7899_v37 = vadd.f32 %v7898_v30, %v15077_v18 }
0x27a4   :  { %v11743_v25 = vpop.f32.mrf.mxu1  ;;  %v11751_v7 = vpop.f32.mrf.mxu0 }
0x27a5   :  { %v7944_v28 = vadd.f32 %v7859_v53, %v14956_v36  ;;  %v7951_v58 = vadd.f32 %v7899_v37, %v14959_v9 }
0x27a6   :  { %v7861_v15 = vpop.f32.mrf.mxu1  ;;  %v7901_v6 = vpop.f32.mrf.mxu0 }
0x27a7   :  { %v10257_v45 = vmul.f32 -1.442695, %v7944_v28  ;;  %v10258_v26 = vmul.f32 -1.442695, %v7951_v58 }
0x27a8   :  { %v11744_v20 = vpop.f32.mrf.mxu1  ;;  %v11752_v35 = vpop.f32.mrf.mxu0 }
0x27a9   :  { %12978 = vpow2.f32 %v10257_v45 }
0x27aa   :  { %v7938_v11 = vpop.f32.mrf.mxu1  ;;  %12980 = vpow2.f32 %v10258_v26 }
0x27ab   :  { %v7939_v56 = vadd.f32 %v7938_v11, %v15084_v4 }
0x27ac   :  { %v11759_v31 = vpop.f32.mrf.mxu1 }
0x27ae   :  { %v7941_v42 = vpop.f32.mrf.mxu1 }
0x27b0   :  { %v11760_v39 = vpop.f32.mrf.mxu1 }
0x27b6   :  { %v12979_v59 = vpop.eup %12978 }
0x27b7   :  { %v7948_v21 = vadd.f32 1.0, %v12979_v59  ;;  %v12981_v36 = vpop.eup %12980 }
0x27b8   :  { %v7955_v16 = vadd.f32 1.0, %v12981_v36 }
0x27b9   :  { %12982 = vrcp.f32 %v7948_v21 }
0x27ba   :  { %12984 = vrcp.f32 %v7955_v16 }
0x27c6   :  { %v12983_v53 = vpop.eup %12982 }
0x27c7   :  { %v7958_v30 = vmul.f32 %v12983_v53, %v7939_v56  ;;  %v12985_v7 = vpop.eup %12984 }
0x27c8   :  { %v7961_v9 = vsub.f32 1.0, %v12985_v7  ;;  %v7963_v15 = vmul.f32 %v12985_v7, %v15122_v63 }
0x27c9   :  { %v7959_v25 = vadd.f32 %v7958_v30, %v14999_v5 }
0x27cb   :  { %12986 = vtanh.f32 %v7959_v25 }
0x27d8   :  { %v12987_v28 = vpop.eup %12986 }
0x27d9   :  { %v7962_v6 = vmul.f32 %v12987_v28, %v7961_v9 }
0x27db   :  { %v15154_v45 = vadd.f32 %v7963_v15, %v7962_v6 }
0x27dd   :  { %v7965_v37 = vpack.c.bf16 %v15154_v45, %v15154_v45 }
0x27df   :  { %11766 = vmatmul.mubr.msk.bf16.vlgmr.msra.gmra.mxu0 %vm650_vm3, %v7965_v37  ;;  %11774 = vmatmul.mubr.msk.bf16.vlgmr.msra.gmra.mxu1 %vm650_vm3, %v7965_v37 }
0x27e0   :  { %11778 = vmatpush3.bf16.msra.mxu0 %v14910_v33  ;;  %11781 = vmatprep.mubr.msk.bf16.mxu0 %vm13133_vm5, %v15554_v47 }
0x27e1   :  { %11779 = vmatprep.subr.bf16.mxu0 %v15554_v47  ;;  %11786 = vmatpush3.bf16.msra.mxu1 %v14857_v54 }
0x27e2   :  { %11787 = vmatprep.subr.bf16.mxu1 %v15554_v47  ;;  %11789 = vmatprep.mubr.msk.bf16.mxu1 %vm13133_vm5, %v15554_v47 }
0x27e4   :  { %11780 = vmatpush3.bf16.msra.mxu0 %v14917_v61 }
0x27e5   :  { %11793 = vmatprep.subr.bf16.mxu0 %v15554_v47  ;;  %11788 = vmatpush3.bf16.msra.mxu1 %v14867_v44 }
0x27e6   :  { %11801 = vmatprep.subr.bf16.mxu1 %v15554_v47 }
0x27e7   :  { %11782 = vmatmul.mubr.msk.bf16.vlgmr.msra.gmra.mxu0 %vm650_vm3, %v7965_v37 }
0x27e8   :  { %11794 = vmatpush3.bf16.msra.mxu0 %v14893_v60  ;;  %11797 = vmatprep.mubr.msk.bf16.mxu0 %vm13133_vm5, %v15554_v47 }
0x27e9   :  { %11795 = vmatprep.subr.bf16.mxu0 %v15554_v47 }
0x27ec   :  { %11796 = vmatpush3.bf16.msra.mxu0 %v14903_v14 }
0x27ed   :  { %11809 = vmatprep.subr.bf16.mxu0 %v15554_v47 }
0x289f   :  { %v8003_v5 = vpop.f32.mrf.mxu0  ;;  %v8043_v20 = vpop.f32.mrf.mxu1 }
0x28a0   :  { %v8004_v35 = vadd.f32 %v8003_v5, %v15070_v57  ;;  %v8044_v59 = vadd.f32 %v8043_v20, %v15077_v18 }
0x28a1   :  { %v11767_v11 = vpop.f32.mrf.mxu0  ;;  %v11775_v58 = vpop.f32.mrf.mxu1 }
0x28a2   :  { %v8089_v31 = vadd.f32 %v8004_v35, %v14962_v24  ;;  %v8096_v56 = vadd.f32 %v8044_v59, %v14965_v49 }
0x28a3   :  { %v8006_v42 = vpop.f32.mrf.mxu0  ;;  %v8046_v26 = vpop.f32.mrf.mxu1 }
0x28a4   :  { %v10262_v39 = vmul.f32 -1.442695, %v8089_v31  ;;  %v10263_v25 = vmul.f32 -1.442695, %v8096_v56 }
0x28a5   :  { %v11768_v21 = vpop.f32.mrf.mxu0  ;;  %v11776_v36 = vpop.f32.mrf.mxu1 }
0x28a6   :  { %12988 = vpow2.f32 %v10262_v39 }
0x28a7   :  { %v8083_v16 = vpop.f32.mrf.mxu0  ;;  %12990 = vpow2.f32 %v10263_v25 }
0x28a8   :  { %v8084_v6 = vadd.f32 %v8083_v16, %v15084_v4 }
0x28a9   :  { %v11783_v53 = vpop.f32.mrf.mxu0 }
0x28ab   :  { %v8086_v30 = vpop.f32.mrf.mxu0 }
0x28ad   :  { %v11784_v7 = vpop.f32.mrf.mxu0 }
0x28b3   :  { %v12989_v9 = vpop.eup %12988 }
0x28b4   :  { %v8093_v28 = vadd.f32 1.0, %v12989_v9  ;;  %v12991_v24 = vpop.eup %12990 }
0x28b5   :  { %v8100_v15 = vadd.f32 1.0, %v12991_v24 }
0x28b6   :  { %12992 = vrcp.f32 %v8093_v28 }
0x28b7   :  { %12994 = vrcp.f32 %v8100_v15 }
0x28c3   :  { %v12993_v37 = vpop.eup %12992 }
0x28c4   :  { %v8103_v5 = vmul.f32 %v12993_v37, %v8084_v6  ;;  %v12995_v35 = vpop.eup %12994 }
0x28c5   :  { %v8106_v49 = vsub.f32 1.0, %v12995_v35  ;;  %v8108_v58 = vmul.f32 %v12995_v35, %v15154_v45 }
0x28c6   :  { %v8104_v20 = vadd.f32 %v8103_v5, %v15005_v13 }
0x28c8   :  { %12996 = vtanh.f32 %v8104_v20 }
0x28d5   :  { %v12997_v11 = vpop.eup %12996 }
0x28d6   :  { %v8107_v31 = vmul.f32 %v12997_v11, %v8106_v49 }
0x28d8   :  { %v15186_v42 = vadd.f32 %v8108_v58, %v8107_v31 }
0x28da   :  { %v8110_v26 = vpack.c.bf16 %v15186_v42, %v15186_v42 }
0x28dc   :  { %11790 = vmatmul.mubr.msk.bf16.vlgmr.msra.gmra.mxu1 %vm650_vm3, %v8110_v26  ;;  %11798 = vmatmul.mubr.msk.bf16.vlgmr.msra.gmra.mxu0 %vm650_vm3, %v8110_v26 }
0x28dd   :  { %11802 = vmatpush3.bf16.msra.mxu1 %v14910_v33  ;;  %11805 = vmatprep.mubr.msk.bf16.mxu1 %vm13133_vm5, %v15554_v47 }
0x28de   :  { %11803 = vmatprep.subr.bf16.mxu1 %v15554_v47  ;;  %11810 = vmatpush3.bf16.msra.mxu0 %v14857_v54 }
0x28df   :  { %11811 = vmatprep.subr.bf16.mxu0 %v15554_v47  ;;  %11813 = vmatprep.mubr.msk.bf16.mxu0 %vm13133_vm5, %v15554_v47 }
0x28e1   :  { %11804 = vmatpush3.bf16.msra.mxu1 %v14917_v61 }
0x28e2   :  { %11817 = vmatprep.subr.bf16.mxu1 %v15554_v47  ;;  %11812 = vmatpush3.bf16.msra.mxu0 %v14867_v44 }
0x28e3   :  { %11825 = vmatprep.subr.bf16.mxu0 %v15554_v47 }
0x28e4   :  { %11806 = vmatmul.mubr.msk.bf16.vlgmr.msra.gmra.mxu1 %vm650_vm3, %v8110_v26 }
0x28e5   :  { %11818 = vmatpush3.bf16.msra.mxu1 %v14893_v60  ;;  %11821 = vmatprep.mubr.msk.bf16.mxu1 %vm13133_vm5, %v15554_v47 }
0x28e6   :  { %11819 = vmatprep.subr.bf16.mxu1 %v15554_v47 }
0x28e9   :  { %11820 = vmatpush3.bf16.msra.mxu1 %v14903_v14 }
0x28ea   :  { %11833 = vmatprep.subr.bf16.mxu1 %v15554_v47 }
0x299c   :  { %v8148_v54 = vpop.f32.mrf.mxu1  ;;  %v8188_v13 = vpop.f32.mrf.mxu0 }
0x299d   :  { %v8149_v39 = vadd.f32 %v8148_v54, %v15070_v57  ;;  %v8189_v56 = vadd.f32 %v8188_v13, %v15077_v18  ;;  %v15221_v13 = vld [vmem:[%s14802_s2 + $0x38] sm:$0xff]  }
0x299e   :  { %v11791_v44 = vpop.f32.mrf.mxu1  ;;  %v11799_v59 = vpop.f32.mrf.mxu0 }
0x299f   :  { %v8234_v21 = vadd.f32 %v8149_v39, %v14968_v32  ;;  %v8241_v14 = vadd.f32 %v8189_v56, %v14971_v2  ;;  %v15244_v44 = vld [vmem:[%s14802_s2 + $0x58] sm:$0xff]   ;;  %v15257_v59 = vld [vmem:[%s14802_s2 + $0x50] sm:$0xff]  }
0x29a0   :  { %v8151_v36 = vpop.f32.mrf.mxu1  ;;  %v8191_v16 = vpop.f32.mrf.mxu0 }
0x29a1   :  { %v10267_v60 = vmul.f32 -1.442695, %v8234_v21  ;;  %v10268_v28 = vmul.f32 -1.442695, %v8241_v14 }
0x29a2   :  { %v11792_v53 = vpop.f32.mrf.mxu1  ;;  %v11800_v30 = vpop.f32.mrf.mxu0 }
0x29a3   :  { %12998 = vpow2.f32 %v10267_v60 }
0x29a4   :  { %v8228_v25 = vpop.f32.mrf.mxu1  ;;  %13000 = vpow2.f32 %v10268_v28 }
0x29a5   :  { %v8229_v5 = vadd.f32 %v8228_v25, %v15084_v4 }
0x29a6   :  { %v11807_v7 = vpop.f32.mrf.mxu1 }
0x29a8   :  { %v8231_v9 = vpop.f32.mrf.mxu1 }
0x29a9   :  { %v15291_v9 = vrot.slane %v15062_v55, %v13988_v23  ;;  %v15298_v23 = vrot.slane %v15062_v55, %v13999_v41 }
0x29aa   :  { %v11808_v24 = vpop.f32.mrf.mxu1 }
0x29b0   :  { %v12999_v15 = vpop.eup %12998 }
0x29b1   :  { %v8238_v6 = vadd.f32 1.0, %v12999_v15  ;;  %v13001_v32 = vpop.eup %13000 }
0x29b2   :  { %v8245_v37 = vadd.f32 1.0, %v13001_v32 }
0x29b3   :  { %13002 = vrcp.f32 %v8238_v6 }
0x29b4   :  { %13004 = vrcp.f32 %v8245_v37 }
0x29c0   :  { %v13003_v20 = vpop.eup %13002 }
0x29c1   :  { %v8248_v35 = vmul.f32 %v13003_v20, %v8229_v5  ;;  %v13005_v2 = vpop.eup %13004 }
0x29c2   :  { %v8251_v11 = vsub.f32 1.0, %v13005_v2  ;;  %v8253_v31 = vmul.f32 %v13005_v2, %v15186_v42 }
0x29c3   :  { %v8249_v49 = vadd.f32 %v8248_v35, %v15011_v52  ;;  %v15230_v52 = vld [vmem:[%s14802_s2 + $0x30] sm:$0xff]  }
0x29c5   :  { %13006 = vtanh.f32 %v8249_v49 }
0x29d2   :  { %v13007_v58 = vpop.eup %13006 }
0x29d3   :  { %v8252_v26 = vmul.f32 %v13007_v58, %v8251_v11 }
0x29d5   :  { %v15218_v54 = vadd.f32 %v8253_v31, %v8252_v26 }
0x29d7   :  { %v8255_v39 = vpack.c.bf16 %v15218_v54, %v15218_v54 }
0x29d9   :  { %11814 = vmatmul.mubr.msk.bf16.vlgmr.msra.gmra.mxu0 %vm650_vm3, %v8255_v39  ;;  %11822 = vmatmul.mubr.msk.bf16.vlgmr.msra.gmra.mxu1 %vm650_vm3, %v8255_v39 }
0x29da   :  { %11826 = vmatpush3.bf16.msra.mxu0 %v14910_v33  ;;  %11834 = vmatpush3.bf16.msra.mxu1 %v15221_v13  ;;  %v15241_v33 = vld [vmem:[%s14802_s2 + $0x48] sm:$0xff]  }
0x29db   :  { %11827 = vmatprep.subr.bf16.mxu0 %v15554_v47  ;;  %11835 = vmatprep.subr.bf16.mxu1 %v15554_v47 }
0x29dc   :  { %11829 = vmatprep.mubr.msk.bf16.mxu0 %vm13133_vm5, %v15554_v47  ;;  %11837 = vmatprep.mubr.msk.bf16.mxu1 %vm13133_vm5, %v15554_v47 }
0x29de   :  { %11828 = vmatpush3.bf16.msra.mxu0 %v14917_v61  ;;  %11836 = vmatpush3.bf16.msra.mxu1 %v15230_v52  ;;  %v15254_v61 = vld [vmem:[%s14802_s2 + $0x40] sm:$0xff]  }
0x29df   :  { %11841 = vmatprep.subr.bf16.mxu0 %v15554_v47  ;;  %11849 = vmatprep.subr.bf16.mxu1 %v15554_v47 }
0x29e1   :  { %11830 = vmatmul.mubr.msk.bf16.vlgmr.msra.gmra.mxu0 %vm650_vm3, %v8255_v39  ;;  %11838 = vmatmul.mubr.msk.bf16.vlgmr.msra.gmra.mxu1 %vm650_vm3, %v14897_v46 }
0x29e2   :  { %11842 = vmatpush3.bf16.msra.mxu0 %v15241_v33  ;;  %11850 = vmatpush3.bf16.msra.mxu1 %v15244_v44 }
0x29e3   :  { %11843 = vmatprep.subr.bf16.mxu0 %v15554_v47  ;;  %11851 = vmatprep.subr.bf16.mxu1 %v15554_v47 }
0x29e4   :  { %11845 = vmatprep.mubr.msk.bf16.mxu0 %vm13133_vm5, %v15554_v47  ;;  %11853 = vmatprep.mubr.msk.bf16.mxu1 %vm13133_vm5, %v15554_v47 }
0x29e6   :  { %11844 = vmatpush3.bf16.msra.mxu0 %v15254_v61  ;;  %11852 = vmatpush3.bf16.msra.mxu1 %v15257_v59 }
0x29e7   :  { %11857 = vmatprep.subr.bf16.mxu0 %v15554_v47  ;;  %11865 = vmatprep.subr.bf16.mxu1 %v15554_v47 }
0x29e9   :  { %11846 = vmatmul.mubr.msk.bf16.vlgmr.msra.gmra.mxu0 %vm650_vm3, %v14897_v46  ;;  %11854 = vmatmul.mubr.msk.bf16.vlgmr.msra.gmra.mxu1 %vm650_vm3, %v14897_v46 }
0x29ea   :  { %11858 = vmatpush3.bf16.msra.mxu0 %v15221_v13  ;;  %11866 = vmatpush3.bf16.msra.mxu1 %v15241_v33 }
0x29eb   :  { %11859 = vmatprep.subr.bf16.mxu0 %v15554_v47  ;;  %11867 = vmatprep.subr.bf16.mxu1 %v15554_v47 }
0x29ec   :  { %11861 = vmatprep.mubr.msk.bf16.mxu0 %vm13133_vm5, %v15554_v47  ;;  %11869 = vmatprep.mubr.msk.bf16.mxu1 %vm13133_vm5, %v15554_v47 }
0x29ee   :  { %11860 = vmatpush3.bf16.msra.mxu0 %v15230_v52  ;;  %11868 = vmatpush3.bf16.msra.mxu1 %v15254_v61 }
0x29ef   :  { %11873 = vmatprep.subr.bf16.mxu0 %v15554_v47  ;;  %11881 = vmatprep.subr.bf16.mxu1 %v15554_v47 }
0x2a99   :  { %v8293_v46 = vpop.f32.mrf.mxu0  ;;  %v8333_v21 = vpop.f32.mrf.mxu1 }
0x2a9a   :  { %v8294_v36 = vadd.f32 %v8293_v46, %v15070_v57  ;;  %v8334_v16 = vadd.f32 %v8333_v21, %v15077_v18  ;;  %v7333_v18 = vadd.f32 %v15016_v1, %v14981_v43  ;;  %v7406_v43 = vadd.f32 %v15064_v50, %v15023_v40 }
0x2a9b   :  { %v11815_v60 = vpop.f32.mrf.mxu0  ;;  %v11823_v56 = vpop.f32.mrf.mxu1 }
0x2a9c   :  { %v8379_v53 = vadd.f32 %v8294_v36, %v14974_v29  ;;  %v8386_v30 = vadd.f32 %v8334_v16, %v14977_v51 }
0x2a9d   :  { %v8296_v25 = vpop.f32.mrf.mxu0  ;;  %v8336_v14 = vpop.f32.mrf.mxu1 }
0x2a9e   :  { %v10272_v7 = vmul.f32 -1.442695, %v8379_v53  ;;  %v10273_v20 = vmul.f32 -1.442695, %v8386_v30 }
0x2a9f   :  { %v11816_v28 = vpop.f32.mrf.mxu0  ;;  %v11824_v24 = vpop.f32.mrf.mxu1 }
0x2aa0   :  { %13008 = vpow2.f32 %v10272_v7 }
0x2aa1   :  { %v8373_v15 = vpop.f32.mrf.mxu0  ;;  %v8450_v57 = vpop.f32.mrf.mxu1 }
0x2aa2   :  { %v8451_v6 = vadd.f32 %v8450_v57, %v15291_v9  ;;  %v8374_v50 = vadd.f32 %v8373_v15, %v15084_v4  ;;  %v15307_v57 = vrot.slane %v15062_v55, %v15567_v12 }
0x2aa3   :  { %v11831_v29 = vpop.f32.mrf.mxu0  ;;  %v11839_v32 = vpop.f32.mrf.mxu1 }
0x2aa4   :  { %v8568_v51 = vadd.f32 %v8451_v6, %v7333_v18  ;;  %v7479_v32 = vadd.f32 %v15066_v38, %v15027_v22 }
0x2aa5   :  { %v8376_v37 = vpop.f32.mrf.mxu0  ;;  %v8453_v5 = vpop.f32.mrf.mxu1 }
0x2aa6   :  { %v10283_v35 = vmul.f32 -1.442695, %v8568_v51 }
0x2aa7   :  { %v11832_v49 = vpop.f32.mrf.mxu0  ;;  %v11840_v2 = vpop.f32.mrf.mxu1 }
0x2aa8   :  { %13010 = vpow2.f32 %v10283_v35 }
0x2aa9   :  { %v8506_v11 = vpop.f32.mrf.mxu0  ;;  %v8562_v58 = vpop.f32.mrf.mxu1  ;;  %13012 = vpow2.f32 %v10273_v20 }
0x2aaa   :  { %v8507_v1 = vadd.f32 %v8506_v11, %v15298_v23  ;;  %v8563_v6 = vadd.f32 %v8562_v58, %v15307_v57 }
0x2aab   :  { %v11847_v31 = vpop.f32.mrf.mxu0  ;;  %v11855_v26 = vpop.f32.mrf.mxu1 }
0x2aac   :  { %v8575_v39 = vadd.f32 %v8507_v1, %v7406_v43 }
0x2aad   :  { %v13009_v46 = vpop.eup %13008  ;;  %v8509_v21 = vpop.f32.mrf.mxu0 }
0x2aae   :  { %v8565_v36 = vpop.f32.mrf.mxu1  ;;  %v8383_v16 = vadd.f32 1.0, %v13009_v46  ;;  %v10284_v41 = vmul.f32 -1.442695, %v8575_v39 }
0x2aaf   :  { %v11848_v60 = vpop.f32.mrf.mxu0 }
0x2ab0   :  { %v11856_v56 = vpop.f32.mrf.mxu1  ;;  %13014 = vrcp.f32 %v8383_v16 }
0x2ab1   :  { %13016 = vpow2.f32 %v10284_v41 }
0x2ab5   :  { %v13011_v53 = vpop.eup %13010 }
0x2ab6   :  { %v8572_v30 = vadd.f32 1.0, %v13011_v53  ;;  %v13013_v25 = vpop.eup %13012 }
0x2ab7   :  { %v8390_v40 = vadd.f32 1.0, %v13013_v25 }
0x2ab8   :  { %13018 = vrcp.f32 %v8572_v30 }
0x2ab9   :  { %13020 = vrcp.f32 %v8390_v40 }
0x2abd   :  { %v13015_v14 = vpop.eup %13014 }
0x2abe   :  { %v8393_v7 = vmul.f32 %v13015_v14, %v8374_v50  ;;  %v13017_v28 = vpop.eup %13016 }
0x2abf   :  { %v8579_v18 = vadd.f32 1.0, %v13017_v28 }
0x2ac0   :  { %v8394_v24 = vadd.f32 %v8393_v7, %v15019_v34 }
0x2ac2   :  { %13022 = vtanh.f32 %v8394_v24 }
0x2ac3   :  { %13024 = vrcp.f32 %v8579_v18 }
0x2ac5   :  { %v13019_v29 = vpop.eup %13018 }
0x2ac6   :  { %v8582_v4 = vmul.f32 %v13019_v29, %v8563_v6  ;;  %v13021_v51 = vpop.eup %13020 }
0x2ac7   :  { %v8396_v37 = vsub.f32 1.0, %v13021_v51  ;;  %v8398_v20 = vmul.f32 %v13021_v51, %v15218_v54 }
0x2ac8   :  { %v8583_v15 = vadd.f32 %v8582_v4, %v7479_v32 }
0x2aca   :  { %13026 = vtanh.f32 %v8583_v15 }
0x2acf   :  { %v13023_v5 = vpop.eup %13022 }
0x2ad0   :  { %v8397_v34 = vmul.f32 %v13023_v5, %v8396_v37  ;;  %v13025_v55 = vpop.eup %13024 }
0x2ad1   :  { %v8585_v35 = vsub.f32 1.0, %v13025_v55  ;;  %v8587_v2 = vmul.f32 %v13025_v55, %v14890_v17 }
0x2ad2   :  { %v15313_v12 = vadd.f32 %v8398_v20, %v8397_v34 }
0x2ad7   :  { %v13027_v49 = vpop.eup %13026 }
0x2ad8   :  { %v8586_v11 = vmul.f32 %v13027_v49, %v8585_v35 }
0x2ada   :  { %v15316_v58 = vadd.f32 %v8587_v2, %v8586_v11 }
0x2adc   :  { %v8589_v22 = vpack.c.bf16 %v15316_v58, %v15316_v58 }
0x2ade   :  { %11862 = vmatmul.mubr.msk.bf16.vlgmr.msra.gmra.mxu0 %vm650_vm3, %v8589_v22  ;;  %11870 = vmatmul.mubr.msk.bf16.vlgmr.msra.gmra.mxu1 %vm650_vm3, %v8589_v22 }
0x2adf   :  { %11874 = vmatpush3.bf16.msra.mxu0 %v15244_v44  ;;  %11877 = vmatprep.mubr.msk.bf16.mxu0 %vm13133_vm5, %v15554_v47 }
0x2ae0   :  { %11875 = vmatprep.subr.bf16.mxu0 %v15554_v47  ;;  %11882 = vmatpush3.bf16.msra.mxu1 %v15221_v13 }
0x2ae1   :  { %11883 = vmatprep.subr.bf16.mxu1 %v15554_v47  ;;  %11885 = vmatprep.mubr.msk.bf16.mxu1 %vm13133_vm5, %v15554_v47 }
0x2ae3   :  { %11876 = vmatpush3.bf16.msra.mxu0 %v15257_v59 }
0x2ae4   :  { %11889 = vmatprep.subr.bf16.mxu0 %v15554_v47  ;;  %11884 = vmatpush3.bf16.msra.mxu1 %v15230_v52 }
0x2ae5   :  { %11897 = vmatprep.subr.bf16.mxu1 %v15554_v47 }
0x2ae6   :  { %11878 = vmatmul.mubr.msk.bf16.vlgmr.msra.gmra.mxu0 %vm650_vm3, %v8589_v22 }
0x2ae7   :  { %11890 = vmatpush3.bf16.msra.mxu0 %v15241_v33  ;;  %11893 = vmatprep.mubr.msk.bf16.mxu0 %vm13133_vm5, %v15554_v47 }
0x2ae8   :  { %11891 = vmatprep.subr.bf16.mxu0 %v15554_v47 }
0x2aeb   :  { %11892 = vmatpush3.bf16.msra.mxu0 %v15254_v61 }
0x2aec   :  { %11905 = vmatprep.subr.bf16.mxu0 %v15554_v47 }
0x2b9e   :  { %v8627_v17 = vpop.f32.mrf.mxu0  ;;  %v8667_v38 = vpop.f32.mrf.mxu1 }
0x2b9f   :  { %v8628_v43 = vadd.f32 %v8627_v17, %v15291_v9  ;;  %v8668_v36 = vadd.f32 %v8667_v38, %v15298_v23 }
0x2ba0   :  { %v11863_v1 = vpop.f32.mrf.mxu0  ;;  %v11871_v31 = vpop.f32.mrf.mxu1 }
0x2ba1   :  { %v8713_v26 = vadd.f32 %v8628_v43, %v15014_v3  ;;  %v8720_v56 = vadd.f32 %v8668_v36, %v15057_v48 }
0x2ba2   :  { %v8630_v39 = vpop.f32.mrf.mxu0  ;;  %v8670_v46 = vpop.f32.mrf.mxu1 }
0x2ba3   :  { %v10288_v21 = vmul.f32 -1.442695, %v8713_v26  ;;  %v10289_v25 = vmul.f32 -1.442695, %v8720_v56 }
0x2ba4   :  { %v11864_v16 = vpop.f32.mrf.mxu0  ;;  %v11872_v41 = vpop.f32.mrf.mxu1 }
0x2ba5   :  { %13028 = vpow2.f32 %v10288_v21 }
0x2ba6   :  { %v8707_v60 = vpop.f32.mrf.mxu0  ;;  %13030 = vpow2.f32 %v10289_v25 }
0x2ba7   :  { %v8708_v28 = vadd.f32 %v8707_v60, %v15307_v57 }
0x2ba8   :  { %v11879_v53 = vpop.f32.mrf.mxu0 }
0x2baa   :  { %v8710_v30 = vpop.f32.mrf.mxu0 }
0x2bac   :  { %v11880_v40 = vpop.f32.mrf.mxu0 }
0x2bb2   :  { %v13029_v50 = vpop.eup %13028 }
0x2bb3   :  { %v8717_v14 = vadd.f32 1.0, %v13029_v50  ;;  %v13031_v3 = vpop.eup %13030 }
0x2bb4   :  { %v8724_v7 = vadd.f32 1.0, %v13031_v3 }
0x2bb5   :  { %13032 = vrcp.f32 %v8717_v14 }
0x2bb6   :  { %13034 = vrcp.f32 %v8724_v7 }
0x2bc2   :  { %v13033_v24 = vpop.eup %13032 }
0x2bc3   :  { %v8727_v18 = vmul.f32 %v13033_v24, %v8708_v28  ;;  %v13035_v29 = vpop.eup %13034 }
0x2bc4   :  { %v8730_v48 = vsub.f32 1.0, %v13035_v29  ;;  %v8732_v4 = vmul.f32 %v13035_v29, %v15316_v58 }
0x2bc5   :  { %v8728_v6 = vadd.f32 %v8727_v18, %v15060_v62 }
0x2bc7   :  { %13036 = vtanh.f32 %v8728_v6 }
0x2bd4   :  { %v13037_v32 = vpop.eup %13036 }
0x2bd5   :  { %v8731_v15 = vmul.f32 %v13037_v32, %v8730_v48 }
0x2bd7   :  { %v15348_v51 = vadd.f32 %v8732_v4, %v8731_v15 }
0x2bd9   :  { %v8734_v37 = vpack.c.bf16 %v15348_v51, %v15348_v51 }
0x2bdb   :  { %11886 = vmatmul.mubr.msk.bf16.vlgmr.msra.gmra.mxu1 %vm650_vm3, %v8734_v37  ;;  %11894 = vmatmul.mubr.msk.bf16.vlgmr.msra.gmra.mxu0 %vm650_vm3, %v8734_v37 }
0x2bdc   :  { %11898 = vmatpush3.bf16.msra.mxu1 %v15244_v44  ;;  %11901 = vmatprep.mubr.msk.bf16.mxu1 %vm13133_vm5, %v15554_v47 }
0x2bdd   :  { %11899 = vmatprep.subr.bf16.mxu1 %v15554_v47  ;;  %11906 = vmatpush3.bf16.msra.mxu0 %v15221_v13 }
0x2bde   :  { %11907 = vmatprep.subr.bf16.mxu0 %v15554_v47  ;;  %11909 = vmatprep.mubr.msk.bf16.mxu0 %vm13133_vm5, %v15554_v47 }
0x2be0   :  { %11900 = vmatpush3.bf16.msra.mxu1 %v15257_v59 }
0x2be1   :  { %11913 = vmatprep.subr.bf16.mxu1 %v15554_v47  ;;  %11908 = vmatpush3.bf16.msra.mxu0 %v15230_v52 }
0x2be2   :  { %11921 = vmatprep.subr.bf16.mxu0 %v15554_v47 }
0x2be3   :  { %11902 = vmatmul.mubr.msk.bf16.vlgmr.msra.gmra.mxu1 %vm650_vm3, %v8734_v37 }
0x2be4   :  { %11914 = vmatpush3.bf16.msra.mxu1 %v15241_v33  ;;  %11917 = vmatprep.mubr.msk.bf16.mxu1 %vm13133_vm5, %v15554_v47 }
0x2be5   :  { %11915 = vmatprep.subr.bf16.mxu1 %v15554_v47 }
0x2be8   :  { %11916 = vmatpush3.bf16.msra.mxu1 %v15254_v61 }
0x2be9   :  { %11929 = vmatprep.subr.bf16.mxu1 %v15554_v47 }
0x2c9b   :  { %v8772_v62 = vpop.f32.mrf.mxu1  ;;  %v8812_v5 = vpop.f32.mrf.mxu0 }
0x2c9c   :  { %v8773_v34 = vadd.f32 %v8772_v62, %v15291_v9  ;;  %v8813_v22 = vadd.f32 %v8812_v5, %v15298_v23  ;;  %v15580_v5 = vld [vmem:[#allocation10_spill] sm:$0xff] }
0x2c9d   :  { %v11887_v20 = vpop.f32.mrf.mxu1  ;;  %v11895_v55 = vpop.f32.mrf.mxu0 }
0x2c9e   :  { %v8858_v35 = vadd.f32 %v8773_v34, %v15008_v10  ;;  %v8865_v1 = vadd.f32 %v8813_v22, %v15051_v19 }
0x2c9f   :  { %v8775_v49 = vpop.f32.mrf.mxu1  ;;  %v8815_v2 = vpop.f32.mrf.mxu0 }
0x2ca0   :  { %v10293_v11 = vmul.f32 -1.442695, %v8858_v35  ;;  %v10294_v39 = vmul.f32 -1.442695, %v8865_v1  ;;  %v15581_v1 = vld [vmem:[#allocation11_spill] sm:$0xff] }
0x2ca1   :  { %v11888_v17 = vpop.f32.mrf.mxu1  ;;  %v11896_v38 = vpop.f32.mrf.mxu0 }
0x2ca2   :  { %13038 = vpow2.f32 %v10293_v11 }
0x2ca3   :  { %v8852_v43 = vpop.f32.mrf.mxu1  ;;  %13040 = vpow2.f32 %v10294_v39 }
0x2ca4   :  { %v8853_v41 = vadd.f32 %v8852_v43, %v15307_v57 }
0x2ca5   :  { %v11903_v31 = vpop.f32.mrf.mxu1 }
0x2ca7   :  { %v8855_v26 = vpop.f32.mrf.mxu1 }
0x2ca9   :  { %v11904_v46 = vpop.f32.mrf.mxu1 }
0x2caf   :  { %v13039_v21 = vpop.eup %13038 }
0x2cb0   :  { %v8862_v36 = vadd.f32 1.0, %v13039_v21  ;;  %v13041_v10 = vpop.eup %13040 }
0x2cb1   :  { %v8869_v16 = vadd.f32 1.0, %v13041_v10 }
0x2cb2   :  { %13042 = vrcp.f32 %v8862_v36 }
0x2cb3   :  { %13044 = vrcp.f32 %v8869_v16 }
0x2cbf   :  { %v13043_v60 = vpop.eup %13042 }
0x2cc0   :  { %v8872_v56 = vmul.f32 %v13043_v60, %v8853_v41  ;;  %v13045_v30 = vpop.eup %13044 }
0x2cc1   :  { %v8875_v19 = vsub.f32 1.0, %v13045_v30  ;;  %v8877_v40 = vmul.f32 %v13045_v30, %v15348_v51 }
0x2cc2   :  { %v8873_v53 = vadd.f32 %v8872_v56, %v15054_v8 }
0x2cc4   :  { %13046 = vtanh.f32 %v8873_v53  ;;  %v15582_v53 = vld [vmem:[#allocation5_spill] sm:$0xff] }
0x2cd1   :  { %v13047_v25 = vpop.eup %13046 }
0x2cd2   :  { %v8876_v50 = vmul.f32 %v13047_v25, %v8875_v19 }
0x2cd4   :  { %v15380_v14 = vadd.f32 %v8877_v40, %v8876_v50 }
0x2cd6   :  { %v8879_v3 = vpack.c.bf16 %v15380_v14, %v15380_v14 }
0x2cd8   :  { %11910 = vmatmul.mubr.msk.bf16.vlgmr.msra.gmra.mxu0 %vm650_vm3, %v8879_v3  ;;  %11918 = vmatmul.mubr.msk.bf16.vlgmr.msra.gmra.mxu1 %vm650_vm3, %v8879_v3 }
0x2cd9   :  { %11922 = vmatpush3.bf16.msra.mxu0 %v15244_v44  ;;  %11925 = vmatprep.mubr.msk.bf16.mxu0 %vm13133_vm5, %v15554_v47 }
0x2cda   :  { %11923 = vmatprep.subr.bf16.mxu0 %v15554_v47  ;;  %11930 = vmatpush3.bf16.msra.mxu1 %v15221_v13 }
0x2cdb   :  { %11931 = vmatprep.subr.bf16.mxu1 %v15554_v47  ;;  %11933 = vmatprep.mubr.msk.bf16.mxu1 %vm13133_vm5, %v15554_v47 }
0x2cdd   :  { %11924 = vmatpush3.bf16.msra.mxu0 %v15257_v59 }
0x2cde   :  { %11937 = vmatprep.subr.bf16.mxu0 %v15554_v47  ;;  %11932 = vmatpush3.bf16.msra.mxu1 %v15230_v52 }
0x2cdf   :  { %11945 = vmatprep.subr.bf16.mxu1 %v15554_v47 }
0x2ce0   :  { %11926 = vmatmul.mubr.msk.bf16.vlgmr.msra.gmra.mxu0 %vm650_vm3, %v8879_v3 }
0x2ce1   :  { %11938 = vmatpush3.bf16.msra.mxu0 %v15241_v33  ;;  %11941 = vmatprep.mubr.msk.bf16.mxu0 %vm13133_vm5, %v15554_v47 }
0x2ce2   :  { %11939 = vmatprep.subr.bf16.mxu0 %v15554_v47 }
0x2ce5   :  { %11940 = vmatpush3.bf16.msra.mxu0 %v15254_v61 }
0x2ce6   :  { %11953 = vmatprep.subr.bf16.mxu0 %v15554_v47 }
0x2d98   :  { %v8917_v8 = vpop.f32.mrf.mxu0  ;;  %v8957_v7 = vpop.f32.mrf.mxu1 }
0x2d99   :  { %v8918_v28 = vadd.f32 %v8917_v8, %v15291_v9  ;;  %v8958_v4 = vadd.f32 %v8957_v7, %v15298_v23 }
0x2d9a   :  { %v11911_v24 = vpop.f32.mrf.mxu0  ;;  %v11919_v18 = vpop.f32.mrf.mxu1 }
0x2d9b   :  { %v9003_v6 = vadd.f32 %v8918_v28, %v15002_v27  ;;  %v9010_v34 = vadd.f32 %v8958_v4, %v15580_v5  ;;  %v15584_v5 = vld [vmem:[#allocation9_spill] sm:$0xff] }
0x2d9c   :  { %v8920_v29 = vpop.f32.mrf.mxu0  ;;  %v8960_v48 = vpop.f32.mrf.mxu1 }
0x2d9d   :  { %v10298_v32 = vmul.f32 -1.442695, %v9003_v6  ;;  %v10299_v35 = vmul.f32 -1.442695, %v9010_v34 }
0x2d9e   :  { %v11912_v15 = vpop.f32.mrf.mxu0  ;;  %v11920_v37 = vpop.f32.mrf.mxu1 }
0x2d9f   :  { %13048 = vpow2.f32 %v10298_v32 }
0x2da0   :  { %v8997_v62 = vpop.f32.mrf.mxu0  ;;  %13050 = vpow2.f32 %v10299_v35 }
0x2da1   :  { %v8998_v17 = vadd.f32 %v8997_v62, %v15307_v57 }
0x2da2   :  { %v11927_v20 = vpop.f32.mrf.mxu0 }
0x2da4   :  { %v9000_v55 = vpop.f32.mrf.mxu0 }
0x2da6   :  { %v11928_v49 = vpop.f32.mrf.mxu0 }
0x2dac   :  { %v13049_v2 = vpop.eup %13048 }
0x2dad   :  { %v9007_v11 = vadd.f32 1.0, %v13049_v2  ;;  %v13051_v27 = vpop.eup %13050 }
0x2dae   :  { %v9014_v22 = vadd.f32 1.0, %v13051_v27 }
0x2daf   :  { %13052 = vrcp.f32 %v9007_v11 }
0x2db0   :  { %13054 = vrcp.f32 %v9014_v22 }
0x2dbc   :  { %v13053_v38 = vpop.eup %13052 }
0x2dbd   :  { %v9017_v43 = vmul.f32 %v13053_v38, %v8998_v17  ;;  %v13055_v26 = vpop.eup %13054 }
0x2dbe   :  { %v9020_v39 = vsub.f32 1.0, %v13055_v26  ;;  %v9022_v21 = vmul.f32 %v13055_v26, %v15380_v14 }
0x2dbf   :  { %v9018_v31 = vadd.f32 %v9017_v43, %v15581_v1 }
0x2dc1   :  { %13056 = vtanh.f32 %v9018_v31  ;;  %v15586_v31 = vld [vmem:[#allocation6_spill] sm:$0xff] }
0x2dce   :  { %v13057_v46 = vpop.eup %13056 }
0x2dcf   :  { %v9021_v36 = vmul.f32 %v13057_v46, %v9020_v39 }
0x2dd1   :  { %v15412_v10 = vadd.f32 %v9022_v21, %v9021_v36 }
0x2dd3   :  { %v9024_v16 = vpack.c.bf16 %v15412_v10, %v15412_v10 }
0x2dd5   :  { %11934 = vmatmul.mubr.msk.bf16.vlgmr.msra.gmra.mxu1 %vm650_vm3, %v9024_v16  ;;  %11942 = vmatmul.mubr.msk.bf16.vlgmr.msra.gmra.mxu0 %vm650_vm3, %v9024_v16 }
0x2dd6   :  { %11946 = vmatpush3.bf16.msra.mxu1 %v15244_v44  ;;  %11949 = vmatprep.mubr.msk.bf16.mxu1 %vm13133_vm5, %v15554_v47 }
0x2dd7   :  { %11947 = vmatprep.subr.bf16.mxu1 %v15554_v47  ;;  %11954 = vmatpush3.bf16.msra.mxu0 %v15221_v13 }
0x2dd8   :  { %11955 = vmatprep.subr.bf16.mxu0 %v15554_v47  ;;  %11957 = vmatprep.mubr.msk.bf16.mxu0 %vm13133_vm5, %v15554_v47 }
0x2dda   :  { %11948 = vmatpush3.bf16.msra.mxu1 %v15257_v59 }
0x2ddb   :  { %11961 = vmatprep.subr.bf16.mxu1 %v15554_v47  ;;  %11956 = vmatpush3.bf16.msra.mxu0 %v15230_v52 }
0x2ddc   :  { %11969 = vmatprep.subr.bf16.mxu0 %v15554_v47 }
0x2ddd   :  { %11950 = vmatmul.mubr.msk.bf16.vlgmr.msra.gmra.mxu1 %vm650_vm3, %v9024_v16 }
0x2dde   :  { %11962 = vmatpush3.bf16.msra.mxu1 %v15241_v33  ;;  %11965 = vmatprep.mubr.msk.bf16.mxu1 %vm13133_vm5, %v15554_v47 }
0x2ddf   :  { %11963 = vmatprep.subr.bf16.mxu1 %v15554_v47 }
0x2de2   :  { %11964 = vmatpush3.bf16.msra.mxu1 %v15254_v61  ;;  %v15583_v61 = vld [vmem:[#allocation8_spill] sm:$0xff] }
0x2de3   :  { %11977 = vmatprep.subr.mxu1 %v15313_v12 }
0x2e95   :  { %v9062_v13 = vpop.f32.mrf.mxu1  ;;  %v9102_v41 = vpop.f32.mrf.mxu0 }
0x2e96   :  { %v9063_v60 = vadd.f32 %v9062_v13, %v15291_v9  ;;  %v9103_v40 = vadd.f32 %v9102_v41, %v15298_v23 }
0x2e97   :  { %v11935_v52 = vpop.f32.mrf.mxu1  ;;  %v11943_v56 = vpop.f32.mrf.mxu0 }
0x2e98   :  { %v9148_v30 = vadd.f32 %v9063_v60, %v15582_v53  ;;  %v9155_v7 = vadd.f32 %v9103_v40, %v15583_v61  ;;  %v15587_v52 = vld [vmem:[#allocation7_spill] sm:$0xff]  ;;  %v15588_v61 = vmov 0  }
0x2e99   :  { %v9065_v19 = vpop.f32.mrf.mxu1  ;;  %v9105_v25 = vpop.f32.mrf.mxu0 }
0x2e9a   :  { %v10303_v33 = vmul.f32 -1.442695, %v9148_v30  ;;  %v10304_v18 = vmul.f32 -1.442695, %v9155_v7 }
0x2e9b   :  { %v11936_v50 = vpop.f32.mrf.mxu1  ;;  %v11944_v3 = vpop.f32.mrf.mxu0 }
0x2e9c   :  { %13058 = vpow2.f32 %v10303_v33  ;;  %v9566_v50 = vld [vmem:[%s9659_s13 + $0x8] sm:$0xff] }
0x2e9d   :  { %v9142_v8 = vpop.f32.mrf.mxu1  ;;  %13060 = vpow2.f32 %v10304_v18  ;;  %vm9568_vm12 = vcmp.eq.s32.totalorder %v9566_v50, 0  ;;  %vm9591_vm14 = vcmp.eq.s32.totalorder %v9566_v50, 1  ;;  %vm9614_vm1 = vcmp.eq.s32.totalorder %v9566_v50, 2 }
0x2e9e   :  { %v9143_v15 = vadd.f32 %v9142_v8, %v15307_v57  ;;  %v9593_v18 = vsel %vm9591_vm14, 1, %v15588_v61 }
0x2e9f   :  { %v11951_v28 = vpop.f32.mrf.mxu1 }
0x2ea0   :  { %v9570_v28 = vsel %vm9568_vm12, 1, %v15588_v61 }
0x2ea1   :  { %v9145_v24 = vpop.f32.mrf.mxu1 }
0x2ea3   :  { %v11952_v6 = vpop.f32.mrf.mxu1 }
0x2ea9   :  { %v13059_v29 = vpop.eup %13058 }
0x2eaa   :  { %v9152_v48 = vadd.f32 1.0, %v13059_v29  ;;  %v13061_v32 = vpop.eup %13060  ;;  %v9616_v29 = vsel %vm9614_vm1, 1, %v15588_v61 }
0x2eab   :  { %v9159_v4 = vadd.f32 1.0, %v13061_v32 }
0x2eac   :  { %13062 = vrcp.f32 %v9152_v48  ;;  %v9557_v48 = vld [vmem:[%s9658_s3] sm:$0x7] }
0x2ead   :  { %13064 = vrcp.f32 %v9159_v4 }
0x2eb9   :  { %v13063_v37 = vpop.eup %13062 }
0x2eba   :  { %v9162_v62 = vmul.f32 %v13063_v37, %v9143_v15  ;;  %v13065_v20 = vpop.eup %13064 }
0x2ebb   :  { %v9165_v55 = vsub.f32 1.0, %v13065_v20  ;;  %v9167_v49 = vmul.f32 %v13065_v20, %v15412_v10 }
0x2ebc   :  { %v9163_v34 = vadd.f32 %v9162_v62, %v15584_v5 }
0x2ebe   :  { %13066 = vtanh.f32 %v9163_v34 }
0x2ecb   :  { %v13067_v35 = vpop.eup %13066 }
0x2ecc   :  { %v9166_v2 = vmul.f32 %v13067_v35, %v9165_v55 }
0x2ece   :  { %v15444_v11 = vadd.f32 %v9167_v49, %v9166_v2 }
0x2ed0   :  { %v9169_v27 = vpack.c.bf16 %v15444_v11, %v15444_v11 }
0x2ed2   :  { %11958 = vmatmul.mubr.msk.bf16.vlgmr.msra.gmra.mxu0 %vm650_vm3, %v9169_v27  ;;  %11966 = vmatmul.mubr.msk.bf16.vlgmr.msra.gmra.mxu1 %vm650_vm3, %v9169_v27 }
0x2ed3   :  { %11970 = vmatpush3.bf16.msra.mxu0 %v15244_v44  ;;  %11978 = vmatpush3.msra.mxu1 %v15313_v12  ;;  %v15585_v12 = vld [vmem:[#allocation4_spill] sm:$0xff] }
0x2ed4   :  { %11979 = vmatprep.subr.mxu1 %v15218_v54  ;;  %11971 = vmatprep.subr.bf16.mxu0 %v15554_v47 }
0x2ed5   :  { %11980 = vmatpush3.msra.mxu1 %v15218_v54  ;;  %11973 = vmatprep.mubr.msk.bf16.mxu0 %vm13133_vm5, %v15554_v47 }
0x2ed6   :  { %11981 = vmatprep.subr.mxu1 %v15186_v42 }
0x2ed7   :  { %11972 = vmatpush3.bf16.msra.mxu0 %v15257_v59  ;;  %11982 = vmatpush3.msra.mxu1 %v15186_v42 }
0x2ed8   :  { %11983 = vmatprep.subr.mxu1 %v15154_v45  ;;  %11992 = vmatprep.subr.mxu0 %v15316_v58 }
0x2ed9   :  { %11984 = vmatpush3.msra.mxu1 %v15154_v45 }
0x2eda   :  { %11985 = vmatprep.subr.mxu1 %v15122_v63  ;;  %11974 = vmatmul.mubr.msk.bf16.vlgmr.msra.gmra.mxu0 %vm650_vm3, %v9169_v27 }
0x2edb   :  { %11986 = vmatpush3.msra.mxu1 %v15122_v63  ;;  %11993 = vmatpush3.msra.mxu0 %v15316_v58  ;;  %v9315_v63 = vld [vmem:[%s9656_s27 + $0x8] sm:$0xff] }
0x2edc   :  { %11987 = vmatprep.subr.mxu1 %v15090_v0  ;;  %11994 = vmatprep.subr.mxu0 %v15348_v51 }
0x2edd   :  { %11988 = vmatpush3.msra.mxu1 %v15090_v0  ;;  %11995 = vmatpush3.msra.mxu0 %v15348_v51  ;;  %v9314_v0 = vld [vmem:[%s9656_s27] sm:$0xff] }
0x2ede   :  { %11996 = vmatprep.subr.mxu0 %v15380_v14  ;;  %12007 = vmatprep.subr.mxu1 %v15554_v47 }
0x2edf   :  { %11997 = vmatpush3.msra.mxu0 %v15380_v14  ;;  %12004 = vmatprep.mubr.msk.f32.mxu0 %vm9316_vm0, %v9314_v0 }
0x2ee0   :  { %11998 = vmatprep.subr.mxu0 %v15412_v10  ;;  %11989 = vmatprep.mubr.msk.f32.mxu1 %vm9316_vm0, %v9314_v0 }
0x2ee1   :  { %11999 = vmatpush3.msra.mxu0 %v15412_v10  ;;  %11990 = vmatmul.mubr.msk.f32.vlgmr.msra.gmra.mxu1 %vm9316_vm0, %v9315_v63 }
0x2ee2   :  { %12000 = vmatprep.subr.mxu0 %v15444_v11  ;;  %12011 = vmatprep.mubr.msk.f32.mxu1 %vm13133_vm5, %v15554_v47 }
0x2ee3   :  { %12001 = vmatpush3.msra.mxu0 %v15444_v11 }
0x2f92   :  { %v9207_v45 = vpop.f32.mrf.mxu0  ;;  %v9247_v42 = vpop.f32.mrf.mxu1 }
0x2f93   :  { %v9208_v54 = vadd.f32 %v9207_v45, %v15291_v9  ;;  %v9248_v17 = vadd.f32 %v9247_v42, %v15298_v23 }
0x2f94   :  { %v11959_v44 = vpop.f32.mrf.mxu0  ;;  %v11967_v59 = vpop.f32.mrf.mxu1 }
0x2f95   :  { %v9293_v58 = vadd.f32 %v9208_v54, %v15585_v12  ;;  %v9300_v26 = vadd.f32 %v9248_v17, %v15586_v31 }
0x2f96   :  { %v9210_v51 = vpop.f32.mrf.mxu0  ;;  %v9250_v14 = vpop.f32.mrf.mxu1 }
0x2f97   :  { %v10308_v22 = vmul.f32 -1.442695, %v9293_v58  ;;  %v10309_v21 = vmul.f32 -1.442695, %v9300_v26 }
0x2f98   :  { %v11960_v38 = vpop.f32.mrf.mxu0  ;;  %v11968_v43 = vpop.f32.mrf.mxu1 }
0x2f99   :  { %13068 = vpow2.f32 %v10308_v22 }
0x2f9a   :  { %v9287_v1 = vpop.f32.mrf.mxu0  ;;  %13070 = vpow2.f32 %v10309_v21 }
0x2f9b   :  { %v9288_v41 = vadd.f32 %v9287_v1, %v15307_v57  ;;  %v9565_v57 = vld [vmem:[%s9659_s13] sm:$0xff] }
0x2f9c   :  { %v11975_v39 = vpop.f32.mrf.mxu0  ;;  %vm9567_vm5 = vcmp.eq.s32.totalorder %v9565_v57, 0  ;;  %vm9590_vm13 = vcmp.eq.s32.totalorder %v9565_v57, 1  ;;  %vm9613_vm15 = vcmp.eq.s32.totalorder %v9565_v57, 2 }
0x2f9d   :  { %v9569_v7 = vsel %vm9567_vm5, 1, %v15588_v61  ;;  %v9592_v24 = vsel %vm9590_vm13, 1, %v15588_v61  ;;  %v9615_v6 = vsel %vm9613_vm15, 1, %v15588_v61 }
0x2f9e   :  { %v9290_v46 = vpop.f32.mrf.mxu0 }
0x2fa0   :  { %v11976_v36 = vpop.f32.mrf.mxu0 }
0x2fa1   :  { %v11991_v32 = vpop.f32.mrf.mxu1 }
0x2fa3   :  { %v9389_v37 = vpop.f32.mrf.mxu1 }
0x2fa6   :  { %v13069_v9 = vpop.eup %13068 }
0x2fa7   :  { %v9297_v10 = vadd.f32 1.0, %v13069_v9  ;;  %v13071_v16 = vpop.eup %13070 }
0x2fa8   :  { %v9304_v13 = vadd.f32 1.0, %v13071_v16 }
0x2fa9   :  { %13072 = vrcp.f32 %v9297_v10 }
0x2faa   :  { %13074 = vrcp.f32 %v9304_v13 }
0x2fb6   :  { %v13073_v60 = vpop.eup %13072 }
0x2fb7   :  { %v9307_v23 = vmul.f32 %v13073_v60, %v9288_v41  ;;  %v13075_v53 = vpop.eup %13074 }
0x2fb8   :  { %v9310_v30 = vsub.f32 1.0, %v13075_v53  ;;  %v9312_v33 = vmul.f32 %v13075_v53, %v15444_v11 }
0x2fb9   :  { %v9308_v56 = vadd.f32 %v9307_v23, %v15587_v52 }
0x2fbb   :  { %13076 = vtanh.f32 %v9308_v56 }
0x2fc8   :  { %v13077_v19 = vpop.eup %13076 }
0x2fc9   :  { %v9311_v25 = vmul.f32 %v13077_v19, %v9310_v30 }
0x2fcb   :  { %v9313_v40 = vadd.f32 %v9312_v33, %v9311_v25 }
0x2fcd   :  { %12002 = vmatprep.subr.mxu0 %v9313_v40 }
0x2fce   :  { %12003 = vmatpush3.msra.mxu0 %v9313_v40 }
0x2fcf   :  { %12005 = vmatmul.mubr.msk.f32.vlgmr.msra.gmra.mxu0 %vm9316_vm0, %v9315_v63 }
0x308f   :  { %v12006_v3 = vpop.f32.mrf.mxu0 }
0x3090   :  { %9477 = vrot.lane.b32.xlu0 %v12006_v3, %s13147_s29 }
0x3091   :  { %v9464_v8 = vpop.f32.mrf.mxu0 }
0x3092   :  { %9475 = vrot.lane.b32.xlu1 %v9464_v8, %s13147_s29  ;;  %s13161_s29 = smov 10  }
0x3093   :  { %s9657_s21 = sld [smem:[%s15527_s0 + %s13161_s29]]  }
0x3094   :  { %9572 = vperm.xlu0 %12064, %v9569_v7  }
0x3096   :  { %9575 = vperm.xlu1 %12065, %v9570_v28  }
0x3098   :  { %9595 = vperm.xlu0 %12064, %v9592_v24  }
0x3099   :  { %v9483_v5 = vld [vmem:[%s9657_s21] sm:$0x7] }
0x309a   :  { %9598 = vperm.xlu1 %12065, %v9593_v18  }
0x309c   :  { %9618 = vperm.xlu0 %12064, %v9615_v6  }
0x309e   :  { %9621 = vperm.xlu1 %12065, %v9616_v29  }
0x30a0   :  { %9560 = vperm.xlu0 %12064, %v9557_v48  }
0x3102   :  { %v9478_v4 = vpop.permute.xlu0 %9477 }
0x3103   :  { %v9482_v15 = vsel %vm650_vm3, %v11991_v32, %v9478_v4 }
0x3104   :  { %12008 = vmatpush3.msra.mxu1 %v9482_v15  ;;  %v9476_v62 = vpop.permute.xlu1 %9475 }
0x3105   :  { %v9481_v34 = vsel %vm650_vm3, %v9389_v37, %v9476_v62  ;;  %12009 = vmatprep.subr.mxu1 %v15554_v47 }
0x3106   :  { %12010 = vmatpush3.msra.mxu1 %v9481_v34 }
0x3107   :  { %12012 = vmatmul.mubr.msk.f32.vlgmr.msra.gmra.mxu1 %vm439_vm2, %v9483_v5 }
0x310f   :  { %v9573_v20 = vpop.permute.xlu0 %9572 }
0x3110   :  { %vm9577_vm6 = vcmp.eq.s32.totalorder %v9573_v20, 1 }
0x3111   :  { %v9579_v55 = vsel %vm9577_vm6, %v9481_v34, -inf  ;;  %v9576_v35 = vpop.permute.xlu1 %9575 }
0x3112   :  { %vm9578_vm7 = vcmp.eq.s32.totalorder %v9576_v35, 1  ;;  %v9581_v11 = vsel %vm1251_vm4, %v9579_v55, -inf }
0x3113   :  { %v9580_v49 = vsel %vm9578_vm7, %v9482_v15, -inf  ;;  %v9596_v2 = vpop.permute.xlu0 %9595 }
0x3114   :  { %v9582_v27 = vsel %vm1251_vm4, %v9580_v49, -inf  ;;  %vm9600_vm8 = vcmp.eq.s32.totalorder %v9596_v2, 1 }
0x3115   :  { %v9583_v0 = vmax.f32 %v9581_v11, %v9582_v27  ;;  %v9602_v63 = vsel %vm9600_vm8, %v9481_v34, -inf  ;;  %v9599_v45 = vpop.permute.xlu1 %9598 }
0x3116   :  { %vm9601_vm3 = vcmp.eq.s32.totalorder %v9599_v45, 1  ;;  %v9604_v44 = vsel %vm1251_vm4, %v9602_v63, -inf }
0x3117   :  { %v9584_v47 = vrot.slane %v9583_v0, 4  ;;  %v9603_v42 = vsel %vm9601_vm3, %v9482_v15, -inf  ;;  %v9619_v54 = vpop.permute.xlu0 %9618 }
0x3118   :  { %v9605_v59 = vsel %vm1251_vm4, %v9603_v42, -inf  ;;  %vm9623_vm2 = vcmp.eq.s32.totalorder %v9619_v54, 1 }
0x3119   :  { %v9585_v12 = vmax.f32 %v9583_v0, %v9584_v47  ;;  %v9606_v58 = vmax.f32 %v9604_v44, %v9605_v59  ;;  %v9625_v51 = vsel %vm9623_vm2, %v9481_v34, -inf  ;;  %v9622_v14 = vpop.permute.xlu1 %9621 }
0x311a   :  { %vm9624_vm9 = vcmp.eq.s32.totalorder %v9622_v14, 1  ;;  %v9627_v43 = vsel %vm1251_vm4, %v9625_v51, -inf }
0x311b   :  { %v9607_v22 = vrot.slane %v9606_v58, 4  ;;  %v9626_v17 = vsel %vm9624_vm9, %v9482_v15, -inf  ;;  %v9586_v38 = vrot.slane %v9585_v12, 2  ;;  %v9561_v19 = vpop.permute.xlu0 %9560 }
0x311c   :  { %v9628_v1 = vsel %vm1251_vm4, %v9626_v17, -inf  ;;  %13078 = vrcp.f32 %v9561_v19 }
0x311d   :  { %v9608_v31 = vmax.f32 %v9606_v58, %v9607_v22  ;;  %v9629_v26 = vmax.f32 %v9627_v43, %v9628_v1  ;;  %v9587_v21 = vmax.f32 %v9585_v12, %v9586_v38 }
0x311f   :  { %v9609_v39 = vrot.slane %v9608_v31, 2  ;;  %v9630_v46 = vrot.slane %v9629_v26, 4  ;;  %v9588_v13 = vrot.slane %v9587_v21, 1 }
0x3121   :  { %v9610_v36 = vmax.f32 %v9608_v31, %v9609_v39  ;;  %v9631_v9 = vmax.f32 %v9629_v26, %v9630_v46  ;;  %v9589_v52 = vmax.f32 %v9587_v21, %v9588_v13 }
0x3123   :  { %v9611_v10 = vrot.slane %v9610_v36, 1  ;;  %v9632_v16 = vrot.slane %v9631_v9, 2 }
0x3125   :  { %v9633_v41 = vmax.f32 %v9631_v9, %v9632_v16  ;;  %v9612_v60 = vmax.f32 %v9610_v36, %v9611_v10 }
0x3127   :  { %v9634_v23 = vrot.slane %v9633_v41, 1  ;;  %v9636_v53 = vsel %vm6878_vm10, %v9589_v52, %v9612_v60 }
0x3129   :  { %v9635_v56 = vmax.f32 %v9633_v41, %v9634_v23  ;;  %v13079_v25 = vpop.eup %13078 }
0x312b   :  { %v9637_v30 = vsel %vm6880_vm11, %v9636_v53, %v9635_v56 }
0x312c   :  { %9639 = vrot.lane.b32.xlu1 %v9637_v30, %s13162_s22 }
0x319e   :  { %v9640_v57 = vpop.permute.xlu1 %9639 }
0x31c7   :  { %v9553_v33 = vpop.f32.mrf.mxu1 }
0x31c8   :  { %v9564_v40 = vmul.f32 %v13079_v25, %v9553_v33 }
0x31c9   :  { %v12013_v50 = vpop.f32.mrf.mxu1 }
0x31ca   :  { %v9642_v3 = vsel %vm1251_vm4, %v9564_v40, %v9640_v57 }
0x31cb   :  { %9643 = vst [vmem:[%s9687_s30] sm:$0x7] %v9642_v3 }

</bundles_post_ra>
